<compile_context>
chip_gen: v6e
topology: v6e:2x2x1
jax: 0.10.0
libtpu: 0.0.40
codegen_flags: <defaults>
</compile_context>

<pallas_src>
import jax
import jax.numpy as jnp
from jax.experimental import pallas as pl
from jax.experimental.pallas import tpu as pltpu

EPS = 1e-5


# --------------------------------------------------------------------------
# Small helpers
# --------------------------------------------------------------------------
def _vmem_limit_bytes():
    """~3/4 of physical VMEM: 96 MiB on v5e/v6e (128 MiB), 48 MiB on v7x (64 MiB)."""
    cap = 64 * 1024 * 1024
    try:
        cap = int(getattr(pltpu.get_tpu_info(), "vmem_capacity_bytes", cap))
    except Exception:
        pass
    return max(32 * 1024 * 1024, min((cap * 3) // 4, 100 * 1024 * 1024))


def _pick_tile(m, target=512):
    """Largest row tile <= target dividing m (prefer multiples of 16 for bf16)."""
    if m <= target:
        return m
    for step in (16, 8):
        t = (target // step) * step
        while t >= step:
            if m % t == 0:
                return t
            t -= step
    return m  # single un-tiled block fallback


def _full_spec(shape):
    """Whole-array VMEM block (weights / per-channel params), 1-D grid."""
    nd = len(shape)
    return pl.BlockSpec(shape, lambda i, _nd=nd: (0,) * _nd)


def _partial_stats_mxu(y):
    """Per-tile [sum; sum_of_squares] over rows via a ones-row MXU dot."""
    ones = jnp.ones((1, y.shape[0]), jnp.float32)
    s = jnp.dot(ones, y, preferred_element_type=jnp.float32)
    ss = jnp.dot(ones, y * y, preferred_element_type=jnp.float32)
    return jnp.concatenate([s, ss], axis=0)  # (2, C)


def _partial_stats_sum(y):
    """Per-tile [sum; sum_of_squares] over rows via XLU cross-sublane reduce."""
    s = jnp.sum(y, axis=0, keepdims=True)
    ss = jnp.sum(y * y, axis=0, keepdims=True)
    return jnp.concatenate([s, ss], axis=0)  # (2, C)


def _bn_affine(partial_stats, gamma, beta, count):
    """Fold full-batch training-mode BN stats into per-channel scale/shift (f32)."""
    s = jnp.sum(partial_stats, axis=0)                     # (2, C)
    mean = s[0] / count
    var = jnp.maximum(s[1] / count - mean * mean, 0.0)     # biased batch variance
    scale = gamma * jax.lax.rsqrt(var + EPS)               # (1, C)
    shift = beta - mean * scale                            # (1, C)
    return scale, shift


# --------------------------------------------------------------------------
# Kernels
# --------------------------------------------------------------------------
def _conv1_kernel(x_ref, w_ref, y_ref, stats_ref):
    """conv1 (1x1) = channel matmul (bf16 in / f32 acc) + BN1 partial stats."""
    x = x_ref[...].astype(jnp.bfloat16)
    y = jnp.dot(x, w_ref[...], preferred_element_type=jnp.float32)
    stats_ref[...] = _partial_stats_mxu(y).reshape(stats_ref.shape)
    y_ref[...] = y.astype(y_ref.dtype)          # bf16 store AFTER f32 stats


def _conv2_kernel(y1_ref, s1_ref, t1_ref, w2_ref, y2_ref, stats_ref, pad_ref):
    """BN1 + ReLU + conv2 (3x3, stride=1, pad=1) + BN2 partial stats.

    bf16 padded scratch; im2col over kw only (K=3P), f32 accumulation over the
    three kh shifts.  Halo border is zeroed once (step 0); interior rewritten
    every step.
    """
    _, H, W, P = y1_ref.shape

    @pl.when(pl.program_id(0) == 0)
    def _():
        pad_ref[...] = jnp.zeros(pad_ref.shape, pad_ref.dtype)

    y1n = jnp.maximum(
        y1_ref[...].astype(jnp.float32) * s1_ref[...] + t1_ref[...], 0.0)
    pad_ref[1:H + 1, 1:W + 1, :] = y1n.reshape(H, W, P).astype(pad_ref.dtype)

    acc = jnp.zeros((H * W, P), jnp.float32)
    for ky in range(3):
        patches = jnp.concatenate(
            [pad_ref[ky:ky + H, kx:kx + W, :] for kx in range(3)], axis=-1
        ).reshape(H * W, 3 * P)
        acc = acc + jnp.dot(patches, w2_ref[ky],
                            preferred_element_type=jnp.float32)

    stats_ref[...] = _partial_stats_sum(acc).reshape(stats_ref.shape)
    y2_ref[...] = acc.reshape(1, H, W, P).astype(y2_ref.dtype)


def _conv3_kernel(y2_ref, s2_ref, t2_ref, w3_ref, y3_ref, stats_ref):
    """BN2 + ReLU + conv3 (1x1) + BN3 partial stats."""
    a = jnp.maximum(
        y2_ref[...].astype(jnp.float32) * s2_ref[...] + t2_ref[...], 0.0)
    y3 = jnp.dot(a.astype(jnp.bfloat16), w3_ref[...],
                 preferred_element_type=jnp.float32)
    stats_ref[...] = _partial_stats_sum(y3).reshape(stats_ref.shape)
    y3_ref[...] = y3.astype(y3_ref.dtype)


def _residual_kernel(y3_ref, x_ref, s3_ref, t3_ref, out_ref):
    """BN3 + residual add + final ReLU (output aliases the residual buffer)."""
    y = y3_ref[...].astype(jnp.float32) * s3_ref[...] + t3_ref[...]
    out_ref[...] = jnp.maximum(y + x_ref[...], 0.0).astype(out_ref.dtype)


# --------------------------------------------------------------------------
# Wrappers
# --------------------------------------------------------------------------
def bottleneck_nhwc(x, params):
    """x: (N, H, W, Cin) f32.  params: kernel-layout bf16 weights + f32 BN params."""
    w1, g1, b1, w2, g2, b2, w3, g3, b3 = params
    N, H, W, Cin = x.shape
    P = w1.shape[1]
    Cout = w3.shape[1]
    assert Cout == Cin, "downsample is None => inplanes must equal planes*expansion"
    M = N * H * W
    tm = _pick_tile(M)
    gm = M // tm

    vmem = _vmem_limit_bytes()
    cp_par = pltpu.CompilerParams(dimension_semantics=("parallel",),
                                  vmem_limit_bytes=vmem)
    cp_arb = pltpu.CompilerParams(dimension_semantics=("arbitrary",),
                                  vmem_limit_bytes=vmem)

    xf = x.reshape(M, Cin)

    # ---- stage 1: conv1 (1x1) + BN1 partial stats (bf16 activations out) ----
    y1_raw, st1 = pl.pallas_call(
        _conv1_kernel,
        grid=(gm,),
        in_specs=[pl.BlockSpec((tm, Cin), lambda i: (i, 0)),
                  _full_spec(w1.shape)],
        out_specs=[pl.BlockSpec((tm, P), lambda i: (i, 0)),
                   pl.BlockSpec((1, 2, P), lambda i: (i, 0, 0))],
        out_shape=[jax.ShapeDtypeStruct((M, P), jnp.bfloat16),
                   jax.ShapeDtypeStruct((gm, 2, P), jnp.float32)],
        compiler_params=cp_par,
    )(xf, w1)
    scale1, shift1 = _bn_affine(st1, g1, b1, M)

    # ---- stage 2: BN1 + ReLU + conv2 (3x3) + BN2 partial stats ----
    y2_raw, st2 = pl.pallas_call(
        _conv2_kernel,
        grid=(N,),
        in_specs=[pl.BlockSpec((1, H, W, P), lambda n: (n, 0, 0, 0)),
                  _full_spec((1, P)),
                  _full_spec((1, P)),
                  _full_spec(w2.shape)],
        out_specs=[pl.BlockSpec((1, H, W, P), lambda n: (n, 0, 0, 0)),
                   pl.BlockSpec((1, 2, P), lambda n: (n, 0, 0))],
        out_shape=[jax.ShapeDtypeStruct((N, H, W, P), jnp.bfloat16),
                   jax.ShapeDtypeStruct((N, 2, P), jnp.float32)],
        scratch_shapes=[pltpu.VMEM((H + 2, W + 2, P), jnp.bfloat16)],
        compiler_params=cp_arb,  # persistent halo scratch => sequential axis
    )(y1_raw.reshape(N, H, W, P), scale1, shift1, w2)
    scale2, shift2 = _bn_affine(st2, g2, b2, M)

    # ---- stage 3: BN2 + ReLU + conv3 (1x1) + BN3 partial stats ----
    y3_raw, st3 = pl.pallas_call(
        _conv3_kernel,
        grid=(gm,),
        in_specs=[pl.BlockSpec((tm, P), lambda i: (i, 0)),
                  _full_spec((1, P)),
                  _full_spec((1, P)),
                  _full_spec(w3.shape)],
        out_specs=[pl.BlockSpec((tm, Cout), lambda i: (i, 0)),
                   pl.BlockSpec((1, 2, Cout), lambda i: (i, 0, 0))],
        out_shape=[jax.ShapeDtypeStruct((M, Cout), jnp.bfloat16),
                   jax.ShapeDtypeStruct((gm, 2, Cout), jnp.float32)],
        compiler_params=cp_par,
    )(y2_raw.reshape(M, P), scale2, shift2, w3)
    scale3, shift3 = _bn_affine(st3, g3, b3, M)

    # ---- stage 4: BN3 + residual add + ReLU (writes into the residual buffer) ----
    out = pl.pallas_call(
        _residual_kernel,
        grid=(gm,),
        in_specs=[pl.BlockSpec((tm, Cout), lambda i: (i, 0)),
                  pl.BlockSpec((tm, Cin), lambda i: (i, 0)),
                  _full_spec((1, Cout)),
                  _full_spec((1, Cout))],
        out_specs=pl.BlockSpec((tm, Cout), lambda i: (i, 0)),
        out_shape=jax.ShapeDtypeStruct((M, Cout), x.dtype),
        input_output_aliases={1: 0},   # reuse xf's HBM buffer for the output
        compiler_params=cp_par,
    )(y3_raw, xf, scale3, shift3)

    return out.reshape(N, H, W, Cout)


def bottleneck_nchw(x_nchw, params):
    # NCHW <-> NHWC only at the boundary; in a full network keep activations
    # NHWC between blocks so these transposes are paid once.
    x = jnp.transpose(x_nchw, (0, 2, 3, 1))
    out = bottleneck_nhwc(x, params)
    return jnp.transpose(out, (0, 3, 1, 2))


# --------------------------------------------------------------------------
# Pure-JAX f32 reference (PyTorch-layout weights, training-mode BN)
# --------------------------------------------------------------------------
def _reference_nchw(x, tparams):
    w1_t, g1, b1, w2_t, g2, b2, w3_t, g3, b3 = tparams

    def conv(a, w, pad):
        return jax.lax.conv_general_dilated(
            a, w, window_strides=(1, 1), padding=[(pad, pad), (pad, pad)],
            dimension_numbers=("NCHW", "OIHW", "NCHW"))

    def bn(a, g, b):
        mean = jnp.mean(a, axis=(0, 2, 3), keepdims=True)
        var = jnp.var(a, axis=(0, 2, 3), keepdims=True)
        return ((a - mean) * jax.lax.rsqrt(var + EPS) * g.reshape(1, -1, 1, 1)
                + b.reshape(1, -1, 1, 1))

    out = jax.nn.relu(bn(conv(x, w1_t, 0), g1, b1))
    out = jax.nn.relu(bn(conv(out, w2_t, 1), g2, b2))
    out = bn(conv(out, w3_t, 0), g3, b3)
    return jax.nn.relu(out + x)


if __name__ == "__main__":
    key = jax.random.PRNGKey(0)
    N, H, W = 2, 16, 16
    planes = 4
    expansion = 4                      # Bottleneck.expansion
    inplanes = planes * expansion      # residual add requires Cin == Cout (downsample=None)
    Cout = planes * expansion

    keys = jax.random.split(key, 10)

    # PyTorch conv-layout weights, then re-layout / cast (bf16) for the kernels.
    w1_t = jax.random.normal(keys[0], (planes, inplanes, 1, 1), jnp.float32) * 0.1  # conv1
    w2_t = jax.random.normal(keys[1], (planes, planes, 3, 3), jnp.float32) * 0.1    # conv2
    w3_t = jax.random.normal(keys[2], (Cout, planes, 1, 1), jnp.float32) * 0.1      # conv3

    w1 = jnp.transpose(w1_t[:, :, 0, 0], (1, 0)).astype(jnp.bfloat16)                # (Cin, P)
    w2 = jnp.transpose(w2_t, (2, 3, 1, 0)).reshape(3, 3 * planes, planes)            # (3, 3P, P)
    w2 = w2.astype(jnp.bfloat16)
    w3 = jnp.transpose(w3_t[:, :, 0, 0], (1, 0)).astype(jnp.bfloat16)                # (P, Cout)

    g1 = 1.0 + 0.1 * jax.random.normal(keys[3], (1, planes), jnp.float32)
    b1 = 0.1 * jax.random.normal(keys[4], (1, planes), jnp.float32)
    g2 = 1.0 + 0.1 * jax.random.normal(keys[5], (1, planes), jnp.float32)
    b2 = 0.1 * jax.random.normal(keys[6], (1, planes), jnp.float32)
    g3 = 1.0 + 0.1 * jax.random.normal(keys[7], (1, Cout), jnp.float32)
    b3 = 0.1 * jax.random.normal(keys[8], (1, Cout), jnp.float32)

    x = jax.random.normal(keys[9], (N, inplanes, H, W), jnp.float32)

    params = (w1, g1, b1, w2, g2, b2, w3, g3, b3)
    y = jax.jit(bottleneck_nchw)(x, params)
    jax.block_until_ready(y)
    assert y.shape == (N, Cout, H, W)

    # Sanity vs. f32 reference (bf16 matmuls / bf16 intermediates => loose tol).
    ref = _reference_nchw(x, (w1_t, g1, b1, w2_t, g2, b2, w3_t, g3, b3))
    err = float(jnp.max(jnp.abs(y.astype(jnp.float32) - ref)))
    assert err < 2e-1, f"kernel deviates from f32 reference: max abs err {err}"

    print("KERNEL_OK")
</pallas_src>

<mosaic_0001>
module attributes {stable_mosaic.version = 11 : i64} {
  func.func @_conv1_kernel(%arg0: i32, %arg1: memref<512x16xf32, #tpu.memory_space<vmem>>, %arg2: memref<16x4xbf16, #tpu.memory_space<vmem>>, %arg3: memref<512x4xbf16, #tpu.memory_space<vmem>>, %arg4: memref<1x2x4xf32, #tpu.memory_space<vmem>>) attributes {dimension_semantics = [#tpu.dimension_semantics<parallel>], iteration_bounds = array<i64: 1>, scalar_prefetch = 0 : i64, scratch_operands = 0 : i64, tpu.core_type = #tpu.core_type<tc>, window_params = [{transform_indices = @transform_0, window_bounds = array<i64: 512, 16>}, {pipeline_mode = #tpu.pipeline_mode<synchronous>, transform_indices = @transform_1, window_bounds = array<i64: 16, 4>}, {transform_indices = @transform_2, window_bounds = array<i64: 512, 4>}, {transform_indices = @transform_3, window_bounds = array<i64: 1, 2, 4>}]} {
    %c0 = arith.constant 0 : index
    %c0_0 = arith.constant 0 : index
    %0 = vector.load %arg1[%c0, %c0_0] : memref<512x16xf32, #tpu.memory_space<vmem>>, vector<512x16xf32>
    %1 = arith.truncf %0 : vector<512x16xf32> to vector<512x16xbf16>
    %c0_1 = arith.constant 0 : index
    %c0_2 = arith.constant 0 : index
    %2 = vector.load %arg2[%c0_1, %c0_2] : memref<16x4xbf16, #tpu.memory_space<vmem>>, vector<16x4xbf16>
    %cst = arith.constant dense<0.000000e+00> : vector<512x4xf32>
    %3 = tpu.matmul %1, %2, %cst {dimension_numbers = #tpu.dot_dimension_numbers<[1], [0], [0], [1], [0, 0, 1, 1], [], []>} : vector<512x16xbf16>, vector<16x4xbf16>, vector<512x4xf32> -> vector<512x4xf32>
    %cst_3 = arith.constant 1.000000e+00 : f32
    %4 = vector.broadcast %cst_3 : f32 to vector<1x512xf32>
    %cst_4 = arith.constant dense<0.000000e+00> : vector<1x4xf32>
    %5 = tpu.matmul %4, %3, %cst_4 {dimension_numbers = #tpu.dot_dimension_numbers<[1], [0], [0], [1], [0, 0, 1, 1], [], []>} : vector<1x512xf32>, vector<512x4xf32>, vector<1x4xf32> -> vector<1x4xf32>
    %6 = arith.mulf %3, %3 : vector<512x4xf32>
    %cst_5 = arith.constant dense<0.000000e+00> : vector<1x4xf32>
    %7 = tpu.matmul %4, %6, %cst_5 {dimension_numbers = #tpu.dot_dimension_numbers<[1], [0], [0], [1], [0, 0, 1, 1], [], []>} : vector<1x512xf32>, vector<512x4xf32>, vector<1x4xf32> -> vector<1x4xf32>
    %8 = tpu.concatenate %5, %7 in 0 : vector<1x4xf32>, vector<1x4xf32> -> vector<2x4xf32>
    %9 = vector.shape_cast %8 : vector<2x4xf32> to vector<1x2x4xf32>
    %c0_6 = arith.constant 0 : index
    %c0_7 = arith.constant 0 : index
    %c0_8 = arith.constant 0 : index
    %10 = vector.load %arg4[%c0_6, %c0_7, %c0_8] : memref<1x2x4xf32, #tpu.memory_space<vmem>>, vector<1x2x4xf32>
    tpu.vector_store %arg4[%c0_6, %c0_7, %c0_8], %9 {strides = array<i32>} : memref<1x2x4xf32, #tpu.memory_space<vmem>>, vector<1x2x4xf32>,
    %11 = arith.truncf %3 : vector<512x4xf32> to vector<512x4xbf16>
    %c0_9 = arith.constant 0 : index
    %c0_10 = arith.constant 0 : index
    %12 = vector.load %arg3[%c0_9, %c0_10] : memref<512x4xbf16, #tpu.memory_space<vmem>>, vector<512x4xbf16>
    tpu.vector_store %arg3[%c0_9, %c0_10], %11 {strides = array<i32>} : memref<512x4xbf16, #tpu.memory_space<vmem>>, vector<512x4xbf16>,
    return
  }
  func.func @transform_0(%arg0: i32) -> (i32, i32) {
    %c0_i32 = arith.constant 0 : i32
    %c0_i32_0 = arith.constant 0 : i32
    return %arg0, %c0_i32 : i32, i32
  }
  func.func @transform_1(%arg0: i32) -> (i32, i32) {
    %c0_i32 = arith.constant 0 : i32
    %c0_i32_0 = arith.constant 0 : i32
    %c0_i32_1 = arith.constant 0 : i32
    return %c0_i32, %c0_i32_0 : i32, i32
  }
  func.func @transform_2(%arg0: i32) -> (i32, i32) {
    %c0_i32 = arith.constant 0 : i32
    %c0_i32_0 = arith.constant 0 : i32
    return %arg0, %c0_i32 : i32, i32
  }
  func.func @transform_3(%arg0: i32) -> (i32, i32, i32) {
    %c0_i32 = arith.constant 0 : i32
    %c0_i32_0 = arith.constant 0 : i32
    %c0_i32_1 = arith.constant 0 : i32
    return %arg0, %c0_i32, %c0_i32_0 : i32, i32, i32
  }
}

module attributes {stable_mosaic.version = 11 : i64} {
  func.func @_conv2_kernel(%arg0: i32, %arg1: memref<1x16x16x4xbf16, #tpu.memory_space<vmem>>, %arg2: memref<1x4xf32, #tpu.memory_space<vmem>>, %arg3: memref<1x4xf32, #tpu.memory_space<vmem>>, %arg4: memref<3x12x4xbf16, #tpu.memory_space<vmem>>, %arg5: memref<1x16x16x4xbf16, #tpu.memory_space<vmem>>, %arg6: memref<1x2x4xf32, #tpu.memory_space<vmem>>, %arg7: memref<18x18x4xbf16, #tpu.memory_space<vmem>>) attributes {dimension_semantics = [#tpu.dimension_semantics<arbitrary>], iteration_bounds = array<i64: 2>, scalar_prefetch = 0 : i64, scratch_operands = 1 : i64, tpu.core_type = #tpu.core_type<tc>, window_params = [{transform_indices = @transform_0, window_bounds = array<i64: 1, 16, 16, 4>}, {pipeline_mode = #tpu.pipeline_mode<synchronous>, transform_indices = @transform_1, window_bounds = array<i64: 1, 4>}, {pipeline_mode = #tpu.pipeline_mode<synchronous>, transform_indices = @transform_2, window_bounds = array<i64: 1, 4>}, {pipeline_mode = #tpu.pipeline_mode<synchronous>, transform_indices = @transform_3, window_bounds = array<i64: 3, 12, 4>}, {transform_indices = @transform_4, window_bounds = array<i64: 1, 16, 16, 4>}, {transform_indices = @transform_5, window_bounds = array<i64: 1, 2, 4>}]} {
    %c0_i32 = arith.constant 0 : i32
    %0 = arith.cmpi eq, %arg0, %c0_i32 : i32
    %1 = arith.extui %0 : i1 to i32
    %c0_i32_0 = arith.constant 0 : i32
    %2 = arith.cmpi ne, %1, %c0_i32_0 : i32
    scf.if %2 {
      %cst_58 = arith.constant 0.000000e+00 : bf16
      %57 = vector.broadcast %cst_58 : bf16 to vector<18x18x4xbf16>
      %c0_59 = arith.constant 0 : index
      %c0_60 = arith.constant 0 : index
      %c0_61 = arith.constant 0 : index
      %58 = vector.load %arg7[%c0_59, %c0_60, %c0_61] : memref<18x18x4xbf16, #tpu.memory_space<vmem>>, vector<18x18x4xbf16>
      tpu.vector_store %arg7[%c0_59, %c0_60, %c0_61], %57 {strides = array<i32>} : memref<18x18x4xbf16, #tpu.memory_space<vmem>>, vector<18x18x4xbf16>,
    } else {
    }
    %c0 = arith.constant 0 : index
    %c0_1 = arith.constant 0 : index
    %c0_2 = arith.constant 0 : index
    %c0_3 = arith.constant 0 : index
    %3 = vector.load %arg1[%c0, %c0_1, %c0_2, %c0_3] : memref<1x16x16x4xbf16, #tpu.memory_space<vmem>>, vector<1x16x16x4xbf16>
    %4 = arith.extf %3 : vector<1x16x16x4xbf16> to vector<1x16x16x4xf32>
    %c0_4 = arith.constant 0 : index
    %c0_5 = arith.constant 0 : index
    %5 = vector.load %arg2[%c0_4, %c0_5] : memref<1x4xf32, #tpu.memory_space<vmem>>, vector<1x4xf32>
    %6 = vector.shape_cast %5 : vector<1x4xf32> to vector<1x1x1x4xf32>
    %7 = vector.broadcast %6 : vector<1x1x1x4xf32> to vector<1x16x16x4xf32>
    %8 = arith.mulf %4, %7 : vector<1x16x16x4xf32>
    %c0_6 = arith.constant 0 : index
    %c0_7 = arith.constant 0 : index
    %9 = vector.load %arg3[%c0_6, %c0_7] : memref<1x4xf32, #tpu.memory_space<vmem>>, vector<1x4xf32>
    %10 = vector.shape_cast %9 : vector<1x4xf32> to vector<1x1x1x4xf32>
    %11 = vector.broadcast %10 : vector<1x1x1x4xf32> to vector<1x16x16x4xf32>
    %12 = arith.addf %8, %11 : vector<1x16x16x4xf32>
    %cst = arith.constant 0.000000e+00 : f32
    %13 = vector.broadcast %cst : f32 to vector<1x16x16x4xf32>
    %14 = arith.maximumf %12, %13 : vector<1x16x16x4xf32>
    %15 = vector.shape_cast %14 : vector<1x16x16x4xf32> to vector<16x16x4xf32>
    %16 = arith.truncf %15 : vector<16x16x4xf32> to vector<16x16x4xbf16>
    %c1 = arith.constant 1 : index
    %c1_8 = arith.constant 1 : index
    %c0_9 = arith.constant 0 : index
    %17 = vector.load %arg7[%c1, %c1_8, %c0_9] : memref<18x18x4xbf16, #tpu.memory_space<vmem>>, vector<16x16x4xbf16>
    tpu.vector_store %arg7[%c1, %c1_8, %c0_9], %16 {strides = array<i32>} : memref<18x18x4xbf16, #tpu.memory_space<vmem>>, vector<16x16x4xbf16>,
    %cst_10 = arith.constant 0.000000e+00 : f32
    %18 = vector.broadcast %cst_10 : f32 to vector<256x4xf32>
    %c0_11 = arith.constant 0 : index
    %c0_12 = arith.constant 0 : index
    %c0_13 = arith.constant 0 : index
    %19 = vector.load %arg7[%c0_11, %c0_12, %c0_13] : memref<18x18x4xbf16, #tpu.memory_space<vmem>>, vector<16x16x4xbf16>
    %c0_14 = arith.constant 0 : index
    %c1_15 = arith.constant 1 : index
    %c0_16 = arith.constant 0 : index
    %20 = vector.load %arg7[%c0_14, %c1_15, %c0_16] : memref<18x18x4xbf16, #tpu.memory_space<vmem>>, vector<16x16x4xbf16>
    %c0_17 = arith.constant 0 : index
    %c2 = arith.constant 2 : index
    %c0_18 = arith.constant 0 : index
    %21 = vector.load %arg7[%c0_17, %c2, %c0_18] : memref<18x18x4xbf16, #tpu.memory_space<vmem>>, vector<16x16x4xbf16>
    %22 = tpu.concatenate %19, %20, %21 in 2 : vector<16x16x4xbf16>, vector<16x16x4xbf16>, vector<16x16x4xbf16> -> vector<16x16x12xbf16>
    %23 = vector.shape_cast %22 : vector<16x16x12xbf16> to vector<256x12xbf16>
    %c0_19 = arith.constant 0 : index
    %c0_20 = arith.constant 0 : index
    %c0_21 = arith.constant 0 : index
    %24 = vector.load %arg4[%c0_19, %c0_20, %c0_21] : memref<3x12x4xbf16, #tpu.memory_space<vmem>>, vector<1x12x4xbf16>
    %25 = vector.shape_cast %24 : vector<1x12x4xbf16> to vector<12x4xbf16>
    %cst_22 = arith.constant dense<0.000000e+00> : vector<256x4xf32>
    %26 = tpu.matmul %23, %25, %cst_22 {dimension_numbers = #tpu.dot_dimension_numbers<[1], [0], [0], [1], [0, 0, 1, 1], [], []>} : vector<256x12xbf16>, vector<12x4xbf16>, vector<256x4xf32> -> vector<256x4xf32>
    %27 = arith.addf %18, %26 : vector<256x4xf32>
    %c1_23 = arith.constant 1 : index
    %c0_24 = arith.constant 0 : index
    %c0_25 = arith.constant 0 : index
    %28 = vector.load %arg7[%c1_23, %c0_24, %c0_25] : memref<18x18x4xbf16, #tpu.memory_space<vmem>>, vector<16x16x4xbf16>
    %c1_26 = arith.constant 1 : index
    %c1_27 = arith.constant 1 : index
    %c0_28 = arith.constant 0 : index
    %29 = vector.load %arg7[%c1_26, %c1_27, %c0_28] : memref<18x18x4xbf16, #tpu.memory_space<vmem>>, vector<16x16x4xbf16>
    %c1_29 = arith.constant 1 : index
    %c2_30 = arith.constant 2 : index
    %c0_31 = arith.constant 0 : index
    %30 = vector.load %arg7[%c1_29, %c2_30, %c0_31] : memref<18x18x4xbf16, #tpu.memory_space<vmem>>, vector<16x16x4xbf16>
    %31 = tpu.concatenate %28, %29, %30 in 2 : vector<16x16x4xbf16>, vector<16x16x4xbf16>, vector<16x16x4xbf16> -> vector<16x16x12xbf16>
    %32 = vector.shape_cast %31 : vector<16x16x12xbf16> to vector<256x12xbf16>
    %c1_32 = arith.constant 1 : index
    %c0_33 = arith.constant 0 : index
    %c0_34 = arith.constant 0 : index
    %33 = vector.load %arg4[%c1_32, %c0_33, %c0_34] : memref<3x12x4xbf16, #tpu.memory_space<vmem>>, vector<1x12x4xbf16>
    %34 = vector.shape_cast %33 : vector<1x12x4xbf16> to vector<12x4xbf16>
    %cst_35 = arith.constant dense<0.000000e+00> : vector<256x4xf32>
    %35 = tpu.matmul %32, %34, %cst_35 {dimension_numbers = #tpu.dot_dimension_numbers<[1], [0], [0], [1], [0, 0, 1, 1], [], []>} : vector<256x12xbf16>, vector<12x4xbf16>, vector<256x4xf32> -> vector<256x4xf32>
    %36 = arith.addf %27, %35 : vector<256x4xf32>
    %c2_36 = arith.constant 2 : index
    %c0_37 = arith.constant 0 : index
    %c0_38 = arith.constant 0 : index
    %37 = vector.load %arg7[%c2_36, %c0_37, %c0_38] : memref<18x18x4xbf16, #tpu.memory_space<vmem>>, vector<16x16x4xbf16>
    %c2_39 = arith.constant 2 : index
    %c1_40 = arith.constant 1 : index
    %c0_41 = arith.constant 0 : index
    %38 = vector.load %arg7[%c2_39, %c1_40, %c0_41] : memref<18x18x4xbf16, #tpu.memory_space<vmem>>, vector<16x16x4xbf16>
    %c2_42 = arith.constant 2 : index
    %c2_43 = arith.constant 2 : index
    %c0_44 = arith.constant 0 : index
    %39 = vector.load %arg7[%c2_42, %c2_43, %c0_44] : memref<18x18x4xbf16, #tpu.memory_space<vmem>>, vector<16x16x4xbf16>
    %40 = tpu.concatenate %37, %38, %39 in 2 : vector<16x16x4xbf16>, vector<16x16x4xbf16>, vector<16x16x4xbf16> -> vector<16x16x12xbf16>
    %41 = vector.shape_cast %40 : vector<16x16x12xbf16> to vector<256x12xbf16>
    %c2_45 = arith.constant 2 : index
    %c0_46 = arith.constant 0 : index
    %c0_47 = arith.constant 0 : index
    %42 = vector.load %arg4[%c2_45, %c0_46, %c0_47] : memref<3x12x4xbf16, #tpu.memory_space<vmem>>, vector<1x12x4xbf16>
    %43 = vector.shape_cast %42 : vector<1x12x4xbf16> to vector<12x4xbf16>
    %cst_48 = arith.constant dense<0.000000e+00> : vector<256x4xf32>
    %44 = tpu.matmul %41, %43, %cst_48 {dimension_numbers = #tpu.dot_dimension_numbers<[1], [0], [0], [1], [0, 0, 1, 1], [], []>} : vector<256x12xbf16>, vector<12x4xbf16>, vector<256x4xf32> -> vector<256x4xf32>
    %45 = arith.addf %36, %44 : vector<256x4xf32>
    %cst_49 = arith.constant dense<0.000000e+00> : vector<4xf32>
    %46 = vector.multi_reduction <add>, %45, %cst_49 [0] : vector<256x4xf32> to vector<4xf32>
    %47 = vector.shape_cast %46 : vector<4xf32> to vector<1x4xf32>
    %48 = arith.mulf %45, %45 : vector<256x4xf32>
    %cst_50 = arith.constant dense<0.000000e+00> : vector<4xf32>
    %49 = vector.multi_reduction <add>, %48, %cst_50 [0] : vector<256x4xf32> to vector<4xf32>
    %50 = vector.shape_cast %49 : vector<4xf32> to vector<1x4xf32>
    %51 = tpu.concatenate %47, %50 in 0 : vector<1x4xf32>, vector<1x4xf32> -> vector<2x4xf32>
    %52 = vector.shape_cast %51 : vector<2x4xf32> to vector<1x2x4xf32>
    %c0_51 = arith.constant 0 : index
    %c0_52 = arith.constant 0 : index
    %c0_53 = arith.constant 0 : index
    %53 = vector.load %arg6[%c0_51, %c0_52, %c0_53] : memref<1x2x4xf32, #tpu.memory_space<vmem>>, vector<1x2x4xf32>
    tpu.vector_store %arg6[%c0_51, %c0_52, %c0_53], %52 {strides = array<i32>} : memref<1x2x4xf32, #tpu.memory_space<vmem>>, vector<1x2x4xf32>,
    %54 = vector.shape_cast %45 : vector<256x4xf32> to vector<1x16x16x4xf32>
    %55 = arith.truncf %54 : vector<1x16x16x4xf32> to vector<1x16x16x4xbf16>
    %c0_54 = arith.constant 0 : index
    %c0_55 = arith.constant 0 : index
    %c0_56 = arith.constant 0 : index
    %c0_57 = arith.constant 0 : index
    %56 = vector.load %arg5[%c0_54, %c0_55, %c0_56, %c0_57] : memref<1x16x16x4xbf16, #tpu.memory_space<vmem>>, vector<1x16x16x4xbf16>
    tpu.vector_store %arg5[%c0_54, %c0_55, %c0_56, %c0_57], %55 {strides = array<i32>} : memref<1x16x16x4xbf16, #tpu.memory_space<vmem>>, vector<1x16x16x4xbf16>,
    return
  }
  func.func @transform_0(%arg0: i32) -> (i32, i32, i32, i32) {
    %c0_i32 = arith.constant 0 : i32
    %c0_i32_0 = arith.constant 0 : i32
    %c0_i32_1 = arith.constant 0 : i32
    %c0_i32_2 = arith.constant 0 : i32
    return %arg0, %c0_i32, %c0_i32_0, %c0_i32_1 : i32, i32, i32, i32
  }
  func.func @transform_1(%arg0: i32) -> (i32, i32) {
    %c0_i32 = arith.constant 0 : i32
    %c0_i32_0 = arith.constant 0 : i32
    %c0_i32_1 = arith.constant 0 : i32
    return %c0_i32, %c0_i32_0 : i32, i32
  }
  func.func @transform_2(%arg0: i32) -> (i32, i32) {
    %c0_i32 = arith.constant 0 : i32
    %c0_i32_0 = arith.constant 0 : i32
    %c0_i32_1 = arith.constant 0 : i32
    return %c0_i32, %c0_i32_0 : i32, i32
  }
  func.func @transform_3(%arg0: i32) -> (i32, i32, i32) {
    %c0_i32 = arith.constant 0 : i32
    %c0_i32_0 = arith.constant 0 : i32
    %c0_i32_1 = arith.constant 0 : i32
    %c0_i32_2 = arith.constant 0 : i32
    return %c0_i32, %c0_i32_0, %c0_i32_1 : i32, i32, i32
  }
  func.func @transform_4(%arg0: i32) -> (i32, i32, i32, i32) {
    %c0_i32 = arith.constant 0 : i32
    %c0_i32_0 = arith.constant 0 : i32
    %c0_i32_1 = arith.constant 0 : i32
    %c0_i32_2 = arith.constant 0 : i32
    return %arg0, %c0_i32, %c0_i32_0, %c0_i32_1 : i32, i32, i32, i32
  }
  func.func @transform_5(%arg0: i32) -> (i32, i32, i32) {
    %c0_i32 = arith.constant 0 : i32
    %c0_i32_0 = arith.constant 0 : i32
    %c0_i32_1 = arith.constant 0 : i32
    return %arg0, %c0_i32, %c0_i32_0 : i32, i32, i32
  }
}

module attributes {stable_mosaic.version = 11 : i64} {
  func.func @_residual_kernel(%arg0: i32, %arg1: memref<512x16xbf16, #tpu.memory_space<vmem>>, %arg2: memref<512x16xf32, #tpu.memory_space<vmem>>, %arg3: memref<1x16xf32, #tpu.memory_space<vmem>>, %arg4: memref<1x16xf32, #tpu.memory_space<vmem>>, %arg5: memref<512x16xf32, #tpu.memory_space<vmem>>) attributes {dimension_semantics = [#tpu.dimension_semantics<parallel>], iteration_bounds = array<i64: 1>, scalar_prefetch = 0 : i64, scratch_operands = 0 : i64, tpu.core_type = #tpu.core_type<tc>, window_params = [{transform_indices = @transform_0, window_bounds = array<i64: 512, 16>}, {transform_indices = @transform_1, window_bounds = array<i64: 512, 16>}, {pipeline_mode = #tpu.pipeline_mode<synchronous>, transform_indices = @transform_2, window_bounds = array<i64: 1, 16>}, {pipeline_mode = #tpu.pipeline_mode<synchronous>, transform_indices = @transform_3, window_bounds = array<i64: 1, 16>}, {transform_indices = @transform_4, window_bounds = array<i64: 512, 16>}]} {
    %c0 = arith.constant 0 : index
    %c0_0 = arith.constant 0 : index
    %0 = vector.load %arg1[%c0, %c0_0] : memref<512x16xbf16, #tpu.memory_space<vmem>>, vector<512x16xbf16>
    %1 = arith.extf %0 : vector<512x16xbf16> to vector<512x16xf32>
    %c0_1 = arith.constant 0 : index
    %c0_2 = arith.constant 0 : index
    %2 = vector.load %arg3[%c0_1, %c0_2] : memref<1x16xf32, #tpu.memory_space<vmem>>, vector<1x16xf32>
    %3 = vector.broadcast %2 : vector<1x16xf32> to vector<512x16xf32>
    %4 = arith.mulf %1, %3 : vector<512x16xf32>
    %c0_3 = arith.constant 0 : index
    %c0_4 = arith.constant 0 : index
    %5 = vector.load %arg4[%c0_3, %c0_4] : memref<1x16xf32, #tpu.memory_space<vmem>>, vector<1x16xf32>
    %6 = vector.broadcast %5 : vector<1x16xf32> to vector<512x16xf32>
    %7 = arith.addf %4, %6 : vector<512x16xf32>
    %c0_5 = arith.constant 0 : index
    %c0_6 = arith.constant 0 : index
    %8 = vector.load %arg2[%c0_5, %c0_6] : memref<512x16xf32, #tpu.memory_space<vmem>>, vector<512x16xf32>
    %9 = arith.addf %7, %8 : vector<512x16xf32>
    %cst = arith.constant 0.000000e+00 : f32
    %10 = vector.broadcast %cst : f32 to vector<512x16xf32>
    %11 = arith.maximumf %9, %10 : vector<512x16xf32>
    %c0_7 = arith.constant 0 : index
    %c0_8 = arith.constant 0 : index
    %12 = vector.load %arg5[%c0_7, %c0_8] : memref<512x16xf32, #tpu.memory_space<vmem>>, vector<512x16xf32>
    tpu.vector_store %arg5[%c0_7, %c0_8], %11 {strides = array<i32>} : memref<512x16xf32, #tpu.memory_space<vmem>>, vector<512x16xf32>,
    return
  }
  func.func @transform_0(%arg0: i32) -> (i32, i32) {
    %c0_i32 = arith.constant 0 : i32
    %c0_i32_0 = arith.constant 0 : i32
    return %arg0, %c0_i32 : i32, i32
  }
  func.func @transform_1(%arg0: i32) -> (i32, i32) {
    %c0_i32 = arith.constant 0 : i32
    %c0_i32_0 = arith.constant 0 : i32
    return %arg0, %c0_i32 : i32, i32
  }
  func.func @transform_2(%arg0: i32) -> (i32, i32) {
    %c0_i32 = arith.constant 0 : i32
    %c0_i32_0 = arith.constant 0 : i32
    %c0_i32_1 = arith.constant 0 : i32
    return %c0_i32, %c0_i32_0 : i32, i32
  }
  func.func @transform_3(%arg0: i32) -> (i32, i32) {
    %c0_i32 = arith.constant 0 : i32
    %c0_i32_0 = arith.constant 0 : i32
    %c0_i32_1 = arith.constant 0 : i32
    return %c0_i32, %c0_i32_0 : i32, i32
  }
  func.func @transform_4(%arg0: i32) -> (i32, i32) {
    %c0_i32 = arith.constant 0 : i32
    %c0_i32_0 = arith.constant 0 : i32
    return %arg0, %c0_i32 : i32, i32
  }
}

module attributes {stable_mosaic.version = 11 : i64} {
  func.func @_conv3_kernel(%arg0: i32, %arg1: memref<512x4xbf16, #tpu.memory_space<vmem>>, %arg2: memref<1x4xf32, #tpu.memory_space<vmem>>, %arg3: memref<1x4xf32, #tpu.memory_space<vmem>>, %arg4: memref<4x16xbf16, #tpu.memory_space<vmem>>, %arg5: memref<512x16xbf16, #tpu.memory_space<vmem>>, %arg6: memref<1x2x16xf32, #tpu.memory_space<vmem>>) attributes {dimension_semantics = [#tpu.dimension_semantics<parallel>], iteration_bounds = array<i64: 1>, scalar_prefetch = 0 : i64, scratch_operands = 0 : i64, tpu.core_type = #tpu.core_type<tc>, window_params = [{transform_indices = @transform_0, window_bounds = array<i64: 512, 4>}, {pipeline_mode = #tpu.pipeline_mode<synchronous>, transform_indices = @transform_1, window_bounds = array<i64: 1, 4>}, {pipeline_mode = #tpu.pipeline_mode<synchronous>, transform_indices = @transform_2, window_bounds = array<i64: 1, 4>}, {pipeline_mode = #tpu.pipeline_mode<synchronous>, transform_indices = @transform_3, window_bounds = array<i64: 4, 16>}, {transform_indices = @transform_4, window_bounds = array<i64: 512, 16>}, {transform_indices = @transform_5, window_bounds = array<i64: 1, 2, 16>}]} {
    %c0 = arith.constant 0 : index
    %c0_0 = arith.constant 0 : index
    %0 = vector.load %arg1[%c0, %c0_0] : memref<512x4xbf16, #tpu.memory_space<vmem>>, vector<512x4xbf16>
    %1 = arith.extf %0 : vector<512x4xbf16> to vector<512x4xf32>
    %c0_1 = arith.constant 0 : index
    %c0_2 = arith.constant 0 : index
    %2 = vector.load %arg2[%c0_1, %c0_2] : memref<1x4xf32, #tpu.memory_space<vmem>>, vector<1x4xf32>
    %3 = vector.broadcast %2 : vector<1x4xf32> to vector<512x4xf32>
    %4 = arith.mulf %1, %3 : vector<512x4xf32>
    %c0_3 = arith.constant 0 : index
    %c0_4 = arith.constant 0 : index
    %5 = vector.load %arg3[%c0_3, %c0_4] : memref<1x4xf32, #tpu.memory_space<vmem>>, vector<1x4xf32>
    %6 = vector.broadcast %5 : vector<1x4xf32> to vector<512x4xf32>
    %7 = arith.addf %4, %6 : vector<512x4xf32>
    %cst = arith.constant 0.000000e+00 : f32
    %8 = vector.broadcast %cst : f32 to vector<512x4xf32>
    %9 = arith.maximumf %7, %8 : vector<512x4xf32>
    %10 = arith.truncf %9 : vector<512x4xf32> to vector<512x4xbf16>
    %c0_5 = arith.constant 0 : index
    %c0_6 = arith.constant 0 : index
    %11 = vector.load %arg4[%c0_5, %c0_6] : memref<4x16xbf16, #tpu.memory_space<vmem>>, vector<4x16xbf16>
    %cst_7 = arith.constant dense<0.000000e+00> : vector<512x16xf32>
    %12 = tpu.matmul %10, %11, %cst_7 {dimension_numbers = #tpu.dot_dimension_numbers<[1], [0], [0], [1], [0, 0, 1, 1], [], []>} : vector<512x4xbf16>, vector<4x16xbf16>, vector<512x16xf32> -> vector<512x16xf32>
    %cst_8 = arith.constant dense<0.000000e+00> : vector<16xf32>
    %13 = vector.multi_reduction <add>, %12, %cst_8 [0] : vector<512x16xf32> to vector<16xf32>
    %14 = vector.shape_cast %13 : vector<16xf32> to vector<1x16xf32>
    %15 = arith.mulf %12, %12 : vector<512x16xf32>
    %cst_9 = arith.constant dense<0.000000e+00> : vector<16xf32>
    %16 = vector.multi_reduction <add>, %15, %cst_9 [0] : vector<512x16xf32> to vector<16xf32>
    %17 = vector.shape_cast %16 : vector<16xf32> to vector<1x16xf32>
    %18 = tpu.concatenate %14, %17 in 0 : vector<1x16xf32>, vector<1x16xf32> -> vector<2x16xf32>
    %19 = vector.shape_cast %18 : vector<2x16xf32> to vector<1x2x16xf32>
    %c0_10 = arith.constant 0 : index
    %c0_11 = arith.constant 0 : index
    %c0_12 = arith.constant 0 : index
    %20 = vector.load %arg6[%c0_10, %c0_11, %c0_12] : memref<1x2x16xf32, #tpu.memory_space<vmem>>, vector<1x2x16xf32>
    tpu.vector_store %arg6[%c0_10, %c0_11, %c0_12], %19 {strides = array<i32>} : memref<1x2x16xf32, #tpu.memory_space<vmem>>, vector<1x2x16xf32>,
    %21 = arith.truncf %12 : vector<512x16xf32> to vector<512x16xbf16>
    %c0_13 = arith.constant 0 : index
    %c0_14 = arith.constant 0 : index
    %22 = vector.load %arg5[%c0_13, %c0_14] : memref<512x16xbf16, #tpu.memory_space<vmem>>, vector<512x16xbf16>
    tpu.vector_store %arg5[%c0_13, %c0_14], %21 {strides = array<i32>} : memref<512x16xbf16, #tpu.memory_space<vmem>>, vector<512x16xbf16>,
    return
  }
  func.func @transform_0(%arg0: i32) -> (i32, i32) {
    %c0_i32 = arith.constant 0 : i32
    %c0_i32_0 = arith.constant 0 : i32
    return %arg0, %c0_i32 : i32, i32
  }
  func.func @transform_1(%arg0: i32) -> (i32, i32) {
    %c0_i32 = arith.constant 0 : i32
    %c0_i32_0 = arith.constant 0 : i32
    %c0_i32_1 = arith.constant 0 : i32
    return %c0_i32, %c0_i32_0 : i32, i32
  }
  func.func @transform_2(%arg0: i32) -> (i32, i32) {
    %c0_i32 = arith.constant 0 : i32
    %c0_i32_0 = arith.constant 0 : i32
    %c0_i32_1 = arith.constant 0 : i32
    return %c0_i32, %c0_i32_0 : i32, i32
  }
  func.func @transform_3(%arg0: i32) -> (i32, i32) {
    %c0_i32 = arith.constant 0 : i32
    %c0_i32_0 = arith.constant 0 : i32
    %c0_i32_1 = arith.constant 0 : i32
    return %c0_i32, %c0_i32_0 : i32, i32
  }
  func.func @transform_4(%arg0: i32) -> (i32, i32) {
    %c0_i32 = arith.constant 0 : i32
    %c0_i32_0 = arith.constant 0 : i32
    return %arg0, %c0_i32 : i32, i32
  }
  func.func @transform_5(%arg0: i32) -> (i32, i32, i32) {
    %c0_i32 = arith.constant 0 : i32
    %c0_i32_0 = arith.constant 0 : i32
    %c0_i32_1 = arith.constant 0 : i32
    return %arg0, %c0_i32, %c0_i32_0 : i32, i32, i32
  }
}

</mosaic_0001>

<bundles_post_ra>
// kernel: bottleneck_nchw.7
= control target key start
LH: loop header
LB: loop body
LE: loop exit
PB: predicated region body
PF: predicated region fallthrough
CT: control target
= control target key end

     0   :  { %vm479_vm0 = vcmask 130048   ;;  %s1416_s0 = inlined_call_operand.vmem [shape: bf16[512,16], index: 0, kind: input, shape index: {}]   ;;  %s1417_s2 = inlined_call_operand.vmem [shape: f32[1,16], index: 2, kind: input, shape index: {}]   ;;  %s1418_s3 = inlined_call_operand.vmem [shape: f32[1,16], index: 3, kind: input, shape index: {}]   ;;  %s1419_s1 = inlined_call_operand.vmem [shape: f32[512,16], index: 1, kind: input, shape index: {}, may-alias: {1,4}]   ;;  %s1420_s4 = inlined_call_operand.vmem [shape: f32[512,16], index: 4, kind: output, shape index: {}, may-alias: {1,4}]  }
   0x1   :  { %v551_v0 = vld [vmem:[%s1416_s0] sm:$0xff]   ;;  %v678_v4 = vld [vmem:[%s1416_s0 + $0x8] sm:$0xff]   ;;  %v679_v8 = vld [vmem:[%s1416_s0 + $0x10] sm:$0xff]  }
   0x2   :  { %v740_v1 = vld [vmem:[%s1417_s2] ss:$0 sm:$0xff]  ;;  %v552_v2 = vunpack.c.l.bf16 %v551_v0  ;;  %v553_v3 = vunpack.c.h.bf16 %v551_v0  ;;  %v556_v6 = vunpack.c.l.bf16 %v678_v4  ;;  %v557_v7 = vunpack.c.h.bf16 %v678_v4  ;;  %v680_v13 = vld [vmem:[%s1416_s0 + $0x18] sm:$0xff]   ;;  %v288_v15 = vld [vmem:[%s1419_s1 + $0x8] sm:$0xff] }
   0x3   :  { %v748_v5 = vld [vmem:[%s1418_s3] ss:$0 sm:$0xff]  ;;  %v560_v11 = vunpack.c.l.bf16 %v679_v8  ;;  %v561_v12 = vunpack.c.h.bf16 %v679_v8  ;;  %v564_v18 = vunpack.c.l.bf16 %v680_v13  ;;  %v565_v19 = vunpack.c.h.bf16 %v680_v13  ;;  %v289_v22 = vld [vmem:[%s1419_s1 + $0x10] sm:$0xff]  ;;  %v290_v23 = vld [vmem:[%s1419_s1 + $0x18] sm:$0xff] }
   0x4   :  { %v152_v9 = vmul.f32 %v552_v2, %v740_v1  ;;  %v153_v10 = vmul.f32 %v553_v3, %v740_v1  ;;  %v287_v14 = vld [vmem:[%s1419_s1] sm:$0xff]  ;;  %v154_v16 = vmul.f32 %v556_v6, %v740_v1  ;;  %v155_v17 = vmul.f32 %v557_v7, %v740_v1  ;;  %v292_v29 = vld [vmem:[%s1419_s1 + $0x28] sm:$0xff]  ;;  %v293_v36 = vld [vmem:[%s1419_s1 + $0x30] sm:$0xff] }
   0x5   :  { %v156_v24 = vmul.f32 %v560_v11, %v740_v1  ;;  %v157_v25 = vmul.f32 %v561_v12, %v740_v1  ;;  %v291_v28 = vld [vmem:[%s1419_s1 + $0x20] sm:$0xff]  ;;  %v158_v30 = vmul.f32 %v564_v18, %v740_v1  ;;  %v159_v31 = vmul.f32 %v565_v19, %v740_v1  ;;  %v294_v37 = vld [vmem:[%s1419_s1 + $0x38] sm:$0xff]  ;;  %v682_v47 = vld [vmem:[%s1416_s0 + $0x28] sm:$0xff]  }
   0x6   :  { %v223_v20 = vadd.f32 %v748_v5, %v152_v9  ;;  %v224_v21 = vadd.f32 %v748_v5, %v153_v10  ;;  %v225_v26 = vadd.f32 %v748_v5, %v154_v16  ;;  %v226_v27 = vadd.f32 %v748_v5, %v155_v17  ;;  %v681_v42 = vld [vmem:[%s1416_s0 + $0x20] sm:$0xff]   ;;  %v683_v52 = vld [vmem:[%s1416_s0 + $0x30] sm:$0xff]   ;;  %v684_v57 = vld [vmem:[%s1416_s0 + $0x38] sm:$0xff]  }
   0x7   :  { %v227_v34 = vadd.f32 %v748_v5, %v156_v24  ;;  %v228_v35 = vadd.f32 %v748_v5, %v157_v25  ;;  %v229_v40 = vadd.f32 %v748_v5, %v158_v30  ;;  %v230_v41 = vadd.f32 %v748_v5, %v159_v31 }
   0x8   :  { %v351_v32 = vadd.f32 %v287_v14, %v223_v20  ;;  %v352_v33 = vadd.f32 %v288_v15, %v224_v21  ;;  %v353_v38 = vadd.f32 %v289_v22, %v225_v26  ;;  %v354_v39 = vadd.f32 %v290_v23, %v226_v27 }
   0x9   :  { %v355_v45 = vadd.f32 %v291_v28, %v227_v34  ;;  %v356_v46 = vadd.f32 %v292_v29, %v228_v35  ;;  %v357_v50 = vadd.f32 %v293_v36, %v229_v40  ;;  %v358_v51 = vadd.f32 %v294_v37, %v230_v41  ;;  %v686_v37 = vld [vmem:[%s1416_s0 + $0x48] sm:$0xff]  }
   0xa   :  { %v415_v43 = vmax.f32 %v351_v32, 0.0  ;;  %v416_v44 = vmax.f32 %v352_v33, 0.0  ;;  %v417_v48 = vmax.f32 %v353_v38, 0.0  ;;  %v418_v49 = vmax.f32 %v354_v39, 0.0  ;;  %v685_v32 = vld [vmem:[%s1416_s0 + $0x40] sm:$0xff]  }
   0xb   :  { %v419_v53 = vmax.f32 %v355_v45, 0.0  ;;  %v420_v54 = vmax.f32 %v356_v46, 0.0  ;;  %v568_v55 = vunpack.c.l.bf16 %v681_v42  ;;  %v569_v56 = vunpack.c.h.bf16 %v681_v42  ;;  %v687_v42 = vld [vmem:[%s1416_s0 + $0x50] sm:$0xff]  }
   0xc   :  { %480 = vst.msk [vmem:[%s1420_s4] sm:$0xff] %vm479_vm0, %v415_v43  ;;  %481 = vst.msk [vmem:[%s1420_s4 + $0x8] sm:$0xff] %vm479_vm0, %v416_v44  ;;  %v421_v58 = vmax.f32 %v357_v50, 0.0  ;;  %v422_v59 = vmax.f32 %v358_v51, 0.0  ;;  %v572_v60 = vunpack.c.l.bf16 %v682_v47  ;;  %v573_v61 = vunpack.c.h.bf16 %v682_v47  ;;  %v688_v47 = vld [vmem:[%s1416_s0 + $0x58] sm:$0xff]  }
   0xd   :  { %482 = vst.msk [vmem:[%s1420_s4 + $0x10] sm:$0xff] %vm479_vm0, %v417_v48  ;;  %483 = vst.msk [vmem:[%s1420_s4 + $0x18] sm:$0xff] %vm479_vm0, %v418_v49  ;;  %v160_v62 = vmul.f32 %v568_v55, %v740_v1  ;;  %v161_v63 = vmul.f32 %v569_v56, %v740_v1  ;;  %v576_v0 = vunpack.c.l.bf16 %v683_v52  ;;  %v577_v2 = vunpack.c.h.bf16 %v683_v52 }
   0xe   :  { %484 = vst.msk [vmem:[%s1420_s4 + $0x20] sm:$0xff] %vm479_vm0, %v419_v53  ;;  %485 = vst.msk [vmem:[%s1420_s4 + $0x28] sm:$0xff] %vm479_vm0, %v420_v54  ;;  %v162_v6 = vmul.f32 %v572_v60, %v740_v1  ;;  %v163_v7 = vmul.f32 %v573_v61, %v740_v1  ;;  %v580_v8 = vunpack.c.l.bf16 %v684_v57  ;;  %v581_v9 = vunpack.c.h.bf16 %v684_v57 }
   0xf   :  { %486 = vst.msk [vmem:[%s1420_s4 + $0x30] sm:$0xff] %vm479_vm0, %v421_v58  ;;  %487 = vst.msk [vmem:[%s1420_s4 + $0x38] sm:$0xff] %vm479_vm0, %v422_v59  ;;  %v231_v10 = vadd.f32 %v748_v5, %v160_v62  ;;  %v232_v11 = vadd.f32 %v748_v5, %v161_v63  ;;  %v164_v14 = vmul.f32 %v576_v0, %v740_v1  ;;  %v584_v45 = vunpack.c.l.bf16 %v685_v32 }
  0x10   :  { %v165_v15 = vmul.f32 %v577_v2, %v740_v1  ;;  %v233_v16 = vadd.f32 %v748_v5, %v162_v6  ;;  %v234_v17 = vadd.f32 %v748_v5, %v163_v7  ;;  %v166_v20 = vmul.f32 %v580_v8, %v740_v1 }
  0x11   :  { %v167_v21 = vmul.f32 %v581_v9, %v740_v1  ;;  %v235_v24 = vadd.f32 %v748_v5, %v164_v14  ;;  %v585_v46 = vunpack.c.h.bf16 %v685_v32  ;;  %v588_v50 = vunpack.c.l.bf16 %v686_v37  ;;  %v691_v32 = vld [vmem:[%s1416_s0 + $0x70] sm:$0xff]  }
  0x12   :  { %v236_v25 = vadd.f32 %v748_v5, %v165_v15  ;;  %v237_v30 = vadd.f32 %v748_v5, %v166_v20  ;;  %v589_v51 = vunpack.c.h.bf16 %v686_v37  ;;  %v168_v52 = vmul.f32 %v584_v45, %v740_v1  ;;  %v692_v37 = vld [vmem:[%s1416_s0 + $0x78] sm:$0xff]  }
  0x13   :  { %v238_v31 = vadd.f32 %v748_v5, %v167_v21  ;;  %v169_v53 = vmul.f32 %v585_v46, %v740_v1  ;;  %v592_v54 = vunpack.c.l.bf16 %v687_v42  ;;  %v593_v55 = vunpack.c.h.bf16 %v687_v42 }
  0x14   :  { %v170_v58 = vmul.f32 %v588_v50, %v740_v1  ;;  %v171_v59 = vmul.f32 %v589_v51, %v740_v1  ;;  %v596_v60 = vunpack.c.l.bf16 %v688_v47  ;;  %v597_v61 = vunpack.c.h.bf16 %v688_v47 }
  0x15   :  { %v239_v62 = vadd.f32 %v748_v5, %v168_v52  ;;  %v240_v63 = vadd.f32 %v748_v5, %v169_v53  ;;  %v609_v45 = vunpack.c.h.bf16 %v691_v32  ;;  %v612_v50 = vunpack.c.l.bf16 %v692_v37 }
  0x16   :  { %v295_v3 = vld [vmem:[%s1419_s1 + $0x40] sm:$0xff]  ;;  %v296_v4 = vld [vmem:[%s1419_s1 + $0x48] sm:$0xff]  ;;  %v297_v12 = vld [vmem:[%s1419_s1 + $0x50] sm:$0xff]  ;;  %v241_v6 = vadd.f32 %v748_v5, %v170_v58  ;;  %v242_v7 = vadd.f32 %v748_v5, %v171_v59  ;;  %v613_v51 = vunpack.c.h.bf16 %v692_v37 }
  0x17   :  { %v298_v13 = vld [vmem:[%s1419_s1 + $0x58] sm:$0xff]  ;;  %v299_v18 = vld [vmem:[%s1419_s1 + $0x60] sm:$0xff]  ;;  %v300_v19 = vld [vmem:[%s1419_s1 + $0x68] sm:$0xff]  ;;  %v359_v22 = vadd.f32 %v295_v3, %v231_v10  ;;  %v360_v23 = vadd.f32 %v296_v4, %v232_v11  ;;  %v361_v28 = vadd.f32 %v297_v12, %v233_v16  ;;  %v172_v3 = vmul.f32 %v592_v54, %v740_v1 }
  0x18   :  { %v301_v26 = vld [vmem:[%s1419_s1 + $0x70] sm:$0xff]  ;;  %v302_v27 = vld [vmem:[%s1419_s1 + $0x78] sm:$0xff]  ;;  %v362_v29 = vadd.f32 %v298_v13, %v234_v17  ;;  %v363_v35 = vadd.f32 %v299_v18, %v235_v24  ;;  %v364_v36 = vadd.f32 %v300_v19, %v236_v25  ;;  %v173_v4 = vmul.f32 %v593_v55, %v740_v1 }
  0x19   :  { %v423_v33 = vmax.f32 %v359_v22, 0.0  ;;  %v424_v34 = vmax.f32 %v360_v23, 0.0  ;;  %v425_v38 = vmax.f32 %v361_v28, 0.0  ;;  %v365_v40 = vadd.f32 %v301_v26, %v237_v30  ;;  %v689_v22 = vld [vmem:[%s1416_s0 + $0x60] sm:$0xff]  }
  0x1a   :  { %v426_v39 = vmax.f32 %v362_v29, 0.0  ;;  %v366_v41 = vadd.f32 %v302_v27, %v238_v31  ;;  %v427_v43 = vmax.f32 %v363_v35, 0.0  ;;  %v428_v44 = vmax.f32 %v364_v36, 0.0  ;;  %v690_v27 = vld [vmem:[%s1416_s0 + $0x68] sm:$0xff]  }
  0x1b   :  { %488 = vst.msk [vmem:[%s1420_s4 + $0x40] sm:$0xff] %vm479_vm0, %v423_v33  ;;  %489 = vst.msk [vmem:[%s1420_s4 + $0x48] sm:$0xff] %vm479_vm0, %v424_v34  ;;  %v429_v48 = vmax.f32 %v365_v40, 0.0  ;;  %v174_v10 = vmul.f32 %v596_v60, %v740_v1  ;;  %v175_v11 = vmul.f32 %v597_v61, %v740_v1  ;;  %v243_v14 = vadd.f32 %v748_v5, %v172_v3 }
  0x1c   :  { %490 = vst.msk [vmem:[%s1420_s4 + $0x50] sm:$0xff] %vm479_vm0, %v425_v38  ;;  %491 = vst.msk [vmem:[%s1420_s4 + $0x58] sm:$0xff] %vm479_vm0, %v426_v39  ;;  %v430_v49 = vmax.f32 %v366_v41, 0.0  ;;  %v244_v15 = vadd.f32 %v748_v5, %v173_v4  ;;  %v600_v35 = vunpack.c.l.bf16 %v689_v22  ;;  %v601_v36 = vunpack.c.h.bf16 %v689_v22  ;;  %v695_v22 = vld [vmem:[%s1416_s0 + $0x90] sm:$0xff]  }
  0x1d   :  { %492 = vst.msk [vmem:[%s1420_s4 + $0x60] sm:$0xff] %vm479_vm0, %v427_v43  ;;  %493 = vst.msk [vmem:[%s1420_s4 + $0x68] sm:$0xff] %vm479_vm0, %v428_v44  ;;  %v245_v20 = vadd.f32 %v748_v5, %v174_v10  ;;  %v246_v21 = vadd.f32 %v748_v5, %v175_v11  ;;  %v604_v40 = vunpack.c.l.bf16 %v690_v27  ;;  %v605_v41 = vunpack.c.h.bf16 %v690_v27  ;;  %v696_v27 = vld [vmem:[%s1416_s0 + $0x98] sm:$0xff]  }
  0x1e   :  { %494 = vst.msk [vmem:[%s1420_s4 + $0x70] sm:$0xff] %vm479_vm0, %v429_v48  ;;  %495 = vst.msk [vmem:[%s1420_s4 + $0x78] sm:$0xff] %vm479_vm0, %v430_v49  ;;  %v176_v42 = vmul.f32 %v600_v35, %v740_v1  ;;  %v177_v43 = vmul.f32 %v601_v36, %v740_v1  ;;  %v608_v44 = vunpack.c.l.bf16 %v691_v32  ;;  %v625_v35 = vunpack.c.h.bf16 %v695_v22 }
  0x1f   :  { %v178_v48 = vmul.f32 %v604_v40, %v740_v1  ;;  %v179_v49 = vmul.f32 %v605_v41, %v740_v1  ;;  %v628_v40 = vunpack.c.l.bf16 %v696_v27  ;;  %v629_v41 = vunpack.c.h.bf16 %v696_v27 }
  0x20   :  { %v247_v52 = vadd.f32 %v748_v5, %v176_v42  ;;  %v248_v53 = vadd.f32 %v748_v5, %v177_v43 }
  0x21   :  { %v249_v58 = vadd.f32 %v748_v5, %v178_v48  ;;  %v250_v59 = vadd.f32 %v748_v5, %v179_v49 }
  0x25   :  { %v303_v56 = vld [vmem:[%s1419_s1 + $0x80] sm:$0xff]  ;;  %v304_v57 = vld [vmem:[%s1419_s1 + $0x88] sm:$0xff]  ;;  %v305_v0 = vld [vmem:[%s1419_s1 + $0x90] sm:$0xff] }
  0x26   :  { %v306_v2 = vld [vmem:[%s1419_s1 + $0x98] sm:$0xff]  ;;  %v307_v8 = vld [vmem:[%s1419_s1 + $0xa0] sm:$0xff]  ;;  %v308_v9 = vld [vmem:[%s1419_s1 + $0xa8] sm:$0xff]  ;;  %v367_v12 = vadd.f32 %v303_v56, %v239_v62  ;;  %v368_v13 = vadd.f32 %v304_v57, %v240_v63  ;;  %v369_v18 = vadd.f32 %v305_v0, %v241_v6  ;;  %v180_v56 = vmul.f32 %v608_v44, %v740_v1 }
  0x27   :  { %v309_v16 = vld [vmem:[%s1419_s1 + $0xb0] sm:$0xff]  ;;  %v310_v17 = vld [vmem:[%s1419_s1 + $0xb8] sm:$0xff]  ;;  %v370_v19 = vadd.f32 %v306_v2, %v242_v7  ;;  %v371_v25 = vadd.f32 %v307_v8, %v243_v14  ;;  %v372_v26 = vadd.f32 %v308_v9, %v244_v15  ;;  %v181_v57 = vmul.f32 %v609_v45, %v740_v1 }
  0x28   :  { %v431_v23 = vmax.f32 %v367_v12, 0.0  ;;  %v432_v24 = vmax.f32 %v368_v13, 0.0  ;;  %v433_v28 = vmax.f32 %v369_v18, 0.0  ;;  %v373_v30 = vadd.f32 %v309_v16, %v245_v20  ;;  %v693_v12 = vld [vmem:[%s1416_s0 + $0x80] sm:$0xff]  }
  0x29   :  { %v434_v29 = vmax.f32 %v370_v19, 0.0  ;;  %v374_v31 = vadd.f32 %v310_v17, %v246_v21  ;;  %v435_v33 = vmax.f32 %v371_v25, 0.0  ;;  %v436_v34 = vmax.f32 %v372_v26, 0.0  ;;  %v694_v17 = vld [vmem:[%s1416_s0 + $0x88] sm:$0xff]  }
  0x2a   :  { %496 = vst.msk [vmem:[%s1420_s4 + $0x80] sm:$0xff] %vm479_vm0, %v431_v23  ;;  %497 = vst.msk [vmem:[%s1420_s4 + $0x88] sm:$0xff] %vm479_vm0, %v432_v24  ;;  %v437_v38 = vmax.f32 %v373_v30, 0.0  ;;  %v182_v62 = vmul.f32 %v612_v50, %v740_v1  ;;  %v183_v63 = vmul.f32 %v613_v51, %v740_v1  ;;  %v251_v3 = vadd.f32 %v748_v5, %v180_v56 }
  0x2b   :  { %498 = vst.msk [vmem:[%s1420_s4 + $0x90] sm:$0xff] %vm479_vm0, %v433_v28  ;;  %499 = vst.msk [vmem:[%s1420_s4 + $0x98] sm:$0xff] %vm479_vm0, %v434_v29  ;;  %v438_v39 = vmax.f32 %v374_v31, 0.0  ;;  %v252_v4 = vadd.f32 %v748_v5, %v181_v57  ;;  %v616_v25 = vunpack.c.l.bf16 %v693_v12  ;;  %v617_v26 = vunpack.c.h.bf16 %v693_v12  ;;  %v699_v12 = vld [vmem:[%s1416_s0 + $0xb0] sm:$0xff]  }
  0x2c   :  { %500 = vst.msk [vmem:[%s1420_s4 + $0xa0] sm:$0xff] %vm479_vm0, %v435_v33  ;;  %501 = vst.msk [vmem:[%s1420_s4 + $0xa8] sm:$0xff] %vm479_vm0, %v436_v34  ;;  %v253_v10 = vadd.f32 %v748_v5, %v182_v62  ;;  %v254_v11 = vadd.f32 %v748_v5, %v183_v63  ;;  %v620_v30 = vunpack.c.l.bf16 %v694_v17  ;;  %v621_v31 = vunpack.c.h.bf16 %v694_v17  ;;  %v700_v17 = vld [vmem:[%s1416_s0 + $0xb8] sm:$0xff]  }
  0x2d   :  { %502 = vst.msk [vmem:[%s1420_s4 + $0xb0] sm:$0xff] %vm479_vm0, %v437_v38  ;;  %503 = vst.msk [vmem:[%s1420_s4 + $0xb8] sm:$0xff] %vm479_vm0, %v438_v39  ;;  %v184_v32 = vmul.f32 %v616_v25, %v740_v1  ;;  %v185_v33 = vmul.f32 %v617_v26, %v740_v1  ;;  %v624_v34 = vunpack.c.l.bf16 %v695_v22  ;;  %v641_v25 = vunpack.c.h.bf16 %v699_v12 }
  0x2e   :  { %v186_v38 = vmul.f32 %v620_v30, %v740_v1  ;;  %v187_v39 = vmul.f32 %v621_v31, %v740_v1  ;;  %v644_v30 = vunpack.c.l.bf16 %v700_v17  ;;  %v645_v31 = vunpack.c.h.bf16 %v700_v17 }
  0x2f   :  { %v255_v42 = vadd.f32 %v748_v5, %v184_v32  ;;  %v256_v43 = vadd.f32 %v748_v5, %v185_v33 }
  0x30   :  { %v257_v48 = vadd.f32 %v748_v5, %v186_v38  ;;  %v258_v49 = vadd.f32 %v748_v5, %v187_v39 }
  0x34   :  { %v311_v46 = vld [vmem:[%s1419_s1 + $0xc0] sm:$0xff]  ;;  %v312_v47 = vld [vmem:[%s1419_s1 + $0xc8] sm:$0xff]  ;;  %v313_v54 = vld [vmem:[%s1419_s1 + $0xd0] sm:$0xff] }
  0x35   :  { %v314_v55 = vld [vmem:[%s1419_s1 + $0xd8] sm:$0xff]  ;;  %v315_v60 = vld [vmem:[%s1419_s1 + $0xe0] sm:$0xff]  ;;  %v316_v61 = vld [vmem:[%s1419_s1 + $0xe8] sm:$0xff]  ;;  %v375_v0 = vadd.f32 %v311_v46, %v247_v52  ;;  %v376_v2 = vadd.f32 %v312_v47, %v248_v53  ;;  %v377_v8 = vadd.f32 %v313_v54, %v249_v58  ;;  %v188_v46 = vmul.f32 %v624_v34, %v740_v1 }
  0x36   :  { %v317_v6 = vld [vmem:[%s1419_s1 + $0xf0] sm:$0xff]  ;;  %v318_v7 = vld [vmem:[%s1419_s1 + $0xf8] sm:$0xff]  ;;  %v378_v9 = vadd.f32 %v314_v55, %v250_v59  ;;  %v379_v15 = vadd.f32 %v315_v60, %v251_v3  ;;  %v380_v16 = vadd.f32 %v316_v61, %v252_v4  ;;  %v189_v47 = vmul.f32 %v625_v35, %v740_v1 }
  0x37   :  { %v439_v13 = vmax.f32 %v375_v0, 0.0  ;;  %v440_v14 = vmax.f32 %v376_v2, 0.0  ;;  %v441_v18 = vmax.f32 %v377_v8, 0.0  ;;  %v381_v20 = vadd.f32 %v317_v6, %v253_v10  ;;  %v697_v0 = vld [vmem:[%s1416_s0 + $0xa0] sm:$0xff]  }
  0x38   :  { %v442_v19 = vmax.f32 %v378_v9, 0.0  ;;  %v382_v21 = vadd.f32 %v318_v7, %v254_v11  ;;  %v443_v23 = vmax.f32 %v379_v15, 0.0  ;;  %v444_v24 = vmax.f32 %v380_v16, 0.0  ;;  %v698_v7 = vld [vmem:[%s1416_s0 + $0xa8] sm:$0xff]  }
  0x39   :  { %504 = vst.msk [vmem:[%s1420_s4 + $0xc0] sm:$0xff] %vm479_vm0, %v439_v13  ;;  %505 = vst.msk [vmem:[%s1420_s4 + $0xc8] sm:$0xff] %vm479_vm0, %v440_v14  ;;  %v445_v28 = vmax.f32 %v381_v20, 0.0  ;;  %v190_v52 = vmul.f32 %v628_v40, %v740_v1  ;;  %v191_v53 = vmul.f32 %v629_v41, %v740_v1  ;;  %v259_v56 = vadd.f32 %v748_v5, %v188_v46 }
  0x3a   :  { %506 = vst.msk [vmem:[%s1420_s4 + $0xd0] sm:$0xff] %vm479_vm0, %v441_v18  ;;  %507 = vst.msk [vmem:[%s1420_s4 + $0xd8] sm:$0xff] %vm479_vm0, %v442_v19  ;;  %v446_v29 = vmax.f32 %v382_v21, 0.0  ;;  %v260_v57 = vadd.f32 %v748_v5, %v189_v47  ;;  %v632_v15 = vunpack.c.l.bf16 %v697_v0  ;;  %v633_v16 = vunpack.c.h.bf16 %v697_v0  ;;  %v703_v0 = vld [vmem:[%s1416_s0 + $0xd0] sm:$0xff]  }
  0x3b   :  { %508 = vst.msk [vmem:[%s1420_s4 + $0xe0] sm:$0xff] %vm479_vm0, %v443_v23  ;;  %509 = vst.msk [vmem:[%s1420_s4 + $0xe8] sm:$0xff] %vm479_vm0, %v444_v24  ;;  %v261_v62 = vadd.f32 %v748_v5, %v190_v52  ;;  %v262_v63 = vadd.f32 %v748_v5, %v191_v53  ;;  %v636_v20 = vunpack.c.l.bf16 %v698_v7  ;;  %v637_v21 = vunpack.c.h.bf16 %v698_v7  ;;  %v704_v7 = vld [vmem:[%s1416_s0 + $0xd8] sm:$0xff]  }
  0x3c   :  { %510 = vst.msk [vmem:[%s1420_s4 + $0xf0] sm:$0xff] %vm479_vm0, %v445_v28  ;;  %511 = vst.msk [vmem:[%s1420_s4 + $0xf8] sm:$0xff] %vm479_vm0, %v446_v29  ;;  %v192_v22 = vmul.f32 %v632_v15, %v740_v1  ;;  %v193_v23 = vmul.f32 %v633_v16, %v740_v1  ;;  %v640_v24 = vunpack.c.l.bf16 %v699_v12  ;;  %v657_v15 = vunpack.c.h.bf16 %v703_v0 }
  0x3d   :  { %v194_v28 = vmul.f32 %v636_v20, %v740_v1  ;;  %v195_v29 = vmul.f32 %v637_v21, %v740_v1  ;;  %v660_v20 = vunpack.c.l.bf16 %v704_v7  ;;  %v661_v21 = vunpack.c.h.bf16 %v704_v7 }
  0x3e   :  { %v263_v32 = vadd.f32 %v748_v5, %v192_v22  ;;  %v264_v33 = vadd.f32 %v748_v5, %v193_v23 }
  0x3f   :  { %v265_v38 = vadd.f32 %v748_v5, %v194_v28  ;;  %v266_v39 = vadd.f32 %v748_v5, %v195_v29 }
  0x43   :  { %v319_v36 = vld [vmem:[%s1419_s1 + $0x100] sm:$0xff]  ;;  %v320_v37 = vld [vmem:[%s1419_s1 + $0x108] sm:$0xff]  ;;  %v321_v44 = vld [vmem:[%s1419_s1 + $0x110] sm:$0xff] }
  0x44   :  { %v322_v45 = vld [vmem:[%s1419_s1 + $0x118] sm:$0xff]  ;;  %v323_v50 = vld [vmem:[%s1419_s1 + $0x120] sm:$0xff]  ;;  %v324_v51 = vld [vmem:[%s1419_s1 + $0x128] sm:$0xff]  ;;  %v383_v54 = vadd.f32 %v319_v36, %v255_v42  ;;  %v384_v55 = vadd.f32 %v320_v37, %v256_v43  ;;  %v385_v60 = vadd.f32 %v321_v44, %v257_v48  ;;  %v196_v36 = vmul.f32 %v640_v24, %v740_v1 }
  0x45   :  { %v325_v58 = vld [vmem:[%s1419_s1 + $0x130] sm:$0xff]  ;;  %v326_v59 = vld [vmem:[%s1419_s1 + $0x138] sm:$0xff]  ;;  %v386_v61 = vadd.f32 %v322_v45, %v258_v49  ;;  %v387_v4 = vadd.f32 %v323_v50, %v259_v56  ;;  %v388_v6 = vadd.f32 %v324_v51, %v260_v57  ;;  %v197_v37 = vmul.f32 %v641_v25, %v740_v1 }
  0x46   :  { %v447_v2 = vmax.f32 %v383_v54, 0.0  ;;  %v448_v3 = vmax.f32 %v384_v55, 0.0  ;;  %v449_v8 = vmax.f32 %v385_v60, 0.0  ;;  %v389_v10 = vadd.f32 %v325_v58, %v261_v62  ;;  %v701_v54 = vld [vmem:[%s1416_s0 + $0xc0] sm:$0xff]  }
  0x47   :  { %v450_v9 = vmax.f32 %v386_v61, 0.0  ;;  %v390_v11 = vadd.f32 %v326_v59, %v262_v63  ;;  %v451_v13 = vmax.f32 %v387_v4, 0.0  ;;  %v452_v14 = vmax.f32 %v388_v6, 0.0  ;;  %v702_v59 = vld [vmem:[%s1416_s0 + $0xc8] sm:$0xff]  }
  0x48   :  { %512 = vst.msk [vmem:[%s1420_s4 + $0x100] sm:$0xff] %vm479_vm0, %v447_v2  ;;  %513 = vst.msk [vmem:[%s1420_s4 + $0x108] sm:$0xff] %vm479_vm0, %v448_v3  ;;  %v453_v18 = vmax.f32 %v389_v10, 0.0  ;;  %v198_v42 = vmul.f32 %v644_v30, %v740_v1  ;;  %v199_v43 = vmul.f32 %v645_v31, %v740_v1  ;;  %v267_v46 = vadd.f32 %v748_v5, %v196_v36 }
  0x49   :  { %514 = vst.msk [vmem:[%s1420_s4 + $0x110] sm:$0xff] %vm479_vm0, %v449_v8  ;;  %515 = vst.msk [vmem:[%s1420_s4 + $0x118] sm:$0xff] %vm479_vm0, %v450_v9  ;;  %v454_v19 = vmax.f32 %v390_v11, 0.0  ;;  %v268_v47 = vadd.f32 %v748_v5, %v197_v37  ;;  %v648_v4 = vunpack.c.l.bf16 %v701_v54  ;;  %v649_v6 = vunpack.c.h.bf16 %v701_v54  ;;  %v707_v54 = vld [vmem:[%s1416_s0 + $0xf0] sm:$0xff]  }
  0x4a   :  { %516 = vst.msk [vmem:[%s1420_s4 + $0x120] sm:$0xff] %vm479_vm0, %v451_v13  ;;  %517 = vst.msk [vmem:[%s1420_s4 + $0x128] sm:$0xff] %vm479_vm0, %v452_v14  ;;  %v269_v52 = vadd.f32 %v748_v5, %v198_v42  ;;  %v270_v53 = vadd.f32 %v748_v5, %v199_v43  ;;  %v652_v10 = vunpack.c.l.bf16 %v702_v59  ;;  %v653_v11 = vunpack.c.h.bf16 %v702_v59  ;;  %v708_v59 = vld [vmem:[%s1416_s0 + $0xf8] sm:$0xff]  }
  0x4b   :  { %518 = vst.msk [vmem:[%s1420_s4 + $0x130] sm:$0xff] %vm479_vm0, %v453_v18  ;;  %519 = vst.msk [vmem:[%s1420_s4 + $0x138] sm:$0xff] %vm479_vm0, %v454_v19  ;;  %v200_v12 = vmul.f32 %v648_v4, %v740_v1  ;;  %v201_v13 = vmul.f32 %v649_v6, %v740_v1  ;;  %v656_v14 = vunpack.c.l.bf16 %v703_v0  ;;  %v673_v4 = vunpack.c.h.bf16 %v707_v54 }
  0x4c   :  { %v202_v18 = vmul.f32 %v652_v10, %v740_v1  ;;  %v203_v19 = vmul.f32 %v653_v11, %v740_v1  ;;  %v676_v10 = vunpack.c.l.bf16 %v708_v59  ;;  %v677_v11 = vunpack.c.h.bf16 %v708_v59 }
  0x4d   :  { %v271_v22 = vadd.f32 %v748_v5, %v200_v12  ;;  %v272_v23 = vadd.f32 %v748_v5, %v201_v13 }
  0x4e   :  { %v273_v28 = vadd.f32 %v748_v5, %v202_v18  ;;  %v274_v29 = vadd.f32 %v748_v5, %v203_v19 }
  0x52   :  { %v327_v26 = vld [vmem:[%s1419_s1 + $0x140] sm:$0xff]  ;;  %v328_v27 = vld [vmem:[%s1419_s1 + $0x148] sm:$0xff]  ;;  %v329_v34 = vld [vmem:[%s1419_s1 + $0x150] sm:$0xff] }
  0x53   :  { %v330_v35 = vld [vmem:[%s1419_s1 + $0x158] sm:$0xff]  ;;  %v331_v40 = vld [vmem:[%s1419_s1 + $0x160] sm:$0xff]  ;;  %v332_v41 = vld [vmem:[%s1419_s1 + $0x168] sm:$0xff]  ;;  %v391_v44 = vadd.f32 %v327_v26, %v263_v32  ;;  %v392_v45 = vadd.f32 %v328_v27, %v264_v33  ;;  %v393_v50 = vadd.f32 %v329_v34, %v265_v38  ;;  %v204_v26 = vmul.f32 %v656_v14, %v740_v1 }
  0x54   :  { %v333_v48 = vld [vmem:[%s1419_s1 + $0x170] sm:$0xff]  ;;  %v334_v49 = vld [vmem:[%s1419_s1 + $0x178] sm:$0xff]  ;;  %v394_v51 = vadd.f32 %v330_v35, %v266_v39  ;;  %v395_v57 = vadd.f32 %v331_v40, %v267_v46  ;;  %v396_v58 = vadd.f32 %v332_v41, %v268_v47  ;;  %v205_v27 = vmul.f32 %v657_v15, %v740_v1 }
  0x55   :  { %v455_v55 = vmax.f32 %v391_v44, 0.0  ;;  %v456_v56 = vmax.f32 %v392_v45, 0.0  ;;  %v457_v60 = vmax.f32 %v393_v50, 0.0  ;;  %v397_v62 = vadd.f32 %v333_v48, %v269_v52  ;;  %v705_v44 = vld [vmem:[%s1416_s0 + $0xe0] sm:$0xff]  }
  0x56   :  { %v458_v61 = vmax.f32 %v394_v51, 0.0  ;;  %v398_v63 = vadd.f32 %v334_v49, %v270_v53  ;;  %v459_v2 = vmax.f32 %v395_v57, 0.0  ;;  %v460_v3 = vmax.f32 %v396_v58, 0.0  ;;  %v706_v49 = vld [vmem:[%s1416_s0 + $0xe8] sm:$0xff]  }
  0x57   :  { %520 = vst.msk [vmem:[%s1420_s4 + $0x140] sm:$0xff] %vm479_vm0, %v455_v55  ;;  %521 = vst.msk [vmem:[%s1420_s4 + $0x148] sm:$0xff] %vm479_vm0, %v456_v56  ;;  %v461_v8 = vmax.f32 %v397_v62, 0.0  ;;  %v206_v32 = vmul.f32 %v660_v20, %v740_v1  ;;  %v207_v33 = vmul.f32 %v661_v21, %v740_v1  ;;  %v275_v36 = vadd.f32 %v748_v5, %v204_v26 }
  0x58   :  { %522 = vst.msk [vmem:[%s1420_s4 + $0x150] sm:$0xff] %vm479_vm0, %v457_v60  ;;  %523 = vst.msk [vmem:[%s1420_s4 + $0x158] sm:$0xff] %vm479_vm0, %v458_v61  ;;  %v462_v9 = vmax.f32 %v398_v63, 0.0  ;;  %v276_v37 = vadd.f32 %v748_v5, %v205_v27  ;;  %v664_v57 = vunpack.c.l.bf16 %v705_v44  ;;  %v665_v58 = vunpack.c.h.bf16 %v705_v44 }
  0x59   :  { %524 = vst.msk [vmem:[%s1420_s4 + $0x160] sm:$0xff] %vm479_vm0, %v459_v2  ;;  %525 = vst.msk [vmem:[%s1420_s4 + $0x168] sm:$0xff] %vm479_vm0, %v460_v3  ;;  %v277_v42 = vadd.f32 %v748_v5, %v206_v32  ;;  %v278_v43 = vadd.f32 %v748_v5, %v207_v33  ;;  %v668_v62 = vunpack.c.l.bf16 %v706_v49  ;;  %v669_v63 = vunpack.c.h.bf16 %v706_v49 }
  0x5a   :  { %526 = vst.msk [vmem:[%s1420_s4 + $0x170] sm:$0xff] %vm479_vm0, %v461_v8  ;;  %527 = vst.msk [vmem:[%s1420_s4 + $0x178] sm:$0xff] %vm479_vm0, %v462_v9  ;;  %v208_v0 = vmul.f32 %v664_v57, %v740_v1  ;;  %v209_v2 = vmul.f32 %v665_v58, %v740_v1  ;;  %v672_v3 = vunpack.c.l.bf16 %v707_v54 }
  0x5b   :  { %v210_v8 = vmul.f32 %v668_v62, %v740_v1  ;;  %v211_v9 = vmul.f32 %v669_v63, %v740_v1 }
  0x5c   :  { %v279_v12 = vadd.f32 %v748_v5, %v208_v0  ;;  %v280_v13 = vadd.f32 %v748_v5, %v209_v2 }
  0x5d   :  { %v281_v18 = vadd.f32 %v748_v5, %v210_v8  ;;  %v282_v19 = vadd.f32 %v748_v5, %v211_v9 }
  0x61   :  { %v335_v16 = vld [vmem:[%s1419_s1 + $0x180] sm:$0xff]  ;;  %v336_v17 = vld [vmem:[%s1419_s1 + $0x188] sm:$0xff]  ;;  %v337_v24 = vld [vmem:[%s1419_s1 + $0x190] sm:$0xff] }
  0x62   :  { %v338_v25 = vld [vmem:[%s1419_s1 + $0x198] sm:$0xff]  ;;  %v339_v30 = vld [vmem:[%s1419_s1 + $0x1a0] sm:$0xff]  ;;  %v340_v31 = vld [vmem:[%s1419_s1 + $0x1a8] sm:$0xff]  ;;  %v399_v34 = vadd.f32 %v335_v16, %v271_v22  ;;  %v400_v35 = vadd.f32 %v336_v17, %v272_v23  ;;  %v401_v40 = vadd.f32 %v337_v24, %v273_v28  ;;  %v212_v16 = vmul.f32 %v672_v3, %v740_v1 }
  0x63   :  { %v341_v38 = vld [vmem:[%s1419_s1 + $0x1b0] sm:$0xff]  ;;  %v342_v39 = vld [vmem:[%s1419_s1 + $0x1b8] sm:$0xff]  ;;  %v402_v41 = vadd.f32 %v338_v25, %v274_v29  ;;  %v403_v47 = vadd.f32 %v339_v30, %v275_v36  ;;  %v404_v48 = vadd.f32 %v340_v31, %v276_v37  ;;  %v213_v17 = vmul.f32 %v673_v4, %v740_v1 }
  0x64   :  { %v463_v45 = vmax.f32 %v399_v34, 0.0  ;;  %v464_v46 = vmax.f32 %v400_v35, 0.0  ;;  %v465_v50 = vmax.f32 %v401_v40, 0.0  ;;  %v405_v52 = vadd.f32 %v341_v38, %v277_v42 }
  0x65   :  { %v466_v51 = vmax.f32 %v402_v41, 0.0  ;;  %v406_v53 = vadd.f32 %v342_v39, %v278_v43  ;;  %v467_v55 = vmax.f32 %v403_v47, 0.0  ;;  %v468_v56 = vmax.f32 %v404_v48, 0.0 }
  0x66   :  { %528 = vst.msk [vmem:[%s1420_s4 + $0x180] sm:$0xff] %vm479_vm0, %v463_v45  ;;  %529 = vst.msk [vmem:[%s1420_s4 + $0x188] sm:$0xff] %vm479_vm0, %v464_v46  ;;  %v469_v60 = vmax.f32 %v405_v52, 0.0  ;;  %v214_v22 = vmul.f32 %v676_v10, %v740_v1  ;;  %v215_v23 = vmul.f32 %v677_v11, %v740_v1  ;;  %v283_v26 = vadd.f32 %v748_v5, %v212_v16 }
  0x67   :  { %530 = vst.msk [vmem:[%s1420_s4 + $0x190] sm:$0xff] %vm479_vm0, %v465_v50  ;;  %531 = vst.msk [vmem:[%s1420_s4 + $0x198] sm:$0xff] %vm479_vm0, %v466_v51  ;;  %v470_v61 = vmax.f32 %v406_v53, 0.0  ;;  %v284_v27 = vadd.f32 %v748_v5, %v213_v17 }
  0x68   :  { %532 = vst.msk [vmem:[%s1420_s4 + $0x1a0] sm:$0xff] %vm479_vm0, %v467_v55  ;;  %533 = vst.msk [vmem:[%s1420_s4 + $0x1a8] sm:$0xff] %vm479_vm0, %v468_v56  ;;  %v285_v32 = vadd.f32 %v748_v5, %v214_v22  ;;  %v286_v1 = vadd.f32 %v748_v5, %v215_v23 }
  0x69   :  { %534 = vst.msk [vmem:[%s1420_s4 + $0x1b0] sm:$0xff] %vm479_vm0, %v469_v60  ;;  %535 = vst.msk [vmem:[%s1420_s4 + $0x1b8] sm:$0xff] %vm479_vm0, %v470_v61 }
  0x70   :  { %v343_v6 = vld [vmem:[%s1419_s1 + $0x1c0] sm:$0xff]  ;;  %v344_v7 = vld [vmem:[%s1419_s1 + $0x1c8] sm:$0xff]  ;;  %v345_v14 = vld [vmem:[%s1419_s1 + $0x1d0] sm:$0xff] }
  0x71   :  { %v346_v15 = vld [vmem:[%s1419_s1 + $0x1d8] sm:$0xff]  ;;  %v347_v20 = vld [vmem:[%s1419_s1 + $0x1e0] sm:$0xff]  ;;  %v348_v21 = vld [vmem:[%s1419_s1 + $0x1e8] sm:$0xff]  ;;  %v407_v24 = vadd.f32 %v343_v6, %v279_v12  ;;  %v408_v25 = vadd.f32 %v344_v7, %v280_v13  ;;  %v409_v30 = vadd.f32 %v345_v14, %v281_v18 }
  0x72   :  { %v349_v28 = vld [vmem:[%s1419_s1 + $0x1f0] sm:$0xff]  ;;  %v350_v29 = vld [vmem:[%s1419_s1 + $0x1f8] sm:$0xff]  ;;  %v410_v31 = vadd.f32 %v346_v15, %v282_v19  ;;  %v411_v35 = vadd.f32 %v347_v20, %v283_v26  ;;  %v412_v36 = vadd.f32 %v348_v21, %v284_v27 }
  0x73   :  { %v471_v33 = vmax.f32 %v407_v24, 0.0  ;;  %v472_v34 = vmax.f32 %v408_v25, 0.0  ;;  %v473_v37 = vmax.f32 %v409_v30, 0.0  ;;  %v413_v39 = vadd.f32 %v349_v28, %v285_v32 }
  0x74   :  { %v474_v38 = vmax.f32 %v410_v31, 0.0  ;;  %v414_v40 = vadd.f32 %v350_v29, %v286_v1  ;;  %v475_v41 = vmax.f32 %v411_v35, 0.0  ;;  %v476_v5 = vmax.f32 %v412_v36, 0.0 }
  0x75   :  { %536 = vst.msk [vmem:[%s1420_s4 + $0x1c0] sm:$0xff] %vm479_vm0, %v471_v33  ;;  %537 = vst.msk [vmem:[%s1420_s4 + $0x1c8] sm:$0xff] %vm479_vm0, %v472_v34  ;;  %v477_v42 = vmax.f32 %v413_v39, 0.0 }
  0x76   :  { %538 = vst.msk [vmem:[%s1420_s4 + $0x1d0] sm:$0xff] %vm479_vm0, %v473_v37  ;;  %539 = vst.msk [vmem:[%s1420_s4 + $0x1d8] sm:$0xff] %vm479_vm0, %v474_v38  ;;  %v478_v43 = vmax.f32 %v414_v40, 0.0 }
  0x77   :  { %540 = vst.msk [vmem:[%s1420_s4 + $0x1e0] sm:$0xff] %vm479_vm0, %v475_v41  ;;  %541 = vst.msk [vmem:[%s1420_s4 + $0x1e8] sm:$0xff] %vm479_vm0, %v476_v5 }
  0x78   :  { %542 = vst.msk [vmem:[%s1420_s4 + $0x1f0] sm:$0xff] %vm479_vm0, %v477_v42  ;;  %543 = vst.msk [vmem:[%s1420_s4 + $0x1f8] sm:$0xff] %vm479_vm0, %v478_v43 }

// kernel: bottleneck_nchw.4
= control target key start
LH: loop header
LB: loop body
LE: loop exit
PB: predicated region body
PF: predicated region fallthrough
CT: control target
= control target key end

     0   :  { %vm118_vm0 = vcmask 130048   ;;  %vm1111_vm1 = vcmask 27648   ;;  %vm851_vm2 = vcmask 1040384   ;;  %vm853_vm3 = vcmask 25600   ;;  %s2549_s1 = inlined_call_operand.vmem [shape: bf16[16,4], index: 1, kind: input, shape index: {}]   ;;  %s2550_s0 = inlined_call_operand.vmem [shape: f32[512,16], index: 0, kind: input, shape index: {}]   ;;  %s2551_s2 = inlined_call_operand.vmem [shape: bf16[512,4], index: 2, kind: output, shape index: {0}]   ;;  %s2552_s3 = inlined_call_operand.vmem [shape: f32[1,2,4], index: 3, kind: output, shape index: {1}]  }
   0x1   :  { %v1585_v0 = vld [vmem:[%s2549_s1] sm:$0xff]   ;;  %v15_v2 = vld [vmem:[%s2550_s0 + $0x8] sm:$0xff]  ;;  %v16_v3 = vld [vmem:[%s2550_s0 + $0x10] sm:$0xff] }
   0x2   :  { %v14_v1 = vld [vmem:[%s2550_s0] sm:$0xff]  ;;  %1518 = vmatprep.subr.bf16.mxu0 %v1585_v0  ;;  %v17_v5 = vld [vmem:[%s2550_s0 + $0x18] sm:$0xff]  ;;  %v19_v7 = vld [vmem:[%s2550_s0 + $0x28] sm:$0xff] }
   0x3   :  { %v78_v4 = vpack.c.bf16 %v15_v2, %v14_v1  ;;  %v18_v6 = vld [vmem:[%s2550_s0 + $0x20] sm:$0xff]  ;;  %1519 = vmatpush3.bf16.msra.mxu0 %v1585_v0  ;;  %v79_v8 = vpack.c.bf16 %v17_v5, %v16_v3  ;;  %v20_v10 = vld [vmem:[%s2550_s0 + $0x30] sm:$0xff]  ;;  %v21_v11 = vld [vmem:[%s2550_s0 + $0x38] sm:$0xff] }
   0x4   :  { %v80_v9 = vpack.c.bf16 %v19_v7, %v18_v6  ;;  %v22_v12 = vld [vmem:[%s2550_s0 + $0x40] sm:$0xff]  ;;  %v23_v13 = vld [vmem:[%s2550_s0 + $0x48] sm:$0xff]  ;;  %v81_v14 = vpack.c.bf16 %v21_v11, %v20_v10  ;;  %v24_v16 = vld [vmem:[%s2550_s0 + $0x50] sm:$0xff] }
   0x5   :  { %1520 = vmatprep.mubr.msk.bf16.mxu0 %vm118_vm0, %v78_v4  ;;  %v82_v15 = vpack.c.bf16 %v23_v13, %v22_v12  ;;  %v25_v17 = vld [vmem:[%s2550_s0 + $0x58] sm:$0xff]  ;;  %v26_v18 = vld [vmem:[%s2550_s0 + $0x60] sm:$0xff]  ;;  %v27_v19 = vld [vmem:[%s2550_s0 + $0x68] sm:$0xff] }
   0x6   :  { %1521 = vmatmul.mubr.msk.bf16.vlgmr.msra.gmra.mxu0 %vm118_vm0, %v79_v8  ;;  %v83_v20 = vpack.c.bf16 %v25_v17, %v24_v16  ;;  %v84_v21 = vpack.c.bf16 %v27_v19, %v26_v18  ;;  %v28_v22 = vld [vmem:[%s2550_s0 + $0x70] sm:$0xff]  ;;  %v29_v23 = vld [vmem:[%s2550_s0 + $0x78] sm:$0xff]  ;;  %v30_v24 = vld [vmem:[%s2550_s0 + $0x80] sm:$0xff] }
   0x7   :  { %1524 = vmatprep.mubr.msk.bf16.mxu0 %vm118_vm0, %v80_v9  ;;  %v31_v25 = vld [vmem:[%s2550_s0 + $0x88] sm:$0xff]  ;;  %v85_v26 = vpack.c.bf16 %v29_v23, %v28_v22  ;;  %v32_v28 = vld [vmem:[%s2550_s0 + $0x90] sm:$0xff]  ;;  %v33_v29 = vld [vmem:[%s2550_s0 + $0x98] sm:$0xff] }
   0x8   :  { %v86_v27 = vpack.c.bf16 %v31_v25, %v30_v24  ;;  %v34_v30 = vld [vmem:[%s2550_s0 + $0xa0] sm:$0xff]  ;;  %v35_v31 = vld [vmem:[%s2550_s0 + $0xa8] sm:$0xff]  ;;  %v87_v32 = vpack.c.bf16 %v33_v29, %v32_v28  ;;  %v36_v34 = vld [vmem:[%s2550_s0 + $0xb0] sm:$0xff] }
   0x9   :  { %v88_v33 = vpack.c.bf16 %v35_v31, %v34_v30  ;;  %v37_v35 = vld [vmem:[%s2550_s0 + $0xb8] sm:$0xff]  ;;  %v38_v36 = vld [vmem:[%s2550_s0 + $0xc0] sm:$0xff]  ;;  %v39_v37 = vld [vmem:[%s2550_s0 + $0xc8] sm:$0xff] }
   0xa   :  { %v89_v38 = vpack.c.bf16 %v37_v35, %v36_v34  ;;  %v90_v39 = vpack.c.bf16 %v39_v37, %v38_v36  ;;  %v40_v40 = vld [vmem:[%s2550_s0 + $0xd0] sm:$0xff]  ;;  %v41_v41 = vld [vmem:[%s2550_s0 + $0xd8] sm:$0xff]  ;;  %v42_v42 = vld [vmem:[%s2550_s0 + $0xe0] sm:$0xff] }
   0xb   :  { %v43_v43 = vld [vmem:[%s2550_s0 + $0xe8] sm:$0xff]  ;;  %v91_v44 = vpack.c.bf16 %v41_v41, %v40_v40  ;;  %v44_v46 = vld [vmem:[%s2550_s0 + $0xf0] sm:$0xff]  ;;  %v45_v47 = vld [vmem:[%s2550_s0 + $0xf8] sm:$0xff] }
   0xc   :  { %v92_v45 = vpack.c.bf16 %v43_v43, %v42_v42  ;;  %v46_v48 = vld [vmem:[%s2550_s0 + $0x100] sm:$0xff]  ;;  %v47_v49 = vld [vmem:[%s2550_s0 + $0x108] sm:$0xff]  ;;  %v93_v50 = vpack.c.bf16 %v45_v47, %v44_v46  ;;  %v48_v52 = vld [vmem:[%s2550_s0 + $0x110] sm:$0xff] }
   0xd   :  { %v94_v51 = vpack.c.bf16 %v47_v49, %v46_v48  ;;  %v49_v53 = vld [vmem:[%s2550_s0 + $0x118] sm:$0xff]  ;;  %v50_v54 = vld [vmem:[%s2550_s0 + $0x120] sm:$0xff]  ;;  %v51_v55 = vld [vmem:[%s2550_s0 + $0x128] sm:$0xff] }
   0xe   :  { %1525 = vmatmul.mubr.msk.bf16.gmra.mxu0 %vm118_vm0, %v81_v14  ;;  %v95_v56 = vpack.c.bf16 %v49_v53, %v48_v52  ;;  %v96_v57 = vpack.c.bf16 %v51_v55, %v50_v54  ;;  %v52_v58 = vld [vmem:[%s2550_s0 + $0x130] sm:$0xff]  ;;  %v53_v59 = vld [vmem:[%s2550_s0 + $0x138] sm:$0xff]  ;;  %v54_v60 = vld [vmem:[%s2550_s0 + $0x140] sm:$0xff] }
   0xf   :  { %1528 = vmatprep.mubr.msk.bf16.mxu0 %vm118_vm0, %v82_v15  ;;  %v55_v61 = vld [vmem:[%s2550_s0 + $0x148] sm:$0xff]  ;;  %v97_v62 = vpack.c.bf16 %v53_v59, %v52_v58  ;;  %v56_v0 = vld [vmem:[%s2550_s0 + $0x150] sm:$0xff]  ;;  %v57_v1 = vld [vmem:[%s2550_s0 + $0x158] sm:$0xff] }
  0x10   :  { %v98_v63 = vpack.c.bf16 %v55_v61, %v54_v60  ;;  %v58_v2 = vld [vmem:[%s2550_s0 + $0x160] sm:$0xff]  ;;  %v59_v3 = vld [vmem:[%s2550_s0 + $0x168] sm:$0xff]  ;;  %v99_v4 = vpack.c.bf16 %v57_v1, %v56_v0  ;;  %v60_v6 = vld [vmem:[%s2550_s0 + $0x170] sm:$0xff] }
  0x11   :  { %v100_v5 = vpack.c.bf16 %v59_v3, %v58_v2  ;;  %v61_v7 = vld [vmem:[%s2550_s0 + $0x178] sm:$0xff]  ;;  %v62_v8 = vld [vmem:[%s2550_s0 + $0x180] sm:$0xff]  ;;  %v63_v9 = vld [vmem:[%s2550_s0 + $0x188] sm:$0xff] }
  0x12   :  { %v101_v10 = vpack.c.bf16 %v61_v7, %v60_v6  ;;  %v102_v11 = vpack.c.bf16 %v63_v9, %v62_v8  ;;  %v64_v12 = vld [vmem:[%s2550_s0 + $0x190] sm:$0xff]  ;;  %v65_v13 = vld [vmem:[%s2550_s0 + $0x198] sm:$0xff]  ;;  %v66_v14 = vld [vmem:[%s2550_s0 + $0x1a0] sm:$0xff] }
  0x13   :  { %v67_v15 = vld [vmem:[%s2550_s0 + $0x1a8] sm:$0xff]  ;;  %v103_v16 = vpack.c.bf16 %v65_v13, %v64_v12  ;;  %v68_v18 = vld [vmem:[%s2550_s0 + $0x1b0] sm:$0xff]  ;;  %v69_v19 = vld [vmem:[%s2550_s0 + $0x1b8] sm:$0xff] }
  0x14   :  { %v104_v17 = vpack.c.bf16 %v67_v15, %v66_v14  ;;  %v105_v22 = vpack.c.bf16 %v69_v19, %v68_v18  ;;  %v72_v24 = vld [vmem:[%s2550_s0 + $0x1d0] sm:$0xff]  ;;  %v73_v25 = vld [vmem:[%s2550_s0 + $0x1d8] sm:$0xff] }
  0x15   :  { %v107_v28 = vpack.c.bf16 %v73_v25, %v72_v24  ;;  %v76_v30 = vld [vmem:[%s2550_s0 + $0x1f0] sm:$0xff]  ;;  %v77_v31 = vld [vmem:[%s2550_s0 + $0x1f8] sm:$0xff] }
  0x16   :  { %1529 = vmatmul.mubr.msk.bf16.gmra.mxu0 %vm118_vm0, %v83_v20  ;;  %v70_v20 = vld [vmem:[%s2550_s0 + $0x1c0] sm:$0xff] }
  0x17   :  { %1532 = vmatprep.mubr.msk.bf16.mxu0 %vm118_vm0, %v84_v21  ;;  %v71_v21 = vld [vmem:[%s2550_s0 + $0x1c8] sm:$0xff] }
  0x18   :  { %v106_v23 = vpack.c.bf16 %v71_v21, %v70_v20 }
  0x1e   :  { %1533 = vmatmul.mubr.msk.bf16.gmra.mxu0 %vm118_vm0, %v85_v26  ;;  %v74_v26 = vld [vmem:[%s2550_s0 + $0x1e0] sm:$0xff] }
  0x1f   :  { %1536 = vmatprep.mubr.msk.bf16.mxu0 %vm118_vm0, %v86_v27  ;;  %v75_v27 = vld [vmem:[%s2550_s0 + $0x1e8] sm:$0xff] }
  0x20   :  { %v108_v29 = vpack.c.bf16 %v75_v27, %v74_v26 }
  0x26   :  { %1537 = vmatmul.mubr.msk.bf16.gmra.mxu0 %vm118_vm0, %v87_v32  ;;  %v109_v32 = vpack.c.bf16 %v77_v31, %v76_v30 }
  0x27   :  { %1540 = vmatprep.mubr.msk.bf16.mxu0 %vm118_vm0, %v88_v33  ;;  %v2553_v33 = vmov 1.0  }
  0x28   :  { %568 = vmatprep.mubr.f32.mxu1 %v2553_v33 }
  0x2e   :  { %1541 = vmatmul.mubr.msk.bf16.gmra.mxu0 %vm118_vm0, %v89_v38 }
  0x2f   :  { %1544 = vmatprep.mubr.msk.bf16.mxu0 %vm118_vm0, %v90_v39 }
  0x36   :  { %1545 = vmatmul.mubr.msk.bf16.gmra.mxu0 %vm118_vm0, %v91_v44 }
  0x37   :  { %1548 = vmatprep.mubr.msk.bf16.mxu0 %vm118_vm0, %v92_v45 }
  0x3e   :  { %1549 = vmatmul.mubr.msk.bf16.gmra.mxu0 %vm118_vm0, %v93_v50 }
  0x3f   :  { %1552 = vmatprep.mubr.msk.bf16.mxu0 %vm118_vm0, %v94_v51 }
  0x46   :  { %1553 = vmatmul.mubr.msk.bf16.gmra.mxu0 %vm118_vm0, %v95_v56 }
  0x47   :  { %1556 = vmatprep.mubr.msk.bf16.mxu0 %vm118_vm0, %v96_v57 }
  0x4e   :  { %1557 = vmatmul.mubr.msk.bf16.gmra.mxu0 %vm118_vm0, %v97_v62 }
  0x4f   :  { %1560 = vmatprep.mubr.msk.bf16.mxu0 %vm118_vm0, %v98_v63 }
  0x56   :  { %1561 = vmatmul.mubr.msk.bf16.gmra.mxu0 %vm118_vm0, %v99_v4 }
  0x57   :  { %1564 = vmatprep.mubr.msk.bf16.mxu0 %vm118_vm0, %v100_v5 }
  0x5e   :  { %1565 = vmatmul.mubr.msk.bf16.gmra.mxu0 %vm118_vm0, %v101_v10 }
  0x5f   :  { %1568 = vmatprep.mubr.msk.bf16.mxu0 %vm118_vm0, %v102_v11 }
  0x66   :  { %1569 = vmatmul.mubr.msk.bf16.gmra.mxu0 %vm118_vm0, %v103_v16 }
  0x67   :  { %1572 = vmatprep.mubr.msk.bf16.mxu0 %vm118_vm0, %v104_v17 }
  0x6e   :  { %1573 = vmatmul.mubr.msk.bf16.gmra.mxu0 %vm118_vm0, %v105_v22 }
  0x6f   :  { %1576 = vmatprep.mubr.msk.bf16.mxu0 %vm118_vm0, %v106_v23 }
  0x76   :  { %1577 = vmatmul.mubr.msk.bf16.gmra.mxu0 %vm118_vm0, %v107_v28 }
  0x77   :  { %1580 = vmatprep.mubr.msk.bf16.mxu0 %vm118_vm0, %v108_v29 }
  0x7e   :  { %1581 = vmatmul.mubr.msk.bf16.gmra.mxu0 %vm118_vm0, %v109_v32 }
  0xc6   :  { %v1835_v34 = vpop.f32.mrf.mxu0 }
  0xc7   :  { %v1283_v35 = vpack.c.bf16 %v1835_v34, %v1835_v34 }
  0xc8   :  { %v1839_v36 = vpop.f32.mrf.mxu0 }
  0xc9   :  { %2560 = vst [vmem:[#allocation2_spill] sm:$0xff] %v1839_v36  ;;  %1114 = vst.msk [vmem:[%s2551_s2 + $0x8] sm:$0xf] %vm1111_vm1, %v1283_v35  ;;  %v1281_v37 = vpack.c.bf16 %v1839_v36, %v1839_v36 }
  0xca   :  { %v1847_v38 = vpop.f32.mrf.mxu0 }
  0xcb   :  { %1112 = vst.msk [vmem:[%s2551_s2] sm:$0xf] %vm1111_vm1, %v1281_v37  ;;  %v1284_v39 = vpack.c.bf16 %v1847_v38, %v1847_v38 }
  0xcc   :  { %v1855_v40 = vpop.f32.mrf.mxu0 }
  0xcd   :  { %2561 = vst [vmem:[#allocation3_spill] sm:$0xff] %v1855_v40  ;;  %1115 = vst.msk [vmem:[%s2551_s2 + $0xc] sm:$0xf] %vm1111_vm1, %v1284_v39  ;;  %v1282_v41 = vpack.c.bf16 %v1855_v40, %v1855_v40 }
  0xce   :  { %v1863_v42 = vpop.f32.mrf.mxu0 }
  0xcf   :  { %1113 = vst.msk [vmem:[%s2551_s2 + $0x4] sm:$0xf] %vm1111_vm1, %v1282_v41  ;;  %v1287_v43 = vpack.c.bf16 %v1863_v42, %v1863_v42 }
  0xd0   :  { %v1871_v44 = vpop.f32.mrf.mxu0 }
  0xd1   :  { %1118 = vst.msk [vmem:[%s2551_s2 + $0x18] sm:$0xf] %vm1111_vm1, %v1287_v43  ;;  %v1285_v45 = vpack.c.bf16 %v1871_v44, %v1871_v44 }
  0xd2   :  { %v1879_v46 = vpop.f32.mrf.mxu0 }
  0xd3   :  { %1116 = vst.msk [vmem:[%s2551_s2 + $0x10] sm:$0xf] %vm1111_vm1, %v1285_v45  ;;  %v1288_v47 = vpack.c.bf16 %v1879_v46, %v1879_v46 }
  0xd4   :  { %v1887_v48 = vpop.f32.mrf.mxu0 }
  0xd5   :  { %1119 = vst.msk [vmem:[%s2551_s2 + $0x1c] sm:$0xf] %vm1111_vm1, %v1288_v47  ;;  %v1286_v49 = vpack.c.bf16 %v1887_v48, %v1887_v48 }
  0xd6   :  { %v1895_v50 = vpop.f32.mrf.mxu0 }
  0xd7   :  { %1117 = vst.msk [vmem:[%s2551_s2 + $0x14] sm:$0xf] %vm1111_vm1, %v1286_v49  ;;  %v1291_v51 = vpack.c.bf16 %v1895_v50, %v1895_v50 }
  0xd8   :  { %v1903_v52 = vpop.f32.mrf.mxu0 }
  0xd9   :  { %1122 = vst.msk [vmem:[%s2551_s2 + $0x28] sm:$0xf] %vm1111_vm1, %v1291_v51  ;;  %v1289_v53 = vpack.c.bf16 %v1903_v52, %v1903_v52 }
  0xda   :  { %v1911_v54 = vpop.f32.mrf.mxu0 }
  0xdb   :  { %1120 = vst.msk [vmem:[%s2551_s2 + $0x20] sm:$0xf] %vm1111_vm1, %v1289_v53  ;;  %v1292_v55 = vpack.c.bf16 %v1911_v54, %v1911_v54 }
  0xdc   :  { %v1919_v56 = vpop.f32.mrf.mxu0 }
  0xdd   :  { %1123 = vst.msk [vmem:[%s2551_s2 + $0x2c] sm:$0xf] %vm1111_vm1, %v1292_v55  ;;  %v1290_v57 = vpack.c.bf16 %v1919_v56, %v1919_v56 }
  0xde   :  { %v1927_v58 = vpop.f32.mrf.mxu0 }
  0xdf   :  { %1121 = vst.msk [vmem:[%s2551_s2 + $0x24] sm:$0xf] %vm1111_vm1, %v1290_v57  ;;  %v1295_v59 = vpack.c.bf16 %v1927_v58, %v1927_v58 }
  0xe0   :  { %v1935_v60 = vpop.f32.mrf.mxu0 }
  0xe1   :  { %1126 = vst.msk [vmem:[%s2551_s2 + $0x38] sm:$0xf] %vm1111_vm1, %v1295_v59  ;;  %v1293_v61 = vpack.c.bf16 %v1935_v60, %v1935_v60 }
  0xe2   :  { %v1943_v62 = vpop.f32.mrf.mxu0 }
  0xe3   :  { %1124 = vst.msk [vmem:[%s2551_s2 + $0x30] sm:$0xf] %vm1111_vm1, %v1293_v61  ;;  %v1296_v63 = vpack.c.bf16 %v1943_v62, %v1943_v62 }
  0xe4   :  { %v1951_v0 = vpop.f32.mrf.mxu0 }
  0xe5   :  { %1127 = vst.msk [vmem:[%s2551_s2 + $0x3c] sm:$0xf] %vm1111_vm1, %v1296_v63  ;;  %v1294_v1 = vpack.c.bf16 %v1951_v0, %v1951_v0 }
  0xe6   :  { %v1959_v2 = vpop.f32.mrf.mxu0 }
  0xe7   :  { %1125 = vst.msk [vmem:[%s2551_s2 + $0x34] sm:$0xf] %vm1111_vm1, %v1294_v1  ;;  %v1299_v3 = vpack.c.bf16 %v1959_v2, %v1959_v2 }
  0xe8   :  { %v1967_v4 = vpop.f32.mrf.mxu0 }
  0xe9   :  { %2562 = vst [vmem:[#allocation4_spill] sm:$0xff] %v1967_v4  ;;  %1130 = vst.msk [vmem:[%s2551_s2 + $0x48] sm:$0xf] %vm1111_vm1, %v1299_v3  ;;  %v1297_v5 = vpack.c.bf16 %v1967_v4, %v1967_v4 }
  0xea   :  { %v1975_v6 = vpop.f32.mrf.mxu0 }
  0xeb   :  { %1128 = vst.msk [vmem:[%s2551_s2 + $0x40] sm:$0xf] %vm1111_vm1, %v1297_v5  ;;  %v1300_v7 = vpack.c.bf16 %v1975_v6, %v1975_v6 }
  0xec   :  { %v1983_v8 = vpop.f32.mrf.mxu0 }
  0xed   :  { %1131 = vst.msk [vmem:[%s2551_s2 + $0x4c] sm:$0xf] %vm1111_vm1, %v1300_v7  ;;  %v1298_v9 = vpack.c.bf16 %v1983_v8, %v1983_v8 }
  0xee   :  { %v1991_v10 = vpop.f32.mrf.mxu0 }
  0xef   :  { %1129 = vst.msk [vmem:[%s2551_s2 + $0x44] sm:$0xf] %vm1111_vm1, %v1298_v9  ;;  %v1303_v11 = vpack.c.bf16 %v1991_v10, %v1991_v10 }
  0xf0   :  { %v1999_v12 = vpop.f32.mrf.mxu0 }
  0xf1   :  { %1134 = vst.msk [vmem:[%s2551_s2 + $0x58] sm:$0xf] %vm1111_vm1, %v1303_v11  ;;  %v1301_v13 = vpack.c.bf16 %v1999_v12, %v1999_v12 }
  0xf2   :  { %v2007_v14 = vpop.f32.mrf.mxu0 }
  0xf3   :  { %1132 = vst.msk [vmem:[%s2551_s2 + $0x50] sm:$0xf] %vm1111_vm1, %v1301_v13  ;;  %v1304_v15 = vpack.c.bf16 %v2007_v14, %v2007_v14 }
  0xf4   :  { %v2015_v16 = vpop.f32.mrf.mxu0 }
  0xf5   :  { %1135 = vst.msk [vmem:[%s2551_s2 + $0x5c] sm:$0xf] %vm1111_vm1, %v1304_v15  ;;  %v1302_v17 = vpack.c.bf16 %v2015_v16, %v2015_v16 }
  0xf6   :  { %v2023_v18 = vpop.f32.mrf.mxu0 }
  0xf7   :  { %1133 = vst.msk [vmem:[%s2551_s2 + $0x54] sm:$0xf] %vm1111_vm1, %v1302_v17  ;;  %v1307_v19 = vpack.c.bf16 %v2023_v18, %v2023_v18 }
  0xf8   :  { %v2031_v20 = vpop.f32.mrf.mxu0 }
  0xf9   :  { %1138 = vst.msk [vmem:[%s2551_s2 + $0x68] sm:$0xf] %vm1111_vm1, %v1307_v19  ;;  %v1305_v21 = vpack.c.bf16 %v2031_v20, %v2031_v20 }
  0xfa   :  { %v2039_v22 = vpop.f32.mrf.mxu0 }
  0xfb   :  { %1136 = vst.msk [vmem:[%s2551_s2 + $0x60] sm:$0xf] %vm1111_vm1, %v1305_v21  ;;  %v1308_v23 = vpack.c.bf16 %v2039_v22, %v2039_v22 }
  0xfc   :  { %v2047_v24 = vpop.f32.mrf.mxu0 }
  0xfd   :  { %1139 = vst.msk [vmem:[%s2551_s2 + $0x6c] sm:$0xf] %vm1111_vm1, %v1308_v23  ;;  %v1306_v25 = vpack.c.bf16 %v2047_v24, %v2047_v24 }
  0xfe   :  { %v2055_v26 = vpop.f32.mrf.mxu0 }
  0xff   :  { %1137 = vst.msk [vmem:[%s2551_s2 + $0x64] sm:$0xf] %vm1111_vm1, %v1306_v25  ;;  %v1311_v27 = vpack.c.bf16 %v2055_v26, %v2055_v26 }
 0x100   :  { %v2063_v28 = vpop.f32.mrf.mxu0 }
 0x101   :  { %1142 = vst.msk [vmem:[%s2551_s2 + $0x78] sm:$0xf] %vm1111_vm1, %v1311_v27  ;;  %v1309_v29 = vpack.c.bf16 %v2063_v28, %v2063_v28 }
 0x102   :  { %v2071_v30 = vpop.f32.mrf.mxu0 }
 0x103   :  { %1140 = vst.msk [vmem:[%s2551_s2 + $0x70] sm:$0xf] %vm1111_vm1, %v1309_v29  ;;  %v1312_v31 = vpack.c.bf16 %v2071_v30, %v2071_v30  ;;  %1378 = vmatprep.subr.mxu1 %v2071_v30 }
 0x104   :  { %v2080_v32 = vpop.f32.mrf.mxu0  ;;  %1379 = vmatpush3.msra.mxu1 %v1943_v62 }
 0x105   :  { %1143 = vst.msk [vmem:[%s2551_s2 + $0x7c] sm:$0xf] %vm1111_vm1, %v1312_v31  ;;  %v1310_v35 = vpack.c.bf16 %v2080_v32, %v2080_v32  ;;  %1380 = vmatprep.subr.mxu1 %v2055_v26 }
 0x106   :  { %v2090_v37 = vpop.f32.mrf.mxu0  ;;  %1381 = vmatpush3.msra.mxu1 %v1927_v58 }
 0x107   :  { %1141 = vst.msk [vmem:[%s2551_s2 + $0x74] sm:$0xf] %vm1111_vm1, %v1310_v35  ;;  %v1315_v39 = vpack.c.bf16 %v2090_v37, %v2090_v37  ;;  %1382 = vmatprep.subr.mxu1 %v2080_v32 }
 0x108   :  { %v2100_v41 = vpop.f32.mrf.mxu0  ;;  %1383 = vmatpush3.msra.mxu1 %v1951_v0 }
 0x109   :  { %1146 = vst.msk [vmem:[%s2551_s2 + $0x88] sm:$0xf] %vm1111_vm1, %v1315_v39  ;;  %v1313_v43 = vpack.c.bf16 %v2100_v41, %v2100_v41  ;;  %1384 = vmatprep.subr.mxu1 %v2063_v28 }
 0x10a   :  { %v2110_v45 = vpop.f32.mrf.mxu0  ;;  %1385 = vmatpush3.msra.mxu1 %v1935_v60 }
 0x10b   :  { %1144 = vst.msk [vmem:[%s2551_s2 + $0x80] sm:$0xf] %vm1111_vm1, %v1313_v43  ;;  %v1316_v47 = vpack.c.bf16 %v2110_v45, %v2110_v45  ;;  %1386 = vmatprep.subr.mxu1 %v2039_v22 }
 0x10c   :  { %v2120_v49 = vpop.f32.mrf.mxu0  ;;  %1387 = vmatpush3.msra.mxu1 %v1911_v54 }
 0x10d   :  { %1147 = vst.msk [vmem:[%s2551_s2 + $0x8c] sm:$0xf] %vm1111_vm1, %v1316_v47  ;;  %v1314_v51 = vpack.c.bf16 %v2120_v49, %v2120_v49  ;;  %1388 = vmatprep.subr.mxu1 %v2023_v18 }
 0x10e   :  { %v2130_v53 = vpop.f32.mrf.mxu0  ;;  %1389 = vmatpush3.msra.mxu1 %v1895_v50 }
 0x10f   :  { %1145 = vst.msk [vmem:[%s2551_s2 + $0x84] sm:$0xf] %vm1111_vm1, %v1314_v51  ;;  %v1319_v55 = vpack.c.bf16 %v2130_v53, %v2130_v53  ;;  %1390 = vmatprep.subr.mxu1 %v2047_v24 }
 0x110   :  { %v2140_v57 = vpop.f32.mrf.mxu0  ;;  %1391 = vmatpush3.msra.mxu1 %v1919_v56 }
 0x111   :  { %1150 = vst.msk [vmem:[%s2551_s2 + $0x98] sm:$0xf] %vm1111_vm1, %v1319_v55  ;;  %v1317_v59 = vpack.c.bf16 %v2140_v57, %v2140_v57  ;;  %1392 = vmatprep.subr.mxu1 %v2031_v20 }
 0x112   :  { %v2150_v61 = vpop.f32.mrf.mxu0  ;;  %1393 = vmatpush3.msra.mxu1 %v1903_v52 }
 0x113   :  { %1148 = vst.msk [vmem:[%s2551_s2 + $0x90] sm:$0xf] %vm1111_vm1, %v1317_v59  ;;  %v1320_v63 = vpack.c.bf16 %v2150_v61, %v2150_v61  ;;  %1394 = vmatprep.subr.mxu1 %v2007_v14 }
 0x114   :  { %v2160_v1 = vpop.f32.mrf.mxu0  ;;  %1395 = vmatpush3.msra.mxu1 %v1879_v46 }
 0x115   :  { %1151 = vst.msk [vmem:[%s2551_s2 + $0x9c] sm:$0xf] %vm1111_vm1, %v1320_v63  ;;  %v1318_v3 = vpack.c.bf16 %v2160_v1, %v2160_v1  ;;  %1396 = vmatprep.subr.mxu1 %v1991_v10 }
 0x116   :  { %v2170_v5 = vpop.f32.mrf.mxu0  ;;  %1397 = vmatpush3.msra.mxu1 %v1863_v42 }
 0x117   :  { %1149 = vst.msk [vmem:[%s2551_s2 + $0x94] sm:$0xf] %vm1111_vm1, %v1318_v3  ;;  %v1323_v7 = vpack.c.bf16 %v2170_v5, %v2170_v5  ;;  %1398 = vmatprep.subr.mxu1 %v2015_v16 }
 0x118   :  { %v2180_v9 = vpop.f32.mrf.mxu0  ;;  %1399 = vmatpush3.msra.mxu1 %v1887_v48 }
 0x119   :  { %1154 = vst.msk [vmem:[%s2551_s2 + $0xa8] sm:$0xf] %vm1111_vm1, %v1323_v7  ;;  %v1321_v11 = vpack.c.bf16 %v2180_v9, %v2180_v9  ;;  %1400 = vmatprep.subr.mxu1 %v1999_v12 }
 0x11a   :  { %v2190_v13 = vpop.f32.mrf.mxu0  ;;  %1401 = vmatpush3.msra.mxu1 %v1871_v44 }
 0x11b   :  { %1152 = vst.msk [vmem:[%s2551_s2 + $0xa0] sm:$0xf] %vm1111_vm1, %v1321_v11  ;;  %v1324_v15 = vpack.c.bf16 %v2190_v13, %v2190_v13  ;;  %1402 = vmatprep.subr.mxu1 %v1975_v6 }
 0x11c   :  { %v2200_v17 = vpop.f32.mrf.mxu0  ;;  %1403 = vmatpush3.msra.mxu1 %v1847_v38 }
 0x11d   :  { %1155 = vst.msk [vmem:[%s2551_s2 + $0xac] sm:$0xf] %vm1111_vm1, %v1324_v15  ;;  %v1322_v19 = vpack.c.bf16 %v2200_v17, %v2200_v17  ;;  %1404 = vmatprep.subr.mxu1 %v1959_v2 }
 0x11e   :  { %v2210_v21 = vpop.f32.mrf.mxu0  ;;  %1405 = vmatpush3.msra.mxu1 %v1835_v34 }
 0x11f   :  { %1153 = vst.msk [vmem:[%s2551_s2 + $0xa4] sm:$0xf] %vm1111_vm1, %v1322_v19  ;;  %v1327_v23 = vpack.c.bf16 %v2210_v21, %v2210_v21  ;;  %1406 = vmatprep.subr.mxu1 %v1983_v8 }
 0x120   :  { %v2220_v25 = vpop.f32.mrf.mxu0  ;;  %1407 = vmatpush3.msra.mxu1 %v1855_v40 }
 0x121   :  { %1158 = vst.msk [vmem:[%s2551_s2 + $0xb8] sm:$0xf] %vm1111_vm1, %v1327_v23  ;;  %v1325_v27 = vpack.c.bf16 %v2220_v25, %v2220_v25  ;;  %1408 = vmatprep.subr.mxu1 %v1967_v4 }
 0x122   :  { %v2230_v29 = vpop.f32.mrf.mxu0  ;;  %1409 = vmatpush3.msra.mxu1 %v1839_v36 }
 0x123   :  { %1156 = vst.msk [vmem:[%s2551_s2 + $0xb0] sm:$0xf] %vm1111_vm1, %v1325_v27  ;;  %v1328_v31 = vpack.c.bf16 %v2230_v29, %v2230_v29  ;;  %569 = vmatmul.mubr.f32.vlgmr.msra.gmra.mxu1 %v2553_v33 }
 0x124   :  { %v2240_v35 = vpop.f32.mrf.mxu0  ;;  %638 = vmatprep.mubr.f32.mxu1 %v2553_v33 }
 0x125   :  { %1159 = vst.msk [vmem:[%s2551_s2 + $0xbc] sm:$0xf] %vm1111_vm1, %v1328_v31  ;;  %v1326_v39 = vpack.c.bf16 %v2240_v35, %v2240_v35 }
 0x126   :  { %v2249_v43 = vpop.f32.mrf.mxu0 }
 0x127   :  { %2563 = vst [vmem:[#allocation5_spill] sm:$0xff] %v2249_v43  ;;  %1157 = vst.msk [vmem:[%s2551_s2 + $0xb4] sm:$0xf] %vm1111_vm1, %v1326_v39  ;;  %v1331_v47 = vpack.c.bf16 %v2249_v43, %v2249_v43 }
 0x128   :  { %v2257_v51 = vpop.f32.mrf.mxu0 }
 0x129   :  { %1162 = vst.msk [vmem:[%s2551_s2 + $0xc8] sm:$0xf] %vm1111_vm1, %v1331_v47  ;;  %v1329_v55 = vpack.c.bf16 %v2257_v51, %v2257_v51 }
 0x12a   :  { %v2265_v59 = vpop.f32.mrf.mxu0 }
 0x12b   :  { %1160 = vst.msk [vmem:[%s2551_s2 + $0xc0] sm:$0xf] %vm1111_vm1, %v1329_v55  ;;  %v1332_v63 = vpack.c.bf16 %v2265_v59, %v2265_v59 }
 0x12c   :  { %v2273_v3 = vpop.f32.mrf.mxu0 }
 0x12d   :  { %2564 = vst [vmem:[#allocation6_spill] sm:$0xff] %v2273_v3  ;;  %1163 = vst.msk [vmem:[%s2551_s2 + $0xcc] sm:$0xf] %vm1111_vm1, %v1332_v63  ;;  %v1330_v7 = vpack.c.bf16 %v2273_v3, %v2273_v3 }
 0x12e   :  { %v2281_v11 = vpop.f32.mrf.mxu0 }
 0x12f   :  { %1161 = vst.msk [vmem:[%s2551_s2 + $0xc4] sm:$0xf] %vm1111_vm1, %v1330_v7  ;;  %v1335_v15 = vpack.c.bf16 %v2281_v11, %v2281_v11 }
 0x130   :  { %v2289_v19 = vpop.f32.mrf.mxu0 }
 0x131   :  { %1166 = vst.msk [vmem:[%s2551_s2 + $0xd8] sm:$0xf] %vm1111_vm1, %v1335_v15  ;;  %v1333_v23 = vpack.c.bf16 %v2289_v19, %v2289_v19 }
 0x132   :  { %v2297_v27 = vpop.f32.mrf.mxu0 }
 0x133   :  { %1164 = vst.msk [vmem:[%s2551_s2 + $0xd0] sm:$0xf] %vm1111_vm1, %v1333_v23  ;;  %v1336_v31 = vpack.c.bf16 %v2297_v27, %v2297_v27 }
 0x134   :  { %v2305_v39 = vpop.f32.mrf.mxu0 }
 0x135   :  { %1167 = vst.msk [vmem:[%s2551_s2 + $0xdc] sm:$0xf] %vm1111_vm1, %v1336_v31  ;;  %v1334_v47 = vpack.c.bf16 %v2305_v39, %v2305_v39 }
 0x136   :  { %v2313_v55 = vpop.f32.mrf.mxu0 }
 0x137   :  { %1165 = vst.msk [vmem:[%s2551_s2 + $0xd4] sm:$0xf] %vm1111_vm1, %v1334_v47  ;;  %v1339_v63 = vpack.c.bf16 %v2313_v55, %v2313_v55 }
 0x138   :  { %v2321_v7 = vpop.f32.mrf.mxu0 }
 0x139   :  { %1170 = vst.msk [vmem:[%s2551_s2 + $0xe8] sm:$0xf] %vm1111_vm1, %v1339_v63  ;;  %v1337_v15 = vpack.c.bf16 %v2321_v7, %v2321_v7 }
 0x13a   :  { %v2329_v23 = vpop.f32.mrf.mxu0 }
 0x13b   :  { %1168 = vst.msk [vmem:[%s2551_s2 + $0xe0] sm:$0xf] %vm1111_vm1, %v1337_v15  ;;  %v1340_v31 = vpack.c.bf16 %v2329_v23, %v2329_v23 }
 0x13c   :  { %v2337_v47 = vpop.f32.mrf.mxu0 }
 0x13d   :  { %1171 = vst.msk [vmem:[%s2551_s2 + $0xec] sm:$0xf] %vm1111_vm1, %v1340_v31  ;;  %v1338_v63 = vpack.c.bf16 %v2337_v47, %v2337_v47 }
 0x13e   :  { %v2345_v33 = vpop.f32.mrf.mxu0 }
 0x13f   :  { %1169 = vst.msk [vmem:[%s2551_s2 + $0xe4] sm:$0xf] %vm1111_vm1, %v1338_v63  ;;  %v1343_v15 = vpack.c.bf16 %v2345_v33, %v2345_v33 }
 0x140   :  { %v2353_v36 = vpop.f32.mrf.mxu0 }
 0x141   :  { %1174 = vst.msk [vmem:[%s2551_s2 + $0xf8] sm:$0xf] %vm1111_vm1, %v1343_v15  ;;  %v1341_v31 = vpack.c.bf16 %v2353_v36, %v2353_v36 }
 0x142   :  { %v2361_v4 = vpop.f32.mrf.mxu0 }
 0x143   :  { %1172 = vst.msk [vmem:[%s2551_s2 + $0xf0] sm:$0xf] %vm1111_vm1, %v1341_v31  ;;  %v1344_v63 = vpack.c.bf16 %v2361_v4, %v2361_v4  ;;  %1413 = vmatprep.subr.mxu1 %v2361_v4  ;;  %v675_v31 = vmul.f32 %v2071_v30, %v2071_v30  ;;  %v673_v30 = vmul.f32 %v2080_v32, %v2080_v32 }
 0x144   :  { %v2370_v40 = vpop.f32.mrf.mxu0  ;;  %1414 = vmatpush3.msra.mxu1 %v2230_v29  ;;  %v655_v32 = vmul.f32 %v1911_v54, %v1911_v54  ;;  %v668_v54 = vmul.f32 %v2031_v20, %v2031_v20  ;;  %v650_v20 = vmul.f32 %v1863_v42, %v1863_v42  ;;  %v663_v42 = vmul.f32 %v1975_v6, %v1975_v6 }
 0x145   :  { %1175 = vst.msk [vmem:[%s2551_s2 + $0xfc] sm:$0xf] %vm1111_vm1, %v1344_v63  ;;  %v1342_v15 = vpack.c.bf16 %v2370_v40, %v2370_v40  ;;  %1415 = vmatprep.subr.mxu1 %v2345_v33  ;;  %v659_v63 = vmul.f32 %v1943_v62, %v1943_v62  ;;  %v657_v62 = vmul.f32 %v1951_v0, %v1951_v0 }
 0x146   :  { %1416 = vmatpush3.msra.mxu1 %v2210_v21  ;;  %v670_v0 = vmul.f32 %v2023_v18, %v2023_v18  ;;  %v652_v18 = vmul.f32 %v1903_v52, %v1903_v52  ;;  %v665_v52 = vmul.f32 %v2015_v16, %v2015_v16  ;;  %v647_v16 = vmul.f32 %v1847_v38, %v1847_v38 }
 0x147   :  { %1173 = vst.msk [vmem:[%s2551_s2 + $0xf4] sm:$0xf] %vm1111_vm1, %v1342_v15  ;;  %1417 = vmatprep.subr.mxu1 %v2370_v40  ;;  %v674_v15 = vmul.f32 %v2055_v26, %v2055_v26  ;;  %v672_v26 = vmul.f32 %v2063_v28, %v2063_v28  ;;  %v654_v28 = vmul.f32 %v1895_v50, %v1895_v50 }
 0x148   :  { %1418 = vmatpush3.msra.mxu1 %v2240_v35  ;;  %v667_v50 = vmul.f32 %v2007_v14, %v2007_v14  ;;  %v649_v14 = vmul.f32 %v1887_v48, %v1887_v48  ;;  %v662_v48 = vmul.f32 %v1959_v2, %v1959_v2 }
 0x149   :  { %1419 = vmatprep.subr.mxu1 %v2353_v36 }
 0x14a   :  { %1420 = vmatpush3.msra.mxu1 %v2220_v25 }
 0x14b   :  { %1421 = vmatprep.subr.mxu1 %v2329_v23 }
 0x14c   :  { %1422 = vmatpush3.msra.mxu1 %v2190_v13 }
 0x14d   :  { %1423 = vmatprep.subr.mxu1 %v2313_v55 }
 0x14e   :  { %1424 = vmatpush3.msra.mxu1 %v2170_v5 }
 0x14f   :  { %1425 = vmatprep.subr.mxu1 %v2337_v47 }
 0x150   :  { %1426 = vmatpush3.msra.mxu1 %v2200_v17 }
 0x151   :  { %1427 = vmatprep.subr.mxu1 %v2321_v7 }
 0x152   :  { %1428 = vmatpush3.msra.mxu1 %v2180_v9 }
 0x153   :  { %1429 = vmatprep.subr.mxu1 %v2297_v27 }
 0x154   :  { %1430 = vmatpush3.msra.mxu1 %v2150_v61 }
 0x155   :  { %1431 = vmatprep.subr.mxu1 %v2281_v11 }
 0x156   :  { %1432 = vmatpush3.msra.mxu1 %v2130_v53 }
 0x157   :  { %1433 = vmatprep.subr.mxu1 %v2305_v39 }
 0x158   :  { %1434 = vmatpush3.msra.mxu1 %v2160_v1 }
 0x159   :  { %1435 = vmatprep.subr.mxu1 %v2289_v19 }
 0x15a   :  { %1436 = vmatpush3.msra.mxu1 %v2140_v57 }
 0x15b   :  { %1437 = vmatprep.subr.mxu1 %v2265_v59 }
 0x15c   :  { %1438 = vmatpush3.msra.mxu1 %v2110_v45 }
 0x15d   :  { %1439 = vmatprep.subr.mxu1 %v2249_v43  ;;  %v2565_v43 = vmov 1.0  }
 0x15e   :  { %1440 = vmatpush3.msra.mxu1 %v2090_v37 }
 0x15f   :  { %1441 = vmatprep.subr.mxu1 %v2273_v3  ;;  %v658_v3 = vmul.f32 %v1927_v58, %v1927_v58  ;;  %v671_v58 = vmul.f32 %v2039_v22, %v2039_v22  ;;  %v653_v22 = vmul.f32 %v1919_v56, %v1919_v56  ;;  %v666_v56 = vmul.f32 %v1991_v10, %v1991_v10 }
 0x160   :  { %1442 = vmatpush3.msra.mxu1 %v2120_v49  ;;  %v648_v10 = vmul.f32 %v1871_v44, %v1871_v44  ;;  %v661_v44 = vmul.f32 %v1983_v8, %v1983_v8  ;;  %v691_v8 = vmul.f32 %v2230_v29, %v2230_v29  ;;  %v689_v29 = vmul.f32 %v2240_v35, %v2240_v35 }
 0x161   :  { %1443 = vmatprep.subr.mxu1 %v2257_v51  ;;  %v702_v35 = vmul.f32 %v2313_v55, %v2313_v55  ;;  %v684_v55 = vmul.f32 %v2180_v9, %v2180_v9  ;;  %v697_v9 = vmul.f32 %v2305_v39, %v2305_v39  ;;  %v679_v39 = vmul.f32 %v2110_v45, %v2110_v45 }
 0x162   :  { %1444 = vmatpush3.msra.mxu1 %v2100_v41  ;;  %v692_v45 = vmul.f32 %v2257_v51, %v2257_v51 }
 0x163   :  { %639 = vmatmul.mubr.f32.vlgmr.msra.gmra.mxu1 %v2565_v43  ;;  %1448 = vmatprep.subr.mxu1 %v675_v31  ;;  %v656_v31 = vmul.f32 %v1935_v60, %v1935_v60  ;;  %v669_v60 = vmul.f32 %v2047_v24, %v2047_v24  ;;  %v651_v24 = vmul.f32 %v1879_v46, %v1879_v46 }
 0x164   :  { %1449 = vmatpush3.msra.mxu1 %v659_v63  ;;  %772 = vmatprep.mubr.f32.mxu1 %v2565_v43  ;;  %v664_v46 = vmul.f32 %v1999_v12, %v1999_v12  ;;  %v646_v12 = vmul.f32 %v1835_v34, %v1835_v34  ;;  %v2567_v63 = vld [vmem:[#allocation4_spill] sm:$0xff]  ;;  %v707_v34 = vmul.f32 %v2361_v4, %v2361_v4 }
 0x165   :  { %1450 = vmatprep.subr.mxu1 %v674_v15  ;;  %v660_v38 = vmul.f32 %v2567_v63, %v2567_v63  ;;  %v2568_v15 = vld [vmem:[#allocation2_spill] sm:$0xff]  ;;  %v705_v4 = vmul.f32 %v2370_v40, %v2370_v40  ;;  %v687_v40 = vmul.f32 %v2190_v13, %v2190_v13  ;;  %v700_v13 = vmul.f32 %v2321_v7, %v2321_v7 }
 0x166   :  { %1451 = vmatpush3.msra.mxu1 %v658_v3  ;;  %v2566_v3 = vld [vmem:[#allocation3_spill] sm:$0xff]  ;;  %v644_v2 = vmul.f32 %v2568_v15, %v2568_v15  ;;  %v682_v7 = vmul.f32 %v2130_v53, %v2130_v53  ;;  %v695_v53 = vmul.f32 %v2265_v59, %v2265_v59  ;;  %v677_v59 = vmul.f32 %v2120_v49, %v2120_v49 }
 0x167   :  { %1452 = vmatprep.subr.mxu1 %v673_v30  ;;  %v645_v6 = vmul.f32 %v2566_v3, %v2566_v3  ;;  %v706_v30 = vmul.f32 %v2345_v33, %v2345_v33  ;;  %v704_v33 = vmul.f32 %v2353_v36, %v2353_v36  ;;  %v686_v36 = vmul.f32 %v2170_v5, %v2170_v5 }
 0x168   :  { %1453 = vmatpush3.msra.mxu1 %v657_v62  ;;  %v690_v62 = vmul.f32 %v2210_v21, %v2210_v21  ;;  %v703_v21 = vmul.f32 %v2329_v23, %v2329_v23  ;;  %v685_v23 = vmul.f32 %v2200_v17, %v2200_v17  ;;  %v699_v5 = vmul.f32 %v2297_v27, %v2297_v27 }
 0x169   :  { %1454 = vmatprep.subr.mxu1 %v672_v26  ;;  %v688_v26 = vmul.f32 %v2220_v25, %v2220_v25  ;;  %v701_v25 = vmul.f32 %v2337_v47, %v2337_v47  ;;  %v683_v47 = vmul.f32 %v2150_v61, %v2150_v61  ;;  %v698_v17 = vmul.f32 %v2281_v11, %v2281_v11 }
 0x16a   :  { %1455 = vmatpush3.msra.mxu1 %v656_v31  ;;  %v681_v27 = vmul.f32 %v2160_v1, %v2160_v1  ;;  %v696_v61 = vmul.f32 %v2289_v19, %v2289_v19  ;;  %v680_v11 = vmul.f32 %v2140_v57, %v2140_v57  ;;  %v2569_v31 = vld [vmem:[#allocation5_spill] sm:$0xff]  ;;  %v678_v19 = vmul.f32 %v2090_v37, %v2090_v37 }
 0x16b   :  { %1456 = vmatprep.subr.mxu1 %v671_v58  ;;  %v694_v1 = vmul.f32 %v2569_v31, %v2569_v31  ;;  %v2570_v58 = vld [vmem:[#allocation6_spill] sm:$0xff] }
 0x16c   :  { %1457 = vmatpush3.msra.mxu1 %v655_v32  ;;  %v693_v57 = vmul.f32 %v2570_v58, %v2570_v58  ;;  %v676_v32 = vmul.f32 %v2100_v41, %v2100_v41 }
 0x16d   :  { %1458 = vmatprep.subr.mxu1 %v670_v0 }
 0x16e   :  { %1459 = vmatpush3.msra.mxu1 %v654_v28 }
 0x16f   :  { %1460 = vmatprep.subr.mxu1 %v669_v60 }
 0x170   :  { %1461 = vmatpush3.msra.mxu1 %v653_v22 }
 0x171   :  { %1462 = vmatprep.subr.mxu1 %v668_v54 }
 0x172   :  { %1463 = vmatpush3.msra.mxu1 %v652_v18 }
 0x173   :  { %1464 = vmatprep.subr.mxu1 %v667_v50 }
 0x174   :  { %1465 = vmatpush3.msra.mxu1 %v651_v24 }
 0x175   :  { %1466 = vmatprep.subr.mxu1 %v666_v56 }
 0x176   :  { %1467 = vmatpush3.msra.mxu1 %v650_v20 }
 0x177   :  { %1468 = vmatprep.subr.mxu1 %v665_v52 }
 0x178   :  { %1469 = vmatpush3.msra.mxu1 %v649_v14 }
 0x179   :  { %1470 = vmatprep.subr.mxu1 %v664_v46 }
 0x17a   :  { %1471 = vmatpush3.msra.mxu1 %v648_v10 }
 0x17b   :  { %1472 = vmatprep.subr.mxu1 %v663_v42 }
 0x17c   :  { %1473 = vmatpush3.msra.mxu1 %v647_v16 }
 0x17d   :  { %1474 = vmatprep.subr.mxu1 %v662_v48 }
 0x17e   :  { %1475 = vmatpush3.msra.mxu1 %v646_v12 }
 0x17f   :  { %1476 = vmatprep.subr.mxu1 %v661_v44 }
 0x180   :  { %1477 = vmatpush3.msra.mxu1 %v645_v6 }
 0x181   :  { %1478 = vmatprep.subr.mxu1 %v660_v38 }
 0x182   :  { %1479 = vmatpush3.msra.mxu1 %v644_v2 }
 0x183   :  { %773 = vmatmul.mubr.f32.vlgmr.msra.gmra.mxu1 %v2565_v43  ;;  %1483 = vmatprep.subr.mxu1 %v707_v34 }
 0x184   :  { %1484 = vmatpush3.msra.mxu1 %v691_v8  ;;  %842 = vmatprep.mubr.f32.mxu1 %v2565_v43 }
 0x185   :  { %1485 = vmatprep.subr.mxu1 %v706_v30 }
 0x186   :  { %1486 = vmatpush3.msra.mxu1 %v690_v62 }
 0x187   :  { %1487 = vmatprep.subr.mxu1 %v705_v4 }
 0x188   :  { %1488 = vmatpush3.msra.mxu1 %v689_v29 }
 0x189   :  { %1489 = vmatprep.subr.mxu1 %v704_v33 }
 0x18a   :  { %1490 = vmatpush3.msra.mxu1 %v688_v26 }
 0x18b   :  { %1491 = vmatprep.subr.mxu1 %v703_v21 }
 0x18c   :  { %1492 = vmatpush3.msra.mxu1 %v687_v40 }
 0x18d   :  { %1493 = vmatprep.subr.mxu1 %v702_v35 }
 0x18e   :  { %1494 = vmatpush3.msra.mxu1 %v686_v36 }
 0x18f   :  { %1495 = vmatprep.subr.mxu1 %v701_v25 }
 0x190   :  { %1496 = vmatpush3.msra.mxu1 %v685_v23 }
 0x191   :  { %1497 = vmatprep.subr.mxu1 %v700_v13 }
 0x192   :  { %1498 = vmatpush3.msra.mxu1 %v684_v55 }
 0x193   :  { %1499 = vmatprep.subr.mxu1 %v699_v5 }
 0x194   :  { %1500 = vmatpush3.msra.mxu1 %v683_v47 }
 0x195   :  { %1501 = vmatprep.subr.mxu1 %v698_v17 }
 0x196   :  { %1502 = vmatpush3.msra.mxu1 %v682_v7 }
 0x197   :  { %1503 = vmatprep.subr.mxu1 %v697_v9 }
 0x198   :  { %1504 = vmatpush3.msra.mxu1 %v681_v27 }
 0x199   :  { %1505 = vmatprep.subr.mxu1 %v696_v61 }
 0x19a   :  { %1506 = vmatpush3.msra.mxu1 %v680_v11 }
 0x19b   :  { %1507 = vmatprep.subr.mxu1 %v695_v53 }
 0x19c   :  { %1508 = vmatpush3.msra.mxu1 %v679_v39 }
 0x19d   :  { %1509 = vmatprep.subr.mxu1 %v694_v1 }
 0x19e   :  { %1510 = vmatpush3.msra.mxu1 %v678_v19 }
 0x19f   :  { %1511 = vmatprep.subr.mxu1 %v693_v57 }
 0x1a0   :  { %1512 = vmatpush3.msra.mxu1 %v677_v59 }
 0x1a1   :  { %1513 = vmatprep.subr.mxu1 %v692_v45 }
 0x1a2   :  { %1514 = vmatpush3.msra.mxu1 %v676_v32 }
 0x1a3   :  { %843 = vmatmul.mubr.f32.vlgmr.msra.gmra.mxu1 %v2565_v43 }
 0x1e3   :  { %v1410_v37 = vpop.f32.mrf.mxu1 }
 0x1e5   :  { %v1411_v0 = vpop.f32.mrf.mxu1 }
 0x1e6   :  { %v1412_v56 = vadd.f32 %v1411_v0, %v1410_v37 }
 0x223   :  { %v1445_v28 = vpop.f32.mrf.mxu1 }
 0x225   :  { %v1446_v60 = vpop.f32.mrf.mxu1 }
 0x226   :  { %v1447_v50 = vadd.f32 %v1446_v60, %v1445_v28 }
 0x228   :  { %v641_v41 = vadd.f32 %v1447_v50, %v1412_v56 }
 0x243   :  { %v1480_v22 = vpop.f32.mrf.mxu1 }
 0x245   :  { %v1481_v54 = vpop.f32.mrf.mxu1 }
 0x246   :  { %v1482_v24 = vadd.f32 %v1481_v54, %v1480_v22 }
 0x263   :  { %v1515_v49 = vpop.f32.mrf.mxu1 }
 0x265   :  { %v1516_v18 = vpop.f32.mrf.mxu1 }
 0x266   :  { %v1517_v51 = vadd.f32 %v1516_v18, %v1515_v49 }
 0x268   :  { %v845_v20 = vadd.f32 %v1517_v51, %v1482_v24 }
 0x26a   :  { %v849_v52 = vrot.slane %v845_v20, 7 }
 0x26c   :  { %v852_v14 = vsel %vm851_vm2, %v641_v41, %v849_v52 }
 0x26d   :  { %854 = vst.msk [vmem:[%s2552_s3] sm:$0x3] %vm853_vm3, %v852_v14 }

// kernel: bottleneck_nchw.6
= control target key start
LH: loop header
LB: loop body
LE: loop exit
PB: predicated region body
PF: predicated region fallthrough
CT: control target
= control target key end

     0   :  { %vm484_vm0 = vcmask 1041408   ;;  %vm387_vm1 = vcmask 31744   ;;  %vm1368_vm2 = vcmask 125952   ;;  %vm777_vm3 = vcmask 130048   ;;  %s2809_s3 = inlined_call_operand.vmem [shape: bf16[4,16], index: 3, kind: input, shape index: {}]   ;;  %s2810_s0 = inlined_call_operand.vmem [shape: bf16[512,4], index: 0, kind: input, shape index: {}]   ;;  %s2811_s1 = inlined_call_operand.vmem [shape: f32[1,4], index: 1, kind: input, shape index: {}]   ;;  %s2812_s2 = inlined_call_operand.vmem [shape: f32[1,4], index: 2, kind: input, shape index: {}]   ;;  %s2813_s4 = inlined_call_operand.vmem [shape: bf16[512,16], index: 4, kind: output, shape index: {0}]   ;;  %s2814_s5 = inlined_call_operand.vmem [shape: f32[1,2,16], index: 5, kind: output, shape index: {1}]  }
   0x1   :  { %v386_v0 = vld [vmem:[%s2809_s3] sm:$0x3]  ;;  %v1731_v6 = vld [vmem:[%s2810_s0 + $0x8] sm:$0xff]   ;;  %v1732_v7 = vld [vmem:[%s2810_s0 + $0x10] sm:$0xff]   ;;  %vm1108_vm4 = vcmask 1040384   ;;  %vm1110_vm5 = vcmask 123904  }
   0x2   :  { %v1604_v1 = vld [vmem:[%s2810_s0] sm:$0xff]   ;;  %1863 = vmatprep.subr.msk.bf16.mxu0 %vm484_vm0, %v386_v0  ;;  %v486_v3 = vsel %vm484_vm0, %v386_v0, 0  ;;  %1864 = vmatprep.subr.msk.bf16.mxu1 %vm484_vm0, %v386_v0  ;;  %v1609_v9 = vunpack.c.l.bf16 %v1731_v6  ;;  %v1610_v10 = vunpack.c.h.bf16 %v1731_v6  ;;  %v1613_v11 = vunpack.c.l.bf16 %v1732_v7  ;;  %v1733_v13 = vld [vmem:[%s2810_s0 + $0x18] sm:$0xff]   ;;  %v1735_v35 = vld [vmem:[%s2810_s0 + $0x28] sm:$0xff]  }
   0x3   :  { %v1904_v2 = vld [vmem:[%s2811_s1] ss:$0 sm:$0xff]  ;;  %v1605_v4 = vunpack.c.l.bf16 %v1604_v1  ;;  %v1606_v5 = vunpack.c.h.bf16 %v1604_v1  ;;  %1796 = vmatpush3.bf16.msra.mxu0 %v486_v3  ;;  %v1614_v12 = vunpack.c.h.bf16 %v1732_v7  ;;  %1862 = vmatpush3.bf16.msra.mxu1 %v486_v3  ;;  %v1617_v16 = vunpack.c.l.bf16 %v1733_v13  ;;  %v1736_v40 = vld [vmem:[%s2810_s0 + $0x30] sm:$0xff]   ;;  %v1737_v51 = vld [vmem:[%s2810_s0 + $0x38] sm:$0xff]  }
   0x4   :  { %v1915_v8 = vld [vmem:[%s2812_s2] ss:$0 sm:$0xff]  ;;  %v1618_v17 = vunpack.c.h.bf16 %v1733_v13  ;;  %v157_v18 = vmul.f32 %v1609_v9, %v1904_v2  ;;  %v158_v19 = vmul.f32 %v1610_v10, %v1904_v2  ;;  %v159_v20 = vmul.f32 %v1613_v11, %v1904_v2  ;;  %v1739_v9 = vld [vmem:[%s2810_s0 + $0x48] sm:$0xff]   ;;  %v1740_v11 = vld [vmem:[%s2810_s0 + $0x50] sm:$0xff]  }
   0x5   :  { %v155_v14 = vmul.f32 %v1605_v4, %v1904_v2  ;;  %v156_v15 = vmul.f32 %v1606_v5, %v1904_v2  ;;  %v160_v21 = vmul.f32 %v1614_v12, %v1904_v2  ;;  %v161_v24 = vmul.f32 %v1617_v16, %v1904_v2  ;;  %v1734_v30 = vld [vmem:[%s2810_s0 + $0x20] sm:$0xff]  }
   0x6   :  { %v162_v25 = vmul.f32 %v1618_v17, %v1904_v2  ;;  %v228_v26 = vadd.f32 %v1915_v8, %v157_v18  ;;  %v229_v27 = vadd.f32 %v1915_v8, %v158_v19  ;;  %v230_v28 = vadd.f32 %v1915_v8, %v159_v20  ;;  %v1738_v63 = vld [vmem:[%s2810_s0 + $0x40] sm:$0xff]   ;;  %v1741_v20 = vld [vmem:[%s2810_s0 + $0x58] sm:$0xff]  }
   0x7   :  { %v226_v22 = vadd.f32 %v1915_v8, %v155_v14  ;;  %v227_v23 = vadd.f32 %v1915_v8, %v156_v15  ;;  %v231_v29 = vadd.f32 %v1915_v8, %v160_v21  ;;  %v232_v33 = vadd.f32 %v1915_v8, %v161_v24 }
   0x8   :  { %v233_v34 = vadd.f32 %v1915_v8, %v162_v25  ;;  %v292_v36 = vmax.f32 %v228_v26, 0.0  ;;  %v293_v37 = vmax.f32 %v229_v27, 0.0  ;;  %v294_v38 = vmax.f32 %v230_v28, 0.0 }
   0x9   :  { %v290_v31 = vmax.f32 %v226_v22, 0.0  ;;  %v291_v32 = vmax.f32 %v227_v23, 0.0  ;;  %v295_v39 = vmax.f32 %v231_v29, 0.0  ;;  %v1621_v42 = vunpack.c.l.bf16 %v1734_v30 }
   0xa   :  { %v355_v43 = vpack.c.bf16 %v293_v37, %v292_v36  ;;  %v1622_v45 = vunpack.c.h.bf16 %v1734_v30  ;;  %v1625_v46 = vunpack.c.l.bf16 %v1735_v35  ;;  %v296_v47 = vmax.f32 %v232_v33, 0.0 }
   0xb   :  { %v354_v41 = vpack.c.bf16 %v291_v32, %v290_v31  ;;  %v356_v44 = vpack.c.bf16 %v295_v39, %v294_v38  ;;  %v163_v48 = vmul.f32 %v1621_v42, %v1904_v2  ;;  %v1626_v49 = vunpack.c.h.bf16 %v1735_v35  ;;  %v1742_v31 = vld [vmem:[%s2810_s0 + $0x60] sm:$0xff]  }
   0xc   :  { %v1629_v50 = vunpack.c.l.bf16 %v1736_v40  ;;  %v297_v52 = vmax.f32 %v233_v34, 0.0  ;;  %v164_v53 = vmul.f32 %v1622_v45, %v1904_v2  ;;  %v165_v54 = vmul.f32 %v1625_v46, %v1904_v2 }
   0xd   :  { %1797 = vmatprep.mubr.msk.bf16.mxu0 %vm387_vm1, %v354_v41  ;;  %v1630_v55 = vunpack.c.h.bf16 %v1736_v40  ;;  %v234_v56 = vadd.f32 %v1915_v8, %v163_v48  ;;  %v166_v57 = vmul.f32 %v1626_v49, %v1904_v2  ;;  %v1633_v61 = vunpack.c.l.bf16 %v1737_v51 }
   0xe   :  { %1798 = vmatmul.mubr.msk.bf16.vlgmr.msra.gmra.mxu0 %vm387_vm1, %v355_v43  ;;  %v167_v58 = vmul.f32 %v1629_v50, %v1904_v2  ;;  %v235_v59 = vadd.f32 %v1915_v8, %v164_v53  ;;  %v1634_v62 = vunpack.c.h.bf16 %v1737_v51  ;;  %v236_v1 = vadd.f32 %v1915_v8, %v165_v54 }
   0xf   :  { %1801 = vmatprep.mubr.msk.bf16.mxu0 %vm387_vm1, %v356_v44  ;;  %v168_v60 = vmul.f32 %v1630_v55, %v1904_v2  ;;  %v298_v0 = vmax.f32 %v234_v56, 0.0  ;;  %v237_v3 = vadd.f32 %v1915_v8, %v166_v57  ;;  %v357_v5 = vpack.c.bf16 %v297_v52, %v296_v47  ;;  %v1743_v44 = vld [vmem:[%s2810_s0 + $0x68] sm:$0xff]   ;;  %v1744_v56 = vld [vmem:[%s2810_s0 + $0x70] sm:$0xff]  }
  0x10   :  { %v238_v4 = vadd.f32 %v1915_v8, %v167_v58  ;;  %v299_v6 = vmax.f32 %v235_v59, 0.0  ;;  %v1637_v10 = vunpack.c.l.bf16 %v1738_v63  ;;  %v169_v13 = vmul.f32 %v1633_v61, %v1904_v2 }
  0x11   :  { %v239_v7 = vadd.f32 %v1915_v8, %v168_v60  ;;  %v170_v14 = vmul.f32 %v1634_v62, %v1904_v2  ;;  %v1638_v15 = vunpack.c.h.bf16 %v1738_v63  ;;  %v300_v16 = vmax.f32 %v236_v1, 0.0  ;;  %v2014_v1 = vld [vmem:[%s2810_s0 + $0x78] sm:$0xff]  }
  0x12   :  { %v358_v12 = vpack.c.bf16 %v299_v6, %v298_v0  ;;  %v301_v17 = vmax.f32 %v237_v3, 0.0  ;;  %v302_v18 = vmax.f32 %v238_v4, 0.0  ;;  %v1641_v19 = vunpack.c.l.bf16 %v1739_v9  ;;  %v1746_v3 = vld [vmem:[%s2810_s0 + $0x80] sm:$0xff]  }
  0x13   :  { %v303_v21 = vmax.f32 %v239_v7, 0.0  ;;  %v171_v22 = vmul.f32 %v1637_v10, %v1904_v2  ;;  %v1642_v23 = vunpack.c.h.bf16 %v1739_v9  ;;  %v1645_v24 = vunpack.c.l.bf16 %v1740_v11 }
  0x14   :  { %v172_v25 = vmul.f32 %v1638_v15, %v1904_v2  ;;  %v173_v26 = vmul.f32 %v1641_v19, %v1904_v2  ;;  %v1646_v27 = vunpack.c.h.bf16 %v1740_v11  ;;  %v1649_v30 = vunpack.c.l.bf16 %v1741_v20  ;;  %v1747_v19 = vld [vmem:[%s2810_s0 + $0x88] sm:$0xff]  }
  0x15   :  { %v174_v28 = vmul.f32 %v1642_v23, %v1904_v2  ;;  %v175_v29 = vmul.f32 %v1645_v24, %v1904_v2  ;;  %v240_v32 = vadd.f32 %v1915_v8, %v169_v13  ;;  %v241_v33 = vadd.f32 %v1915_v8, %v170_v14  ;;  %v1748_v24 = vld [vmem:[%s2810_s0 + $0x90] sm:$0xff]  }
  0x16   :  { %1802 = vmatmul.mubr.msk.bf16.gmra.mxu0 %vm387_vm1, %v357_v5  ;;  %v176_v34 = vmul.f32 %v1646_v27, %v1904_v2  ;;  %v1650_v35 = vunpack.c.h.bf16 %v1741_v20  ;;  %v359_v36 = vpack.c.bf16 %v301_v17, %v300_v16  ;;  %v360_v37 = vpack.c.bf16 %v303_v21, %v302_v18 }
  0x17   :  { %1805 = vmatprep.mubr.msk.bf16.mxu0 %vm387_vm1, %v358_v12  ;;  %v242_v38 = vadd.f32 %v1915_v8, %v171_v22  ;;  %v177_v39 = vmul.f32 %v1649_v30, %v1904_v2  ;;  %v243_v40 = vadd.f32 %v1915_v8, %v172_v25  ;;  %v244_v41 = vadd.f32 %v1915_v8, %v173_v26 }
  0x18   :  { %v178_v42 = vmul.f32 %v1650_v35, %v1904_v2  ;;  %v1653_v43 = vunpack.c.l.bf16 %v1742_v31  ;;  %v245_v45 = vadd.f32 %v1915_v8, %v174_v28  ;;  %v246_v46 = vadd.f32 %v1915_v8, %v175_v29 }
  0x19   :  { %v247_v47 = vadd.f32 %v1915_v8, %v176_v34  ;;  %v248_v48 = vadd.f32 %v1915_v8, %v177_v39  ;;  %v1654_v50 = vunpack.c.h.bf16 %v1742_v31  ;;  %v304_v52 = vmax.f32 %v240_v32, 0.0 }
  0x1a   :  { %v249_v49 = vadd.f32 %v1915_v8, %v178_v42  ;;  %v179_v51 = vmul.f32 %v1653_v43, %v1904_v2  ;;  %v305_v53 = vmax.f32 %v241_v33, 0.0  ;;  %v1657_v54 = vunpack.c.l.bf16 %v1743_v44  ;;  %v1749_v33 = vld [vmem:[%s2810_s0 + $0x98] sm:$0xff]  }
  0x1b   :  { %v1658_v55 = vunpack.c.h.bf16 %v1743_v44  ;;  %v306_v57 = vmax.f32 %v242_v38, 0.0  ;;  %v307_v58 = vmax.f32 %v243_v40, 0.0  ;;  %v308_v59 = vmax.f32 %v244_v41, 0.0 }
  0x1c   :  { %v180_v60 = vmul.f32 %v1654_v50, %v1904_v2  ;;  %v309_v61 = vmax.f32 %v245_v45, 0.0  ;;  %v310_v62 = vmax.f32 %v246_v46, 0.0  ;;  %v311_v63 = vmax.f32 %v247_v47, 0.0  ;;  %v1750_v46 = vld [vmem:[%s2810_s0 + $0xa0] sm:$0xff]  }
  0x1d   :  { %v181_v0 = vmul.f32 %v1657_v54, %v1904_v2  ;;  %v312_v4 = vmax.f32 %v248_v48, 0.0  ;;  %v313_v5 = vmax.f32 %v249_v49, 0.0  ;;  %v2020_v6 = vadd.f32 %v1915_v8, %v179_v51 }
  0x1e   :  { %1806 = vmatmul.mubr.msk.bf16.gmra.mxu0 %vm387_vm1, %v359_v36  ;;  %v1661_v7 = vunpack.c.l.bf16 %v1744_v56  ;;  %v361_v9 = vpack.c.bf16 %v305_v53, %v304_v52  ;;  %v2023_v10 = vadd.f32 %v1915_v8, %v180_v60  ;;  %v182_v11 = vmul.f32 %v1658_v55, %v1904_v2  ;;  %v1751_v55 = vld [vmem:[%s2810_s0 + $0xa8] sm:$0xff]  }
  0x1f   :  { %1809 = vmatprep.mubr.msk.bf16.mxu0 %vm387_vm1, %v360_v37  ;;  %v1662_v12 = vunpack.c.h.bf16 %v1744_v56  ;;  %v362_v13 = vpack.c.bf16 %v307_v58, %v306_v57  ;;  %v1665_v14 = vunpack.c.l.bf16 %v2014_v1  ;;  %v1669_v15 = vunpack.c.l.bf16 %v1746_v3 }
  0x20   :  { %v363_v16 = vpack.c.bf16 %v309_v61, %v308_v59  ;;  %v364_v17 = vpack.c.bf16 %v311_v63, %v310_v62  ;;  %v2028_v18 = vadd.f32 %v1915_v8, %v181_v0  ;;  %v2033_v20 = vpack.c.bf16 %v313_v5, %v312_v4 }
  0x21   :  { %v314_v21 = vmax.f32 %v2020_v6, 0.0  ;;  %v183_v22 = vmul.f32 %v1661_v7, %v1904_v2  ;;  %v1670_v23 = vunpack.c.h.bf16 %v1746_v3  ;;  %v315_v25 = vmax.f32 %v2023_v10, 0.0  ;;  %v1752_v7 = vld [vmem:[%s2810_s0 + $0xb0] sm:$0xff]   ;;  %v1754_v6 = vld [vmem:[%s2810_s0 + $0xc0] sm:$0xff]  }
  0x22   :  { %v2043_v26 = vadd.f32 %v1915_v8, %v182_v11  ;;  %v184_v27 = vmul.f32 %v1662_v12, %v1904_v2  ;;  %v187_v28 = vmul.f32 %v1669_v15, %v1904_v2  ;;  %v1666_v29 = vunpack.c.h.bf16 %v2014_v1 }
  0x23   :  { %v2050_v30 = vmul.f32 %v1665_v14, %v1904_v2  ;;  %v188_v31 = vmul.f32 %v1670_v23, %v1904_v2  ;;  %v1673_v32 = vunpack.c.l.bf16 %v1747_v19  ;;  %v316_v34 = vmax.f32 %v2028_v18, 0.0  ;;  %v1756_v18 = vld [vmem:[%s2810_s0 + $0xd0] sm:$0xff]  }
  0x24   :  { %v258_v35 = vadd.f32 %v1915_v8, %v187_v28  ;;  %v1674_v36 = vunpack.c.h.bf16 %v1747_v19  ;;  %v1677_v37 = vunpack.c.l.bf16 %v1748_v24  ;;  %v2059_v38 = vadd.f32 %v1915_v8, %v183_v22 }
  0x25   :  { %v259_v39 = vadd.f32 %v1915_v8, %v188_v31  ;;  %v189_v40 = vmul.f32 %v1673_v32, %v1904_v2  ;;  %v1678_v41 = vunpack.c.h.bf16 %v1748_v24  ;;  %v1681_v45 = vunpack.c.l.bf16 %v1749_v33  ;;  %v1753_v24 = vld [vmem:[%s2810_s0 + $0xb8] sm:$0xff]  }
  0x26   :  { %1810 = vmatmul.mubr.msk.bf16.gmra.mxu0 %vm387_vm1, %v361_v9  ;;  %v322_v42 = vmax.f32 %v258_v35, 0.0  ;;  %v190_v43 = vmul.f32 %v1674_v36, %v1904_v2  ;;  %v191_v44 = vmul.f32 %v1677_v37, %v1904_v2  ;;  %v2069_v47 = vadd.f32 %v1915_v8, %v184_v27 }
  0x27   :  { %1813 = vmatprep.mubr.msk.bf16.mxu0 %vm387_vm1, %v362_v13  ;;  %v323_v48 = vmax.f32 %v259_v39, 0.0  ;;  %v260_v49 = vadd.f32 %v1915_v8, %v189_v40  ;;  %v192_v50 = vmul.f32 %v1678_v41, %v1904_v2  ;;  %v1682_v53 = vunpack.c.h.bf16 %v1749_v33 }
  0x28   :  { %v261_v51 = vadd.f32 %v1915_v8, %v190_v43  ;;  %v262_v52 = vadd.f32 %v1915_v8, %v191_v44  ;;  %v193_v54 = vmul.f32 %v1681_v45, %v1904_v2  ;;  %v1685_v59 = vunpack.c.l.bf16 %v1750_v46 }
  0x29   :  { %v370_v56 = vpack.c.bf16 %v323_v48, %v322_v42  ;;  %v324_v57 = vmax.f32 %v260_v49, 0.0  ;;  %v263_v58 = vadd.f32 %v1915_v8, %v192_v50  ;;  %v194_v62 = vmul.f32 %v1682_v53, %v1904_v2 }
  0x2a   :  { %v325_v60 = vmax.f32 %v261_v51, 0.0  ;;  %v326_v61 = vmax.f32 %v262_v52, 0.0  ;;  %v264_v63 = vadd.f32 %v1915_v8, %v193_v54  ;;  %v1686_v3 = vunpack.c.h.bf16 %v1750_v46  ;;  %v1755_v52 = vld [vmem:[%s2810_s0 + $0xc8] sm:$0xff]  }
  0x2b   :  { %1829 = vmatprep.mubr.msk.bf16.mxu1 %vm387_vm1, %v370_v56  ;;  %v327_v0 = vmax.f32 %v263_v58, 0.0  ;;  %v195_v4 = vmul.f32 %v1685_v59, %v1904_v2  ;;  %v1689_v5 = vunpack.c.l.bf16 %v1751_v55  ;;  %v265_v10 = vadd.f32 %v1915_v8, %v194_v62 }
  0x2c   :  { %v371_v9 = vpack.c.bf16 %v325_v60, %v324_v57  ;;  %v328_v11 = vmax.f32 %v264_v63, 0.0  ;;  %v1690_v12 = vunpack.c.h.bf16 %v1751_v55  ;;  %v196_v14 = vmul.f32 %v1686_v3, %v1904_v2 }
  0x2d   :  { %v372_v13 = vpack.c.bf16 %v327_v0, %v326_v61  ;;  %v266_v15 = vadd.f32 %v1915_v8, %v195_v4  ;;  %v1693_v22 = vunpack.c.l.bf16 %v1752_v7  ;;  %v1694_v23 = vunpack.c.h.bf16 %v1752_v7 }
  0x2e   :  { %1814 = vmatmul.mubr.msk.bf16.gmra.mxu0 %vm387_vm1, %v363_v16  ;;  %v197_v16 = vmul.f32 %v1689_v5, %v1904_v2  ;;  %1830 = vmatmul.mubr.msk.bf16.vlgmr.msra.gmra.mxu1 %vm387_vm1, %v371_v9  ;;  %v198_v19 = vmul.f32 %v1690_v12, %v1904_v2  ;;  %v366_v27 = vpack.c.bf16 %v315_v25, %v314_v21  ;;  %v317_v28 = vmax.f32 %v2043_v26, 0.0 }
  0x2f   :  { %1817 = vmatprep.mubr.msk.bf16.mxu0 %vm387_vm1, %v364_v17  ;;  %v329_v17 = vmax.f32 %v265_v10, 0.0  ;;  %1833 = vmatprep.mubr.msk.bf16.mxu1 %vm387_vm1, %v372_v13  ;;  %v267_v31 = vadd.f32 %v1915_v8, %v196_v14  ;;  %v330_v32 = vmax.f32 %v266_v15, 0.0  ;;  %v318_v33 = vmax.f32 %v2059_v38, 0.0  ;;  %v1757_v14 = vld [vmem:[%s2810_s0 + $0xd8] sm:$0xff]  }
  0x30   :  { %v186_v35 = vmul.f32 %v1666_v29, %v1904_v2  ;;  %v199_v36 = vmul.f32 %v1693_v22, %v1904_v2  ;;  %v200_v37 = vmul.f32 %v1694_v23, %v1904_v2  ;;  %v319_v21 = vmax.f32 %v2069_v47, 0.0 }
  0x31   :  { %v331_v25 = vmax.f32 %v267_v31, 0.0  ;;  %v1697_v26 = vunpack.c.l.bf16 %v1753_v24  ;;  %v1698_v39 = vunpack.c.h.bf16 %v1753_v24  ;;  %v373_v38 = vpack.c.bf16 %v329_v17, %v328_v11  ;;  %v1758_v17 = vld [vmem:[%s2810_s0 + $0xe0] sm:$0xff]  }
  0x32   :  { %v268_v1 = vadd.f32 %v1915_v8, %v197_v16  ;;  %v269_v29 = vadd.f32 %v1915_v8, %v198_v19  ;;  %v270_v40 = vadd.f32 %v1915_v8, %v199_v36  ;;  %v271_v42 = vadd.f32 %v1915_v8, %v200_v37 }
  0x33   :  { %v374_v41 = vpack.c.bf16 %v331_v25, %v330_v32  ;;  %v1701_v43 = vunpack.c.l.bf16 %v1754_v6  ;;  %v1702_v44 = vunpack.c.h.bf16 %v1754_v6  ;;  %v256_v45 = vadd.f32 %v1915_v8, %v2050_v30 }
  0x34   :  { %v257_v46 = vadd.f32 %v1915_v8, %v186_v35  ;;  %v202_v47 = vmul.f32 %v1698_v39, %v1904_v2  ;;  %v367_v48 = vpack.c.bf16 %v317_v28, %v316_v34  ;;  %v368_v49 = vpack.c.bf16 %v319_v21, %v318_v33  ;;  %v1759_v39 = vld [vmem:[%s2810_s0 + $0xe8] sm:$0xff]  }
  0x35   :  { %v332_v50 = vmax.f32 %v268_v1, 0.0  ;;  %v333_v51 = vmax.f32 %v269_v29, 0.0  ;;  %v334_v30 = vmax.f32 %v270_v40, 0.0  ;;  %v335_v53 = vmax.f32 %v271_v42, 0.0  ;;  %v1760_v29 = vld [vmem:[%s2810_s0 + $0xf0] sm:$0xff]  }
  0x36   :  { %1818 = vmatmul.mubr.msk.bf16.gmra.mxu0 %vm387_vm1, %v2033_v20  ;;  %v201_v20 = vmul.f32 %v1697_v26, %v1904_v2  ;;  %1834 = vmatmul.mubr.msk.bf16.gmra.mxu1 %vm387_vm1, %v373_v38  ;;  %v203_v54 = vmul.f32 %v1701_v43, %v1904_v2  ;;  %v204_v55 = vmul.f32 %v1702_v44, %v1904_v2  ;;  %v320_v34 = vmax.f32 %v256_v45, 0.0 }
  0x37   :  { %1821 = vmatprep.mubr.msk.bf16.mxu0 %vm387_vm1, %v366_v27  ;;  %1837 = vmatprep.mubr.msk.bf16.mxu1 %vm387_vm1, %v374_v41  ;;  %v321_v56 = vmax.f32 %v257_v46, 0.0  ;;  %v273_v58 = vadd.f32 %v1915_v8, %v202_v47  ;;  %v1705_v59 = vunpack.c.l.bf16 %v1755_v52  ;;  %v375_v60 = vpack.c.bf16 %v333_v51, %v332_v50 }
  0x38   :  { %v272_v57 = vadd.f32 %v1915_v8, %v201_v20  ;;  %v1706_v61 = vunpack.c.h.bf16 %v1755_v52  ;;  %v1709_v62 = vunpack.c.l.bf16 %v1756_v18  ;;  %v1710_v63 = vunpack.c.h.bf16 %v1756_v18  ;;  %v1761_v18 = vld [vmem:[%s2810_s0 + $0xf8] sm:$0xff]  }
  0x39   :  { %v376_v0 = vpack.c.bf16 %v335_v53, %v334_v30  ;;  %v274_v3 = vadd.f32 %v1915_v8, %v203_v54  ;;  %v275_v4 = vadd.f32 %v1915_v8, %v204_v55  ;;  %v337_v7 = vmax.f32 %v273_v58, 0.0 }
  0x3a   :  { %v336_v5 = vmax.f32 %v272_v57, 0.0  ;;  %v205_v9 = vmul.f32 %v1705_v59, %v1904_v2  ;;  %v369_v10 = vpack.c.bf16 %v321_v56, %v320_v34  ;;  %v206_v11 = vmul.f32 %v1706_v61, %v1904_v2 }
  0x3b   :  { %v207_v12 = vmul.f32 %v1709_v62, %v1904_v2  ;;  %v208_v13 = vmul.f32 %v1710_v63, %v1904_v2  ;;  %v338_v15 = vmax.f32 %v274_v3, 0.0  ;;  %v339_v16 = vmax.f32 %v275_v4, 0.0 }
  0x3c   :  { %v377_v19 = vpack.c.bf16 %v337_v7, %v336_v5  ;;  %v276_v22 = vadd.f32 %v1915_v8, %v205_v9  ;;  %v1713_v23 = vunpack.c.l.bf16 %v1757_v14  ;;  %v277_v24 = vadd.f32 %v1915_v8, %v206_v11 }
  0x3d   :  { %v278_v27 = vadd.f32 %v1915_v8, %v207_v12  ;;  %v279_v28 = vadd.f32 %v1915_v8, %v208_v13  ;;  %v1714_v31 = vunpack.c.h.bf16 %v1757_v14  ;;  %v378_v32 = vpack.c.bf16 %v339_v16, %v338_v15 }
  0x3e   :  { %1822 = vmatmul.mubr.msk.bf16.gmra.mxu0 %vm387_vm1, %v367_v48  ;;  %1838 = vmatmul.mubr.msk.bf16.gmra.mxu1 %vm387_vm1, %v375_v60  ;;  %v1717_v33 = vunpack.c.l.bf16 %v1758_v17  ;;  %v1718_v35 = vunpack.c.h.bf16 %v1758_v17  ;;  %v340_v36 = vmax.f32 %v276_v22, 0.0  ;;  %v209_v37 = vmul.f32 %v1713_v23, %v1904_v2 }
  0x3f   :  { %1825 = vmatprep.mubr.msk.bf16.mxu0 %vm387_vm1, %v368_v49  ;;  %1841 = vmatprep.mubr.msk.bf16.mxu1 %vm387_vm1, %v376_v0  ;;  %v341_v6 = vmax.f32 %v277_v24, 0.0  ;;  %v342_v21 = vmax.f32 %v278_v27, 0.0  ;;  %v343_v25 = vmax.f32 %v279_v28, 0.0  ;;  %v210_v26 = vmul.f32 %v1714_v31, %v1904_v2 }
  0x40   :  { %v211_v38 = vmul.f32 %v1717_v33, %v1904_v2  ;;  %v212_v1 = vmul.f32 %v1718_v35, %v1904_v2  ;;  %v280_v40 = vadd.f32 %v1915_v8, %v209_v37  ;;  %v1721_v41 = vunpack.c.l.bf16 %v1759_v39 }
  0x41   :  { %v379_v42 = vpack.c.bf16 %v341_v6, %v340_v36  ;;  %v380_v43 = vpack.c.bf16 %v343_v25, %v342_v21  ;;  %v281_v44 = vadd.f32 %v1915_v8, %v210_v26  ;;  %v1722_v45 = vunpack.c.h.bf16 %v1759_v39 }
  0x42   :  { %v282_v46 = vadd.f32 %v1915_v8, %v211_v38  ;;  %v283_v20 = vadd.f32 %v1915_v8, %v212_v1  ;;  %v1725_v47 = vunpack.c.l.bf16 %v1760_v29  ;;  %v1726_v48 = vunpack.c.h.bf16 %v1760_v29 }
  0x43   :  { %v213_v49 = vmul.f32 %v1721_v41, %v1904_v2  ;;  %v344_v50 = vmax.f32 %v280_v40, 0.0  ;;  %v345_v51 = vmax.f32 %v281_v44, 0.0  ;;  %v214_v52 = vmul.f32 %v1722_v45, %v1904_v2 }
  0x44   :  { %v346_v30 = vmax.f32 %v282_v46, 0.0  ;;  %v347_v53 = vmax.f32 %v283_v20, 0.0  ;;  %v215_v54 = vmul.f32 %v1725_v47, %v1904_v2  ;;  %v216_v55 = vmul.f32 %v1726_v48, %v1904_v2 }
  0x45   :  { %v284_v34 = vadd.f32 %v1915_v8, %v213_v49  ;;  %v381_v56 = vpack.c.bf16 %v345_v51, %v344_v50  ;;  %v285_v57 = vadd.f32 %v1915_v8, %v214_v52  ;;  %v1729_v58 = vunpack.c.l.bf16 %v1761_v18 }
  0x46   :  { %1826 = vmatmul.mubr.msk.bf16.gmra.mxu0 %vm387_vm1, %v369_v10  ;;  %1842 = vmatmul.mubr.msk.bf16.gmra.mxu1 %vm387_vm1, %v377_v19  ;;  %v1730_v59 = vunpack.c.h.bf16 %v1761_v18  ;;  %v382_v60 = vpack.c.bf16 %v347_v53, %v346_v30  ;;  %v286_v61 = vadd.f32 %v1915_v8, %v215_v54  ;;  %v287_v62 = vadd.f32 %v1915_v8, %v216_v55 }
  0x47   :  { %1845 = vmatprep.mubr.msk.bf16.mxu1 %vm387_vm1, %v378_v32  ;;  %v348_v63 = vmax.f32 %v284_v34, 0.0  ;;  %v349_v0 = vmax.f32 %v285_v57, 0.0  ;;  %v217_v3 = vmul.f32 %v1729_v58, %v1904_v2 }
  0x48   :  { %v218_v4 = vmul.f32 %v1730_v59, %v1904_v2  ;;  %v350_v5 = vmax.f32 %v286_v61, 0.0  ;;  %v351_v7 = vmax.f32 %v287_v62, 0.0 }
  0x49   :  { %v383_v9 = vpack.c.bf16 %v349_v0, %v348_v63  ;;  %v288_v10 = vadd.f32 %v1915_v8, %v217_v3 }
  0x4a   :  { %v289_v11 = vadd.f32 %v1915_v8, %v218_v4  ;;  %v384_v12 = vpack.c.bf16 %v351_v7, %v350_v5 }
  0x4b   :  { %v352_v13 = vmax.f32 %v288_v10, 0.0 }
  0x4c   :  { %v353_v14 = vmax.f32 %v289_v11, 0.0 }
  0x4e   :  { %1846 = vmatmul.mubr.msk.bf16.gmra.mxu1 %vm387_vm1, %v379_v42  ;;  %v385_v15 = vpack.c.bf16 %v353_v14, %v352_v13 }
  0x4f   :  { %1849 = vmatprep.mubr.msk.bf16.mxu1 %vm387_vm1, %v380_v43 }
  0x56   :  { %1850 = vmatmul.mubr.msk.bf16.gmra.mxu1 %vm387_vm1, %v381_v56 }
  0x57   :  { %1853 = vmatprep.mubr.msk.bf16.mxu1 %vm387_vm1, %v382_v60 }
  0x5e   :  { %1854 = vmatmul.mubr.msk.bf16.gmra.mxu1 %vm387_vm1, %v383_v9 }
  0x5f   :  { %1857 = vmatprep.mubr.msk.bf16.mxu1 %vm387_vm1, %v384_v12 }
  0x66   :  { %1858 = vmatmul.mubr.msk.bf16.gmra.mxu1 %vm387_vm1, %v385_v15 }
  0xce   :  { %v1799_v2 = vpop.f32.mrf.mxu0 }
  0xcf   :  { %v1541_v16 = vpack.c.bf16 %v1799_v2, %v1799_v2  ;;  %v913_v24 = vmul.f32 %v1799_v2, %v1799_v2  ;;  %v781_v35 = vsel %vm777_vm3, %v1799_v2, 0.0 }
  0xd0   :  { %v522_v17 = vpop.f32.mrf.mxu0 }
  0xd1   :  { %1371 = vst.msk [vmem:[%s2813_s4 + $0x8] sm:$0xf] %vm1368_vm2, %v1541_v16  ;;  %v1539_v8 = vpack.c.bf16 %v522_v17, %v522_v17  ;;  %v911_v22 = vmul.f32 %v522_v17, %v522_v17  ;;  %v778_v28 = vsel %vm777_vm3, %v522_v17, 0.0  ;;  %v978_v29 = vsel %vm777_vm3, %v913_v24, 0.0 }
  0xd2   :  { %v1800_v19 = vpop.f32.mrf.mxu0 }
  0xd3   :  { %1369 = vst.msk [vmem:[%s2813_s4] sm:$0xf] %vm1368_vm2, %v1539_v8  ;;  %v1542_v23 = vpack.c.bf16 %v1800_v19, %v1800_v19  ;;  %v975_v6 = vsel %vm777_vm3, %v911_v22, 0.0  ;;  %v914_v21 = vmul.f32 %v1800_v19, %v1800_v19  ;;  %v783_v40 = vsel %vm777_vm3, %v1800_v19, 0.0 }
  0xd4   :  { %v525_v27 = vpop.f32.mrf.mxu0 }
  0xd5   :  { %1372 = vst.msk [vmem:[%s2813_s4 + $0xc] sm:$0xf] %vm1368_vm2, %v1542_v23  ;;  %v779_v31 = vsel %vm777_vm3, %v525_v27, 0.0  ;;  %v912_v32 = vmul.f32 %v525_v27, %v525_v27  ;;  %v1540_v33 = vpack.c.bf16 %v525_v27, %v525_v27  ;;  %v980_v46 = vsel %vm777_vm3, %v914_v21, 0.0 }
  0xd6   :  { %v780_v36 = vadd.f32 %v779_v31, %v778_v28  ;;  %v1803_v37 = vpop.f32.mrf.mxu0 }
  0xd7   :  { %v976_v25 = vsel %vm777_vm3, %v912_v32, 0.0  ;;  %1370 = vst.msk [vmem:[%s2813_s4 + $0x4] sm:$0xf] %vm1368_vm2, %v1540_v33  ;;  %v1545_v26 = vpack.c.bf16 %v1803_v37, %v1803_v37  ;;  %v917_v48 = vmul.f32 %v1803_v37, %v1803_v37  ;;  %v789_v56 = vsel %vm777_vm3, %v1803_v37, 0.0 }
  0xd8   :  { %v782_v39 = vadd.f32 %v781_v35, %v780_v36  ;;  %v977_v38 = vadd.f32 %v976_v25, %v975_v6  ;;  %v538_v1 = vpop.f32.mrf.mxu0 }
  0xd9   :  { %1375 = vst.msk [vmem:[%s2813_s4 + $0x18] sm:$0xf] %vm1368_vm2, %v1545_v26  ;;  %v915_v41 = vmul.f32 %v538_v1, %v538_v1  ;;  %v1543_v42 = vpack.c.bf16 %v538_v1, %v538_v1  ;;  %v785_v20 = vsel %vm777_vm3, %v538_v1, 0.0  ;;  %v986_v63 = vsel %vm777_vm3, %v917_v48, 0.0 }
  0xda   :  { %v979_v43 = vadd.f32 %v978_v29, %v977_v38  ;;  %v784_v44 = vadd.f32 %v783_v40, %v782_v39  ;;  %v1804_v45 = vpop.f32.mrf.mxu0 }
  0xdb   :  { %1373 = vst.msk [vmem:[%s2813_s4 + $0x10] sm:$0xf] %vm1368_vm2, %v1543_v42  ;;  %v1546_v47 = vpack.c.bf16 %v1804_v45, %v1804_v45  ;;  %v982_v52 = vsel %vm777_vm3, %v915_v41, 0.0  ;;  %v918_v57 = vmul.f32 %v1804_v45, %v1804_v45  ;;  %v791_v0 = vsel %vm777_vm3, %v1804_v45, 0.0 }
  0xdc   :  { %v786_v49 = vadd.f32 %v785_v20, %v784_v44  ;;  %v981_v50 = vadd.f32 %v980_v46, %v979_v43  ;;  %v541_v51 = vpop.f32.mrf.mxu0 }
  0xdd   :  { %1376 = vst.msk [vmem:[%s2813_s4 + $0x1c] sm:$0xf] %vm1368_vm2, %v1546_v47  ;;  %v787_v30 = vsel %vm777_vm3, %v541_v51, 0.0  ;;  %v916_v53 = vmul.f32 %v541_v51, %v541_v51  ;;  %v1544_v54 = vpack.c.bf16 %v541_v51, %v541_v51  ;;  %v988_v10 = vsel %vm777_vm3, %v918_v57, 0.0 }
  0xde   :  { %v983_v55 = vadd.f32 %v982_v52, %v981_v50  ;;  %v788_v18 = vadd.f32 %v787_v30, %v786_v49  ;;  %v1807_v34 = vpop.f32.mrf.mxu0 }
  0xdf   :  { %v984_v58 = vsel %vm777_vm3, %v916_v53, 0.0  ;;  %1374 = vst.msk [vmem:[%s2813_s4 + $0x14] sm:$0xf] %vm1368_vm2, %v1544_v54  ;;  %v1549_v59 = vpack.c.bf16 %v1807_v34, %v1807_v34  ;;  %v921_v13 = vmul.f32 %v1807_v34, %v1807_v34  ;;  %v797_v27 = vsel %vm777_vm3, %v1807_v34, 0.0 }
  0xe0   :  { %v790_v60 = vadd.f32 %v789_v56, %v788_v18  ;;  %v985_v61 = vadd.f32 %v984_v58, %v983_v55  ;;  %v554_v62 = vpop.f32.mrf.mxu0 }
  0xe1   :  { %1379 = vst.msk [vmem:[%s2813_s4 + $0x28] sm:$0xf] %vm1368_vm2, %v1549_v59  ;;  %v919_v3 = vmul.f32 %v554_v62, %v554_v62  ;;  %v1547_v4 = vpack.c.bf16 %v554_v62, %v554_v62  ;;  %v793_v11 = vsel %vm777_vm3, %v554_v62, 0.0  ;;  %v994_v37 = vsel %vm777_vm3, %v921_v13, 0.0 }
  0xe2   :  { %v987_v5 = vadd.f32 %v986_v63, %v985_v61  ;;  %v792_v7 = vadd.f32 %v791_v0, %v790_v60  ;;  %v1808_v9 = vpop.f32.mrf.mxu0 }
  0xe3   :  { %1377 = vst.msk [vmem:[%s2813_s4 + $0x20] sm:$0xf] %vm1368_vm2, %v1547_v4  ;;  %v1550_v12 = vpack.c.bf16 %v1808_v9, %v1808_v9  ;;  %v990_v16 = vsel %vm777_vm3, %v919_v3, 0.0  ;;  %v922_v28 = vmul.f32 %v1808_v9, %v1808_v9  ;;  %v799_v6 = vsel %vm777_vm3, %v1808_v9, 0.0 }
  0xe4   :  { %v794_v14 = vadd.f32 %v793_v11, %v792_v7  ;;  %v989_v15 = vadd.f32 %v988_v10, %v987_v5  ;;  %v557_v2 = vpop.f32.mrf.mxu0 }
  0xe5   :  { %1380 = vst.msk [vmem:[%s2813_s4 + $0x2c] sm:$0xf] %vm1368_vm2, %v1550_v12  ;;  %v795_v17 = vsel %vm777_vm3, %v557_v2, 0.0  ;;  %v920_v8 = vmul.f32 %v557_v2, %v557_v2  ;;  %v1548_v19 = vpack.c.bf16 %v557_v2, %v557_v2  ;;  %v996_v1 = vsel %vm777_vm3, %v922_v28, 0.0 }
  0xe6   :  { %v991_v22 = vadd.f32 %v990_v16, %v989_v15  ;;  %v796_v23 = vadd.f32 %v795_v17, %v794_v14  ;;  %v1811_v24 = vpop.f32.mrf.mxu0 }
  0xe7   :  { %v992_v31 = vsel %vm777_vm3, %v920_v8, 0.0  ;;  %1378 = vst.msk [vmem:[%s2813_s4 + $0x24] sm:$0xf] %vm1368_vm2, %v1548_v19  ;;  %v1553_v32 = vpack.c.bf16 %v1811_v24, %v1811_v24  ;;  %v925_v41 = vmul.f32 %v1811_v24, %v1811_v24  ;;  %v805_v51 = vsel %vm777_vm3, %v1811_v24, 0.0 }
  0xe8   :  { %v798_v33 = vadd.f32 %v797_v27, %v796_v23  ;;  %v993_v35 = vadd.f32 %v992_v31, %v991_v22  ;;  %v570_v36 = vpop.f32.mrf.mxu0 }
  0xe9   :  { %1383 = vst.msk [vmem:[%s2813_s4 + $0x38] sm:$0xf] %vm1368_vm2, %v1553_v32  ;;  %v923_v21 = vmul.f32 %v570_v36, %v570_v36  ;;  %v1551_v25 = vpack.c.bf16 %v570_v36, %v570_v36  ;;  %v801_v29 = vsel %vm777_vm3, %v570_v36, 0.0  ;;  %v1002_v34 = vsel %vm777_vm3, %v925_v41, 0.0 }
  0xea   :  { %v995_v26 = vadd.f32 %v994_v37, %v993_v35  ;;  %v800_v39 = vadd.f32 %v799_v6, %v798_v33  ;;  %v1812_v38 = vpop.f32.mrf.mxu0 }
  0xeb   :  { %1381 = vst.msk [vmem:[%s2813_s4 + $0x30] sm:$0xf] %vm1368_vm2, %v1551_v25  ;;  %v1554_v40 = vpack.c.bf16 %v1812_v38, %v1812_v38  ;;  %v998_v45 = vsel %vm777_vm3, %v923_v21, 0.0  ;;  %v926_v52 = vmul.f32 %v1812_v38, %v1812_v38  ;;  %v807_v56 = vsel %vm777_vm3, %v1812_v38, 0.0 }
  0xec   :  { %v802_v42 = vadd.f32 %v801_v29, %v800_v39  ;;  %v997_v43 = vadd.f32 %v996_v1, %v995_v26  ;;  %v573_v44 = vpop.f32.mrf.mxu0 }
  0xed   :  { %1384 = vst.msk [vmem:[%s2813_s4 + $0x3c] sm:$0xf] %vm1368_vm2, %v1554_v40  ;;  %v803_v46 = vsel %vm777_vm3, %v573_v44, 0.0  ;;  %v924_v20 = vmul.f32 %v573_v44, %v573_v44  ;;  %v1552_v47 = vpack.c.bf16 %v573_v44, %v573_v44  ;;  %v1004_v63 = vsel %vm777_vm3, %v926_v52, 0.0 }
  0xee   :  { %v999_v48 = vadd.f32 %v998_v45, %v997_v43  ;;  %v804_v49 = vadd.f32 %v803_v46, %v802_v42  ;;  %v1815_v50 = vpop.f32.mrf.mxu0  ;;  %v2297_v62 = vpop.f32.mrf.mxu1 }
  0xef   :  { %v1000_v30 = vsel %vm777_vm3, %v924_v20, 0.0  ;;  %1382 = vst.msk [vmem:[%s2813_s4 + $0x34] sm:$0xf] %vm1368_vm2, %v1552_v47  ;;  %v1557_v53 = vpack.c.bf16 %v1815_v50, %v1815_v50  ;;  %v929_v4 = vmul.f32 %v1815_v50, %v1815_v50  ;;  %v1573_v17 = vpack.c.bf16 %v2297_v62, %v2297_v62 }
  0xf0   :  { %v806_v54 = vadd.f32 %v805_v51, %v804_v49  ;;  %v1001_v55 = vadd.f32 %v1000_v30, %v999_v48  ;;  %v586_v18 = vpop.f32.mrf.mxu0  ;;  %v2305_v10 = vpop.f32.mrf.mxu1  ;;  %v813_v19 = vsel %vm777_vm3, %v1815_v50, 0.0 }
  0xf1   :  { %1387 = vst.msk [vmem:[%s2813_s4 + $0x48] sm:$0xf] %vm1368_vm2, %v1557_v53  ;;  %v927_v57 = vmul.f32 %v586_v18, %v586_v18  ;;  %v1555_v58 = vpack.c.bf16 %v586_v18, %v586_v18  ;;  %v809_v0 = vsel %vm777_vm3, %v586_v18, 0.0  ;;  %1403 = vst.msk [vmem:[%s2813_s4 + $0x88] sm:$0xf] %vm1368_vm2, %v1573_v17  ;;  %v1010_v33 = vsel %vm777_vm3, %v929_v4, 0.0 }
  0xf2   :  { %v1003_v59 = vadd.f32 %v1002_v34, %v1001_v55  ;;  %v808_v60 = vadd.f32 %v807_v56, %v806_v54  ;;  %v1816_v61 = vpop.f32.mrf.mxu0  ;;  %v2315_v8 = vpop.f32.mrf.mxu1  ;;  %v1571_v26 = vpack.c.bf16 %v2305_v10, %v2305_v10 }
  0xf3   :  { %1385 = vst.msk [vmem:[%s2813_s4 + $0x40] sm:$0xf] %vm1368_vm2, %v1555_v58  ;;  %v1558_v3 = vpack.c.bf16 %v1816_v61, %v1816_v61  ;;  %v1006_v11 = vsel %vm777_vm3, %v927_v57, 0.0  ;;  %v930_v22 = vmul.f32 %v1816_v61, %v1816_v61  ;;  %v815_v35 = vsel %vm777_vm3, %v1816_v61, 0.0 }
  0xf4   :  { %v810_v5 = vadd.f32 %v809_v0, %v808_v60  ;;  %v1005_v7 = vadd.f32 %v1004_v63, %v1003_v59  ;;  %v589_v9 = vpop.f32.mrf.mxu0  ;;  %v2327_v32 = vpop.f32.mrf.mxu1  ;;  %1401 = vst.msk [vmem:[%s2813_s4 + $0x80] sm:$0xf] %vm1368_vm2, %v1571_v26  ;;  %v1574_v51 = vpack.c.bf16 %v2315_v8, %v2315_v8 }
  0xf5   :  { %1388 = vst.msk [vmem:[%s2813_s4 + $0x4c] sm:$0xf] %vm1368_vm2, %v1558_v3  ;;  %v811_v12 = vsel %vm777_vm3, %v589_v9, 0.0  ;;  %v928_v13 = vmul.f32 %v589_v9, %v589_v9  ;;  %v1556_v14 = vpack.c.bf16 %v589_v9, %v589_v9  ;;  %v1012_v38 = vsel %vm777_vm3, %v930_v22, 0.0 }
  0xf6   :  { %v1007_v15 = vadd.f32 %v1006_v11, %v1005_v7  ;;  %v812_v2 = vadd.f32 %v811_v12, %v810_v5  ;;  %v1819_v16 = vpop.f32.mrf.mxu0  ;;  %v2337_v39 = vpop.f32.mrf.mxu1  ;;  %1404 = vst.msk [vmem:[%s2813_s4 + $0x8c] sm:$0xf] %vm1368_vm2, %v1574_v51  ;;  %v1572_v4 = vpack.c.bf16 %v2327_v32, %v2327_v32 }
  0xf7   :  { %v1008_v23 = vsel %vm777_vm3, %v928_v13, 0.0  ;;  %1386 = vst.msk [vmem:[%s2813_s4 + $0x44] sm:$0xf] %vm1368_vm2, %v1556_v14  ;;  %v1561_v24 = vpack.c.bf16 %v1819_v16, %v1819_v16  ;;  %v933_v40 = vmul.f32 %v1819_v16, %v1819_v16  ;;  %v821_v30 = vsel %vm777_vm3, %v1819_v16, 0.0 }
  0xf8   :  { %v814_v27 = vadd.f32 %v813_v19, %v812_v2  ;;  %v1009_v28 = vadd.f32 %v1008_v23, %v1007_v15  ;;  %v602_v31 = vpop.f32.mrf.mxu0  ;;  %v2349_v44 = vpop.f32.mrf.mxu1  ;;  %1402 = vst.msk [vmem:[%s2813_s4 + $0x84] sm:$0xf] %vm1368_vm2, %v1572_v4 }
  0xf9   :  { %1391 = vst.msk [vmem:[%s2813_s4 + $0x58] sm:$0xf] %vm1368_vm2, %v1561_v24  ;;  %v931_v36 = vmul.f32 %v602_v31, %v602_v31  ;;  %v1559_v37 = vpack.c.bf16 %v602_v31, %v602_v31  ;;  %v817_v1 = vsel %vm777_vm3, %v602_v31, 0.0  ;;  %v1018_v58 = vsel %vm777_vm3, %v933_v40, 0.0 }
  0xfa   :  { %v1011_v6 = vadd.f32 %v1010_v33, %v1009_v28  ;;  %v816_v21 = vadd.f32 %v815_v35, %v814_v27  ;;  %v1820_v25 = vpop.f32.mrf.mxu0  ;;  %v2359_v52 = vpop.f32.mrf.mxu1  ;;  %v1577_v28 = vpack.c.bf16 %v2337_v39, %v2337_v39 }
  0xfb   :  { %1389 = vst.msk [vmem:[%s2813_s4 + $0x50] sm:$0xf] %vm1368_vm2, %v1559_v37  ;;  %v1562_v29 = vpack.c.bf16 %v1820_v25, %v1820_v25  ;;  %v1014_v45 = vsel %vm777_vm3, %v931_v36, 0.0  ;;  %v934_v53 = vmul.f32 %v1820_v25, %v1820_v25  ;;  %v823_v59 = vsel %vm777_vm3, %v1820_v25, 0.0 }
  0xfc   :  { %v818_v41 = vadd.f32 %v817_v1, %v816_v21  ;;  %v1013_v42 = vadd.f32 %v1012_v38, %v1011_v6  ;;  %v605_v43 = vpop.f32.mrf.mxu0  ;;  %v2371_v57 = vpop.f32.mrf.mxu1  ;;  %1407 = vst.msk [vmem:[%s2813_s4 + $0x98] sm:$0xf] %vm1368_vm2, %v1577_v28 }
  0xfd   :  { %1392 = vst.msk [vmem:[%s2813_s4 + $0x5c] sm:$0xf] %vm1368_vm2, %v1562_v29  ;;  %v819_v46 = vsel %vm777_vm3, %v605_v43, 0.0  ;;  %v932_v20 = vmul.f32 %v605_v43, %v605_v43  ;;  %v1560_v47 = vpack.c.bf16 %v605_v43, %v605_v43  ;;  %v1020_v7 = vsel %vm777_vm3, %v934_v53, 0.0 }
  0xfe   :  { %v1015_v48 = vadd.f32 %v1014_v45, %v1013_v42  ;;  %v820_v49 = vadd.f32 %v819_v46, %v818_v41  ;;  %v1823_v50 = vpop.f32.mrf.mxu0  ;;  %v2381_v5 = vpop.f32.mrf.mxu1  ;;  %v1575_v45 = vpack.c.bf16 %v2349_v44, %v2349_v44 }
  0xff   :  { %v1016_v54 = vsel %vm777_vm3, %v932_v20, 0.0  ;;  %1390 = vst.msk [vmem:[%s2813_s4 + $0x54] sm:$0xf] %vm1368_vm2, %v1560_v47  ;;  %v1565_v55 = vpack.c.bf16 %v1823_v50, %v1823_v50  ;;  %v937_v12 = vmul.f32 %v1823_v50, %v1823_v50  ;;  %v829_v33 = vsel %vm777_vm3, %v1823_v50, 0.0 }
 0x100   :  { %v822_v18 = vadd.f32 %v821_v30, %v820_v49  ;;  %v1017_v34 = vadd.f32 %v1016_v54, %v1015_v48  ;;  %v618_v56 = vpop.f32.mrf.mxu0  ;;  %v2393_v2 = vpop.f32.mrf.mxu1  ;;  %1405 = vst.msk [vmem:[%s2813_s4 + $0x90] sm:$0xf] %vm1368_vm2, %v1575_v45 }
 0x101   :  { %1395 = vst.msk [vmem:[%s2813_s4 + $0x68] sm:$0xf] %vm1368_vm2, %v1565_v55  ;;  %v935_v60 = vmul.f32 %v618_v56, %v618_v56  ;;  %v1563_v61 = vpack.c.bf16 %v618_v56, %v618_v56  ;;  %v825_v9 = vsel %vm777_vm3, %v618_v56, 0.0  ;;  %v1026_v38 = vsel %vm777_vm3, %v937_v12, 0.0 }
 0x102   :  { %v1019_v63 = vadd.f32 %v1018_v58, %v1017_v34  ;;  %v824_v0 = vadd.f32 %v823_v59, %v822_v18  ;;  %v1824_v3 = vpop.f32.mrf.mxu0  ;;  %v2403_v31 = vpop.f32.mrf.mxu1  ;;  %v1578_v59 = vpack.c.bf16 %v2359_v52, %v2359_v52 }
 0x103   :  { %1393 = vst.msk [vmem:[%s2813_s4 + $0x60] sm:$0xf] %vm1368_vm2, %v1563_v61  ;;  %v1566_v11 = vpack.c.bf16 %v1824_v3, %v1824_v3  ;;  %v1022_v16 = vsel %vm777_vm3, %v935_v60, 0.0  ;;  %v938_v35 = vmul.f32 %v1824_v3, %v1824_v3  ;;  %v831_v1 = vsel %vm777_vm3, %v1824_v3, 0.0 }
 0x104   :  { %v826_v13 = vadd.f32 %v825_v9, %v824_v0  ;;  %v1021_v14 = vadd.f32 %v1020_v7, %v1019_v63  ;;  %v621_v15 = vpop.f32.mrf.mxu0  ;;  %v2415_v26 = vpop.f32.mrf.mxu1  ;;  %v1576_v3 = vpack.c.bf16 %v2371_v57, %v2371_v57  ;;  %1408 = vst.msk [vmem:[%s2813_s4 + $0x9c] sm:$0xf] %vm1368_vm2, %v1578_v59 }
 0x105   :  { %1396 = vst.msk [vmem:[%s2813_s4 + $0x6c] sm:$0xf] %vm1368_vm2, %v1566_v11  ;;  %v827_v17 = vsel %vm777_vm3, %v621_v15, 0.0  ;;  %v936_v19 = vmul.f32 %v621_v15, %v621_v15  ;;  %v1564_v22 = vpack.c.bf16 %v621_v15, %v621_v15  ;;  %v1028_v20 = vsel %vm777_vm3, %v938_v35, 0.0 }
 0x106   :  { %v1023_v23 = vadd.f32 %v1022_v16, %v1021_v14  ;;  %v828_v24 = vadd.f32 %v827_v17, %v826_v13  ;;  %v1827_v27 = vpop.f32.mrf.mxu0  ;;  %v2425_v46 = vpop.f32.mrf.mxu1  ;;  %v943_v13 = vmul.f32 %v2305_v10, %v2305_v10  ;;  %1406 = vst.msk [vmem:[%s2813_s4 + $0x94] sm:$0xf] %vm1368_vm2, %v1576_v3  ;;  %v1581_v14 = vpack.c.bf16 %v2381_v5, %v2381_v5 }
 0x107   :  { %v1024_v36 = vsel %vm777_vm3, %v936_v19, 0.0  ;;  %1394 = vst.msk [vmem:[%s2813_s4 + $0x64] sm:$0xf] %vm1368_vm2, %v1564_v22  ;;  %v1569_v37 = vpack.c.bf16 %v1827_v27, %v1827_v27  ;;  %v941_v49 = vmul.f32 %v1827_v27, %v1827_v27  ;;  %v837_v61 = vsel %vm777_vm3, %v1827_v27, 0.0 }
 0x108   :  { %v830_v6 = vadd.f32 %v829_v33, %v828_v24  ;;  %v1025_v21 = vadd.f32 %v1024_v36, %v1023_v23  ;;  %v634_v25 = vpop.f32.mrf.mxu0  ;;  %v2437_v53 = vpop.f32.mrf.mxu1  ;;  %v1579_v17 = vpack.c.bf16 %v2393_v2, %v2393_v2  ;;  %v841_v23 = vsel %vm777_vm3, %v2305_v10, 0.0  ;;  %1411 = vst.msk [vmem:[%s2813_s4 + $0xa8] sm:$0xf] %vm1368_vm2, %v1581_v14 }
 0x109   :  { %1399 = vst.msk [vmem:[%s2813_s4 + $0x78] sm:$0xf] %vm1368_vm2, %v1569_v37  ;;  %v939_v29 = vmul.f32 %v634_v25, %v634_v25  ;;  %v1567_v40 = vpack.c.bf16 %v634_v25, %v634_v25  ;;  %v833_v47 = vsel %vm777_vm3, %v634_v25, 0.0  ;;  %v1034_v11 = vsel %vm777_vm3, %v941_v49, 0.0 }
 0x10a   :  { %v1027_v41 = vadd.f32 %v1026_v38, %v1025_v21  ;;  %v832_v42 = vadd.f32 %v831_v1, %v830_v6  ;;  %v1828_v43 = vpop.f32.mrf.mxu0  ;;  %v2447_v60 = vpop.f32.mrf.mxu1  ;;  %v944_v24 = vmul.f32 %v2327_v32, %v2327_v32  ;;  %v1582_v27 = vpack.c.bf16 %v2403_v31, %v2403_v31  ;;  %1409 = vst.msk [vmem:[%s2813_s4 + $0xa0] sm:$0xf] %vm1368_vm2, %v1579_v17 }
 0x10b   :  { %1397 = vst.msk [vmem:[%s2813_s4 + $0x70] sm:$0xf] %vm1368_vm2, %v1567_v40  ;;  %v1570_v48 = vpack.c.bf16 %v1828_v43, %v1828_v43  ;;  %v1030_v54 = vsel %vm777_vm3, %v939_v29, 0.0  ;;  %v942_v63 = vmul.f32 %v1828_v43, %v1828_v43  ;;  %v839_v12 = vsel %vm777_vm3, %v1828_v43, 0.0 }
 0x10c   :  { %v834_v50 = vadd.f32 %v833_v47, %v832_v42  ;;  %v1029_v51 = vadd.f32 %v1028_v20, %v1027_v41  ;;  %v637_v30 = vpop.f32.mrf.mxu0  ;;  %v2461_v9 = vpop.f32.mrf.mxu1  ;;  %v945_v10 = vmul.f32 %v2297_v62, %v2297_v62  ;;  %v1038_v36 = vsel %vm777_vm3, %v943_v13, 0.0  ;;  %1412 = vst.msk [vmem:[%s2813_s4 + $0xac] sm:$0xf] %vm1368_vm2, %v1582_v27 }
 0x10d   :  { %1400 = vst.msk [vmem:[%s2813_s4 + $0x7c] sm:$0xf] %vm1368_vm2, %v1570_v48  ;;  %v835_v55 = vsel %vm777_vm3, %v637_v30, 0.0  ;;  %v940_v18 = vmul.f32 %v637_v30, %v637_v30  ;;  %v1568_v34 = vpack.c.bf16 %v637_v30, %v637_v30  ;;  %v1036_v22 = vsel %vm777_vm3, %v942_v63, 0.0 }
 0x10e   :  { %v1031_v56 = vadd.f32 %v1030_v54, %v1029_v51  ;;  %v836_v58 = vadd.f32 %v835_v55, %v834_v50  ;;  %v2475_v19 = vpop.f32.mrf.mxu1  ;;  %v843_v37 = vsel %vm777_vm3, %v2327_v32, 0.0  ;;  %v1580_v6 = vpack.c.bf16 %v2415_v26, %v2415_v26 }
 0x10f   :  { %v1032_v0 = vsel %vm777_vm3, %v940_v18, 0.0  ;;  %1398 = vst.msk [vmem:[%s2813_s4 + $0x74] sm:$0xf] %vm1368_vm2, %v1568_v34  ;;  %v1585_v38 = vpack.c.bf16 %v2425_v46, %v2425_v46  ;;  %v845_v29 = vsel %vm777_vm3, %v2297_v62, 0.0  ;;  %v946_v32 = vmul.f32 %v2315_v8, %v2315_v8 }
 0x110   :  { %v838_v4 = vadd.f32 %v837_v61, %v836_v58  ;;  %v1033_v7 = vadd.f32 %v1032_v0, %v1031_v56  ;;  %v2492_v35 = vpop.f32.mrf.mxu1  ;;  %v1040_v40 = vsel %vm777_vm3, %v944_v24, 0.0  ;;  %1410 = vst.msk [vmem:[%s2813_s4 + $0xa4] sm:$0xf] %vm1368_vm2, %v1580_v6  ;;  %v1583_v41 = vpack.c.bf16 %v2437_v53, %v2437_v53 }
 0x111   :  { %1415 = vst.msk [vmem:[%s2813_s4 + $0xb8] sm:$0xf] %vm1368_vm2, %v1585_v38  ;;  %v1042_v45 = vsel %vm777_vm3, %v945_v10, 0.0  ;;  %v847_v20 = vsel %vm777_vm3, %v2315_v8, 0.0  ;;  %v947_v47 = vmul.f32 %v2349_v44, %v2349_v44  ;;  %v1586_v48 = vpack.c.bf16 %v2447_v60, %v2447_v60 }
 0x112   :  { %v840_v15 = vadd.f32 %v839_v12, %v838_v4  ;;  %v1035_v16 = vadd.f32 %v1034_v11, %v1033_v7  ;;  %v2507_v1 = vpop.f32.mrf.mxu1  ;;  %1413 = vst.msk [vmem:[%s2813_s4 + $0xb0] sm:$0xf] %vm1368_vm2, %v1583_v41  ;;  %v1584_v51 = vpack.c.bf16 %v2461_v9, %v2461_v9  ;;  %v1044_v8 = vsel %vm777_vm3, %v946_v32, 0.0 }
 0x113   :  { %v849_v54 = vsel %vm777_vm3, %v2349_v44, 0.0  ;;  %v948_v55 = vmul.f32 %v2371_v57, %v2371_v57  ;;  %1416 = vst.msk [vmem:[%s2813_s4 + $0xbc] sm:$0xf] %vm1368_vm2, %v1586_v48  ;;  %v1589_v18 = vpack.c.bf16 %v2475_v19, %v2475_v19  ;;  %v949_v44 = vmul.f32 %v2337_v39, %v2337_v39 }
 0x114   :  { %v1037_v28 = vadd.f32 %v1036_v22, %v1035_v16  ;;  %v842_v33 = vadd.f32 %v841_v23, %v840_v15  ;;  %v2524_v62 = vpop.f32.mrf.mxu1  ;;  %1414 = vst.msk [vmem:[%s2813_s4 + $0xb4] sm:$0xf] %vm1368_vm2, %v1584_v51  ;;  %v1046_v59 = vsel %vm777_vm3, %v947_v47, 0.0  ;;  %v851_v61 = vsel %vm777_vm3, %v2371_v57, 0.0 }
 0x115   :  { %1419 = vst.msk [vmem:[%s2813_s4 + $0xc8] sm:$0xf] %vm1368_vm2, %v1589_v18  ;;  %v1587_v63 = vpack.c.bf16 %v2492_v35, %v2492_v35  ;;  %v1590_v4 = vpack.c.bf16 %v2507_v1, %v2507_v1  ;;  %v853_v11 = vsel %vm777_vm3, %v2337_v39, 0.0  ;;  %v950_v57 = vmul.f32 %v2359_v52, %v2359_v52 }
 0x116   :  { %v844_v21 = vadd.f32 %v843_v37, %v842_v33  ;;  %v1039_v25 = vadd.f32 %v1038_v36, %v1037_v28  ;;  %v2539_v30 = vpop.f32.mrf.mxu1  ;;  %v1048_v12 = vsel %vm777_vm3, %v948_v55, 0.0  ;;  %v1588_v13 = vpack.c.bf16 %v2524_v62, %v2524_v62 }
 0x117   :  { %1417 = vst.msk [vmem:[%s2813_s4 + $0xc0] sm:$0xf] %vm1368_vm2, %v1587_v63  ;;  %1420 = vst.msk [vmem:[%s2813_s4 + $0xcc] sm:$0xf] %vm1368_vm2, %v1590_v4  ;;  %v1050_v16 = vsel %vm777_vm3, %v949_v44, 0.0  ;;  %v855_v17 = vsel %vm777_vm3, %v2359_v52, 0.0  ;;  %v951_v22 = vmul.f32 %v2393_v2, %v2393_v2  ;;  %v1593_v23 = vpack.c.bf16 %v2539_v30, %v2539_v30 }
 0x118   :  { %v846_v42 = vadd.f32 %v845_v29, %v844_v21  ;;  %v1041_v43 = vadd.f32 %v1040_v40, %v1039_v25  ;;  %v2556_v58 = vpop.f32.mrf.mxu1  ;;  %1418 = vst.msk [vmem:[%s2813_s4 + $0xc4] sm:$0xf] %vm1368_vm2, %v1588_v13  ;;  %v1052_v52 = vsel %vm777_vm3, %v950_v57, 0.0  ;;  %v857_v10 = vsel %vm777_vm3, %v2393_v2, 0.0 }
 0x119   :  { %v1591_v28 = vpack.c.bf16 %v2556_v58, %v2556_v58  ;;  %v952_v36 = vmul.f32 %v2415_v26, %v2415_v26  ;;  %1423 = vst.msk [vmem:[%s2813_s4 + $0xd8] sm:$0xf] %vm1368_vm2, %v1593_v23  ;;  %v953_v2 = vmul.f32 %v2381_v5, %v2381_v5  ;;  %v1054_v38 = vsel %vm777_vm3, %v951_v22, 0.0 }
 0x11a   :  { %v1043_v49 = vadd.f32 %v1042_v45, %v1041_v43  ;;  %v848_v50 = vadd.f32 %v847_v20, %v846_v42  ;;  %v2571_v7 = vpop.f32.mrf.mxu1  ;;  %v859_v29 = vsel %vm777_vm3, %v2415_v26, 0.0  ;;  %v861_v45 = vsel %vm777_vm3, %v2381_v5, 0.0 }
 0x11b   :  { %v1594_v37 = vpack.c.bf16 %v2571_v7, %v2571_v7  ;;  %1421 = vst.msk [vmem:[%s2813_s4 + $0xd0] sm:$0xf] %vm1368_vm2, %v1591_v28  ;;  %v954_v26 = vmul.f32 %v2403_v31, %v2403_v31  ;;  %v1056_v20 = vsel %vm777_vm3, %v952_v36, 0.0  ;;  %v863_v51 = vsel %vm777_vm3, %v2403_v31, 0.0 }
 0x11c   :  { %v850_v34 = vadd.f32 %v849_v54, %v848_v50  ;;  %v1045_v56 = vadd.f32 %v1044_v8, %v1043_v49  ;;  %v2588_v39 = vpop.f32.mrf.mxu1  ;;  %v1058_v50 = vsel %vm777_vm3, %v953_v2, 0.0  ;;  %v955_v8 = vmul.f32 %v2437_v53, %v2437_v53 }
 0x11d   :  { %1424 = vst.msk [vmem:[%s2813_s4 + $0xdc] sm:$0xf] %vm1368_vm2, %v1594_v37  ;;  %v1592_v32 = vpack.c.bf16 %v2588_v39, %v2588_v39  ;;  %v1060_v31 = vsel %vm777_vm3, %v954_v26, 0.0  ;;  %v865_v44 = vsel %vm777_vm3, %v2437_v53, 0.0  ;;  %v957_v53 = vmul.f32 %v2425_v46, %v2425_v46 }
 0x11e   :  { %v1047_v0 = vadd.f32 %v1046_v59, %v1045_v56  ;;  %v852_v3 = vadd.f32 %v851_v61, %v850_v34  ;;  %v2603_v33 = vpop.f32.mrf.mxu1  ;;  %v956_v59 = vmul.f32 %v2461_v9, %v2461_v9  ;;  %v1062_v4 = vsel %vm777_vm3, %v955_v8, 0.0 }
 0x11f   :  { %v1597_v42 = vpack.c.bf16 %v2603_v33, %v2603_v33  ;;  %1422 = vst.msk [vmem:[%s2813_s4 + $0xd4] sm:$0xf] %vm1368_vm2, %v1592_v32  ;;  %v959_v28 = vmul.f32 %v2492_v35, %v2492_v35  ;;  %v875_v32 = vsel %vm777_vm3, %v2524_v62, 0.0  ;;  %v964_v8 = vmul.f32 %v2588_v39, %v2588_v39 }
 0x120   :  { %v854_v14 = vadd.f32 %v853_v11, %v852_v3  ;;  %v1049_v15 = vadd.f32 %v1048_v12, %v1047_v0  ;;  %v2620_v25 = vpop.f32.mrf.mxu1  ;;  %v867_v11 = vsel %vm777_vm3, %v2461_v9, 0.0  ;;  %v1064_v9 = vsel %vm777_vm3, %v956_v59, 0.0 }
 0x121   :  { %v1595_v47 = vpack.c.bf16 %v2620_v25, %v2620_v25  ;;  %1427 = vst.msk [vmem:[%s2813_s4 + $0xe8] sm:$0xf] %vm1368_vm2, %v1597_v42  ;;  %v962_v42 = vmul.f32 %v2507_v1, %v2507_v1  ;;  %v885_v59 = vsel %vm777_vm3, %v2539_v30, 0.0 }
 0x122   :  { %v1051_v24 = vadd.f32 %v1050_v16, %v1049_v15  ;;  %v856_v27 = vadd.f32 %v855_v17, %v854_v14  ;;  %v2635_v43 = vpop.f32.mrf.mxu1  ;;  %v869_v15 = vsel %vm777_vm3, %v2425_v46, 0.0  ;;  %v958_v16 = vmul.f32 %v2447_v60, %v2447_v60 }
 0x123   :  { %1425 = vst.msk [vmem:[%s2813_s4 + $0xe0] sm:$0xf] %vm1368_vm2, %v1595_v47  ;;  %v1598_v54 = vpack.c.bf16 %v2635_v43, %v2635_v43  ;;  %v871_v46 = vsel %vm777_vm3, %v2447_v60, 0.0  ;;  %v960_v60 = vmul.f32 %v2524_v62, %v2524_v62  ;;  %v963_v62 = vmul.f32 %v2556_v58, %v2556_v58 }
 0x124   :  { %v858_v6 = vadd.f32 %v857_v10, %v856_v27  ;;  %v1053_v21 = vadd.f32 %v1052_v52, %v1051_v24  ;;  %v2652_v5 = vpop.f32.mrf.mxu1  ;;  %v1066_v27 = vsel %vm777_vm3, %v957_v53, 0.0  ;;  %v1068_v37 = vsel %vm777_vm3, %v958_v16, 0.0 }
 0x125   :  { %v1596_v34 = vpack.c.bf16 %v2652_v5, %v2652_v5  ;;  %1428 = vst.msk [vmem:[%s2813_s4 + $0xec] sm:$0xf] %vm1368_vm2, %v1598_v54 }
 0x126   :  { %v1055_v40 = vadd.f32 %v1054_v38, %v1053_v21  ;;  %v860_v41 = vadd.f32 %v859_v29, %v858_v6  ;;  %v2667_v56 = vpop.f32.mrf.mxu1  ;;  %v873_v6 = vsel %vm777_vm3, %v2492_v35, 0.0  ;;  %v961_v38 = vmul.f32 %v2475_v19, %v2475_v19 }
 0x127   :  { %v1601_v61 = vpack.c.bf16 %v2667_v56, %v2667_v56  ;;  %1426 = vst.msk [vmem:[%s2813_s4 + $0xe4] sm:$0xf] %vm1368_vm2, %v1596_v34  ;;  %v1070_v29 = vsel %vm777_vm3, %v959_v28, 0.0  ;;  %v883_v34 = vsel %vm777_vm3, %v2588_v39, 0.0  ;;  %v967_v39 = vmul.f32 %v2620_v25, %v2620_v25 }
 0x128   :  { %v862_v48 = vadd.f32 %v861_v45, %v860_v41  ;;  %v1057_v49 = vadd.f32 %v1056_v20, %v1055_v40  ;;  %v2684_v3 = vpop.f32.mrf.mxu1  ;;  %v877_v41 = vsel %vm777_vm3, %v2475_v19, 0.0  ;;  %v1072_v45 = vsel %vm777_vm3, %v960_v60, 0.0 }
 0x129   :  { %1431 = vst.msk [vmem:[%s2813_s4 + $0xf8] sm:$0xf] %vm1368_vm2, %v1601_v61  ;;  %v1599_v57 = vpack.c.bf16 %v2684_v3, %v2684_v3  ;;  %v1074_v47 = vsel %vm777_vm3, %v961_v38, 0.0  ;;  %v881_v19 = vsel %vm777_vm3, %v2556_v58, 0.0  ;;  %v966_v58 = vmul.f32 %v2571_v7, %v2571_v7 }
 0x12a   :  { %v1059_v55 = vadd.f32 %v1058_v50, %v1057_v49  ;;  %v864_v18 = vadd.f32 %v863_v51, %v862_v48  ;;  %v2697_v14 = vpop.f32.mrf.mxu1  ;;  %v879_v48 = vsel %vm777_vm3, %v2507_v1, 0.0  ;;  %v1076_v51 = vsel %vm777_vm3, %v962_v42, 0.0 }
 0x12b   :  { %1429 = vst.msk [vmem:[%s2813_s4 + $0xf0] sm:$0xf] %vm1368_vm2, %v1599_v57  ;;  %v1602_v17 = vpack.c.bf16 %v2697_v14, %v2697_v14  ;;  %v1078_v1 = vsel %vm777_vm3, %v963_v62, 0.0  ;;  %v1080_v61 = vsel %vm777_vm3, %v964_v8, 0.0 }
 0x12c   :  { %v866_v63 = vadd.f32 %v865_v44, %v864_v18  ;;  %v1061_v0 = vadd.f32 %v1060_v31, %v1059_v55  ;;  %v2710_v24 = vpop.f32.mrf.mxu1  ;;  %v965_v18 = vmul.f32 %v2539_v30, %v2539_v30  ;;  %v889_v30 = vsel %vm777_vm3, %v2620_v25, 0.0 }
 0x12d   :  { %1432 = vst.msk [vmem:[%s2813_s4 + $0xfc] sm:$0xf] %vm1368_vm2, %v1602_v17  ;;  %v1600_v52 = vpack.c.bf16 %v2710_v24, %v2710_v24  ;;  %v891_v17 = vsel %vm777_vm3, %v2652_v5, 0.0  ;;  %v970_v25 = vmul.f32 %v2635_v43, %v2635_v43 }
 0x12e   :  { %v1063_v12 = vadd.f32 %v1062_v4, %v1061_v0  ;;  %v868_v13 = vadd.f32 %v867_v11, %v866_v63  ;;  %v1082_v53 = vsel %vm777_vm3, %v965_v18, 0.0  ;;  %v887_v4 = vsel %vm777_vm3, %v2571_v7, 0.0 }
 0x12f   :  { %1430 = vst.msk [vmem:[%s2813_s4 + $0xf4] sm:$0xf] %vm1368_vm2, %v1600_v52  ;;  %v1086_v7 = vsel %vm777_vm3, %v967_v39, 0.0  ;;  %v1092_v60 = vsel %vm777_vm3, %v970_v25, 0.0 }
 0x130   :  { %v870_v22 = vadd.f32 %v869_v15, %v868_v13  ;;  %v1065_v23 = vadd.f32 %v1064_v9, %v1063_v12  ;;  %v1084_v12 = vsel %vm777_vm3, %v966_v58, 0.0  ;;  %v968_v13 = vmul.f32 %v2652_v5, %v2652_v5 }
 0x131   :  { %v969_v9 = vmul.f32 %v2603_v33, %v2603_v33  ;;  %v971_v5 = vmul.f32 %v2684_v3, %v2684_v3 }
 0x132   :  { %v1067_v10 = vadd.f32 %v1066_v27, %v1065_v23  ;;  %v872_v36 = vadd.f32 %v871_v46, %v870_v22  ;;  %v893_v27 = vsel %vm777_vm3, %v2603_v33, 0.0  ;;  %v1088_v46 = vsel %vm777_vm3, %v968_v13, 0.0 }
 0x133   :  { %v897_v33 = vsel %vm777_vm3, %v2684_v3, 0.0  ;;  %v974_v3 = vmul.f32 %v2697_v14, %v2697_v14 }
 0x134   :  { %v874_v21 = vadd.f32 %v873_v6, %v872_v36  ;;  %v1069_v2 = vadd.f32 %v1068_v37, %v1067_v10  ;;  %v1090_v10 = vsel %vm777_vm3, %v969_v9, 0.0  ;;  %v895_v36 = vsel %vm777_vm3, %v2635_v43, 0.0 }
 0x135   :  { %v1094_v43 = vsel %vm777_vm3, %v971_v5, 0.0 }
 0x136   :  { %v1071_v40 = vadd.f32 %v1070_v29, %v1069_v2  ;;  %v876_v35 = vadd.f32 %v875_v32, %v874_v21  ;;  %v972_v21 = vmul.f32 %v2710_v24, %v2710_v24  ;;  %v973_v29 = vmul.f32 %v2667_v56, %v2667_v56 }
 0x137   :  { %v899_v32 = vsel %vm777_vm3, %v2710_v24, 0.0  ;;  %v1100_v24 = vsel %vm777_vm3, %v974_v3, 0.0 }
 0x138   :  { %v878_v26 = vadd.f32 %v877_v41, %v876_v35  ;;  %v1073_v20 = vadd.f32 %v1072_v45, %v1071_v40  ;;  %v901_v41 = vsel %vm777_vm3, %v2667_v56, 0.0  ;;  %v1096_v42 = vsel %vm777_vm3, %v972_v21, 0.0 }
 0x13a   :  { %v1075_v49 = vadd.f32 %v1074_v47, %v1073_v20  ;;  %v880_v50 = vadd.f32 %v879_v48, %v878_v26  ;;  %v1098_v20 = vsel %vm777_vm3, %v973_v29, 0.0  ;;  %v903_v47 = vsel %vm777_vm3, %v2697_v14, 0.0 }
 0x13c   :  { %v882_v54 = vadd.f32 %v881_v19, %v880_v50  ;;  %v1077_v55 = vadd.f32 %v1076_v51, %v1075_v49 }
 0x13e   :  { %v1079_v31 = vadd.f32 %v1078_v1, %v1077_v55  ;;  %v884_v44 = vadd.f32 %v883_v34, %v882_v54 }
 0x140   :  { %v886_v63 = vadd.f32 %v885_v59, %v884_v44  ;;  %v1081_v0 = vadd.f32 %v1080_v61, %v1079_v31 }
 0x142   :  { %v1083_v11 = vadd.f32 %v1082_v53, %v1081_v0  ;;  %v888_v57 = vadd.f32 %v887_v4, %v886_v63 }
 0x144   :  { %v890_v15 = vadd.f32 %v889_v30, %v888_v57  ;;  %v1085_v16 = vadd.f32 %v1084_v12, %v1083_v11 }
 0x146   :  { %v1087_v22 = vadd.f32 %v1086_v7, %v1085_v16  ;;  %v892_v23 = vadd.f32 %v891_v17, %v890_v15 }
 0x148   :  { %v894_v28 = vadd.f32 %v893_v27, %v892_v23  ;;  %v1089_v52 = vadd.f32 %v1088_v46, %v1087_v22 }
 0x14a   :  { %v1091_v37 = vadd.f32 %v1090_v10, %v1089_v52  ;;  %v896_v6 = vadd.f32 %v895_v36, %v894_v28 }
 0x14c   :  { %v898_v2 = vadd.f32 %v897_v33, %v896_v6  ;;  %v1093_v38 = vadd.f32 %v1092_v60, %v1091_v37 }
 0x14e   :  { %v1095_v40 = vadd.f32 %v1094_v43, %v1093_v38  ;;  %v900_v35 = vadd.f32 %v899_v32, %v898_v2 }
 0x150   :  { %v902_v45 = vadd.f32 %v901_v41, %v900_v35  ;;  %v1097_v26 = vadd.f32 %v1096_v42, %v1095_v40 }
 0x152   :  { %v904_v48 = vadd.f32 %v903_v47, %v902_v45  ;;  %v1099_v62 = vadd.f32 %v1098_v20, %v1097_v26 }
 0x154   :  { %v905_v49 = vrot.slane %v904_v48, 4  ;;  %v1101_v50 = vadd.f32 %v1100_v24, %v1099_v62 }
 0x156   :  { %v906_v51 = vadd.f32 %v905_v49, %v904_v48  ;;  %v1102_v56 = vrot.slane %v1101_v50, 4 }
 0x158   :  { %v907_v19 = vrot.slane %v906_v51, 2  ;;  %v1103_v8 = vadd.f32 %v1102_v56, %v1101_v50 }
 0x15a   :  { %v908_v54 = vadd.f32 %v907_v19, %v906_v51  ;;  %v1104_v55 = vrot.slane %v1103_v8, 2 }
 0x15c   :  { %v909_v18 = vrot.slane %v908_v54, 1  ;;  %v1105_v1 = vadd.f32 %v1104_v55, %v1103_v8 }
 0x15e   :  { %v1106_v34 = vrot.slane %v1105_v1, 1  ;;  %v910_v31 = vadd.f32 %v909_v18, %v908_v54 }
 0x160   :  { %v1107_v44 = vadd.f32 %v1106_v34, %v1105_v1 }
 0x162   :  { %v1109_v14 = vsel %vm1108_vm4, %v910_v31, %v1107_v44 }
 0x163   :  { %1111 = vst.msk [vmem:[%s2814_s5] sm:$0x3] %vm1110_vm5, %v1109_v14 }

// kernel: bottleneck_nchw.5
= control target key start
LH: loop header
LB: loop body
LE: loop exit
PB: predicated region body
PF: predicated region fallthrough
CT: control target
= control target key end

     0   :  { %s4680_s18 = smov 0   ;;  %s6189_s0 = inlined_call_operand.vmem [shape: bf16[2,16,16,4], index: 0, kind: input, shape index: {}]   ;;  %s6190_s1 = inlined_call_operand.vmem [shape: f32[1,4], index: 1, kind: input, shape index: {}]   ;;  %s6191_s2 = inlined_call_operand.vmem [shape: f32[1,4], index: 2, kind: input, shape index: {}]   ;;  %s6192_s3 = inlined_call_operand.vmem [shape: bf16[3,12,4], index: 3, kind: input, shape index: {}]   ;;  %s6193_s4 = inlined_call_operand.vmem [shape: bf16[2,16,16,4], index: 4, kind: output, shape index: {0}]   ;;  %s6194_s5 = inlined_call_operand.vmem [shape: f32[2,2,4], index: 5, kind: output, shape index: {1}]  }
   0x1 LB: > { %s3903_s19 = sadd.s32 4294967295, %s4645_s18   ;;  %p3907_p0 = scmp.ge.s32.totalorder %s4645_s18, 1  ;;  %s4645_s18 = sphi %s4680_s18, %s16_s18  }
   0x2   : > { %p190_p1 = scmp.lt.s32.totalorder %s4645_s18, 3 }
   0x4   : > { %p191_p2 = pnand %p3907_p0, %p190_p1 }
   0x6   : > { %194 = sbr.rel (%p191_p2) target bundleno = 680 (0x2a8), region = 36 }
   0xb   : > { %p222_p3 = scmp.lt.s32.totalorder %s3903_s19, 1  ;;  %p3913_p4 = scmp.ne.s32.totalorder %s3903_s19, 0 }
   0xd   : > { %s223_s20 = scalar_select %p222_p3, %s3903_s19, 1 }
   0xe   : > { %240 = sbr.rel (%p3913_p4) target bundleno = 47 (0x2f), region = 40 }
   0xf   : > { %s4181_s21 = sshll.u32 %s223_s20, 7  ;;  %s3912_s22 = sshll.u32 %s223_s20, 1 }
  0x10   : > { %s4691_s25 = scalar_lea.vmem %s6189_s0, %s4181_s21  ;;  %s4696_s28 = scalar_lea.vmem %s6193_s4, %s4181_s21 }
  0x11   : > { %s4701_s6 = scalar_lea.vmem %s6194_s5, %s3912_s22 }
  0x13   : > { %vm241_vm0 = vcmask 27648   ;;  %vm244_vm1 = vcmask 24576   ;;  %v4647_v0 = vmov 0  }
  0x14   : > { %242 = vst.msk [vmem:[#allocation2] sm:$0xf] %vm241_vm0, %v4647_v0  ;;  %243 = vst.msk [vmem:[#allocation2 + $0x4] sm:$0xf] %vm241_vm0, %v4647_v0 }
  0x15   : > { %246 = vst.msk [vmem:[#allocation2 + $0xc] sm:$0xf] %vm241_vm0, %v4647_v0  ;;  %247 = vst.msk [vmem:[#allocation2 + $0x10] sm:$0xf] %vm241_vm0, %v4647_v0 }
  0x16   : > { %249 = vst.msk [vmem:[#allocation2 + $0x18] sm:$0xf] %vm241_vm0, %v4647_v0  ;;  %250 = vst.msk [vmem:[#allocation2 + $0x1c] sm:$0xf] %vm241_vm0, %v4647_v0 }
  0x17   : > { %252 = vst.msk [vmem:[#allocation2 + $0x24] sm:$0xf] %vm241_vm0, %v4647_v0  ;;  %253 = vst.msk [vmem:[#allocation2 + $0x28] sm:$0xf] %vm241_vm0, %v4647_v0 }
  0x18   : > { %255 = vst.msk [vmem:[#allocation2 + $0x30] sm:$0xf] %vm241_vm0, %v4647_v0  ;;  %256 = vst.msk [vmem:[#allocation2 + $0x34] sm:$0xf] %vm241_vm0, %v4647_v0 }
  0x19   : > { %258 = vst.msk [vmem:[#allocation2 + $0x3c] sm:$0xf] %vm241_vm0, %v4647_v0  ;;  %259 = vst.msk [vmem:[#allocation2 + $0x40] sm:$0xf] %vm241_vm0, %v4647_v0 }
  0x1a   : > { %261 = vst.msk [vmem:[#allocation2 + $0x48] sm:$0xf] %vm241_vm0, %v4647_v0  ;;  %262 = vst.msk [vmem:[#allocation2 + $0x4c] sm:$0xf] %vm241_vm0, %v4647_v0 }
  0x1b   : > { %264 = vst.msk [vmem:[#allocation2 + $0x54] sm:$0xf] %vm241_vm0, %v4647_v0  ;;  %265 = vst.msk [vmem:[#allocation2 + $0x58] sm:$0xf] %vm241_vm0, %v4647_v0 }
  0x1c   : > { %267 = vst.msk [vmem:[#allocation2 + $0x60] sm:$0xf] %vm241_vm0, %v4647_v0  ;;  %268 = vst.msk [vmem:[#allocation2 + $0x64] sm:$0xf] %vm241_vm0, %v4647_v0 }
  0x1d   : > { %270 = vst.msk [vmem:[#allocation2 + $0x6c] sm:$0xf] %vm241_vm0, %v4647_v0  ;;  %271 = vst.msk [vmem:[#allocation2 + $0x70] sm:$0xf] %vm241_vm0, %v4647_v0 }
  0x1e   : > { %273 = vst.msk [vmem:[#allocation2 + $0x78] sm:$0xf] %vm241_vm0, %v4647_v0  ;;  %274 = vst.msk [vmem:[#allocation2 + $0x7c] sm:$0xf] %vm241_vm0, %v4647_v0 }
  0x1f   : > { %276 = vst.msk [vmem:[#allocation2 + $0x84] sm:$0xf] %vm241_vm0, %v4647_v0  ;;  %277 = vst.msk [vmem:[#allocation2 + $0x88] sm:$0xf] %vm241_vm0, %v4647_v0 }
  0x20   : > { %279 = vst.msk [vmem:[#allocation2 + $0x90] sm:$0xf] %vm241_vm0, %v4647_v0  ;;  %280 = vst.msk [vmem:[#allocation2 + $0x94] sm:$0xf] %vm241_vm0, %v4647_v0 }
  0x21   : > { %282 = vst.msk [vmem:[#allocation2 + $0x9c] sm:$0xf] %vm241_vm0, %v4647_v0  ;;  %283 = vst.msk [vmem:[#allocation2 + $0xa0] sm:$0xf] %vm241_vm0, %v4647_v0 }
  0x22   : > { %285 = vst.msk [vmem:[#allocation2 + $0xa8] sm:$0xf] %vm241_vm0, %v4647_v0  ;;  %286 = vst.msk [vmem:[#allocation2 + $0xac] sm:$0xf] %vm241_vm0, %v4647_v0 }
  0x23   : > { %288 = vst.msk [vmem:[#allocation2 + $0xb4] sm:$0xf] %vm241_vm0, %v4647_v0  ;;  %289 = vst.msk [vmem:[#allocation2 + $0xb8] sm:$0xf] %vm241_vm0, %v4647_v0 }
  0x24   : > { %291 = vst.msk [vmem:[#allocation2 + $0xc0] sm:$0xf] %vm241_vm0, %v4647_v0  ;;  %292 = vst.msk [vmem:[#allocation2 + $0xc4] sm:$0xf] %vm241_vm0, %v4647_v0 }
  0x25   : > { %294 = vst.msk [vmem:[#allocation2 + $0xcc] sm:$0xf] %vm241_vm0, %v4647_v0  ;;  %295 = vst.msk [vmem:[#allocation2 + $0xd0] sm:$0xf] %vm241_vm0, %v4647_v0 }
  0x26   : > { %245 = vst.msk [vmem:[#allocation2 + $0x8] sm:$0x1] %vm244_vm1, %v4647_v0  ;;  %248 = vst.msk [vmem:[#allocation2 + $0x14] sm:$0x1] %vm244_vm1, %v4647_v0 }
  0x27   : > { %251 = vst.msk [vmem:[#allocation2 + $0x20] sm:$0x1] %vm244_vm1, %v4647_v0  ;;  %254 = vst.msk [vmem:[#allocation2 + $0x2c] sm:$0x1] %vm244_vm1, %v4647_v0 }
  0x28   : > { %257 = vst.msk [vmem:[#allocation2 + $0x38] sm:$0x1] %vm244_vm1, %v4647_v0  ;;  %260 = vst.msk [vmem:[#allocation2 + $0x44] sm:$0x1] %vm244_vm1, %v4647_v0 }
  0x29   : > { %263 = vst.msk [vmem:[#allocation2 + $0x50] sm:$0x1] %vm244_vm1, %v4647_v0  ;;  %266 = vst.msk [vmem:[#allocation2 + $0x5c] sm:$0x1] %vm244_vm1, %v4647_v0 }
  0x2a   : > { %269 = vst.msk [vmem:[#allocation2 + $0x68] sm:$0x1] %vm244_vm1, %v4647_v0  ;;  %272 = vst.msk [vmem:[#allocation2 + $0x74] sm:$0x1] %vm244_vm1, %v4647_v0 }
  0x2b   : > { %275 = vst.msk [vmem:[#allocation2 + $0x80] sm:$0x1] %vm244_vm1, %v4647_v0  ;;  %278 = vst.msk [vmem:[#allocation2 + $0x8c] sm:$0x1] %vm244_vm1, %v4647_v0 }
  0x2c   : > { %281 = vst.msk [vmem:[#allocation2 + $0x98] sm:$0x1] %vm244_vm1, %v4647_v0  ;;  %284 = vst.msk [vmem:[#allocation2 + $0xa4] sm:$0x1] %vm244_vm1, %v4647_v0 }
  0x2d   : > { %287 = vst.msk [vmem:[#allocation2 + $0xb0] sm:$0x1] %vm244_vm1, %v4647_v0  ;;  %290 = vst.msk [vmem:[#allocation2 + $0xbc] sm:$0x1] %vm244_vm1, %v4647_v0 }
  0x2e   : > { %293 = vst.msk [vmem:[#allocation2 + $0xc8] sm:$0x1] %vm244_vm1, %v4647_v0  ;;  %296 = vst.msk [vmem:[#allocation2 + $0xd4] sm:$0x1] %vm244_vm1, %v4647_v0 }
  0x2f PF: > { %v4319_v1 = vld [vmem:[%s4691_s25 + $0x48] sm:$0xff]   ;;  %v4761_v2 = vld [vmem:[%s6190_s1] ss:$0 sm:$0xff]  ;;  %vm891_vm2 = vcmask 27648   ;;  %vm567_vm3 = vsmask.f32 256 }
  0x30   : > { %v4285_v3 = vunpack.c.l.bf16 %v4319_v1  ;;  %v4286_v4 = vunpack.c.h.bf16 %v4319_v1  ;;  %v4766_v5 = vld [vmem:[%s6191_s2] ss:$0 sm:$0xff]  ;;  %vm568_vm4 = vsmask.f32 4368  ;;  %vm892_vm5 = vsmask.f32 7938 }
  0x31   : > { %v4318_v8 = vld [vmem:[%s4691_s25 + $0x40] sm:$0xff]   ;;  %vm899_vm6 = vcmask 24576   ;;  %v4311_v11 = vld [vmem:[%s4691_s25 + $0x8] sm:$0xff]   ;;  %vm4789_vm7 = vmor %vm567_vm3, %vm568_vm4  ;;  %vm1474_vm10 = vcmask 1046528   ;;  %s4648_s11 = smov 8   ;;  %s4649_s12 = smov 4  }
  0x32   : > { %v386_v6 = vmul.f32 %v4285_v3, %v4761_v2  ;;  %v387_v7 = vmul.f32 %v4286_v4, %v4761_v2  ;;  %v4281_v9 = vunpack.c.l.bf16 %v4318_v8  ;;  %v4282_v10 = vunpack.c.h.bf16 %v4318_v8  ;;  %v4248_v16 = vld [vmem:[%s4691_s25] sm:$0xff]   ;;  %vm4795_vm8 = vmand %vm891_vm2, %vm892_vm5  ;;  %v960_v49 = vld [vmem:[#allocation2 + $0x78] sm:$0xf] }
  0x33   : > { %v4253_v14 = vunpack.c.l.bf16 %v4311_v11  ;;  %v4254_v15 = vunpack.c.h.bf16 %v4311_v11  ;;  %v4249_v19 = vunpack.c.l.bf16 %v4248_v16  ;;  %v4250_v20 = vunpack.c.h.bf16 %v4248_v16  ;;  %vm4801_vm9 = vmand %vm899_vm6, %vm567_vm3  ;;  %v964_v53 = vld [vmem:[#allocation2 + $0x80] sm:$0x1]  ;;  %v957_v8 = vld [vmem:[#allocation2 + $0x74] sm:$0x1] }
  0x34   : > { %v425_v12 = vadd.f32 %v4766_v5, %v386_v6  ;;  %v426_v13 = vadd.f32 %v4766_v5, %v387_v7  ;;  %v384_v17 = vmul.f32 %v4281_v9, %v4761_v2  ;;  %v385_v18 = vmul.f32 %v4282_v10, %v4761_v2  ;;  %v953_v7 = vld [vmem:[#allocation2 + $0x6c] sm:$0xf] }
  0x35   : > { %v370_v23 = vmul.f32 %v4253_v14, %v4761_v2  ;;  %v371_v24 = vmul.f32 %v4254_v15, %v4761_v2  ;;  %v368_v27 = vmul.f32 %v4249_v19, %v4761_v2  ;;  %v369_v28 = vmul.f32 %v4250_v20, %v4761_v2 }
  0x36   : > { %v457_v21 = vmax.f32 %v425_v12, 0.0  ;;  %v458_v22 = vmax.f32 %v426_v13, 0.0  ;;  %v423_v25 = vadd.f32 %v4766_v5, %v384_v17  ;;  %v424_v26 = vadd.f32 %v4766_v5, %v385_v18  ;;  %v4313_v18 = vld [vmem:[%s4691_s25 + $0x18] sm:$0xff]  }
  0x37   : > { %v409_v31 = vadd.f32 %v4766_v5, %v370_v23  ;;  %v410_v32 = vadd.f32 %v4766_v5, %v371_v24  ;;  %v407_v35 = vadd.f32 %v4766_v5, %v368_v27  ;;  %v408_v36 = vadd.f32 %v4766_v5, %v369_v28  ;;  %v908_v28 = vld [vmem:[#allocation2 + $0x20] sm:$0x1] }
  0x38   : > { %v4201_v29 = vpack.c.bf16 %v457_v21, %v457_v21  ;;  %v4202_v30 = vpack.c.bf16 %v458_v22, %v458_v22  ;;  %v455_v33 = vmax.f32 %v423_v25, 0.0  ;;  %v456_v34 = vmax.f32 %v424_v26, 0.0  ;;  %v904_v25 = vld [vmem:[#allocation2 + $0x18] sm:$0xf] }
  0x39   : > { %v441_v44 = vmax.f32 %v409_v31, 0.0  ;;  %v442_v45 = vmax.f32 %v410_v32, 0.0  ;;  %v439_v50 = vmax.f32 %v407_v35, 0.0  ;;  %v440_v51 = vmax.f32 %v408_v36, 0.0 }
  0x3a   : > { %v724_v37 = vshrl.u32 %v4201_v29, 16  ;;  %v727_v38 = vshll.u32 %v4201_v29, 16  ;;  %v732_v39 = vshrl.u32 %v4202_v30, 16  ;;  %v735_v40 = vshll.u32 %v4202_v30, 16 }
  0x3b   : > { %v4199_v42 = vpack.c.bf16 %v455_v33, %v455_v33  ;;  %v4200_v43 = vpack.c.bf16 %v456_v34, %v456_v34  ;;  %v4185_v0 = vpack.c.bf16 %v441_v44, %v441_v44  ;;  %v4186_v1 = vpack.c.bf16 %v442_v45, %v442_v45  ;;  %v4320_v33 = vld [vmem:[%s4691_s25 + $0x50] sm:$0xff]  }
  0x3c   : > { %v726_v46 = vrot.slane %v724_v37, 7  ;;  %v734_v47 = vrot.slane %v732_v39, 7  ;;  %v4183_v9 = vpack.c.bf16 %v439_v50, %v439_v50  ;;  %v4184_v22 = vpack.c.bf16 %v440_v51, %v440_v51 }
  0x3d   : > { %v707_v54 = vshrl.u32 %v4199_v42, 16  ;;  %v710_v55 = vshll.u32 %v4199_v42, 16  ;;  %v715_v56 = vshrl.u32 %v4200_v43, 16  ;;  %v718_v57 = vshll.u32 %v4200_v43, 16  ;;  %v901_v42 = vld [vmem:[#allocation2 + $0x14] sm:$0x1] }
  0x3e   : > { %v729_v58 = vor.u32 %v727_v38, %v726_v46  ;;  %v730_v59 = vrot.slane %v726_v46, 4  ;;  %v737_v60 = vor.u32 %v735_v40, %v734_v47  ;;  %v739_v61 = vrot.slane %v734_v47, 4  ;;  %v894_v38 = vld [vmem:[#allocation2 + $0xc] sm:$0xf] }
  0x3f   : > { %v709_v62 = vrot.slane %v707_v54, 7  ;;  %v717_v63 = vrot.slane %v715_v56, 7  ;;  %v588_v14 = vshrl.u32 %v4185_v0, 16  ;;  %v591_v15 = vshll.u32 %v4185_v0, 16 }
  0x40   : > { %v738_v3 = vsel %vm4789_vm7, %v730_v59, %v737_v60  ;;  %v961_v4 = vsel %vm4795_vm8, %v729_v58, %v960_v49  ;;  %v965_v6 = vsel %vm4801_vm9, %v739_v61, %v964_v53  ;;  %v596_v16 = vshrl.u32 %v4186_v1, 16 }
  0x41   : > { %962 = vst [vmem:[#allocation2 + $0x78] sm:$0xf] %v961_v4  ;;  %963 = vst.msk [vmem:[#allocation2 + $0x7c] sm:$0xf] %vm891_vm2, %v738_v3  ;;  %v712_v10 = vor.u32 %v710_v55, %v709_v62  ;;  %v713_v11 = vrot.slane %v709_v62, 4  ;;  %v720_v12 = vor.u32 %v718_v57, %v717_v63  ;;  %v722_v13 = vrot.slane %v717_v63, 4 }
  0x42   : > { %966 = vst [vmem:[#allocation2 + $0x80] sm:$0x1] %v965_v6  ;;  %v599_v17 = vshll.u32 %v4186_v1, 16  ;;  %v590_v23 = vrot.slane %v588_v14, 7  ;;  %v598_v24 = vrot.slane %v596_v16, 7  ;;  %v571_v26 = vshrl.u32 %v4183_v9, 16 }
  0x43   : > { %v721_v19 = vsel %vm4789_vm7, %v713_v11, %v720_v12  ;;  %v954_v20 = vsel %vm4795_vm8, %v712_v10, %v953_v7  ;;  %v958_v21 = vsel %vm4801_vm9, %v722_v13, %v957_v8  ;;  %v574_v27 = vshll.u32 %v4183_v9, 16  ;;  %v4321_v63 = vld [vmem:[%s4691_s25 + $0x58] sm:$0xff]  }
  0x44   : > { %955 = vst [vmem:[#allocation2 + $0x6c] sm:$0xf] %v954_v20  ;;  %956 = vst.msk [vmem:[#allocation2 + $0x70] sm:$0xf] %vm891_vm2, %v721_v19  ;;  %v579_v29 = vshrl.u32 %v4184_v22, 16  ;;  %v582_v30 = vshll.u32 %v4184_v22, 16  ;;  %v4261_v31 = vunpack.c.l.bf16 %v4313_v18  ;;  %v4262_v32 = vunpack.c.h.bf16 %v4313_v18 }
  0x45   : > { %959 = vst [vmem:[#allocation2 + $0x74] sm:$0x1] %v958_v21  ;;  %v593_v34 = vor.u32 %v591_v15, %v590_v23  ;;  %v594_v35 = vrot.slane %v590_v23, 4  ;;  %v601_v36 = vor.u32 %v599_v17, %v598_v24  ;;  %v603_v37 = vrot.slane %v598_v24, 4  ;;  %v4312_v18 = vld [vmem:[%s4691_s25 + $0x10] sm:$0xff]  }
  0x46   : > { %v573_v39 = vrot.slane %v571_v26, 7  ;;  %v581_v40 = vrot.slane %v579_v29, 7  ;;  %v374_v43 = vmul.f32 %v4261_v31, %v4761_v2  ;;  %v375_v44 = vmul.f32 %v4262_v32, %v4761_v2 }
  0x47   : > { %v602_v47 = vsel %vm4789_vm7, %v594_v35, %v601_v36  ;;  %v905_v49 = vsel %vm4795_vm8, %v593_v34, %v904_v25  ;;  %v909_v50 = vsel %vm4801_vm9, %v603_v37, %v908_v28  ;;  %v4289_v51 = vunpack.c.l.bf16 %v4320_v33 }
  0x48   : > { %v1642_v45 = vld [vmem:[#allocation2 + $0x7c] sm:$0xf]  ;;  %v1680_v46 = vld [vmem:[#allocation2 + $0x78] sm:$0xe]  ;;  %906 = vst [vmem:[#allocation2 + $0x18] sm:$0xf] %v905_v49  ;;  %v576_v56 = vor.u32 %v574_v27, %v573_v39  ;;  %v584_v58 = vor.u32 %v582_v30, %v581_v40  ;;  %v413_v61 = vadd.f32 %v4766_v5, %v374_v43  ;;  %v414_v62 = vadd.f32 %v4766_v5, %v375_v44 }
  0x49   : > { %v4829_v53 = vld [vmem:[#allocation2 + $0x80] ss:$0 sps:$4 sm:$0x11]   ;;  %v4037_v54 = vcombine.low %v1680_v46, %v1642_v45  ;;  %v1641_v55 = vld [vmem:[#allocation2 + $0x78] sm:$0xf]  ;;  %v577_v57 = vrot.slane %v573_v39, 4  ;;  %v4290_v11 = vunpack.c.h.bf16 %v4320_v33  ;;  %v388_v12 = vmul.f32 %v4289_v51, %v4761_v2 }
  0x4a   : > { %907 = vst.msk [vmem:[#allocation2 + $0x1c] sm:$0xf] %vm891_vm2, %v602_v47  ;;  %910 = vst [vmem:[#allocation2 + $0x20] sm:$0x1] %v909_v50  ;;  %v4832_v59 = vcombine.low %v1641_v55, %v1642_v45  ;;  %v586_v60 = vrot.slane %v581_v40, 4  ;;  %v2115_v1 = vrot.slane %v4829_v53, 1  ;;  %v895_v6 = vsel %vm4795_vm8, %v576_v56, %v894_v38 }
  0x4b   : > { %v2114_v0 = vrot.slane %v4037_v54, 1  ;;  %v1640_v3 = vld [vmem:[#allocation2 + $0x70] sm:$0xf]  ;;  %v585_v4 = vsel %vm4789_vm7, %v577_v57, %v584_v58  ;;  %v1679_v7 = vld [vmem:[#allocation2 + $0x6c] sm:$0xe]  ;;  %v445_v10 = vmax.f32 %v413_v61, 0.0  ;;  %v4293_v17 = vunpack.c.l.bf16 %v4321_v63 }
  0x4c   : > { %v4842_v8 = vld [vmem:[#allocation2 + $0x74] ss:$0 sps:$4 sm:$0x11]   ;;  %896 = vst [vmem:[#allocation2 + $0xc] sm:$0xf] %v895_v6  ;;  %v902_v9 = vsel %vm4801_vm9, %v586_v60, %v901_v42  ;;  %v4036_v14 = vcombine.low %v1679_v7, %v1640_v3  ;;  %v446_v16 = vmax.f32 %v414_v62, 0.0  ;;  %v389_v22 = vmul.f32 %v4290_v11, %v4761_v2 }
  0x4d   : > { %898 = vst.msk [vmem:[#allocation2 + $0x10] sm:$0xf] %vm891_vm2, %v585_v4  ;;  %v2116_v13 = vsel %vm1474_vm10, %v2114_v0, %v2115_v1  ;;  %v1639_v15 = vld [vmem:[#allocation2 + $0x6c] sm:$0xf]  ;;  %903 = vst [vmem:[#allocation2 + $0x14] sm:$0x1] %v902_v9  ;;  %v4189_v21 = vpack.c.bf16 %v445_v10, %v445_v10  ;;  %v427_v25 = vadd.f32 %v4766_v5, %v388_v12  ;;  %v4294_v26 = vunpack.c.h.bf16 %v4321_v63 }
  0x4e   : > { %2153 = vrot.lane.b32.xlu0 %v2116_v13, %s4648_s11  ;;  %v2112_v19 = vrot.slane %v4842_v8, 1  ;;  %v4852_v20 = vcombine.low %v1639_v15, %v1640_v3  ;;  %v2111_v23 = vrot.slane %v4036_v14, 1  ;;  %v4190_v24 = vpack.c.bf16 %v446_v16, %v446_v16  ;;  %v918_v49 = vld [vmem:[#allocation2 + $0x30] sm:$0xf]  ;;  %v922_v7 = vld [vmem:[#allocation2 + $0x38] sm:$0x1] }
  0x4f   : > { %v1672_v28 = vld [vmem:[#allocation2 + $0x18] sm:$0xe]  ;;  %v428_v29 = vadd.f32 %v4766_v5, %v389_v22  ;;  %v390_v30 = vmul.f32 %v4293_v17, %v4761_v2  ;;  %v4257_v31 = vunpack.c.l.bf16 %v4312_v18  ;;  %v4258_v32 = vunpack.c.h.bf16 %v4312_v18 }
  0x50   : > { %v2113_v33 = vsel %vm1474_vm10, %v2111_v23, %v2112_v19  ;;  %v1625_v36 = vld [vmem:[#allocation2 + $0x18] sm:$0xf]  ;;  %v622_v37 = vshrl.u32 %v4189_v21, 16  ;;  %v391_v38 = vmul.f32 %v4294_v26, %v4761_v2  ;;  %v625_v40 = vshll.u32 %v4189_v21, 16 }
  0x51   : > { %v1626_v27 = vld [vmem:[#allocation2 + $0x1c] sm:$0xf]  ;;  %v4859_v34 = vld [vmem:[#allocation2 + $0x20] ss:$0 sps:$4 sm:$0x11]   ;;  %2151 = vrot.lane.b32.xlu1 %v2113_v33, %s4648_s11  ;;  %v630_v42 = vshrl.u32 %v4190_v24, 16  ;;  %v429_v50 = vadd.f32 %v4766_v5, %v390_v30  ;;  %v372_v57 = vmul.f32 %v4257_v31, %v4761_v2  ;;  %v4870_v58 = vmul.f32 %v4258_v32, %v4761_v2 }
  0x52   : > { %v4029_v35 = vcombine.low %v1672_v28, %v1626_v27  ;;  %v4863_v39 = vcombine.low %v1625_v36, %v1626_v27  ;;  %v633_v43 = vshll.u32 %v4190_v24, 16  ;;  %v2091_v45 = vrot.slane %v4859_v34, 1  ;;  %v967_v24 = vld [vmem:[#allocation2 + $0x84] sm:$0xf]  ;;  %v971_v32 = vld [vmem:[#allocation2 + $0x8c] sm:$0x1] }
  0x53   : > { %v1671_v47 = vld [vmem:[#allocation2 + $0xc] sm:$0xe]  ;;  %v430_v51 = vadd.f32 %v4766_v5, %v391_v38  ;;  %v624_v56 = vrot.slane %v622_v37, 7  ;;  %v632_v62 = vrot.slane %v630_v42, 7  ;;  %v459_v63 = vmax.f32 %v427_v25, 0.0 }
  0x54   : > { %v2090_v44 = vrot.slane %v4029_v35, 1  ;;  %v1624_v46 = vld [vmem:[#allocation2 + $0x10] sm:$0xf]  ;;  %v4505_v54 = vld [vmem:[#allocation2 + $0x14] ss:$0 sps:$4 sm:$0x11]  }
  0x55   : > { %v4028_v55 = vcombine.low %v1671_v47, %v1624_v46  ;;  %v1623_v61 = vld [vmem:[#allocation2 + $0xc] sm:$0xf]  ;;  %v460_v0 = vmax.f32 %v428_v29, 0.0  ;;  %v2088_v3 = vrot.slane %v4505_v54, 1  ;;  %v627_v6 = vor.u32 %v625_v40, %v624_v56 }
  0x56   : > { %v2092_v60 = vsel %vm1474_vm10, %v2090_v44, %v2091_v45  ;;  %v4874_v4 = vcombine.low %v1623_v61, %v1624_v46  ;;  %vm1201_vm11 = vsmask.f32 7424  ;;  %v628_v9 = vrot.slane %v624_v56, 4 }
  0x57   : > { %2137 = vrot.lane.b32.xlu1 %v2092_v60, %s4648_s11  ;;  %v2087_v1 = vrot.slane %v4028_v55, 1  ;;  %v635_v10 = vor.u32 %v633_v43, %v632_v62  ;;  %v637_v11 = vrot.slane %v632_v62, 4  ;;  %v4203_v12 = vpack.c.bf16 %v459_v63, %v459_v63 }
  0x58   : > { %v919_v14 = vsel %vm4795_vm8, %v627_v6, %v918_v49  ;;  %v4204_v15 = vpack.c.bf16 %v460_v0, %v460_v0  ;;  %v461_v16 = vmax.f32 %v429_v50, 0.0  ;;  %v462_v25 = vmax.f32 %v430_v51, 0.0  ;;  %v974_v50 = vld [vmem:[#allocation2 + $0x90] sm:$0xf]  ;;  %v978_v0 = vld [vmem:[#allocation2 + $0x98] sm:$0x1] }
  0x59   : > { %v2089_v13 = vsel %vm1474_vm10, %v2087_v1, %v2088_v3  ;;  %v636_v17 = vsel %vm4789_vm7, %v628_v9, %v635_v10  ;;  %920 = vst [vmem:[#allocation2 + $0x30] sm:$0xf] %v919_v14  ;;  %v923_v18 = vsel %vm4801_vm9, %v637_v11, %v922_v7  ;;  %v741_v19 = vshrl.u32 %v4203_v12, 16 }
  0x5a   : > { %2135 = vrot.lane.b32.xlu0 %v2089_v13, %s4648_s11  ;;  %v744_v21 = vshll.u32 %v4203_v12, 16  ;;  %921 = vst.msk [vmem:[#allocation2 + $0x34] sm:$0xf] %vm891_vm2, %v636_v17  ;;  %924 = vst [vmem:[#allocation2 + $0x38] sm:$0x1] %v923_v18  ;;  %v749_v22 = vshrl.u32 %v4204_v15, 16  ;;  %v4205_v26 = vpack.c.bf16 %v461_v16, %v461_v16  ;;  %v4206_v33 = vpack.c.bf16 %v462_v25, %v462_v25 }
  0x5b   : > { %v752_v23 = vshll.u32 %v4204_v15, 16  ;;  %v743_v27 = vrot.slane %v741_v19, 7  ;;  %v1816_v28 = vshrl.u32 %v4874_v4, 16  ;;  %v1818_v29 = vshll.u32 %v4874_v4, 16  ;;  %v4322_v18 = vld [vmem:[%s4691_s25 + $0x60] sm:$0xff]  }
  0x5c   : > { %v1823_v30 = vshll.u32 %v4505_v54, 16  ;;  %v751_v31 = vrot.slane %v749_v22, 7  ;;  %v758_v35 = vshrl.u32 %v4205_v26, 16  ;;  %v761_v36 = vshll.u32 %v4205_v26, 16 }
  0x5d   : > { %v746_v37 = vor.u32 %v744_v21, %v743_v27  ;;  %v747_v38 = vrot.slane %v743_v27, 4  ;;  %v1820_v40 = vrot.slane %v1818_v29, 1  ;;  %v766_v46 = vshrl.u32 %v4206_v33, 16  ;;  %v4914_v27 = vld [vmem:[%s4691_s25 + $0x68] sm:$0xff]  }
  0x5e   : > { %v1825_v42 = vrot.slane %v1823_v30, 1  ;;  %v754_v43 = vor.u32 %v752_v23, %v751_v31  ;;  %v756_v44 = vrot.slane %v751_v31, 4  ;;  %v760_v45 = vrot.slane %v758_v35, 7  ;;  %v911_v30 = vld [vmem:[#allocation2 + $0x24] sm:$0xf] }
  0x5f   : > { %v968_v47 = vsel %vm4795_vm8, %v746_v37, %v967_v24  ;;  %v769_v49 = vshll.u32 %v4206_v33, 16  ;;  %v1821_v51 = vor.u32 %v1820_v40, %v1816_v28  ;;  %v411_v54 = vadd.f32 %v4766_v5, %v372_v57 }
  0x60   : > { %v1629_v55 = vld [vmem:[#allocation2 + $0x30] sm:$0xf]  ;;  %v755_v60 = vsel %vm4789_vm7, %v747_v38, %v754_v43  ;;  %969 = vst [vmem:[#allocation2 + $0x84] sm:$0xf] %v968_v47  ;;  %v972_v61 = vsel %vm4801_vm9, %v756_v44, %v971_v32  ;;  %v763_v62 = vor.u32 %v761_v36, %v760_v45  ;;  %v764_v63 = vrot.slane %v760_v45, 4 }
  0x61   : > { %v1674_v56 = vld [vmem:[#allocation2 + $0x30] sm:$0xe]  ;;  %v1630_v1 = vld [vmem:[#allocation2 + $0x34] sm:$0xf]  ;;  %970 = vst.msk [vmem:[#allocation2 + $0x88] sm:$0xf] %vm891_vm2, %v755_v60  ;;  %v1826_v57 = vsel %vm1201_vm11, %v1821_v51, %v1825_v42  ;;  %v412_v6 = vadd.f32 %v4766_v5, %v4870_v58  ;;  %v4297_v37 = vunpack.c.l.bf16 %v4322_v18  ;;  %v4298_v38 = vunpack.c.h.bf16 %v4322_v18 }
  0x62   : > { %973 = vst [vmem:[#allocation2 + $0x8c] sm:$0x1] %v972_v61  ;;  %v768_v3 = vrot.slane %v766_v46, 7  ;;  %v443_v7 = vmax.f32 %v411_v54, 0.0  ;;  %v4898_v9 = vcombine.low %v1629_v55, %v1630_v1  ;;  %v4031_v11 = vcombine.low %v1674_v56, %v1630_v1  ;;  %v915_v56 = vld [vmem:[#allocation2 + $0x2c] sm:$0x1] }
  0x63   : > { %v4900_v10 = vld [vmem:[#allocation2 + $0x38] ss:$0 sps:$4 sm:$0x11]   ;;  %v975_v12 = vsel %vm4795_vm8, %v763_v62, %v974_v50  ;;  %v1828_v13 = vshrl.u32 %v4863_v39, 16  ;;  %v444_v16 = vmax.f32 %v412_v6, 0.0  ;;  %v1830_v21 = vshll.u32 %v4863_v39, 16 }
  0x64   : > { %v771_v14 = vor.u32 %v769_v49, %v768_v3  ;;  %v773_v15 = vrot.slane %v768_v3, 4  ;;  %976 = vst [vmem:[#allocation2 + $0x90] sm:$0xf] %v975_v12  ;;  %v4187_v17 = vpack.c.bf16 %v443_v7, %v443_v7  ;;  %v2096_v19 = vrot.slane %v4031_v11, 1 }
  0x65   : > { %v2097_v58 = vrot.slane %v4900_v10, 1  ;;  %v1835_v22 = vshll.u32 %v4859_v34, 16  ;;  %v4188_v25 = vpack.c.bf16 %v444_v16, %v444_v16  ;;  %v1832_v31 = vrot.slane %v1830_v21, 1 }
  0x66   : > { %v772_v23 = vsel %vm4789_vm7, %v764_v63, %v771_v14  ;;  %v979_v24 = vsel %vm4801_vm9, %v773_v15, %v978_v0  ;;  %v605_v26 = vshrl.u32 %v4187_v17, 16  ;;  %v608_v29 = vshll.u32 %v4187_v17, 16 }
  0x67   : > { %v2098_v28 = vsel %vm1474_vm10, %v2096_v19, %v2097_v58  ;;  %977 = vst.msk [vmem:[#allocation2 + $0x94] sm:$0xf] %vm891_vm2, %v772_v23  ;;  %980 = vst [vmem:[#allocation2 + $0x98] sm:$0x1] %v979_v24  ;;  %v1837_v32 = vrot.slane %v1835_v22, 1  ;;  %v613_v36 = vshrl.u32 %v4188_v25, 16  ;;  %v1833_v43 = vor.u32 %v1832_v31, %v1828_v13 }
  0x68   : > { %2141 = vrot.lane.b32.xlu1 %v2098_v28, %s4648_s11  ;;  %v1643_v34 = vld [vmem:[#allocation2 + $0x84] sm:$0xf]  ;;  %v607_v35 = vrot.slane %v605_v26, 7  ;;  %v1644_v40 = vld [vmem:[#allocation2 + $0x88] sm:$0xf]  ;;  %v616_v42 = vshll.u32 %v4188_v25, 16  ;;  %v4301_v45 = vunpack.c.l.bf16 %v4914_v27  ;;  %v392_v62 = vmul.f32 %v4297_v37, %v4761_v2 }
  0x69   : > { %v1681_v33 = vld [vmem:[#allocation2 + $0x84] sm:$0xe]  ;;  %v1912_v44 = vshrl.u32 %v4852_v20, 16  ;;  %v4921_v46 = vcombine.low %v1643_v34, %v1644_v40  ;;  %v4512_v47 = vld [vmem:[#allocation2 + $0x8c] ss:$0 sps:$4 sm:$0x11]   ;;  %v1838_v60 = vsel %vm1201_vm11, %v1833_v43, %v1837_v32  ;;  %v393_v18 = vmul.f32 %v4298_v38, %v4761_v2 }
  0x6a   : > { %v4038_v49 = vcombine.low %v1681_v33, %v1644_v40  ;;  %v610_v50 = vor.u32 %v608_v29, %v607_v35  ;;  %v611_v51 = vrot.slane %v607_v35, 4  ;;  %v615_v55 = vrot.slane %v613_v36, 7 }
  0x6b   : > { %v1645_v54 = vld [vmem:[#allocation2 + $0x90] sm:$0xf]  ;;  %v1914_v61 = vshll.u32 %v4852_v20, 16  ;;  %v2118_v0 = vrot.slane %v4512_v47, 1  ;;  %v1919_v6 = vshll.u32 %v4842_v8, 16  ;;  %v1924_v13 = vshrl.u32 %v4832_v59, 16 }
  0x6c   : > { %v2117_v63 = vrot.slane %v4038_v49, 1  ;;  %v1682_v1 = vld [vmem:[#allocation2 + $0x90] sm:$0xe]  ;;  %2007 = vrot.lane.b32.xlu1 %v1826_v57, %s4649_s12  ;;  %v912_v3 = vsel %vm4795_vm8, %v610_v50, %v911_v30  ;;  %v618_v7 = vor.u32 %v616_v42, %v615_v55  ;;  %v620_v11 = vrot.slane %v615_v55, 4 }
  0x6d   : > { %913 = vst [vmem:[#allocation2 + $0x24] sm:$0xf] %v912_v3  ;;  %v1916_v12 = vrot.slane %v1914_v61, 1  ;;  %v1921_v16 = vrot.slane %v1919_v6, 1  ;;  %v1926_v17 = vshll.u32 %v4832_v59, 16  ;;  %v1931_v24 = vshll.u32 %v4829_v53, 16 }
  0x6e   : > { %v2119_v14 = vsel %vm1474_vm10, %v2117_v63, %v2118_v0  ;;  %v1646_v15 = vld [vmem:[#allocation2 + $0x94] sm:$0xf]  ;;  %v4515_v19 = vld [vmem:[#allocation2 + $0x98] ss:$0 sps:$4 sm:$0x11]   ;;  %v619_v58 = vsel %vm4789_vm7, %v611_v51, %v618_v7  ;;  %v916_v21 = vsel %vm4801_vm9, %v620_v11, %v915_v56  ;;  %v1936_v25 = vshrl.u32 %v4921_v46, 16 }
  0x6f   : > { %2155 = vrot.lane.b32.xlu0 %v2119_v14, %s4648_s11  ;;  %v4935_v57 = vcombine.low %v1645_v54, %v1646_v15  ;;  %v4039_v8 = vcombine.low %v1682_v1, %v1646_v15  ;;  %914 = vst.msk [vmem:[#allocation2 + $0x28] sm:$0xf] %vm891_vm2, %v619_v58  ;;  %917 = vst [vmem:[#allocation2 + $0x2c] sm:$0x1] %v916_v21  ;;  %v1917_v22 = vor.u32 %v1916_v12, %v1912_v44  ;;  %vm1555_vm12 = vcmask 31744  }
  0x70   : > { %2009 = vrot.lane.b32.xlu1 %v1838_v60, %s4649_s12  ;;  %v1928_v23 = vrot.slane %v1926_v17, 1  ;;  %v2121_v28 = vrot.slane %v4515_v19, 1  ;;  %v1955_v32 = vshll.u32 %v4515_v19, 16  ;;  %v1933_v33 = vrot.slane %v1931_v24, 1 }
  0x71   : > { %v2120_v26 = vrot.slane %v4039_v8, 1  ;;  %v1948_v29 = vshrl.u32 %v4935_v57, 16  ;;  %v1950_v30 = vshll.u32 %v4935_v57, 16  ;;  %v4948_v31 = vsel %vm1201_vm11, %v1917_v22, %v1921_v16  ;;  %v4314_v22 = vld [vmem:[%s4691_s25 + $0x20] sm:$0xff]  }
  0x72   : > { %v1929_v34 = vor.u32 %v1928_v23, %v1924_v13  ;;  %v1938_v37 = vshll.u32 %v4921_v46, 16  ;;  %v1943_v53 = vshll.u32 %v4512_v47, 16  ;;  %v1957_v40 = vrot.slane %v1955_v32, 1 }
  0x73   : > { %v2122_v35 = vsel %vm1474_vm10, %v2120_v26, %v2121_v28  ;;  %v1952_v36 = vrot.slane %v1950_v30, 1  ;;  %v1852_v43 = vshrl.u32 %v4898_v9, 16  ;;  %v431_v44 = vadd.f32 %v4766_v5, %v392_v62 }
  0x74   : > { %2157 = vrot.lane.b32.xlu0 %v2122_v35, %s4648_s11  ;;  %v1627_v38 = vld [vmem:[#allocation2 + $0x24] sm:$0xf]  ;;  %v4954_v42 = vsel %vm1201_vm11, %v1929_v34, %v1933_v33  ;;  %v1940_v51 = vrot.slane %v1938_v37, 1  ;;  %v1945_v54 = vrot.slane %v1943_v53, 1  ;;  %v1854_v55 = vshll.u32 %v4898_v9, 16 }
  0x75   : > { %v1673_v49 = vld [vmem:[#allocation2 + $0x24] sm:$0xe]  ;;  %v1953_v50 = vor.u32 %v1952_v36, %v1948_v29  ;;  %v1859_v56 = vshll.u32 %v4900_v10, 16  ;;  %v432_v47 = vadd.f32 %v4766_v5, %v393_v18  ;;  %v463_v60 = vmax.f32 %v431_v44, 0.0  ;;  %v981_v33 = vld [vmem:[#allocation2 + $0x9c] sm:$0xf] }
  0x76   : > { %v4302_v61 = vunpack.c.h.bf16 %v4914_v27  ;;  %v1628_v63 = vld [vmem:[#allocation2 + $0x28] sm:$0xf]  ;;  %v1941_v1 = vor.u32 %v1940_v51, %v1936_v25  ;;  %v1856_v3 = vrot.slane %v1854_v55, 1  ;;  %v394_v62 = vmul.f32 %v4301_v45, %v4761_v2  ;;  %v4518_v7 = vld [vmem:[#allocation2 + $0x2c] ss:$0 sps:$4 sm:$0x11]  }
  0x77   : > { %v1958_v0 = vsel %vm1201_vm11, %v1953_v50, %v1957_v40  ;;  %v4966_v6 = vcombine.low %v1627_v38, %v1628_v63  ;;  %v4030_v11 = vcombine.low %v1673_v49, %v1628_v63  ;;  %v1861_v10 = vrot.slane %v1859_v56, 1  ;;  %v985_v49 = vld [vmem:[#allocation2 + $0xa4] sm:$0x1]  ;;  %v4315_v55 = vld [vmem:[%s4691_s25 + $0x28] sm:$0xff]  }
  0x78   : > { %2029 = vrot.lane.b32.xlu1 %v1958_v0, %s4649_s12  ;;  %v464_v12 = vmax.f32 %v432_v47, 0.0  ;;  %v4970_v13 = vsel %vm1201_vm11, %v1941_v1, %v1945_v54  ;;  %v1857_v14 = vor.u32 %v1856_v3, %v1852_v43  ;;  %v4207_v15 = vpack.c.bf16 %v463_v60, %v463_v60 }
  0x79   : > { %v395_v16 = vmul.f32 %v4302_v61, %v4761_v2  ;;  %v2093_v17 = vrot.slane %v4030_v11, 1  ;;  %v2094_v18 = vrot.slane %v4518_v7, 1  ;;  %v1840_v27 = vshrl.u32 %v4966_v6, 16 }
  0x7a   : > { %v1842_v45 = vshll.u32 %v4966_v6, 16  ;;  %v1847_v19 = vshll.u32 %v4518_v7, 16  ;;  %v1862_v8 = vsel %vm1201_vm11, %v1857_v14, %v1861_v10  ;;  %v4208_v58 = vpack.c.bf16 %v464_v12, %v464_v12 }
  0x7b   : > { %v775_v21 = vshrl.u32 %v4207_v15, 16  ;;  %v2095_v23 = vsel %vm1474_vm10, %v2093_v17, %v2094_v18  ;;  %v778_v25 = vshll.u32 %v4207_v15, 16  ;;  %v433_v26 = vadd.f32 %v4766_v5, %v394_v62  ;;  %v4324_v62 = vld [vmem:[%s4691_s25 + $0x70] sm:$0xff]   ;;  %v988_v17 = vld [vmem:[#allocation2 + $0xa8] sm:$0xf] }
  0x7c   : > { %v1844_v24 = vrot.slane %v1842_v45, 1  ;;  %2139 = vrot.lane.b32.xlu0 %v2095_v23, %s4648_s11  ;;  %v1849_v28 = vrot.slane %v1847_v19, 1  ;;  %v783_v30 = vshrl.u32 %v4208_v58, 16  ;;  %v786_v32 = vshll.u32 %v4208_v58, 16 }
  0x7d   : > { %v777_v29 = vrot.slane %v775_v21, 7  ;;  %v434_v35 = vadd.f32 %v4766_v5, %v395_v16  ;;  %v465_v36 = vmax.f32 %v433_v26, 0.0  ;;  %v4265_v37 = vunpack.c.l.bf16 %v4314_v22 }
  0x7e   : > { %v1845_v34 = vor.u32 %v1844_v24, %v1840_v27  ;;  %v785_v40 = vrot.slane %v783_v30, 7  ;;  %v4266_v43 = vunpack.c.h.bf16 %v4314_v22  ;;  %v4269_v10 = vunpack.c.l.bf16 %v4315_v55  ;;  %v992_v24 = vld [vmem:[#allocation2 + $0xb0] sm:$0x1] }
  0x7f   : > { %v780_v53 = vor.u32 %v778_v25, %v777_v29  ;;  %v781_v38 = vrot.slane %v777_v29, 4  ;;  %v466_v50 = vmax.f32 %v434_v35, 0.0  ;;  %v4209_v51 = vpack.c.bf16 %v465_v36, %v465_v36 }
  0x80   : > { %v1850_v44 = vsel %vm1201_vm11, %v1845_v34, %v1849_v28  ;;  %v376_v54 = vmul.f32 %v4265_v37, %v4761_v2  ;;  %2023 = vrot.lane.b32.xlu0 %v4948_v31, %s4649_s12  ;;  %v788_v56 = vor.u32 %v786_v32, %v785_v40  ;;  %v790_v47 = vrot.slane %v785_v40, 4 }
  0x81   : > { %2011 = vrot.lane.b32.xlu1 %v1850_v44, %s4649_s12  ;;  %v982_v60 = vsel %vm4795_vm8, %v780_v53, %v981_v33  ;;  %v377_v61 = vmul.f32 %v4266_v43, %v4761_v2  ;;  %v4210_v63 = vpack.c.bf16 %v466_v50, %v466_v50  ;;  %v792_v0 = vshrl.u32 %v4209_v51, 16  ;;  %v929_v50 = vld [vmem:[#allocation2 + $0x44] sm:$0x1] }
  0x82   : > { %983 = vst [vmem:[#allocation2 + $0x9c] sm:$0xf] %v982_v60  ;;  %v795_v1 = vshll.u32 %v4209_v51, 16  ;;  %v415_v3 = vadd.f32 %v4766_v5, %v376_v54  ;;  %v789_v7 = vsel %vm4789_vm7, %v781_v38, %v788_v56  ;;  %v986_v31 = vsel %vm4801_vm9, %v790_v47, %v985_v49  ;;  %v925_v49 = vld [vmem:[#allocation2 + $0x3c] sm:$0xf] }
  0x83   : > { %v416_v11 = vadd.f32 %v4766_v5, %v377_v61  ;;  %984 = vst.msk [vmem:[#allocation2 + $0xa0] sm:$0xf] %vm891_vm2, %v789_v7  ;;  %987 = vst [vmem:[#allocation2 + $0xa4] sm:$0x1] %v986_v31  ;;  %v794_v12 = vrot.slane %v792_v0, 7  ;;  %v800_v14 = vshrl.u32 %v4210_v63, 16  ;;  %v4270_v27 = vunpack.c.h.bf16 %v4315_v55 }
  0x84   : > { %v803_v15 = vshll.u32 %v4210_v63, 16  ;;  %v447_v16 = vmax.f32 %v415_v3, 0.0  ;;  %2025 = vrot.lane.b32.xlu0 %v4954_v42, %s4649_s12  ;;  %v378_v45 = vmul.f32 %v4269_v10, %v4761_v2  ;;  %v4305_v19 = vunpack.c.l.bf16 %v4324_v62 }
  0x85   : > { %2013 = vrot.lane.b32.xlu1 %v1862_v8, %s4649_s12  ;;  %v448_v18 = vmax.f32 %v416_v11, 0.0  ;;  %v797_v58 = vor.u32 %v795_v1, %v794_v12  ;;  %v798_v21 = vrot.slane %v794_v12, 4  ;;  %v802_v22 = vrot.slane %v800_v14, 7 }
  0x86   : > { %v4191_v23 = vpack.c.bf16 %v447_v16, %v447_v16  ;;  %v379_v26 = vmul.f32 %v4270_v27, %v4761_v2  ;;  %v417_v28 = vadd.f32 %v4766_v5, %v378_v45  ;;  %v4306_v29 = vunpack.c.h.bf16 %v4324_v62 }
  0x87   : > { %v4192_v25 = vpack.c.bf16 %v448_v18, %v448_v18  ;;  %v805_v42 = vor.u32 %v803_v15, %v802_v22  ;;  %v807_v30 = vrot.slane %v802_v22, 4  ;;  %v989_v8 = vsel %vm4795_vm8, %v797_v58, %v988_v17  ;;  %v5033_v17 = vld [vmem:[%s4691_s25 + $0x78] sm:$0xff]  }
  0x88   : > { %v639_v32 = vshrl.u32 %v4191_v23, 16  ;;  %2027 = vrot.lane.b32.xlu0 %v4970_v13, %s4649_s12  ;;  %990 = vst [vmem:[#allocation2 + $0xa8] sm:$0xf] %v989_v8  ;;  %v642_v35 = vshll.u32 %v4191_v23, 16  ;;  %v418_v37 = vadd.f32 %v4766_v5, %v379_v26  ;;  %v396_v53 = vmul.f32 %v4305_v19, %v4761_v2  ;;  %v5018_v2 = vld [vmem:[%s6190_s1] ss:$0 sm:$0xff] }
  0x89   : > { %v1647_v34 = vld [vmem:[#allocation2 + $0x9c] sm:$0xf]  ;;  %v647_v36 = vshrl.u32 %v4192_v25, 16  ;;  %v806_v38 = vsel %vm4789_vm7, %v798_v21, %v805_v42  ;;  %v993_v40 = vsel %vm4801_vm9, %v807_v30, %v992_v24  ;;  %v650_v44 = vshll.u32 %v4192_v25, 16  ;;  %v5039_v21 = vld [vmem:[%s6191_s2] ss:$0 sm:$0xff] }
  0x8a   : > { %v1683_v33 = vld [vmem:[#allocation2 + $0x9c] sm:$0xe]  ;;  %v641_v43 = vrot.slane %v639_v32, 7  ;;  %v1648_v13 = vld [vmem:[#allocation2 + $0xa0] sm:$0xf]  ;;  %v449_v54 = vmax.f32 %v417_v28, 0.0  ;;  %v397_v55 = vmul.f32 %v5018_v2, %v4306_v29  ;;  %v435_v56 = vadd.f32 %v4766_v5, %v396_v53 }
  0x8b   : > { %991 = vst.msk [vmem:[#allocation2 + $0xac] sm:$0xf] %vm891_vm2, %v806_v38  ;;  %994 = vst [vmem:[#allocation2 + $0xb0] sm:$0x1] %v993_v40  ;;  %v649_v51 = vrot.slane %v647_v36, 7  ;;  %v5022_v47 = vcombine.low %v1647_v34, %v1648_v13  ;;  %v4040_v61 = vcombine.low %v1683_v33, %v1648_v13  ;;  %v450_v62 = vmax.f32 %v418_v37, 0.0 }
  0x8c   : > { %v4521_v60 = vld [vmem:[#allocation2 + $0xa4] ss:$0 sps:$4 sm:$0x11]   ;;  %v644_v63 = vor.u32 %v642_v35, %v641_v43  ;;  %v645_v0 = vrot.slane %v641_v43, 4  ;;  %v4193_v7 = vpack.c.bf16 %v449_v54, %v449_v54  ;;  %v436_v22 = vadd.f32 %v5039_v21, %v397_v55 }
  0x8d   : > { %v652_v1 = vor.u32 %v650_v44, %v649_v51  ;;  %v654_v3 = vrot.slane %v649_v51, 4  ;;  %v1960_v31 = vshrl.u32 %v5022_v47, 16  ;;  %v1962_v11 = vshll.u32 %v5022_v47, 16 }
  0x8e   : > { %v1967_v10 = vshll.u32 %v4521_v60, 16  ;;  %v2123_v12 = vrot.slane %v4040_v61, 1  ;;  %v2124_v14 = vrot.slane %v4521_v60, 1  ;;  %v926_v15 = vsel %vm4795_vm8, %v644_v63, %v925_v49  ;;  %v936_v60 = vld [vmem:[#allocation2 + $0x50] sm:$0x1] }
  0x8f   : > { %v653_v5 = vsel %vm4789_vm7, %v645_v0, %v652_v1  ;;  %v930_v16 = vsel %vm4801_vm9, %v654_v3, %v929_v50  ;;  %v1964_v18 = vrot.slane %v1962_v11, 1  ;;  %v1649_v45 = vld [vmem:[#allocation2 + $0xa8] sm:$0xf]  ;;  %927 = vst [vmem:[#allocation2 + $0x3c] sm:$0xf] %v926_v15  ;;  %v4194_v58 = vpack.c.bf16 %v450_v62, %v450_v62 }
  0x90   : > { %v1969_v27 = vrot.slane %v1967_v10, 1  ;;  %928 = vst.msk [vmem:[#allocation2 + $0x40] sm:$0xf] %vm891_vm2, %v653_v5  ;;  %931 = vst [vmem:[#allocation2 + $0x44] sm:$0x1] %v930_v16  ;;  %v2125_v23 = vsel %vm1474_vm10, %v2123_v12, %v2124_v14  ;;  %v656_v24 = vshrl.u32 %v4193_v7, 16  ;;  %v4309_v8 = vunpack.c.l.bf16 %v5033_v17 }
  0x91   : > { %v1684_v19 = vld [vmem:[#allocation2 + $0xa8] sm:$0xe]  ;;  %v659_v25 = vshll.u32 %v4193_v7, 16  ;;  %v467_v26 = vmax.f32 %v435_v56, 0.0  ;;  %v1965_v28 = vor.u32 %v1964_v18, %v1960_v31  ;;  %v664_v42 = vshrl.u32 %v4194_v58, 16 }
  0x92   : > { %v1650_v29 = vld [vmem:[#allocation2 + $0xac] sm:$0xf]  ;;  %v667_v30 = vshll.u32 %v4194_v58, 16  ;;  %v4523_v34 = vld [vmem:[#allocation2 + $0xb0] ss:$0 sps:$4 sm:$0x11]   ;;  %v4310_v40 = vunpack.c.h.bf16 %v5033_v17  ;;  %v398_v62 = vmul.f32 %v5018_v2, %v4309_v8 }
  0x93   : > { %v5044_v32 = vcombine.low %v1649_v45, %v1650_v29  ;;  %v4041_v33 = vcombine.low %v1684_v19, %v1650_v29  ;;  %v658_v35 = vrot.slane %v656_v24, 7  ;;  %v468_v36 = vmax.f32 %v436_v22, 0.0  ;;  %v932_v56 = vld [vmem:[#allocation2 + $0x48] sm:$0xf] }
  0x94   : > { %v1970_v37 = vsel %vm1201_vm11, %v1965_v28, %v1969_v27  ;;  %v666_v53 = vrot.slane %v664_v42, 7  ;;  %v4211_v38 = vpack.c.bf16 %v467_v26, %v467_v26  ;;  %v1979_v49 = vshll.u32 %v4523_v34, 16 }
  0x95   : > { %2031 = vrot.lane.b32.xlu0 %v1970_v37, %s4649_s12  ;;  %v1972_v43 = vshrl.u32 %v5044_v32, 16  ;;  %v1974_v44 = vshll.u32 %v5044_v32, 16  ;;  %v2126_v50 = vrot.slane %v4041_v33, 1  ;;  %v2127_v13 = vrot.slane %v4523_v34, 1 }
  0x96   : > { %v661_v51 = vor.u32 %v659_v25, %v658_v35  ;;  %v662_v54 = vrot.slane %v658_v35, 4  ;;  %v669_v55 = vor.u32 %v667_v30, %v666_v53  ;;  %v1981_v63 = vrot.slane %v1979_v49, 1  ;;  %v1631_v0 = vld [vmem:[#allocation2 + $0x3c] sm:$0xf]  ;;  %v4316_v25 = vld [vmem:[%s4691_s25 + $0x30] sm:$0xff]  }
  0x97   : > { %v1976_v61 = vrot.slane %v1974_v44, 1  ;;  %v1632_v1 = vld [vmem:[#allocation2 + $0x40] sm:$0xf]  ;;  %v4212_v3 = vpack.c.bf16 %v468_v36, %v468_v36  ;;  %v4525_v31 = vld [vmem:[#allocation2 + $0x44] ss:$0 sps:$4 sm:$0x11]   ;;  %v2128_v11 = vsel %vm1474_vm10, %v2126_v50, %v2127_v13  ;;  %v399_v35 = vmul.f32 %v5018_v2, %v4310_v40 }
  0x98   : > { %v5052_v7 = vcombine.low %v1631_v0, %v1632_v1  ;;  %v670_v10 = vsel %vm4789_vm7, %v662_v54, %v669_v55  ;;  %v671_v12 = vrot.slane %v666_v53, 4  ;;  %v933_v5 = vsel %vm4795_vm8, %v661_v51, %v932_v56  ;;  %v1675_v15 = vld [vmem:[#allocation2 + $0x3c] sm:$0xe]  ;;  %v995_v30 = vld [vmem:[#allocation2 + $0xb4] sm:$0xf] }
  0x99   : > { %v1977_v14 = vor.u32 %v1976_v61, %v1972_v43  ;;  %2159 = vrot.lane.b32.xlu0 %v2125_v23, %s4648_s11  ;;  %935 = vst.msk [vmem:[#allocation2 + $0x4c] sm:$0xf] %vm891_vm2, %v670_v10  ;;  %v809_v16 = vshrl.u32 %v4211_v38, 16  ;;  %v812_v17 = vshll.u32 %v4211_v38, 16  ;;  %v1871_v45 = vshll.u32 %v4525_v31, 16  ;;  %v5072_v43 = vld [vmem:[%s4691_s25 + $0x38] sm:$0xff]  }
  0x9a   : > { %v1864_v18 = vshrl.u32 %v5052_v7, 16  ;;  %v1866_v27 = vshll.u32 %v5052_v7, 16  ;;  %934 = vst [vmem:[#allocation2 + $0x48] sm:$0xf] %v933_v5  ;;  %v937_v19 = vsel %vm4801_vm9, %v671_v12, %v936_v60  ;;  %v4032_v22 = vcombine.low %v1675_v15, %v1632_v1  ;;  %v999_v50 = vld [vmem:[#allocation2 + $0xbc] sm:$0x1] }
  0x9b   : > { %v1982_v58 = vsel %vm1201_vm11, %v1977_v14, %v1981_v63  ;;  %938 = vst [vmem:[#allocation2 + $0x50] sm:$0x1] %v937_v19  ;;  %v2100_v23 = vrot.slane %v4525_v31, 1  ;;  %v811_v24 = vrot.slane %v809_v16, 7  ;;  %v1873_v28 = vrot.slane %v1871_v45, 1 }
  0x9c   : > { %2033 = vrot.lane.b32.xlu1 %v1982_v58, %s4649_s12  ;;  %v1868_v26 = vrot.slane %v1866_v27, 1  ;;  %v817_v29 = vshrl.u32 %v4212_v3, 16  ;;  %v820_v42 = vshll.u32 %v4212_v3, 16  ;;  %v2099_v8 = vrot.slane %v4032_v22, 1 }
  0x9d   : > { %2161 = vrot.lane.b32.xlu0 %v2128_v11, %s4648_s11  ;;  %v814_v34 = vor.u32 %v812_v17, %v811_v24  ;;  %v815_v33 = vrot.slane %v811_v24, 4  ;;  %v437_v53 = vadd.f32 %v5039_v21, %v398_v62  ;;  %v4273_v38 = vunpack.c.l.bf16 %v4316_v25 }
  0x9e   : > { %v1869_v36 = vor.u32 %v1868_v26, %v1864_v18  ;;  %v819_v37 = vrot.slane %v817_v29, 7  ;;  %v2101_v44 = vsel %vm1474_vm10, %v2099_v8, %v2100_v23  ;;  %v438_v13 = vadd.f32 %v5039_v21, %v399_v35 }
  0x9f   : > { %v996_v49 = vsel %vm4795_vm8, %v814_v34, %v995_v30  ;;  %v4274_v51 = vunpack.c.h.bf16 %v4316_v25  ;;  %v469_v60 = vmax.f32 %v437_v53, 0.0  ;;  %v380_v1 = vmul.f32 %v5018_v2, %v4273_v38  ;;  %v1002_v34 = vld [vmem:[#allocation2 + $0xc0] sm:$0xf] }
  0xa0   : > { %v1874_v54 = vsel %vm1201_vm11, %v1869_v36, %v1873_v28  ;;  %v1634_v55 = vld [vmem:[#allocation2 + $0x4c] sm:$0xf]  ;;  %v822_v40 = vor.u32 %v820_v42, %v819_v37  ;;  %v824_v56 = vrot.slane %v819_v37, 4  ;;  %997 = vst [vmem:[#allocation2 + $0xb4] sm:$0xf] %v996_v49  ;;  %v470_v0 = vmax.f32 %v438_v13, 0.0 }
  0xa1   : > { %2015 = vrot.lane.b32.xlu1 %v1874_v54, %s4649_s12  ;;  %v1633_v61 = vld [vmem:[#allocation2 + $0x48] sm:$0xf]  ;;  %2143 = vrot.lane.b32.xlu0 %v2101_v44, %s4648_s11  ;;  %v381_v3 = vmul.f32 %v5018_v2, %v4274_v51  ;;  %v4277_v62 = vunpack.c.l.bf16 %v5072_v43  ;;  %v4213_v5 = vpack.c.bf16 %v469_v60, %v469_v60  ;;  %v419_v16 = vadd.f32 %v5039_v21, %v380_v1 }
  0xa2   : > { %v1676_v63 = vld [vmem:[#allocation2 + $0x48] sm:$0xe]  ;;  %v5084_v31 = vcombine.low %v1633_v61, %v1634_v55  ;;  %v4527_v11 = vld [vmem:[#allocation2 + $0x50] ss:$0 sps:$4 sm:$0x11]   ;;  %v823_v12 = vsel %vm4789_vm7, %v815_v33, %v822_v40  ;;  %v1000_v14 = vsel %vm4801_vm9, %v824_v56, %v999_v50  ;;  %v4214_v15 = vpack.c.bf16 %v470_v0, %v470_v0 }
  0xa3   : > { %v4033_v10 = vcombine.low %v1676_v63, %v1634_v55  ;;  %998 = vst.msk [vmem:[#allocation2 + $0xb8] sm:$0xf] %vm891_vm2, %v823_v12  ;;  %1001 = vst [vmem:[#allocation2 + $0xbc] sm:$0x1] %v1000_v14  ;;  %v420_v17 = vadd.f32 %v5039_v21, %v381_v3  ;;  %v1883_v45 = vshll.u32 %v4527_v11, 16  ;;  %v2103_v58 = vrot.slane %v4527_v11, 1 }
  0xa4   : > { %v1876_v18 = vshrl.u32 %v5084_v31, 16  ;;  %v1878_v27 = vshll.u32 %v5084_v31, 16  ;;  %v826_v22 = vshrl.u32 %v4213_v5, 16  ;;  %v829_v23 = vshll.u32 %v4213_v5, 16  ;;  %v1006_v37 = vld [vmem:[#allocation2 + $0xc8] sm:$0x1] }
  0xa5   : > { %v2102_v19 = vrot.slane %v4033_v10, 1  ;;  %v834_v24 = vshrl.u32 %v4214_v15, 16  ;;  %v1885_v26 = vrot.slane %v1883_v45, 1  ;;  %v837_v28 = vshll.u32 %v4214_v15, 16 }
  0xa6   : > { %v1880_v25 = vrot.slane %v1878_v27, 1  ;;  %v451_v29 = vmax.f32 %v419_v16, 0.0  ;;  %v828_v30 = vrot.slane %v826_v22, 7  ;;  %v4278_v33 = vunpack.c.h.bf16 %v5072_v43  ;;  %v939_v16 = vld [vmem:[#allocation2 + $0x54] sm:$0xf] }
  0xa7   : > { %v2104_v42 = vsel %vm1474_vm10, %v2102_v19, %v2103_v58  ;;  %v836_v8 = vrot.slane %v834_v24, 7  ;;  %v1651_v36 = vld [vmem:[#allocation2 + $0xb4] sm:$0xf]  ;;  %v452_v53 = vmax.f32 %v420_v17, 0.0  ;;  %v382_v44 = vmul.f32 %v5018_v2, %v4277_v62 }
  0xa8   : > { %v1881_v35 = vor.u32 %v1880_v25, %v1876_v18  ;;  %v4195_v38 = vpack.c.bf16 %v451_v29, %v451_v29  ;;  %v831_v49 = vor.u32 %v829_v23, %v828_v30  ;;  %v832_v50 = vrot.slane %v828_v30, 4  ;;  %v1685_v54 = vld [vmem:[#allocation2 + $0xb4] sm:$0xe]  ;;  %v5111_v19 = vld [vmem:[#allocation2 + $0x8] ss:$0 sps:$4 sm:$0x11]  }
  0xa9   : > { %v839_v13 = vor.u32 %v837_v28, %v836_v8  ;;  %v841_v51 = vrot.slane %v836_v8, 4  ;;  %v4196_v56 = vpack.c.bf16 %v452_v53, %v452_v53  ;;  %v943_v23 = vld [vmem:[#allocation2 + $0x5c] sm:$0x1]  ;;  %v383_v24 = vmul.f32 %v5018_v2, %v4278_v33  ;;  %v1009_v8 = vld [vmem:[#allocation2] sm:$0xf] }
  0xaa   : > { %v1886_v55 = vsel %vm1201_vm11, %v1881_v35, %v1885_v26  ;;  %v1652_v40 = vld [vmem:[#allocation2 + $0xb8] sm:$0xf]  ;;  %v673_v60 = vshrl.u32 %v4195_v38, 16  ;;  %v676_v61 = vshll.u32 %v4195_v38, 16  ;;  %v1003_v1 = vsel %vm4795_vm8, %v831_v49, %v1002_v34  ;;  %v5118_v34 = vld [vmem:[#allocation2 + $0x4] sm:$0xf] }
  0xab   : > { %2017 = vrot.lane.b32.xlu1 %v1886_v55, %s4649_s12  ;;  %v5100_v43 = vcombine.low %v1651_v36, %v1652_v40  ;;  %v4530_v63 = vld [vmem:[#allocation2 + $0xbc] ss:$0 sps:$4 sm:$0x11]   ;;  %v840_v0 = vsel %vm4789_vm7, %v832_v50, %v839_v13  ;;  %v1007_v3 = vsel %vm4801_vm9, %v841_v51, %v1006_v37  ;;  %1004 = vst [vmem:[#allocation2 + $0xc0] sm:$0xf] %v1003_v1  ;;  %v681_v10 = vshrl.u32 %v4196_v56, 16 }
  0xac   : > { %1005 = vst.msk [vmem:[#allocation2 + $0xc4] sm:$0xf] %vm891_vm2, %v840_v0  ;;  %1008 = vst [vmem:[#allocation2 + $0xc8] sm:$0x1] %v1007_v3  ;;  %v4042_v62 = vcombine.low %v1685_v54, %v1652_v40  ;;  %v675_v11 = vrot.slane %v673_v60, 7  ;;  %v684_v12 = vshll.u32 %v4196_v56, 16  ;;  %v421_v25 = vadd.f32 %v5039_v21, %v382_v44 }
  0xad   : > { %v1984_v14 = vshrl.u32 %v5100_v43, 16  ;;  %v1986_v5 = vshll.u32 %v5100_v43, 16  ;;  %v1991_v15 = vshll.u32 %v4530_v63, 16  ;;  %v2130_v17 = vrot.slane %v4530_v63, 1 }
  0xae   : > { %v678_v18 = vor.u32 %v676_v61, %v675_v11  ;;  %v679_v27 = vrot.slane %v675_v11, 4  ;;  %v683_v45 = vrot.slane %v681_v10, 7  ;;  %v2129_v26 = vrot.slane %v4042_v62, 1 }
  0xaf   : > { %2145 = vrot.lane.b32.xlu1 %v2104_v42, %s4648_s11  ;;  %v1988_v58 = vrot.slane %v1986_v5, 1  ;;  %v1993_v22 = vrot.slane %v1991_v15, 1  ;;  %v422_v42 = vadd.f32 %v5039_v21, %v383_v24  ;;  %v453_v36 = vmax.f32 %v421_v25, 0.0 }
  0xb0   : > { %v686_v28 = vor.u32 %v684_v12, %v683_v45  ;;  %v688_v29 = vrot.slane %v683_v45, 4  ;;  %v940_v30 = vsel %vm4795_vm8, %v678_v18, %v939_v16  ;;  %v1210_v33 = vshll.u32 %v5111_v19, 16  ;;  %v946_v12 = vld [vmem:[#allocation2 + $0x60] sm:$0xf] }
  0xb1   : > { %v1989_v35 = vor.u32 %v1988_v58, %v1984_v14  ;;  %941 = vst [vmem:[#allocation2 + $0x54] sm:$0xf] %v940_v30  ;;  %v4197_v49 = vpack.c.bf16 %v453_v36, %v453_v36  ;;  %v5129_v50 = vcombine.low %v1009_v8, %v5118_v34  ;;  %v2131_v51 = vsel %vm1474_vm10, %v2129_v26, %v2130_v17 }
  0xb2   : > { %v687_v37 = vsel %vm4789_vm7, %v679_v27, %v686_v28  ;;  %v944_v2 = vsel %vm4801_vm9, %v688_v29, %v943_v23  ;;  %v1653_v38 = vld [vmem:[#allocation2 + $0xc0] sm:$0xf]  ;;  %v454_v55 = vmax.f32 %v422_v42, 0.0  ;;  %v2639_v23 = vld [vmem:[#allocation2 + $0x18] sm:$0xf]  ;;  %vm2272_vm13 = vcmask 1045504  }
  0xb3   : > { %v1994_v53 = vsel %vm1201_vm11, %v1989_v35, %v1993_v22  ;;  %v1654_v44 = vld [vmem:[#allocation2 + $0xc4] sm:$0xf]  ;;  %942 = vst.msk [vmem:[#allocation2 + $0x58] sm:$0xf] %vm891_vm2, %v687_v37  ;;  %945 = vst [vmem:[#allocation2 + $0x5c] sm:$0x1] %v944_v2 }
  0xb4   : > { %2035 = vrot.lane.b32.xlu0 %v1994_v53, %s4649_s12  ;;  %v5132_v21 = vcombine.low %v1653_v38, %v1654_v44  ;;  %v4532_v13 = vld [vmem:[#allocation2 + $0xc8] ss:$0 sps:$4 sm:$0x11]   ;;  %v1686_v54 = vld [vmem:[#allocation2 + $0xc0] sm:$0xe]  ;;  %v690_v56 = vshrl.u32 %v4197_v49, 16  ;;  %v4198_v11 = vpack.c.bf16 %v454_v55, %v454_v55 }
  0xb5   : > { %v4043_v40 = vcombine.low %v1686_v54, %v1654_v44  ;;  %v693_v60 = vshll.u32 %v4197_v49, 16  ;;  %v1203_v61 = vshrl.u32 %v5129_v50, 16  ;;  %v2003_v1 = vshll.u32 %v4532_v13, 16  ;;  %v1057_v22 = vld [vmem:[#allocation2] sm:$0xe] }
  0xb6   : > { %v1996_v63 = vshrl.u32 %v5132_v21, 16  ;;  %v1998_v0 = vshll.u32 %v5132_v21, 16  ;;  %v2133_v3 = vrot.slane %v4532_v13, 1  ;;  %v692_v10 = vrot.slane %v690_v56, 7  ;;  %v950_v42 = vld [vmem:[#allocation2 + $0x68] sm:$0x1] }
  0xb7   : > { %v2132_v62 = vrot.slane %v4043_v40, 1  ;;  %v1205_v14 = vshll.u32 %v5129_v50, 16  ;;  %v2005_v15 = vrot.slane %v2003_v1, 1  ;;  %v698_v58 = vshrl.u32 %v4198_v11, 16  ;;  %v2640_v37 = vld [vmem:[#allocation2 + $0x1c] sm:$0xf] }
  0xb8   : > { %v2000_v5 = vrot.slane %v1998_v0, 1  ;;  %2163 = vrot.lane.b32.xlu0 %v2131_v51, %s4648_s11  ;;  %v1635_v16 = vld [vmem:[#allocation2 + $0x54] sm:$0xf]  ;;  %v695_v27 = vor.u32 %v693_v60, %v692_v10  ;;  %v696_v45 = vrot.slane %v692_v10, 4  ;;  %v701_v26 = vshll.u32 %v4198_v11, 16 }
  0xb9   : > { %v1677_v17 = vld [vmem:[#allocation2 + $0x54] sm:$0xe]  ;;  %v2134_v18 = vsel %vm1474_vm10, %v2132_v62, %v2133_v3  ;;  %v1207_v28 = vrot.slane %v1205_v14, 1  ;;  %v700_v8 = vrot.slane %v698_v58, 7  ;;  %v1212_v38 = vrot.slane %v1210_v33, 1 }
  0xba   : > { %v2001_v24 = vor.u32 %v2000_v5, %v1996_v63  ;;  %v1636_v25 = vld [vmem:[#allocation2 + $0x58] sm:$0xf]  ;;  %v4534_v30 = vld [vmem:[#allocation2 + $0x5c] ss:$0 sps:$4 sm:$0x11]   ;;  %v947_v35 = vsel %vm4795_vm8, %v695_v27, %v946_v12  ;;  %v3980_v49 = vcombine.low %v1057_v22, %v5118_v34  ;;  %v5153_v63 = vcombine.low %v2639_v23, %v2640_v37 }
  0xbb   : > { %v5141_v29 = vcombine.low %v1635_v16, %v1636_v25  ;;  %v4034_v36 = vcombine.low %v1677_v17, %v1636_v25  ;;  %948 = vst [vmem:[#allocation2 + $0x60] sm:$0xf] %v947_v35  ;;  %v1208_v53 = vor.u32 %v1207_v28, %v1203_v61  ;;  %v1011_v44 = vld [vmem:[#allocation2 + $0xc] sm:$0xf]  ;;  %v1895_v51 = vshll.u32 %v4534_v30, 16 }
  0xbc   : > { %v2006_v2 = vsel %vm1201_vm11, %v2001_v24, %v2005_v15  ;;  %2165 = vrot.lane.b32.xlu0 %v2134_v18, %s4648_s11  ;;  %v703_v54 = vor.u32 %v701_v26, %v700_v8  ;;  %v5151_v55 = vld [vmem:[#allocation2 + $0x10] sm:$0xf]  ;;  %v705_v40 = vrot.slane %v700_v8, 4  ;;  %v2106_v60 = vrot.slane %v4534_v30, 1  ;;  %v2687_v62 = vld [vmem:[#allocation2 + $0x18] sm:$0xe] }
  0xbd   : > { %2037 = vrot.lane.b32.xlu1 %v2006_v2, %s4649_s12  ;;  %v1888_v13 = vshrl.u32 %v5141_v29, 16  ;;  %v1890_v48 = vshll.u32 %v5141_v29, 16  ;;  %v2105_v56 = vrot.slane %v4034_v36, 1  ;;  %v5155_v61 = vld [vmem:[#allocation2 + $0x20] ss:$0 sps:$4 sm:$0x11]   ;;  %v1213_v14 = vsel %vm1201_vm11, %v1208_v53, %v1212_v38 }
  0xbe   : > { %v1897_v0 = vrot.slane %v1895_v51, 1  ;;  %v704_v34 = vsel %vm4789_vm7, %v696_v45, %v703_v54  ;;  %v951_v1 = vsel %vm4801_vm9, %v705_v40, %v950_v42  ;;  %v1013_v11 = vld [vmem:[#allocation2 + $0x18] sm:$0xf]  ;;  %v5163_v10 = vld [vmem:[#allocation2 + $0x1c] sm:$0xf]  ;;  %v5168_v41 = vcombine.low %v1011_v44, %v5151_v55 }
  0xbf   : > { %v1892_v33 = vrot.slane %v1890_v48, 1  ;;  %949 = vst.msk [vmem:[#allocation2 + $0x64] sm:$0xf] %vm891_vm2, %v704_v34  ;;  %v2107_v3 = vsel %vm1474_vm10, %v2105_v56, %v2106_v60  ;;  %952 = vst [vmem:[#allocation2 + $0x68] sm:$0x1] %v951_v1  ;;  %v1475_v5 = vrot.slane %v3980_v49, 1  ;;  %v4112_v27 = vcombine.low %v2687_v62, %v2640_v37 }
  0xc0   : > { %2147 = vrot.lane.b32.xlu0 %v2107_v3, %s4648_s11  ;;  %6213 = vst [vmem:[#allocation3_spill] sm:$0xff] %v5168_v41  ;;  %v1476_v15 = vrot.slane %v5111_v19, 1  ;;  %v2832_v52 = vshrl.u32 %v5153_v63, 16  ;;  %v2834_v16 = vshll.u32 %v5153_v63, 16  ;;  %v2839_v18 = vshll.u32 %v5155_v61, 16 }
  0xc1   : > { %v1893_v12 = vor.u32 %v1892_v33, %v1888_v13  ;;  %v5176_v45 = vcombine.low %v1013_v11, %v5163_v10  ;;  %v5180_v23 = vld [vmem:[#allocation2 + $0x20] ss:$0 sps:$4 sm:$0x11]   ;;  %v5182_v24 = vld [vmem:[#allocation2 + $0x14] ss:$0 sps:$4 sm:$0x11]  }
  0xc2   : > { %v2836_v58 = vrot.slane %v2834_v16, 1  ;;  %v1637_v22 = vld [vmem:[#allocation2 + $0x60] sm:$0xf]  ;;  %v1477_v25 = vsel %vm1474_vm10, %v1475_v5, %v1476_v15  ;;  %v2841_v28 = vrot.slane %v2839_v18, 1  ;;  %v2641_v30 = vld [vmem:[#allocation2 + $0x24] sm:$0xf] }
  0xc3   : > { %v1898_v17 = vsel %vm1201_vm11, %v1893_v12, %v1897_v0  ;;  %6214 = vst [vmem:[#allocation4_spill] sm:$0xff] %v5176_v45  ;;  %v1678_v19 = vld [vmem:[#allocation2 + $0x60] sm:$0xe]  ;;  %v5185_v8 = vld [vmem:[#allocation2 + $0x28] sm:$0xf]  ;;  %v1217_v42 = vshll.u32 %v5168_v41, 16 }
  0xc4   : > { %2019 = vrot.lane.b32.xlu1 %v1898_v17, %s4649_s12  ;;  %1394 = vrot.lane.b32.xlu0 %v1213_v14, %s4649_s12  ;;  %v2837_v26 = vor.u32 %v2836_v58, %v2832_v52  ;;  %v3103_v36 = vrot.slane %v4112_v27, 1  ;;  %v1229_v37 = vshll.u32 %v5176_v45, 16  ;;  %v3104_v38 = vrot.slane %v5155_v61, 1  ;;  %v1059_v60 = vld [vmem:[#allocation2 + $0x18] sm:$0xe] }
  0xc5   : > { %v1227_v49 = vshrl.u32 %v5176_v45, 16  ;;  %v1234_v48 = vshll.u32 %v5180_v23, 16  ;;  %v1215_v33 = vshrl.u32 %v5168_v41, 16  ;;  %v5200_v61 = vcombine.low %v2641_v30, %v5185_v8  ;;  %v2643_v0 = vld [vmem:[#allocation2 + $0x30] sm:$0xf] }
  0xc6   : > { %v1638_v35 = vld [vmem:[#allocation2 + $0x64] sm:$0xf]  ;;  %v4536_v53 = vld [vmem:[#allocation2 + $0x68] ss:$0 sps:$4 sm:$0x11]   ;;  %v1231_v13 = vrot.slane %v1229_v37, 1  ;;  %v2842_v56 = vsel %vm1201_vm11, %v2837_v26, %v2841_v28  ;;  %v3105_v17 = vsel %vm1474_vm10, %v3103_v36, %v3104_v38  ;;  %v3982_v18 = vcombine.low %v1059_v60, %v5163_v10 }
  0xc7   : > { %v5189_v2 = vcombine.low %v1637_v22, %v1638_v35  ;;  %v4035_v44 = vcombine.low %v1678_v19, %v1638_v35  ;;  %v1907_v40 = vshll.u32 %v4536_v53, 16  ;;  %6215 = vst [vmem:[#allocation5_spill] sm:$0xff] %v5200_v61  ;;  %v5202_v34 = vld [vmem:[#allocation2 + $0x34] sm:$0xf]  ;;  %v1219_v62 = vrot.slane %v1217_v42, 1 }
  0xc8   : > { %1523 = vrot.lane.b32.xlu0 %v1477_v25, %s4648_s11  ;;  %v1222_v11 = vshll.u32 %v5182_v24, 16  ;;  %v2109_v14 = vrot.slane %v4536_v53, 1  ;;  %v1058_v5 = vld [vmem:[#allocation2 + $0xc] sm:$0xe]  ;;  %v1232_v15 = vor.u32 %v1231_v13, %v1227_v49  ;;  %v1236_v52 = vrot.slane %v1234_v48, 1  ;;  %v5223_v53 = vpop.permute.xlu1 %2151 }
  0xc9   : > { %v1900_v51 = vshrl.u32 %v5189_v2, 16  ;;  %v1902_v54 = vshll.u32 %v5189_v2, 16  ;;  %v1909_v3 = vrot.slane %v1907_v40, 1  ;;  %v2108_v12 = vrot.slane %v4035_v44, 1  ;;  %v1015_v42 = vld [vmem:[#allocation2 + $0x24] sm:$0xf] }
  0xca   : > { %v5208_v27 = vld [vmem:[#allocation2 + $0x38] ss:$0 sps:$4 sm:$0x11]   ;;  %v5211_v58 = vcombine.low %v2643_v0, %v5202_v34  ;;  %v1220_v19 = vor.u32 %v1219_v62, %v1215_v33  ;;  %v1224_v25 = vrot.slane %v1222_v11, 1  ;;  %v3981_v26 = vcombine.low %v1058_v5, %v5151_v55  ;;  %v2689_v37 = vld [vmem:[#allocation2 + $0x30] sm:$0xe] }
  0xcb   : > { %v1904_v1 = vrot.slane %v1902_v54, 1  ;;  %v5215_v28 = vld [vmem:[#allocation2 + $0x2c] ss:$0 sps:$4 sm:$0x11]   ;;  %v2110_v30 = vsel %vm1474_vm10, %v2108_v12, %v2109_v14  ;;  %v2846_v35 = vshll.u32 %v5200_v61, 16  ;;  %v1237_v10 = vsel %vm1201_vm11, %v1232_v15, %v1236_v52 }
  0xcc   : > { %3023 = vrot.lane.b32.xlu0 %v2842_v56, %s4649_s12  ;;  %6216 = vst [vmem:[#allocation6_spill] sm:$0xff] %v5211_v58  ;;  %v2858_v36 = vshll.u32 %v5211_v58, 16  ;;  %v5225_v38 = vld [vmem:[#allocation2 + $0x28] sm:$0xf]  ;;  %v1481_v55 = vrot.slane %v3982_v18, 1  ;;  %v1482_v44 = vrot.slane %v5180_v23, 1  ;;  %v1225_v0 = vsel %vm1201_vm11, %v1220_v19, %v1224_v25 }
  0xcd   : > { %v1905_v16 = vor.u32 %v1904_v1, %v1900_v51  ;;  %v2856_v49 = vshrl.u32 %v5211_v58, 16  ;;  %v2863_v13 = vshll.u32 %v5208_v27, 16  ;;  %v1017_v51 = vld [vmem:[#allocation2 + $0x30] sm:$0xf]  ;;  %v5230_v54 = vld [vmem:[#allocation2 + $0x34] sm:$0xf]  ;;  %v4114_v62 = vcombine.low %v2689_v37, %v5202_v34 }
  0xce   : > { %v2860_v48 = vrot.slane %v2858_v36, 1  ;;  %v1478_v40 = vrot.slane %v3981_v26, 1  ;;  %v1479_v56 = vrot.slane %v5182_v24, 1  ;;  %v2844_v60 = vshrl.u32 %v5200_v61, 16  ;;  %v2688_v1 = vld [vmem:[#allocation2 + $0x24] sm:$0xe] }
  0xcf   : > { %v1910_v22 = vsel %vm1201_vm11, %v1905_v16, %v1909_v3  ;;  %v2851_v33 = vshll.u32 %v5215_v28, 16  ;;  %v2848_v23 = vrot.slane %v2846_v35, 1  ;;  %v5239_v3 = vcombine.low %v1015_v42, %v5225_v38  ;;  %v5246_v5 = vld [vmem:[#allocation2 + $0x38] ss:$0 sps:$4 sm:$0x11]   ;;  %v5250_v16 = vpop.permute.xlu0 %2153 }
  0xd0   : > { %2021 = vrot.lane.b32.xlu1 %v1910_v22, %s4649_s12  ;;  %3151 = vrot.lane.b32.xlu0 %v3105_v17, %s4648_s11  ;;  %v1483_v11 = vsel %vm1474_vm10, %v1481_v55, %v1482_v44  ;;  %v2861_v24 = vor.u32 %v2860_v48, %v2856_v49  ;;  %v2865_v12 = vrot.slane %v2863_v13, 1  ;;  %v5244_v14 = vcombine.low %v1017_v51, %v5230_v54  ;;  %v5248_v15 = vld [vmem:[#allocation2 + $0x2c] ss:$0 sps:$4 sm:$0x11]   ;;  %v2645_v52 = vld [vmem:[#allocation2 + $0x3c] sm:$0xf]  ;;  %v5252_v17 = vpop.permute.xlu1 %2137 }
  0xd1   : > { %6217 = vst [vmem:[#allocation7_spill] sm:$0xff] %v5239_v3  ;;  %v1480_v18 = vsel %vm1474_vm10, %v1478_v40, %v1479_v56  ;;  %v2853_v22 = vrot.slane %v2851_v33, 1  ;;  %v4113_v34 = vcombine.low %v2688_v1, %v5185_v8  ;;  %v2647_v25 = vld [vmem:[#allocation2 + $0x48] sm:$0xf]  ;;  %v5257_v26 = vld [vmem:[#allocation2 + $0x4c] sm:$0xf] }
  0xd2   : > { %6218 = vst [vmem:[#allocation8_spill] sm:$0xff] %v5244_v14  ;;  %v1253_v19 = vshll.u32 %v5244_v14, 16  ;;  %v1241_v35 = vshll.u32 %v5239_v3, 16  ;;  %v3109_v42 = vrot.slane %v4114_v62, 1  ;;  %v3110_v36 = vrot.slane %v5208_v27, 1 }
  0xd3   : > { %v2866_v37 = vsel %vm1201_vm11, %v2861_v24, %v2865_v12  ;;  %v1251_v8 = vshrl.u32 %v5244_v14, 16  ;;  %v1258_v44 = vshll.u32 %v5246_v5, 16  ;;  %v1060_v49 = vld [vmem:[#allocation2 + $0x24] sm:$0xe]  ;;  %v1061_v13 = vld [vmem:[#allocation2 + $0x30] sm:$0xe]  ;;  %v5269_v48 = vcombine.low %v2647_v25, %v5257_v26 }
  0xd4   : > { %2149 = vrot.lane.b32.xlu1 %v2110_v30, %s4648_s11  ;;  %1398 = vrot.lane.b32.xlu0 %v1237_v10, %s4649_s12  ;;  %v2849_v30 = vor.u32 %v2848_v23, %v2844_v60  ;;  %v5262_v10 = vld [vmem:[#allocation2 + $0x40] sm:$0xf]  ;;  %v1255_v55 = vrot.slane %v1253_v19, 1  ;;  %v3106_v51 = vrot.slane %v4113_v34, 1  ;;  %v3107_v40 = vrot.slane %v5215_v28, 1  ;;  %v5283_v28 = vpop.permute.xlu0 %2135 }
  0xd5   : > { %6219 = vst [vmem:[#allocation9_spill] sm:$0xff] %v5269_v48  ;;  %v1246_v56 = vshll.u32 %v5248_v15, 16  ;;  %v5274_v60 = vcombine.low %v2645_v52, %v5262_v10  ;;  %v1021_v27 = vld [vmem:[#allocation2 + $0x48] sm:$0xf]  ;;  %v1243_v23 = vrot.slane %v1241_v35, 1  ;;  %v3111_v1 = vsel %vm1474_vm10, %v3109_v42, %v3110_v36 }
  0xd6   : > { %v2854_v33 = vsel %vm1201_vm11, %v2849_v30, %v2853_v22  ;;  %v5281_v62 = vld [vmem:[#allocation2 + $0x50] ss:$0 sps:$4 sm:$0x11]   ;;  %v1256_v24 = vor.u32 %v1255_v55, %v1251_v8  ;;  %v1260_v12 = vrot.slane %v1258_v44, 1  ;;  %v3984_v52 = vcombine.low %v1061_v13, %v5230_v54  ;;  %v5289_v22 = vld [vmem:[#allocation2 + $0x4c] sm:$0xf] }
  0xd7   : > { %6220 = vst [vmem:[#allocation10_spill] sm:$0xff] %v5274_v60  ;;  %v5291_v34 = vld [vmem:[#allocation2 + $0x44] ss:$0 sps:$4 sm:$0x11]   ;;  %v3108_v19 = vsel %vm1474_vm10, %v3106_v51, %v3107_v40  ;;  %v1248_v25 = vrot.slane %v1246_v56, 1  ;;  %v3983_v30 = vcombine.low %v1060_v49, %v5225_v38  ;;  %v2870_v35 = vshll.u32 %v5274_v60, 16 }
  0xd8   : > { %1396 = vrot.lane.b32.xlu1 %v1225_v0, %s4649_s12  ;;  %1527 = vrot.lane.b32.xlu0 %v1483_v11, %s4648_s11  ;;  %v1239_v0 = vshrl.u32 %v5239_v3, 16  ;;  %v1019_v42 = vld [vmem:[#allocation2 + $0x3c] sm:$0xf]  ;;  %v5296_v36 = vld [vmem:[#allocation2 + $0x40] sm:$0xf]  ;;  %v1488_v54 = vrot.slane %v5246_v5, 1  ;;  %v5303_v55 = vcombine.low %v1021_v27, %v5289_v22  ;;  %v1261_v38 = vsel %vm1201_vm11, %v1256_v24, %v1260_v12 }
  0xd9   : > { %v2887_v8 = vshll.u32 %v5281_v62, 16  ;;  %v2690_v44 = vld [vmem:[#allocation2 + $0x3c] sm:$0xe]  ;;  %v1487_v49 = vrot.slane %v3984_v52, 1  ;;  %v2880_v13 = vshrl.u32 %v5269_v48, 16  ;;  %v1485_v40 = vrot.slane %v5248_v15, 1 }
  0xda   : > { %v5285_v11 = vpop.permute.xlu1 %2141  ;;  %6221 = vst [vmem:[#allocation11_spill] sm:$0xff] %v5303_v55  ;;  %v5309_v56 = vcombine.low %v1019_v42, %v5296_v36  ;;  %v2868_v27 = vshrl.u32 %v5274_v60, 16  ;;  %v2875_v24 = vshll.u32 %v5291_v34, 16  ;;  %v4115_v15 = vcombine.low %v2690_v44, %v5262_v10  ;;  %v5321_v52 = vld [vmem:[#allocation2 + $0x50] ss:$0 sps:$4 sm:$0x11]  }
  0xdb   : > { %v5324_v42 = vld [vmem:[#allocation2 + $0x44] ss:$0 sps:$4 sm:$0x11]   ;;  %v1062_v60 = vld [vmem:[#allocation2 + $0x3c] sm:$0xe]  ;;  %v3113_v14 = vrot.slane %v5291_v34, 1 }
  0xdc   : > { %1525 = vrot.lane.b32.xlu1 %v1480_v18, %s4648_s11  ;;  %3027 = vrot.lane.b32.xlu0 %v2866_v37, %s4649_s12  ;;  %v2882_v18 = vshll.u32 %v5269_v48, 16  ;;  %v1244_v37 = vor.u32 %v1243_v23, %v1239_v0  ;;  %6222 = vst [vmem:[#allocation12_spill] sm:$0xff] %v5309_v56  ;;  %v1484_v23 = vrot.slane %v3983_v30, 1  ;;  %v1489_v30 = vsel %vm1474_vm10, %v1487_v49, %v1488_v54  ;;  %v2649_v61 = vld [vmem:[#allocation2 + $0x54] sm:$0xf] }
  0xdd   : > { %v2889_v48 = vrot.slane %v2887_v8, 1  ;;  %v3112_v54 = vrot.slane %v4115_v15, 1  ;;  %v5335_v8 = vld [vmem:[#allocation2 + $0x58] sm:$0xf]  ;;  %v1270_v15 = vshll.u32 %v5324_v42, 16  ;;  %vm1588_vm14 = vcmask 64512  }
  0xde   : > { %v2884_v51 = vrot.slane %v2882_v18, 1  ;;  %v5313_v5 = vpop.permute.xlu1 %2007  ;;  %v1249_v12 = vsel %vm1201_vm11, %v1244_v37, %v1248_v25  ;;  %v1277_v18 = vshll.u32 %v5303_v55, 16  ;;  %v2651_v25 = vld [vmem:[#allocation2 + $0x60] sm:$0xf]  ;;  %v5329_v37 = vld [vmem:[#allocation2 + $0x64] sm:$0xf]  ;;  %v1486_v10 = vsel %vm1474_vm10, %v1484_v23, %v1485_v40 }
  0xdf   : > { %v3116_v23 = vrot.slane %v5281_v62, 1  ;;  %v5354_v58 = vld [vmem:[#allocation2 + $0x64] sm:$0xf]  ;;  %vm2239_vm15 = vcmask 97280   ;;  %vm3653_vm0 = vcmask 1040384   ;;  %vm3655_vm1 = vcmask 25600  }
  0xe0   : > { %3025 = vrot.lane.b32.xlu1 %v2854_v33, %s4649_s12  ;;  %3155 = vrot.lane.b32.xlu0 %v3111_v1, %s4648_s11  ;;  %v2691_v33 = vld [vmem:[#allocation2 + $0x48] sm:$0xe]  ;;  %v2872_v1 = vrot.slane %v2870_v35, 1  ;;  %v2885_v35 = vor.u32 %v2884_v51, %v2880_v13  ;;  %v1279_v49 = vrot.slane %v1277_v18, 1  ;;  %v1282_v13 = vshll.u32 %v5321_v52, 16 }
  0xe1   : > { %v5311_v0 = vpop.permute.xlu0 %2155  ;;  %v4116_v3 = vcombine.low %v2691_v33, %v5257_v26  ;;  %v1275_v26 = vshrl.u32 %v5303_v55, 16  ;;  %v3985_v18 = vcombine.low %v1062_v60, %v5296_v36  ;;  %v1025_v55 = vld [vmem:[#allocation2 + $0x60] sm:$0xf]  ;;  %v3114_v60 = vsel %vm1474_vm10, %v3112_v54, %v3113_v14  ;;  %v5377_v54 = vld [vmem:[#allocation2 + $0x54] sm:$0xe] }
  0xe2   : > { %v2873_v44 = vor.u32 %v2872_v1, %v2868_v27  ;;  %v5341_v40 = vpop.permute.xlu1 %2009  ;;  %v2890_v33 = vsel %vm1201_vm11, %v2885_v35, %v2889_v48  ;;  %v1063_v27 = vld [vmem:[#allocation2 + $0x48] sm:$0xe]  ;;  %v5346_v1 = vcombine.low %v2651_v25, %v5329_v37  ;;  %v1284_v48 = vrot.slane %v1282_v13, 1  ;;  %v5359_v35 = vld [vmem:[#allocation2 + $0x68] ss:$0 sps:$4 sm:$0x11]  }
  0xe3   : > { %v3115_v34 = vrot.slane %v4116_v3, 1  ;;  %v1280_v3 = vor.u32 %v1279_v49, %v1275_v26  ;;  %v3986_v62 = vcombine.low %v1063_v27, %v5289_v22  ;;  %v4590_v25 = vld [vmem:[%s6192_s3 + $0x8] sm:$0x3f]   ;;  %v1272_v26 = vrot.slane %v1270_v15, 1 }
  0xe4   : > { %3153 = vrot.lane.b32.xlu1 %v3108_v19, %s4648_s11  ;;  %1402 = vrot.lane.b32.xlu0 %v1261_v38, %s4649_s12  ;;  %v1265_v19 = vshll.u32 %v5309_v56, 16  ;;  %v2877_v38 = vrot.slane %v2875_v24, 1  ;;  %6223 = vst [vmem:[#allocation13_spill] sm:$0xff] %v5346_v1  ;;  %v1263_v24 = vshrl.u32 %v5309_v56, 16  ;;  %v2906_v36 = vshll.u32 %v5346_v1, 16 }
  0xe5   : > { %v1490_v49 = vrot.slane %v3985_v18, 1  ;;  %v1491_v22 = vrot.slane %v5324_v42, 1  ;;  %v5369_v13 = vld [vmem:[#allocation2 + $0x5c] ss:$0 sps:$4 sm:$0x11]   ;;  %v2168_v27 = vsel %vm1555_vm12, %v4874_v4, %v5313_v5  ;;  %v5385_v42 = vcombine.low %v1025_v55, %v5354_v58  ;;  %4481 = vmatprep.subr.msk.bf16.mxu0 %vm2272_vm13, %v4590_v25  ;;  %4482 = vmatprep.subr.msk.bf16.mxu1 %vm2272_vm13, %v4590_v25 }
  0xe6   : > { %v5339_v51 = vpop.permute.xlu0 %2157  ;;  %v1494_v15 = vrot.slane %v5321_v52, 1  ;;  %v2911_v18 = vshll.u32 %v5359_v35, 16  ;;  %v2904_v56 = vshrl.u32 %v5346_v1, 16  ;;  %v2908_v41 = vrot.slane %v2906_v36, 1  ;;  %v5396_v4 = vld [vmem:[%s6192_s3 + $0x10] sm:$0x3f]  }
  0xe7   : > { %v2200_v5 = vsel %vm1588_vm14, %v2168_v27, %v5283_v28  ;;  %v2274_v52 = vsel %vm2272_vm13, %v4590_v25, 0  ;;  %v1301_v28 = vshll.u32 %v5385_v42, 16  ;;  %v2170_v36 = vsel %vm1555_vm12, %v4863_v39, %v5341_v40  ;;  %v2655_v40 = vld [vmem:[#allocation2 + $0x78] sm:$0xf] }
  0xe8   : > { %1400 = vrot.lane.b32.xlu1 %v1249_v12, %s4649_s12  ;;  %1531 = vrot.lane.b32.xlu0 %v1489_v30, %s4648_s11  ;;  %v1267_v12 = vrot.slane %v1265_v19, 1  ;;  %v5352_v30 = vcombine.low %v2649_v61, %v5335_v8  ;;  %v2878_v19 = vsel %vm1201_vm11, %v2873_v44, %v2877_v38  ;;  %v3117_v61 = vsel %vm1474_vm10, %v3115_v34, %v3116_v23  ;;  %v1023_v34 = vld [vmem:[#allocation2 + $0x54] sm:$0xf]  ;;  %v5379_v23 = vld [vmem:[#allocation2 + $0x58] sm:$0xf] }
  0xe9   : > { %4379 = vmatprep.mubr.msk.bf16.mxu0 %vm2239_vm15, %v2200_v5  ;;  %4378 = vmatpush3.bf16.msra.mxu0 %v2274_v52  ;;  %v2909_v1 = vor.u32 %v2908_v41, %v2904_v56  ;;  %v2913_v5 = vrot.slane %v2911_v18, 1  ;;  %v2202_v45 = vsel %vm1588_vm14, %v2170_v36, %v5252_v17  ;;  %v1299_v17 = vshrl.u32 %v5385_v42, 16 }
  0xea   : > { %6224 = vst [vmem:[#allocation14_spill] sm:$0xff] %v5352_v30  ;;  %v5373_v44 = vpop.permute.xlu1 %2029  ;;  %v2892_v14 = vshrl.u32 %v5352_v30, 16  ;;  %v2894_v38 = vshll.u32 %v5352_v30, 16  ;;  %v2693_v30 = vld [vmem:[#allocation2 + $0x60] sm:$0xe]  ;;  %4480 = vmatpush3.bf16.msra.mxu1 %v2274_v52  ;;  %4484 = vmatprep.subr.msk.bf16.mxu0 %vm2272_vm13, %v5396_v4  ;;  %v1303_v56 = vrot.slane %v1301_v28, 1 }
  0xeb   : > { %v3122_v52 = vrot.slane %v5359_v35, 1 }
  0xec   : > { %1529 = vrot.lane.b32.xlu1 %v1486_v10, %s4648_s11  ;;  %3031 = vrot.lane.b32.xlu0 %v2890_v33, %s4649_s12  ;;  %v1268_v10 = vor.u32 %v1267_v12, %v1263_v24  ;;  %v1285_v24 = vsel %vm1201_vm11, %v1280_v3, %v1284_v48  ;;  %v1493_v12 = vrot.slane %v3986_v62, 1  ;;  %v5407_v48 = vld [vmem:[%s6192_s3] sm:$0x3f]   ;;  %v2899_v62 = vshll.u32 %v5369_v13, 16 }
  0xed   : > { %v2896_v25 = vrot.slane %v2894_v38, 1  ;;  %4380 = vmatmul.mubr.msk.bf16.vlgmr.msra.gmra.mxu0 %vm2239_vm15, %v2202_v45  ;;  %4483 = vmatprep.subr.msk.bf16.mxu1 %vm2272_vm13, %v5407_v48  ;;  %v1304_v35 = vor.u32 %v1303_v56, %v1299_v17  ;;  %v1029_v56 = vld [vmem:[#allocation2 + $0x78] sm:$0xf] }
  0xee   : > { %v5371_v33 = vpop.permute.xlu0 %2139  ;;  %v1273_v55 = vsel %vm1201_vm11, %v1268_v10, %v1272_v26  ;;  %v4117_v10 = vcombine.low %v5377_v54, %v5335_v8  ;;  %v1495_v26 = vsel %vm1474_vm10, %v1493_v12, %v1494_v15  ;;  %v1492_v8 = vsel %vm1474_vm10, %v1490_v49, %v1491_v22  ;;  %v5446_v54 = vld [vmem:[#allocation2 + $0x70] sm:$0xf] }
  0xef   : > { %v2897_v49 = vor.u32 %v2896_v25, %v2892_v14  ;;  %v2901_v22 = vrot.slane %v2899_v62, 1  ;;  %v2914_v15 = vsel %vm1201_vm11, %v2909_v1, %v2913_v5  ;;  %v1064_v25 = vld [vmem:[#allocation2 + $0x54] sm:$0xe]  ;;  %v5468_v5 = vld [vmem:[#allocation2 + $0x80] ss:$0 sps:$4 sm:$0x11]  }
  0xf0   : > { %3029 = vrot.lane.b32.xlu1 %v2878_v19, %s4649_s12  ;;  %3159 = vrot.lane.b32.xlu0 %v3117_v61, %s4648_s11  ;;  %v5411_v19 = vcombine.low %v1023_v34, %v5379_v23  ;;  %v5413_v61 = vld [vmem:[#allocation2 + $0x68] ss:$0 sps:$4 sm:$0x11]   ;;  %v4118_v34 = vcombine.low %v2693_v30, %v5329_v37  ;;  %v3119_v37 = vrot.slane %v5369_v13, 1  ;;  %v2653_v13 = vld [vmem:[#allocation2 + $0x6c] sm:$0xf] }
  0xf1   : > { %v5436_v30 = vld [vmem:[#allocation2 + $0x5c] ss:$0 sps:$4 sm:$0x11]   ;;  %v1306_v38 = vshll.u32 %v5413_v61, 16  ;;  %v3118_v12 = vrot.slane %v4117_v10, 1  ;;  %v5463_v1 = vcombine.low %v2653_v13, %v5446_v54 }
  0xf2   : > { %v2024_v3 = vpop.permute.xlu0 %2023  ;;  %v3121_v18 = vrot.slane %v4118_v34, 1  ;;  %v1287_v14 = vshrl.u32 %v5411_v19, 16  ;;  %v2902_v34 = vsel %vm1201_vm11, %v2897_v49, %v2901_v22  ;;  %v1027_v13 = vld [vmem:[#allocation2 + $0x6c] sm:$0xf] }
  0xf3   : > { %v2012_v27 = vpop.permute.xlu1 %2011  ;;  %v2184_v39 = vsel %vm1555_vm12, %v4852_v20, %v2024_v3  ;;  %v1289_v20 = vshll.u32 %v5411_v19, 16  ;;  %v1065_v3 = vld [vmem:[#allocation2 + $0x60] sm:$0xe]  ;;  %v1308_v10 = vrot.slane %v1306_v38, 1  ;;  %v5487_v38 = vld [vmem:[#allocation2 + $0x7c] sm:$0xf] }
  0xf4   : > { %3157 = vrot.lane.b32.xlu1 %v3114_v60, %s4648_s11  ;;  %1406 = vrot.lane.b32.xlu0 %v1285_v24, %s4649_s12  ;;  %v5430_v60 = vld [vmem:[#allocation2 + $0x7c] sm:$0xf]  ;;  %v2216_v24 = vsel %vm1588_vm14, %v2184_v39, %v5223_v53  ;;  %v2172_v28 = vsel %vm1555_vm12, %v4966_v6, %v2012_v27  ;;  %v5475_v39 = vld [vmem:[#allocation2 + $0x74] ss:$0 sps:$4 sm:$0x11]  }
  0xf5   : > { %v5449_v45 = vcombine.low %v2655_v40, %v5430_v60  ;;  %4395 = vmatprep.mubr.msk.bf16.mxu1 %vm2239_vm15, %v2216_v24  ;;  %v1291_v36 = vrot.slane %v1289_v20, 1  ;;  %v2204_v6 = vsel %vm1588_vm14, %v2172_v28, %v5371_v33  ;;  %v3123_v40 = vsel %vm1474_vm10, %v3121_v18, %v3122_v52  ;;  %v5491_v24 = vld [vmem:[#allocation2 + $0x70] sm:$0xf]  ;;  %v2695_v52 = vld [vmem:[#allocation2 + $0x78] sm:$0xe] }
  0xf6   : > { %v2026_v41 = vpop.permute.xlu0 %2025  ;;  %4383 = vmatprep.mubr.msk.bf16.mxu0 %vm2239_vm15, %v2204_v6  ;;  %v3120_v20 = vsel %vm1474_vm10, %v3118_v12, %v3119_v37  ;;  %v3987_v33 = vcombine.low %v1064_v25, %v5379_v23  ;;  %v1309_v22 = vsel %vm1201_vm11, %v1304_v35, %v1308_v10  ;;  %v2935_v37 = vshll.u32 %v5468_v5, 16  ;;  %v2694_v28 = vld [vmem:[#allocation2 + $0x6c] sm:$0xe] }
  0xf7   : > { %v2186_v62 = vsel %vm1555_vm12, %v4832_v59, %v2026_v41  ;;  %v2014_v53 = vpop.permute.xlu1 %2013  ;;  %v2930_v59 = vshll.u32 %v5449_v45, 16  ;;  %v1292_v49 = vor.u32 %v1291_v36, %v1287_v14  ;;  %v2928_v23 = vshrl.u32 %v5449_v45, 16 }
  0xf8   : > { %1404 = vrot.lane.b32.xlu1 %v1273_v55, %s4649_s12  ;;  %1535 = vrot.lane.b32.xlu0 %v1495_v26, %s4648_s11  ;;  %v1294_v55 = vshll.u32 %v5436_v30, 16  ;;  %v2218_v27 = vsel %vm1588_vm14, %v2186_v62, %v5250_v16  ;;  %v2174_v41 = vsel %vm1555_vm12, %v4898_v9, %v2014_v53  ;;  %v1500_v9 = vrot.slane %v5413_v61, 1  ;;  %v5518_v53 = vld [vmem:[#allocation2 + $0x74] ss:$0 sps:$4 sm:$0x11]  }
  0xf9   : > { %4396 = vmatmul.mubr.msk.bf16.vlgmr.msra.gmra.mxu1 %vm2239_vm15, %v2218_v27  ;;  %v2206_v12 = vsel %vm1588_vm14, %v2174_v41, %v5285_v11  ;;  %v2190_v18 = vsel %vm1555_vm12, %v4935_v57, %v5373_v44  ;;  %v5504_v61 = vcombine.low %v1029_v56, %v5487_v38  ;;  %v1496_v11 = vrot.slane %v3987_v33, 1  ;;  %v2659_v27 = vld [vmem:[#allocation2 + $0x90] sm:$0xf]  ;;  %v5537_v33 = vld [vmem:[#allocation2 + $0x88] sm:$0xf] }
  0xfa   : > { %v2028_v26 = vpop.permute.xlu0 %2027  ;;  %v1296_v17 = vrot.slane %v1294_v55, 1  ;;  %4384 = vmatmul.mubr.msk.bf16.gmra.mxu0 %vm2239_vm15, %v2206_v12  ;;  %v1497_v55 = vrot.slane %v5436_v30, 1  ;;  %v2916_v62 = vshrl.u32 %v5463_v1, 16  ;;  %v2923_v44 = vshll.u32 %v5475_v39, 16 }
  0xfb   : > { %v2188_v16 = vsel %vm1555_vm12, %v4921_v46, %v2028_v26  ;;  %v2932_v46 = vrot.slane %v2930_v59, 1  ;;  %v2937_v30 = vrot.slane %v2935_v37, 1  ;;  %v4120_v36 = vcombine.low %v2695_v52, %v5430_v60  ;;  %v5525_v26 = vld [vmem:[#allocation2 + $0x80] ss:$0 sps:$4 sm:$0x11]  }
  0xfc   : > { %1533 = vrot.lane.b32.xlu1 %v1492_v8, %s4648_s11  ;;  %3035 = vrot.lane.b32.xlu0 %v2914_v15, %s4649_s12  ;;  %v3988_v8 = vcombine.low %v1065_v3, %v5354_v58  ;;  %v2918_v58 = vshll.u32 %v5463_v1, 16  ;;  %v2220_v14 = vsel %vm1588_vm14, %v2188_v16, %v5311_v0  ;;  %v5511_v3 = vcombine.low %v1027_v13, %v5491_v24  ;;  %v1067_v13 = vld [vmem:[#allocation2 + $0x78] sm:$0xe] }
  0xfd   : > { %4399 = vmatprep.mubr.msk.bf16.mxu1 %vm2239_vm15, %v2220_v14  ;;  %v2933_v0 = vor.u32 %v2932_v46, %v2928_v23  ;;  %v2222_v25 = vsel %vm1588_vm14, %v2190_v18, %v5339_v51  ;;  %v1297_v35 = vsel %vm1201_vm11, %v1292_v49, %v1296_v17  ;;  %v1498_v60 = vsel %vm1474_vm10, %v1496_v11, %v1497_v55  ;;  %v2657_v17 = vld [vmem:[#allocation2 + $0x84] sm:$0xf]  ;;  %v1066_v14 = vld [vmem:[#allocation2 + $0x6c] sm:$0xe] }
  0xfe   : > { %v1499_v15 = vrot.slane %v3988_v8, 1  ;;  %v2920_v57 = vrot.slane %v2918_v58, 1  ;;  %v1313_v59 = vshll.u32 %v5511_v3, 16  ;;  %v2925_v8 = vrot.slane %v2923_v44, 1 }
  0xff   : > { %v4119_v51 = vcombine.low %v2694_v28, %v5446_v54  ;;  %v3127_v16 = vrot.slane %v4120_v36, 1  ;;  %v3128_v56 = vrot.slane %v5468_v5, 1  ;;  %v1323_v49 = vshrl.u32 %v5504_v61, 16 }
 0x100   : > { %3033 = vrot.lane.b32.xlu1 %v2902_v34, %s4649_s12  ;;  %3163 = vrot.lane.b32.xlu0 %v3123_v40, %s4648_s11  ;;  %v1501_v10 = vsel %vm1474_vm10, %v1499_v15, %v1500_v9  ;;  %v1325_v34 = vshll.u32 %v5504_v61, 16  ;;  %v5530_v40 = vld [vmem:[#allocation2 + $0x94] sm:$0xf]  ;;  %v2921_v41 = vor.u32 %v2920_v57, %v2916_v62  ;;  %v1311_v9 = vshrl.u32 %v5511_v3, 16 }
 0x101   : > { %4400 = vmatmul.mubr.msk.bf16.gmra.mxu1 %vm2239_vm15, %v2222_v25  ;;  %v5543_v54 = vcombine.low %v2659_v27, %v5530_v40  ;;  %v1315_v23 = vrot.slane %v1313_v59, 1  ;;  %v1318_v46 = vshll.u32 %v5518_v53, 16  ;;  %v3124_v15 = vrot.slane %v4119_v51, 1  ;;  %v5558_v62 = vld [vmem:[#allocation2 + $0x98] ss:$0 sps:$4 sm:$0x11]  }
 0x102   : > { %v1327_v58 = vrot.slane %v1325_v34, 1  ;;  %v3125_v5 = vrot.slane %v5475_v39, 1  ;;  %v2926_v52 = vsel %vm1201_vm11, %v2921_v41, %v2925_v8  ;;  %v5555_v55 = vcombine.low %v2657_v17, %v5537_v33  ;;  %v5569_v59 = vld [vmem:[#allocation2 + $0x8c] ss:$0 sps:$4 sm:$0x11]  }
 0x103   : > { %v3990_v11 = vcombine.low %v1067_v13, %v5487_v38  ;;  %v2954_v28 = vshll.u32 %v5543_v54, 16  ;;  %v1316_v36 = vor.u32 %v1315_v23, %v1311_v9  ;;  %v1320_v25 = vrot.slane %v1318_v46, 1  ;;  %v5575_v8 = vld [vmem:[#allocation2 + $0x88] sm:$0xf]  ;;  %v2696_v23 = vld [vmem:[#allocation2 + $0x84] sm:$0xe] }
 0x104   : > { %3161 = vrot.lane.b32.xlu1 %v3120_v20, %s4648_s11  ;;  %1410 = vrot.lane.b32.xlu0 %v1309_v22, %s4649_s12  ;;  %v2938_v20 = vsel %vm1201_vm11, %v2933_v0, %v2937_v30  ;;  %v1330_v22 = vshll.u32 %v5525_v26, 16  ;;  %v1328_v57 = vor.u32 %v1327_v58, %v1323_v49  ;;  %v1033_v0 = vld [vmem:[#allocation2 + $0x90] sm:$0xf]  ;;  %v5563_v30 = vld [vmem:[#allocation2 + $0x94] sm:$0xf]  ;;  %v3989_v34 = vcombine.low %v1066_v14, %v5491_v24 }
 0x105   : > { %v1505_v51 = vrot.slane %v3990_v11, 1  ;;  %v5579_v41 = vcombine.low %v1033_v0, %v5563_v30  ;;  %v2956_v17 = vrot.slane %v2954_v28, 1  ;;  %v1503_v49 = vrot.slane %v5518_v53, 1 }
 0x106   : > { %v1332_v39 = vrot.slane %v1330_v22, 1  ;;  %v2697_v22 = vld [vmem:[#allocation2 + $0x90] sm:$0xe]  ;;  %v2947_v9 = vshll.u32 %v5569_v59, 16 }
 0x107   : > { %v2032_v6 = vpop.permute.xlu0 %2031 }
 0x108   : > { %1408 = vrot.lane.b32.xlu1 %v1297_v35, %s4649_s12  ;;  %1539 = vrot.lane.b32.xlu0 %v1501_v10, %s4648_s11  ;;  %v2192_v37 = vsel %vm1555_vm12, %v5022_v47, %v2032_v6  ;;  %v3129_v47 = vsel %vm1474_vm10, %v3127_v16, %v3128_v56  ;;  %v3126_v10 = vsel %vm1474_vm10, %v3124_v15, %v3125_v5  ;;  %v1031_v6 = vld [vmem:[#allocation2 + $0x84] sm:$0xf]  ;;  %v2959_v16 = vshll.u32 %v5558_v62, 16  ;;  %v5597_v5 = vld [vmem:[#allocation2 + $0x98] ss:$0 sps:$4 sm:$0x11]  }
 0x109   : > { %v1333_v24 = vsel %vm1201_vm11, %v1328_v57, %v1332_v39  ;;  %v1321_v56 = vsel %vm1201_vm11, %v1316_v36, %v1320_v25  ;;  %v5589_v46 = vcombine.low %v1031_v6, %v5575_v8  ;;  %v4121_v57 = vcombine.low %v2696_v23, %v5537_v33  ;;  %v2663_v39 = vld [vmem:[#allocation2 + $0xa8] sm:$0xf]  ;;  %v2661_v25 = vld [vmem:[#allocation2 + $0x9c] sm:$0xf] }
 0x10a   : > { %v2949_v0 = vrot.slane %v2947_v9, 1  ;;  %v1354_v33 = vshll.u32 %v5597_v5, 16 }
 0x10b   : > { %v2160_v12 = vpop.permute.xlu0 %2159  ;;  %v1337_v36 = vshll.u32 %v5589_v46, 16 }
 0x10c   : > { %v2224_v18 = vsel %vm1588_vm14, %v2192_v37, %v2160_v12  ;;  %1537 = vrot.lane.b32.xlu1 %v1498_v60, %s4648_s11  ;;  %3039 = vrot.lane.b32.xlu0 %v2938_v20, %s4649_s12  ;;  %v2942_v60 = vshll.u32 %v5555_v55, 16  ;;  %v2952_v20 = vshrl.u32 %v5543_v54, 16  ;;  %v2940_v12 = vshrl.u32 %v5555_v55, 16 }
 0x10d   : > { %4403 = vmatprep.mubr.msk.bf16.mxu1 %vm2239_vm15, %v2224_v18  ;;  %v1349_v18 = vshll.u32 %v5579_v41, 16 }
 0x10e   : > { %v2034_v44 = vpop.permute.xlu1 %2033  ;;  %v2944_v15 = vrot.slane %v2942_v60, 1  ;;  %v2957_v11 = vor.u32 %v2956_v17, %v2952_v20  ;;  %v1069_v60 = vld [vmem:[#allocation2 + $0x90] sm:$0xe]  ;;  %v1335_v20 = vshrl.u32 %v5589_v46, 16  ;;  %v1339_v17 = vrot.slane %v1337_v36, 1 }
 0x10f   : > { %v2194_v35 = vsel %vm1555_vm12, %v5044_v32, %v2034_v44  ;;  %v2162_v38 = vpop.permute.xlu0 %2161  ;;  %v1506_v32 = vrot.slane %v5525_v26, 1  ;;  %v1502_v26 = vrot.slane %v3989_v34, 1  ;;  %v5606_v44 = vld [vmem:[#allocation2 + $0xac] sm:$0xf] }
 0x110   : > { %v2226_v27 = vsel %vm1588_vm14, %v2194_v35, %v2162_v38  ;;  %3037 = vrot.lane.b32.xlu1 %v2926_v52, %s4649_s12  ;;  %3167 = vrot.lane.b32.xlu0 %v3129_v47, %s4648_s11  ;;  %v5600_v52 = vld [vmem:[#allocation2 + $0x8c] ss:$0 sps:$4 sm:$0x11]   ;;  %v2961_v47 = vrot.slane %v2959_v16, 1  ;;  %v2945_v35 = vor.u32 %v2944_v15, %v2940_v12  ;;  %v5612_v38 = vld [vmem:[#allocation2 + $0xa0] sm:$0xf] }
 0x111   : > { %4404 = vmatmul.mubr.msk.bf16.gmra.mxu1 %vm2239_vm15, %v2226_v27  ;;  %v1507_v14 = vsel %vm1474_vm10, %v1505_v51, %v1506_v32  ;;  %v1504_v28 = vsel %vm1474_vm10, %v1502_v26, %v1503_v49  ;;  %v3134_v27 = vrot.slane %v5558_v62, 1  ;;  %v5619_v51 = vcombine.low %v2663_v39, %v5606_v44  ;;  %v5630_v26 = vld [vmem:[#allocation2 + $0xb0] ss:$0 sps:$4 sm:$0x11]   ;;  %v1035_v39 = vld [vmem:[#allocation2 + $0x9c] sm:$0xf] }
 0x112   : > { %v2962_v34 = vsel %vm1201_vm11, %v2957_v11, %v2961_v47  ;;  %v3130_v32 = vrot.slane %v4121_v57, 1  ;;  %v1342_v16 = vshll.u32 %v5600_v52, 16  ;;  %v5625_v49 = vcombine.low %v2661_v25, %v5612_v38  ;;  %v5641_v11 = vld [vmem:[#allocation2 + $0xa4] ss:$0 sps:$4 sm:$0x11]  }
 0x113   : > { %v2016_v58 = vpop.permute.xlu1 %2015  ;;  %v2144_v13 = vpop.permute.xlu0 %2143  ;;  %v2978_v23 = vshll.u32 %v5619_v51, 16  ;;  %v5652_v25 = vld [vmem:[#allocation2 + $0xa0] sm:$0xf] }
 0x114   : > { %v2176_v37 = vsel %vm1555_vm12, %v5052_v7, %v2016_v58  ;;  %3165 = vrot.lane.b32.xlu1 %v3126_v10, %s4648_s11  ;;  %1414 = vrot.lane.b32.xlu0 %v1333_v24, %s4649_s12  ;;  %v4122_v7 = vcombine.low %v2697_v22, %v5530_v40  ;;  %v1347_v40 = vshrl.u32 %v5579_v41, 16  ;;  %v1351_v10 = vrot.slane %v1349_v18, 1  ;;  %v5639_v18 = vld [vmem:[#allocation2 + $0xac] sm:$0xf] }
 0x115   : > { %v2208_v53 = vsel %vm1588_vm14, %v2176_v37, %v2144_v13  ;;  %v3131_v24 = vrot.slane %v5569_v59, 1  ;;  %v1356_v22 = vrot.slane %v1354_v33, 1  ;;  %v3992_v13 = vcombine.low %v1069_v60, %v5563_v30 }
 0x116   : > { %4387 = vmatprep.mubr.msk.bf16.mxu0 %vm2239_vm15, %v2208_v53  ;;  %v3133_v6 = vrot.slane %v4122_v7, 1  ;;  %v1352_v58 = vor.u32 %v1351_v10, %v1347_v40  ;;  %v2950_v59 = vsel %vm1201_vm11, %v2945_v35, %v2949_v0  ;;  %v2475_v37 = vsel %vm2272_vm13, %v5407_v48, 0  ;;  %v1037_v53 = vld [vmem:[#allocation2 + $0xa8] sm:$0xf] }
 0x117   : > { %v3132_v12 = vsel %vm1474_vm10, %v3130_v32, %v3131_v24  ;;  %4412 = vmatpush3.bf16.msra.mxu1 %v2475_v37  ;;  %v1340_v30 = vor.u32 %v1339_v17, %v1335_v20  ;;  %v2966_v47 = vshll.u32 %v5625_v49, 16  ;;  %v1512_v7 = vrot.slane %v5597_v5, 1  ;;  %v2699_v40 = vld [vmem:[#allocation2 + $0xa8] sm:$0xe]  ;;  %v2698_v24 = vld [vmem:[#allocation2 + $0x9c] sm:$0xe] }
 0x118   : > { %1412 = vrot.lane.b32.xlu1 %v1321_v56, %s4649_s12  ;;  %1543 = vrot.lane.b32.xlu0 %v1507_v14, %s4648_s11  ;;  %v1068_v56 = vld [vmem:[#allocation2 + $0x84] sm:$0xe]  ;;  %v3135_v9 = vsel %vm1474_vm10, %v3133_v6, %v3134_v27  ;;  %v1344_v14 = vrot.slane %v1342_v16, 1  ;;  %v1357_v57 = vsel %vm1201_vm11, %v1352_v58, %v1356_v22  ;;  %v2983_v0 = vshll.u32 %v5630_v26, 16  ;;  %v2667_v37 = vld [vmem:[#allocation2 + $0xc0] sm:$0xf] }
 0x119   : > { %v3991_v15 = vcombine.low %v1068_v56, %v5575_v8  ;;  %v2976_v5 = vshrl.u32 %v5619_v51, 16  ;;  %v2980_v35 = vrot.slane %v2978_v23, 1  ;;  %v5656_v10 = vcombine.low %v1037_v53, %v5639_v18  ;;  %v5671_v17 = vld [vmem:[#allocation2 + $0xb0] ss:$0 sps:$4 sm:$0x11]  }
 0x11a   : > { %v1509_v33 = vrot.slane %v5600_v52, 1  ;;  %v2968_v6 = vrot.slane %v2966_v47, 1  ;;  %v2971_v27 = vshll.u32 %v5641_v11, 16  ;;  %v3288_v60 = vsel %vm2272_vm13, %v5396_v4, 0 }
 0x11b   : > { %v1345_v32 = vsel %vm1201_vm11, %v1340_v30, %v1344_v14  ;;  %v5668_v20 = vcombine.low %v1035_v39, %v5652_v25  ;;  %v4124_v52 = vcombine.low %v2699_v40, %v5606_v44  ;;  %v2985_v58 = vrot.slane %v2983_v0, 1  ;;  %4446 = vmatpush3.bf16.msra.mxu0 %v3288_v60  ;;  %v5675_v22 = vld [vmem:[#allocation2 + $0xa4] ss:$0 sps:$4 sm:$0x11]  }
 0x11c   : > { %1541 = vrot.lane.b32.xlu1 %v1504_v28, %s4648_s11  ;;  %3043 = vrot.lane.b32.xlu0 %v2962_v34, %s4649_s12  ;;  %v1511_v28 = vrot.slane %v3992_v13, 1  ;;  %v2964_v34 = vshrl.u32 %v5625_v49, 16  ;;  %v1373_v4 = vshll.u32 %v5656_v10, 16  ;;  %v4123_v23 = vcombine.low %v2698_v24, %v5612_v38  ;;  %v5679_v44 = vld [vmem:[#allocation2 + $0xc4] sm:$0xf] }
 0x11d   : > { %v2018_v62 = vpop.permute.xlu1 %2017  ;;  %v3140_v53 = vrot.slane %v5630_v26, 1  ;;  %v1378_v30 = vshll.u32 %v5671_v17, 16  ;;  %v5694_v0 = vcombine.low %v2667_v37, %v5679_v44  ;;  %v5708_v24 = vld [vmem:[#allocation2 + $0xc8] ss:$0 sps:$4 sm:$0x11]   ;;  %v1518_v37 = vrot.slane %v5671_v17, 1 }
 0x11e   : > { %v2178_v48 = vsel %vm1555_vm12, %v5084_v31, %v2018_v62  ;;  %v1508_v31 = vrot.slane %v3991_v15, 1  ;;  %v1513_v56 = vsel %vm1474_vm10, %v1511_v28, %v1512_v7  ;;  %v2981_v62 = vor.u32 %v2980_v35, %v2976_v5  ;;  %v2665_v7 = vld [vmem:[#allocation2 + $0xb4] sm:$0xf]  ;;  %v1071_v28 = vld [vmem:[#allocation2 + $0xa8] sm:$0xe] }
 0x11f   : > { %v3139_v15 = vrot.slane %v4124_v52, 1  ;;  %v3136_v26 = vrot.slane %v4123_v23, 1  ;;  %v1359_v35 = vshrl.u32 %v5668_v20, 16  ;;  %v3994_v60 = vcombine.low %v1071_v28, %v5639_v18  ;;  %v1039_v23 = vld [vmem:[#allocation2 + $0xb4] sm:$0xf] }
 0x120   : > { %3041 = vrot.lane.b32.xlu1 %v2950_v59, %s4649_s12  ;;  %3171 = vrot.lane.b32.xlu0 %v3135_v9, %s4648_s11  ;;  %v1510_v13 = vsel %vm1474_vm10, %v1508_v31, %v1509_v33  ;;  %v2969_v59 = vor.u32 %v2968_v6, %v2964_v34  ;;  %v2973_v9 = vrot.slane %v2971_v27, 1  ;;  %v2986_v38 = vsel %vm1201_vm11, %v2981_v62, %v2985_v58  ;;  %v1070_v33 = vld [vmem:[#allocation2 + $0x9c] sm:$0xe]  ;;  %v2700_v28 = vld [vmem:[#allocation2 + $0xb4] sm:$0xe] }
 0x121   : > { %v2146_v8 = vpop.permute.xlu1 %2145  ;;  %v1380_v27 = vrot.slane %v1378_v30, 1  ;;  %v3002_v52 = vshll.u32 %v5694_v0, 16  ;;  %v3007_v30 = vshll.u32 %v5708_v24, 16 }
 0x122   : > { %v2210_v36 = vsel %vm1588_vm14, %v2178_v48, %v2146_v8  ;;  %v5689_v48 = vld [vmem:[#allocation2 + $0xb8] sm:$0xf]  ;;  %v1371_v8 = vshrl.u32 %v5656_v10, 16  ;;  %v2974_v5 = vsel %vm1201_vm11, %v2969_v59, %v2973_v9 }
 0x123   : > { %4388 = vmatmul.mubr.msk.bf16.gmra.mxu0 %vm2239_vm15, %v2210_v36  ;;  %v3137_v36 = vrot.slane %v5641_v11, 1  ;;  %v5704_v31 = vcombine.low %v2665_v7, %v5689_v48  ;;  %v3141_v11 = vsel %vm1474_vm10, %v3139_v15, %v3140_v53  ;;  %v5724_v15 = vld [vmem:[#allocation2 + $0xb8] sm:$0xf]  ;;  %v3004_v53 = vrot.slane %v3002_v52, 1 }
 0x124   : > { %3169 = vrot.lane.b32.xlu1 %v3132_v12, %s4648_s11  ;;  %1418 = vrot.lane.b32.xlu0 %v1357_v57, %s4649_s12  ;;  %v1361_v12 = vshll.u32 %v5668_v20, 16  ;;  %v1375_v57 = vrot.slane %v1373_v4, 1  ;;  %v3993_v4 = vcombine.low %v1070_v33, %v5652_v25  ;;  %v3000_v25 = vshrl.u32 %v5694_v0, 16 }
 0x125   : > { %v2990_v59 = vshll.u32 %v5704_v31, 16  ;;  %v2988_v7 = vshrl.u32 %v5704_v31, 16 }
 0x126   : > { %v2036_v16 = vpop.permute.xlu0 %2035  ;;  %v1363_v40 = vrot.slane %v1361_v12, 1  ;;  %v1376_v6 = vor.u32 %v1375_v57, %v1371_v8 }
 0x127   : > { %v2196_v14 = vsel %vm1555_vm12, %v5100_v43, %v2036_v16  ;;  %v1366_v43 = vshll.u32 %v5675_v22, 16  ;;  %v3138_v16 = vsel %vm1474_vm10, %v3136_v26, %v3137_v36  ;;  %v5735_v26 = vcombine.low %v1039_v23, %v5724_v15 }
 0x128   : > { %1416 = vrot.lane.b32.xlu1 %v1345_v32, %s4649_s12  ;;  %1547 = vrot.lane.b32.xlu0 %v1513_v56, %s4648_s11  ;;  %v1364_v62 = vor.u32 %v1363_v40, %v1359_v35  ;;  %v1381_v9 = vsel %vm1201_vm11, %v1376_v6, %v1380_v27  ;;  %v3009_v35 = vrot.slane %v3007_v30, 1 }
 0x129   : > { %v1368_v58 = vrot.slane %v1366_v43, 1 }
 0x12a   : > { %v2164_v47 = vpop.permute.xlu0 %2163 }
 0x12b   : > { %v2228_v39 = vsel %vm1588_vm14, %v2196_v14, %v2164_v47  ;;  %v2701_v14 = vld [vmem:[#allocation2 + $0xc0] sm:$0xe]  ;;  %v1514_v47 = vrot.slane %v3993_v4, 1  ;;  %v1369_v17 = vsel %vm1201_vm11, %v1364_v62, %v1368_v58  ;;  %v3146_v62 = vrot.slane %v5708_v24, 1 }
 0x12c   : > { %4407 = vmatprep.mubr.msk.bf16.mxu1 %vm2239_vm15, %v2228_v39  ;;  %1545 = vrot.lane.b32.xlu1 %v1510_v13, %s4648_s11  ;;  %v5716_v13 = vld [vmem:[#allocation2 + $0xbc] ss:$0 sps:$4 sm:$0x11]   ;;  %v2992_v39 = vrot.slane %v2990_v59, 1  ;;  %v4126_v40 = vcombine.low %v2701_v14, %v5679_v44 }
 0x12d   : > { %3047 = vrot.lane.b32.xlu0 %v2986_v38, %s4649_s12  ;;  %v1515_v38 = vrot.slane %v5675_v22, 1  ;;  %v2995_v8 = vshll.u32 %v5716_v13, 16 }
 0x12e   : > { %v2166_v34 = vpop.permute.xlu0 %2165  ;;  %v2993_v27 = vor.u32 %v2992_v39, %v2988_v7 }
 0x12f   : > { %v2038_v32 = vpop.permute.xlu1 %2037  ;;  %v1516_v6 = vsel %vm1474_vm10, %v1514_v47, %v1515_v38 }
 0x130   : > { %v2198_v56 = vsel %vm1555_vm12, %v5132_v21, %v2038_v32  ;;  %3045 = vrot.lane.b32.xlu1 %v2974_v5, %s4649_s12  ;;  %v1517_v21 = vrot.slane %v3994_v60, 1  ;;  %v3005_v5 = vor.u32 %v3004_v53, %v3000_v25  ;;  %v2997_v60 = vrot.slane %v2995_v8, 1  ;;  %v4633_v25 = vld [vmem:[#allocation2 + $0xd4] ss:$0 sps:$4 sm:$0x11]  }
 0x131   : > { %v2230_v18 = vsel %vm1588_vm14, %v2198_v56, %v2166_v34  ;;  %3175 = vrot.lane.b32.xlu0 %v3141_v11, %s4648_s11  ;;  %v4125_v34 = vcombine.low %v2700_v28, %v5689_v48  ;;  %v4626_v11 = vld [vmem:[#allocation2 + $0xbc] ss:$0 sps:$4 sm:$0x11]   ;;  %v2670_v56 = vld [vmem:[#allocation2 + $0xd0] sm:$0xf]  ;;  %v3145_v48 = vrot.slane %v4126_v40, 1 }
 0x132   : > { %4408 = vmatmul.mubr.msk.bf16.gmra.mxu1 %vm2239_vm15, %v2230_v18  ;;  %v2148_v12 = vpop.permute.xlu0 %2147  ;;  %v1519_v36 = vsel %vm1474_vm10, %v1517_v21, %v1518_v37  ;;  %v3010_v52 = vsel %vm1201_vm11, %v3005_v5, %v3009_v35  ;;  %v3143_v18 = vrot.slane %v5716_v13, 1  ;;  %v1390_v59 = vshll.u32 %v4626_v11, 16  ;;  %v1072_v21 = vld [vmem:[#allocation2 + $0xb4] sm:$0xe]  ;;  %v2702_v5 = vld [vmem:[#allocation2 + $0xcc] sm:$0xe] }
 0x133   : > { %v3142_v4 = vrot.slane %v4125_v34, 1  ;;  %v3995_v13 = vcombine.low %v1072_v21, %v5724_v15  ;;  %v6228_v21 = vld [vmem:[#allocation5_spill] sm:$0xff] }
 0x134   : > { %3173 = vrot.lane.b32.xlu1 %v3138_v16, %s4648_s11  ;;  %v2669_v16 = vld [vmem:[#allocation2 + $0xcc] sm:$0xf]  ;;  %v1392_v14 = vrot.slane %v1390_v59, 1 }
 0x135   : > { %1422 = vrot.lane.b32.xlu0 %v1381_v9, %s4649_s12  ;;  %v1383_v9 = vshrl.u32 %v5735_v26, 16  ;;  %v5759_v37 = vcombine.low %v2669_v16, %v2670_v56  ;;  %v3144_v53 = vsel %vm1474_vm10, %v3142_v4, %v3143_v18  ;;  %v1520_v8 = vrot.slane %v3995_v13, 1  ;;  %v6226_v16 = vld [vmem:[#allocation3_spill] sm:$0xff] }
 0x136   : > { %v2020_v57 = vpop.permute.xlu1 %2019  ;;  %v1395_v22 = vpop.permute.xlu0 %1394 }
 0x137   : > { %v2180_v43 = vsel %vm1555_vm12, %v5141_v29, %v2020_v57  ;;  %v1385_v29 = vshll.u32 %v5735_v26, 16  ;;  %v1557_v44 = vsel %vm1555_vm12, %v5129_v50, %v1395_v22  ;;  %v2998_v50 = vsel %vm1201_vm11, %v2993_v27, %v2997_v60 }
 0x138   : > { %v2212_v33 = vsel %vm1588_vm14, %v2180_v43, %v2148_v12  ;;  %1420 = vrot.lane.b32.xlu1 %v1369_v17, %s4649_s12  ;;  %v3147_v12 = vsel %vm1474_vm10, %v3145_v48, %v3146_v62  ;;  %v3014_v47 = vshll.u32 %v5759_v37, 16  ;;  %v1521_v17 = vrot.slane %v4626_v11, 1 }
 0x139   : > { %4391 = vmatprep.mubr.msk.bf16.mxu0 %vm2239_vm15, %v2212_v33  ;;  %1551 = vrot.lane.b32.xlu0 %v1519_v36, %s4648_s11  ;;  %v1387_v23 = vrot.slane %v1385_v29, 1  ;;  %v3019_v57 = vshll.u32 %v4633_v25, 16  ;;  %v3012_v15 = vshrl.u32 %v5759_v37, 16  ;;  %v4127_v27 = vcombine.low %v2702_v5, %v2670_v56  ;;  %v6232_v5 = vld [vmem:[#allocation10_spill] sm:$0xff] }
 0x13a   : > { %v1524_v32 = vpop.permute.xlu0 %1523  ;;  %v3016_v28 = vrot.slane %v3014_v47, 1  ;;  %v1522_v34 = vsel %vm1474_vm10, %v1520_v8, %v1521_v17  ;;  %v6229_v47 = vld [vmem:[#allocation8_spill] sm:$0xff] }
 0x13b   : > { %v1590_v58 = vsel %vm1588_vm14, %v1557_v44, %v1524_v32  ;;  %v1388_v30 = vor.u32 %v1387_v23, %v1383_v9  ;;  %v3148_v29 = vrot.slane %v4127_v27, 1  ;;  %v3149_v44 = vrot.slane %v4633_v25, 1  ;;  %v6225_v32 = vld [vmem:[#allocation4_spill] sm:$0xff]  ;;  %v6227_v9 = vld [vmem:[#allocation6_spill] sm:$0xff] }
 0x13c   : > { %1549 = vrot.lane.b32.xlu1 %v1516_v6, %s4648_s11  ;;  %4413 = vmatprep.mubr.msk.bf16.mxu1 %vm2239_vm15, %v1590_v58  ;;  %v3017_v11 = vor.u32 %v3016_v28, %v3012_v15  ;;  %v3021_v6 = vrot.slane %v3019_v57, 1 }
 0x13d   : > { %3051 = vrot.lane.b32.xlu0 %v3010_v52, %s4649_s12  ;;  %v1393_v39 = vsel %vm1201_vm11, %v1388_v30, %v1392_v14  ;;  %v3150_v18 = vsel %vm1474_vm10, %v3148_v29, %v3149_v44 }
 0x13e   : > { %v3024_v24 = vpop.permute.xlu0 %3023  ;;  %v3022_v60 = vsel %vm1201_vm11, %v3017_v11, %v3021_v6 }
 0x13f   : > { %v3184_v36 = vsel %vm1555_vm12, %v5153_v63, %v3024_v24 }
 0x140   : > { %3049 = vrot.lane.b32.xlu1 %v2998_v50, %s4649_s12 }
 0x141   : > { %3179 = vrot.lane.b32.xlu0 %v3147_v12, %s4648_s11 }
 0x142   : > { %v2022_v38 = vpop.permute.xlu1 %2021  ;;  %v3152_v7 = vpop.permute.xlu0 %3151 }
 0x143   : > { %v2182_v43 = vsel %vm1555_vm12, %v5189_v2, %v2022_v38  ;;  %v3216_v35 = vsel %vm1588_vm14, %v3184_v36, %v3152_v7  ;;  %v6230_v7 = vld [vmem:[#allocation7_spill] sm:$0xff] }
 0x144   : > { %3177 = vrot.lane.b32.xlu1 %v3144_v53, %s4648_s11 }
 0x146   : > { %v2150_v22 = vpop.permute.xlu1 %2149  ;;  %v1399_v40 = vpop.permute.xlu0 %1398 }
 0x147   : > { %v2214_v33 = vsel %vm1588_vm14, %v2182_v43, %v2150_v22  ;;  %v1561_v52 = vsel %vm1555_vm12, %v6225_v32, %v1399_v40  ;;  %v6231_v43 = vld [vmem:[#allocation9_spill] sm:$0xff] }
 0x148   : > { %1424 = vrot.lane.b32.xlu1 %v1393_v39, %s4649_s12  ;;  %4392 = vmatmul.mubr.msk.bf16.gmra.mxu0 %vm2239_vm15, %v2214_v33 }
 0x149   : > { %4447 = vmatprep.mubr.msk.bf16.mxu0 %vm2239_vm15, %v3216_v35 }
 0x14a   : > { %v1397_v63 = vpop.permute.xlu1 %1396  ;;  %v1528_v2 = vpop.permute.xlu0 %1527 }
 0x14b   : > { %v1559_v48 = vsel %vm1555_vm12, %v6226_v16, %v1397_v63  ;;  %v1594_v58 = vsel %vm1588_vm14, %v1561_v52, %v1528_v2  ;;  %v6233_v63 = vld [vmem:[#allocation11_spill] sm:$0xff] }
 0x14c   : > { %1553 = vrot.lane.b32.xlu1 %v1522_v34, %s4648_s11 }
 0x14e   : > { %v1526_v62 = vpop.permute.xlu1 %1525  ;;  %v3028_v56 = vpop.permute.xlu0 %3027 }
 0x14f   : > { %v1592_v4 = vsel %vm1588_vm14, %v1559_v48, %v1526_v62  ;;  %v3188_v23 = vsel %vm1555_vm12, %v6227_v9, %v3028_v56 }
 0x150   : > { %3053 = vrot.lane.b32.xlu1 %v3022_v60, %s4649_s12  ;;  %4414 = vmatmul.mubr.msk.bf16.vlgmr.msra.gmra.mxu1 %vm2239_vm15, %v1592_v4  ;;  %v6234_v60 = vld [vmem:[#allocation12_spill] sm:$0xff]  ;;  %v6236_v4 = vld [vmem:[#allocation14_spill] sm:$0xff] }
 0x151   : > { %4417 = vmatprep.mubr.msk.bf16.mxu1 %vm2239_vm15, %v1594_v58  ;;  %v6235_v58 = vld [vmem:[#allocation13_spill] sm:$0xff] }
 0x152   : > { %v3026_v59 = vpop.permute.xlu1 %3025  ;;  %v3156_v50 = vpop.permute.xlu0 %3155 }
 0x153   : > { %v3186_v24 = vsel %vm1555_vm12, %v6228_v21, %v3026_v59  ;;  %v3220_v13 = vsel %vm1588_vm14, %v3188_v23, %v3156_v50 }
 0x154   : > { %3181 = vrot.lane.b32.xlu1 %v3150_v18, %s4648_s11 }
 0x156   : > { %v3154_v12 = vpop.permute.xlu1 %3153  ;;  %v1403_v25 = vpop.permute.xlu0 %1402 }
 0x157   : > { %v3218_v53 = vsel %vm1588_vm14, %v3186_v24, %v3154_v12  ;;  %v1565_v38 = vsel %vm1555_vm12, %v6229_v47, %v1403_v25 }
 0x158   : > { %4448 = vmatmul.mubr.msk.bf16.vlgmr.msra.gmra.mxu0 %vm2239_vm15, %v3218_v53 }
 0x159   : > { %4451 = vmatprep.mubr.msk.bf16.mxu0 %vm2239_vm15, %v3220_v13 }
 0x15a   : > { %v1401_v30 = vpop.permute.xlu1 %1400  ;;  %v1532_v14 = vpop.permute.xlu0 %1531 }
 0x15b   : > { %v1563_v8 = vsel %vm1555_vm12, %v6230_v7, %v1401_v30  ;;  %v1598_v57 = vsel %vm1588_vm14, %v1565_v38, %v1532_v14 }
 0x15e   : > { %v1530_v17 = vpop.permute.xlu1 %1529  ;;  %v3032_v39 = vpop.permute.xlu0 %3031 }
 0x15f   : > { %v1596_v15 = vsel %vm1588_vm14, %v1563_v8, %v1530_v17  ;;  %v3192_v22 = vsel %vm1555_vm12, %v6231_v43, %v3032_v39 }
 0x160   : > { %4418 = vmatmul.mubr.msk.bf16.gmra.mxu1 %vm2239_vm15, %v1596_v15 }
 0x161   : > { %4421 = vmatprep.mubr.msk.bf16.mxu1 %vm2239_vm15, %v1598_v57 }
 0x162   : > { %v3030_v28 = vpop.permute.xlu1 %3029  ;;  %v3160_v36 = vpop.permute.xlu0 %3159 }
 0x163   : > { %v3190_v35 = vsel %vm1555_vm12, %v6232_v5, %v3030_v28  ;;  %v3224_v33 = vsel %vm1588_vm14, %v3192_v22, %v3160_v36 }
 0x166   : > { %v3158_v40 = vpop.permute.xlu1 %3157  ;;  %v1407_v34 = vpop.permute.xlu0 %1406 }
 0x167   : > { %v3222_v11 = vsel %vm1588_vm14, %v3190_v35, %v3158_v40  ;;  %v1569_v2 = vsel %vm1555_vm12, %v6233_v63, %v1407_v34 }
 0x168   : > { %4452 = vmatmul.mubr.msk.bf16.gmra.mxu0 %vm2239_vm15, %v3222_v11 }
 0x169   : > { %4455 = vmatprep.mubr.msk.bf16.mxu0 %vm2239_vm15, %v3224_v33 }
 0x16a   : > { %v1405_v6 = vpop.permute.xlu1 %1404  ;;  %v1536_v27 = vpop.permute.xlu0 %1535 }
 0x16b   : > { %v1567_v29 = vsel %vm1555_vm12, %v6234_v60, %v1405_v6  ;;  %v1602_v32 = vsel %vm1588_vm14, %v1569_v2, %v1536_v27 }
 0x16e   : > { %v1534_v44 = vpop.permute.xlu1 %1533  ;;  %v3036_v52 = vpop.permute.xlu0 %3035 }
 0x16f   : > { %v1600_v16 = vsel %vm1588_vm14, %v1567_v29, %v1534_v44  ;;  %v3196_v56 = vsel %vm1555_vm12, %v6235_v58, %v3036_v52 }
 0x170   : > { %4422 = vmatmul.mubr.msk.bf16.gmra.mxu1 %vm2239_vm15, %v1600_v16 }
 0x171   : > { %4425 = vmatprep.mubr.msk.bf16.mxu1 %vm2239_vm15, %v1602_v32 }
 0x172   : > { %v3034_v48 = vpop.permute.xlu1 %3033  ;;  %v3164_v62 = vpop.permute.xlu0 %3163 }
 0x173   : > { %v3194_v18 = vsel %vm1555_vm12, %v6236_v4, %v3034_v48  ;;  %v3228_v50 = vsel %vm1588_vm14, %v3196_v56, %v3164_v62 }
 0x176   : > { %v3162_v59 = vpop.permute.xlu1 %3161  ;;  %v1411_v9 = vpop.permute.xlu0 %1410 }
 0x177   : > { %v3226_v23 = vsel %vm1588_vm14, %v3194_v18, %v3162_v59  ;;  %v1573_v12 = vsel %vm1555_vm12, %v5385_v42, %v1411_v9 }
 0x178   : > { %4456 = vmatmul.mubr.msk.bf16.gmra.mxu0 %vm2239_vm15, %v3226_v23 }
 0x179   : > { %4459 = vmatprep.mubr.msk.bf16.mxu0 %vm2239_vm15, %v3228_v50 }
 0x17a   : > { %v1409_v21 = vpop.permute.xlu1 %1408  ;;  %v1540_v24 = vpop.permute.xlu0 %1539 }
 0x17b   : > { %v1571_v13 = vsel %vm1555_vm12, %v5411_v19, %v1409_v21  ;;  %v1606_v53 = vsel %vm1588_vm14, %v1573_v12, %v1540_v24 }
 0x17e   : > { %v1538_v25 = vpop.permute.xlu1 %1537  ;;  %v3040_v30 = vpop.permute.xlu0 %3039 }
 0x17f   : > { %v1604_v14 = vsel %vm1588_vm14, %v1571_v13, %v1538_v25  ;;  %v3200_v7 = vsel %vm1555_vm12, %v5449_v45, %v3040_v30 }
 0x180   : > { %4426 = vmatmul.mubr.msk.bf16.gmra.mxu1 %vm2239_vm15, %v1604_v14 }
 0x181   : > { %4429 = vmatprep.mubr.msk.bf16.mxu1 %vm2239_vm15, %v1606_v53 }
 0x182   : > { %v3038_v47 = vpop.permute.xlu1 %3037  ;;  %v3168_v38 = vpop.permute.xlu0 %3167 }
 0x183   : > { %v3198_v42 = vsel %vm1555_vm12, %v5463_v1, %v3038_v47  ;;  %v3232_v19 = vsel %vm1588_vm14, %v3200_v7, %v3168_v38 }
 0x186   : > { %v3166_v8 = vpop.permute.xlu1 %3165  ;;  %v1415_v17 = vpop.permute.xlu0 %1414 }
 0x187   : > { %v3230_v57 = vsel %vm1588_vm14, %v3198_v42, %v3166_v8  ;;  %v1577_v28 = vsel %vm1555_vm12, %v5504_v61, %v1415_v17 }
 0x188   : > { %4460 = vmatmul.mubr.msk.bf16.gmra.mxu0 %vm2239_vm15, %v3230_v57 }
 0x189   : > { %4463 = vmatprep.mubr.msk.bf16.mxu0 %vm2239_vm15, %v3232_v19 }
 0x18a   : > { %v1413_v39 = vpop.permute.xlu1 %1412  ;;  %v1544_v15 = vpop.permute.xlu0 %1543 }
 0x18b   : > { %v1575_v45 = vsel %vm1555_vm12, %v5511_v3, %v1413_v39  ;;  %v1610_v1 = vsel %vm1588_vm14, %v1577_v28, %v1544_v15 }
 0x18e   : > { %v1542_v36 = vpop.permute.xlu1 %1541  ;;  %v3044_v43 = vpop.permute.xlu0 %3043 }
 0x18f   : > { %v1608_v22 = vsel %vm1588_vm14, %v1575_v45, %v1542_v36  ;;  %v3204_v40 = vsel %vm1555_vm12, %v5543_v54, %v3044_v43 }
 0x190   : > { %4430 = vmatmul.mubr.msk.bf16.gmra.mxu1 %vm2239_vm15, %v1608_v22 }
 0x191   : > { %4433 = vmatprep.mubr.msk.bf16.mxu1 %vm2239_vm15, %v1610_v1 }
 0x192   : > { %v3042_v5 = vpop.permute.xlu1 %3041  ;;  %v3172_v35 = vpop.permute.xlu0 %3171 }
 0x193   : > { %v3202_v61 = vsel %vm1555_vm12, %v5555_v55, %v3042_v5  ;;  %v3236_v3 = vsel %vm1588_vm14, %v3204_v40, %v3172_v35 }
 0x196   : > { %v3170_v33 = vpop.permute.xlu1 %3169  ;;  %v1419_v34 = vpop.permute.xlu0 %1418 }
 0x197   : > { %v3234_v11 = vsel %vm1588_vm14, %v3202_v61, %v3170_v33  ;;  %v1581_v63 = vsel %vm1555_vm12, %v5579_v41, %v1419_v34 }
 0x198   : > { %4464 = vmatmul.mubr.msk.bf16.gmra.mxu0 %vm2239_vm15, %v3234_v11 }
 0x199   : > { %4467 = vmatprep.mubr.msk.bf16.mxu0 %vm2239_vm15, %v3236_v3 }
 0x19a   : > { %v1417_v6 = vpop.permute.xlu1 %1416  ;;  %v1548_v27 = vpop.permute.xlu0 %1547 }
 0x19b   : > { %v1579_v54 = vsel %vm1555_vm12, %v5589_v46, %v1417_v6  ;;  %v1614_v55 = vsel %vm1588_vm14, %v1581_v63, %v1548_v27 }
 0x19e   : > { %v1546_v2 = vpop.permute.xlu1 %1545 }
 0x19f   : > { %v3048_v60 = vpop.permute.xlu0 %3047  ;;  %v1612_v29 = vsel %vm1588_vm14, %v1579_v54, %v1546_v2 }
 0x1a0   : > { %4434 = vmatmul.mubr.msk.bf16.gmra.mxu1 %vm2239_vm15, %v1612_v29  ;;  %v3208_v52 = vsel %vm1555_vm12, %v5619_v51, %v3048_v60 }
 0x1a1   : > { %4437 = vmatprep.mubr.msk.bf16.mxu1 %vm2239_vm15, %v1614_v55 }
 0x1a2   : > { %v3046_v44 = vpop.permute.xlu1 %3045 }
 0x1a3   : > { %v3176_v32 = vpop.permute.xlu0 %3175  ;;  %v3206_v41 = vsel %vm1555_vm12, %v5625_v49, %v3046_v44 }
 0x1a4   : > { %v3240_v46 = vsel %vm1588_vm14, %v3208_v52, %v3176_v32 }
 0x1a6   : > { %v3174_v16 = vpop.permute.xlu1 %3173 }
 0x1a7   : > { %v1423_v48 = vpop.permute.xlu0 %1422  ;;  %v3238_v62 = vsel %vm1588_vm14, %v3206_v41, %v3174_v16 }
 0x1a8   : > { %4468 = vmatmul.mubr.msk.bf16.gmra.mxu0 %vm2239_vm15, %v3238_v62  ;;  %v1585_v4 = vsel %vm1555_vm12, %v5656_v10, %v1423_v48 }
 0x1a9   : > { %4471 = vmatprep.mubr.msk.bf16.mxu0 %vm2239_vm15, %v3240_v46 }
 0x1aa   : > { %v1421_v58 = vpop.permute.xlu1 %1420 }
 0x1ab   : > { %v1552_v56 = vpop.permute.xlu0 %1551  ;;  %v1583_v51 = vsel %vm1555_vm12, %v5668_v20, %v1421_v58 }
 0x1ac   : > { %v1618_v49 = vsel %vm1588_vm14, %v1585_v4, %v1552_v56 }
 0x1ae   : > { %v1550_v18 = vpop.permute.xlu1 %1549 }
 0x1af   : > { %v1616_v59 = vsel %vm1588_vm14, %v1583_v51, %v1550_v18  ;;  %v3052_v50 = vpop.permute.xlu0 %3051 }
 0x1b0   : > { %4438 = vmatmul.mubr.msk.bf16.gmra.mxu1 %vm2239_vm15, %v1616_v59  ;;  %v3212_v21 = vsel %vm1555_vm12, %v5694_v0, %v3052_v50 }
 0x1b1   : > { %4441 = vmatprep.mubr.msk.bf16.mxu1 %vm2239_vm15, %v1618_v49 }
 0x1b2   : > { %v3050_v9 = vpop.permute.xlu1 %3049 }
 0x1b3   : > { %v3180_v23 = vpop.permute.xlu0 %3179  ;;  %v3210_v10 = vsel %vm1555_vm12, %v5704_v31, %v3050_v9 }
 0x1b4   : > { %v3244_v20 = vsel %vm1588_vm14, %v3212_v21, %v3180_v23 }
 0x1b6   : > { %v3178_v24 = vpop.permute.xlu1 %3177 }
 0x1b7   : > { %v3242_v12 = vsel %vm1588_vm14, %v3210_v10, %v3178_v24 }
 0x1b8   : > { %4472 = vmatmul.mubr.msk.bf16.gmra.mxu0 %vm2239_vm15, %v3242_v12 }
 0x1b9   : > { %4475 = vmatprep.mubr.msk.bf16.mxu0 %vm2239_vm15, %v3244_v20  ;;  %v5905_v38 = vpop.f32.mrf.mxu1 }
 0x1ba   : > { %v1425_v13 = vpop.permute.xlu1 %1424 }
 0x1bb   : > { %v1587_v25 = vsel %vm1555_vm12, %v5735_v26, %v1425_v13  ;;  %v5907_v7 = vpop.f32.mrf.mxu1  ;;  %v4381_v26 = vpop.f32.mrf.mxu0 }
 0x1bd   : > { %v5909_v42 = vpop.f32.mrf.mxu1  ;;  %v2310_v19 = vpop.f32.mrf.mxu0 }
 0x1be   : > { %v1554_v53 = vpop.permute.xlu1 %1553 }
 0x1bf   : > { %v1620_v30 = vsel %vm1588_vm14, %v1587_v25, %v1554_v53  ;;  %v5911_v8 = vpop.f32.mrf.mxu1  ;;  %v4382_v57 = vpop.f32.mrf.mxu0 }
 0x1c0   : > { %4442 = vmatmul.mubr.msk.bf16.gmra.mxu1 %vm2239_vm15, %v1620_v30 }
 0x1c1   : > { %v5913_v17 = vpop.f32.mrf.mxu1 }
 0x1c2   : > { %v3054_v0 = vpop.permute.xlu1 %3053 }
 0x1c3   : > { %v3214_v31 = vsel %vm1555_vm12, %v5759_v37, %v3054_v0  ;;  %v5915_v39 = vpop.f32.mrf.mxu1  ;;  %v2313_v37 = vpop.f32.mrf.mxu0 }
 0x1c5   : > { %v5917_v15 = vpop.f32.mrf.mxu1  ;;  %v4385_v28 = vpop.f32.mrf.mxu0 }
 0x1c6   : > { %v3182_v14 = vpop.permute.xlu1 %3181 }
 0x1c7   : > { %v3246_v47 = vsel %vm1588_vm14, %v3214_v31, %v3182_v14  ;;  %v5919_v45 = vpop.f32.mrf.mxu1  ;;  %v2326_v36 = vpop.f32.mrf.mxu0 }
 0x1c8   : > { %4476 = vmatmul.mubr.msk.bf16.gmra.mxu0 %vm2239_vm15, %v3246_v47 }
 0x1c9   : > { %v4386_v43 = vpop.f32.mrf.mxu0 }
 0x1cb   : > { %v2329_v5 = vpop.f32.mrf.mxu0 }
 0x1d1   : > { %v5921_v1 = vpop.f32.mrf.mxu1 }
 0x1d3   : > { %v5923_v22 = vpop.f32.mrf.mxu1 }
 0x1d5   : > { %v5927_v40 = vpop.f32.mrf.mxu1 }
 0x1d7   : > { %v5931_v33 = vpop.f32.mrf.mxu1 }
 0x1e3   : > { %v5925_v35 = vpop.f32.mrf.mxu0 }
 0x1e5   : > { %v5929_v61 = vpop.f32.mrf.mxu0 }
 0x1e7   : > { %v5935_v34 = vpop.f32.mrf.mxu0 }
 0x1e9   : > { %v5939_v6 = vpop.f32.mrf.mxu0 }
 0x1f2   : > { %v5933_v3 = vpop.f32.mrf.mxu1 }
 0x1f4   : > { %v5937_v11 = vpop.f32.mrf.mxu1 }
 0x1f6   : > { %v5941_v27 = vpop.f32.mrf.mxu1 }
 0x1f8   : > { %v5945_v54 = vpop.f32.mrf.mxu1 }
 0x208   : > { %v5943_v63 = vpop.f32.mrf.mxu0 }
 0x20a   : > { %v5947_v2 = vpop.f32.mrf.mxu0 }
 0x20c   : > { %v5949_v60 = vpop.f32.mrf.mxu0 }
 0x20e   : > { %v5951_v44 = vpop.f32.mrf.mxu0 }
 0x210   : > { %v4415_v55 = vpop.f32.mrf.mxu1 }
 0x211   : > { %v2520_v52 = vadd.f32 %v4415_v55, %v4381_v26 }
 0x212   : > { %v2511_v29 = vpop.f32.mrf.mxu1 }
 0x213   : > { %v2512_v16 = vadd.f32 %v2511_v29, %v2310_v19 }
 0x214   : > { %v4416_v32 = vpop.f32.mrf.mxu1 }
 0x215   : > { %v2523_v4 = vadd.f32 %v4416_v32, %v4382_v57 }
 0x216   : > { %v2514_v48 = vpop.f32.mrf.mxu1 }
 0x217   : > { %v2515_v18 = vadd.f32 %v2514_v48, %v2313_v37 }
 0x218   : > { %v4449_v41 = vpop.f32.mrf.mxu0 }
 0x219   : > { %v5953_v46 = vadd.f32 %v4449_v41, %v2520_v52 }
 0x21a   : > { %v3324_v62 = vpop.f32.mrf.mxu0 }
 0x21b   : > { %v4217_v58 = vpack.c.bf16 %v5953_v46, %v5953_v46  ;;  %v3451_v56 = vadd.f32 %v3324_v62, %v2512_v16  ;;  %v3486_v25 = vsel %vm1555_vm12, %v5953_v46, 0.0 }
 0x21c   : > { %v4450_v51 = vpop.f32.mrf.mxu0 }
 0x21d   : > { %3787 = vst.msk [vmem:[%s4696_s28 + $0x8] sm:$0xf] %vm891_vm2, %v4217_v58  ;;  %v4215_v49 = vpack.c.bf16 %v3451_v56, %v3451_v56  ;;  %v5959_v59 = vadd.f32 %v4450_v51, %v2523_v4  ;;  %v3483_v10 = vsel %vm1555_vm12, %v3451_v56, 0.0 }
 0x21e   : > { %v3327_v50 = vpop.f32.mrf.mxu0 }
 0x21f   : > { %3785 = vst.msk [vmem:[%s4696_s28] sm:$0xf] %vm891_vm2, %v4215_v49  ;;  %v3452_v9 = vadd.f32 %v3327_v50, %v2515_v18  ;;  %v4218_v23 = vpack.c.bf16 %v5959_v59, %v5959_v59  ;;  %v3488_v30 = vsel %vm1555_vm12, %v5959_v59, 0.0 }
 0x220   : > { %v4419_v21 = vpop.f32.mrf.mxu1 }
 0x221   : > { %v3484_v24 = vsel %vm1555_vm12, %v3452_v9, 0.0  ;;  %v4216_v20 = vpack.c.bf16 %v3452_v9, %v3452_v9  ;;  %3788 = vst.msk [vmem:[%s4696_s28 + $0xc] sm:$0xf] %vm891_vm2, %v4218_v23  ;;  %v2536_v14 = vadd.f32 %v4419_v21, %v4385_v28  ;;  %v3553_v49 = vmul.f32 %v3452_v9, %v3452_v9 }
 0x222   : > { %v3485_v12 = vadd.f32 %v3484_v24, %v3483_v10  ;;  %v2527_v13 = vpop.f32.mrf.mxu1  ;;  %v3552_v24 = vmul.f32 %v3451_v56, %v3451_v56 }
 0x223   : > { %3786 = vst.msk [vmem:[%s4696_s28 + $0x4] sm:$0xf] %vm891_vm2, %v4216_v20  ;;  %v2528_v26 = vadd.f32 %v2527_v13, %v2326_v36 }
 0x224   : > { %v3487_v53 = vadd.f32 %v3486_v25, %v3485_v12  ;;  %v4420_v0 = vpop.f32.mrf.mxu1 }
 0x225   : > { %v2539_v32 = vadd.f32 %v4420_v0, %v4386_v43 }
 0x226   : > { %v5975_v31 = vadd.f32 %v3488_v30, %v3487_v53  ;;  %v2530_v57 = vpop.f32.mrf.mxu1  ;;  %v3554_v30 = vmul.f32 %v5953_v46, %v5953_v46 }
 0x227   : > { %v2531_v41 = vadd.f32 %v2530_v57, %v2329_v5 }
 0x228   : > { %v4453_v47 = vpop.f32.mrf.mxu0 }
 0x229   : > { %v5977_v19 = vadd.f32 %v4453_v47, %v2536_v14 }
 0x22a   : > { %v3340_v37 = vpop.f32.mrf.mxu0 }
 0x22b   : > { %v4221_v55 = vpack.c.bf16 %v5977_v19, %v5977_v19  ;;  %v3455_v29 = vadd.f32 %v3340_v37, %v2528_v26  ;;  %v3587_v37 = vsel %vm1555_vm12, %v3554_v30, 0.0 }
 0x22c   : > { %v4454_v52 = vpop.f32.mrf.mxu0 }
 0x22d   : > { %3791 = vst.msk [vmem:[%s4696_s28 + $0x18] sm:$0xf] %vm891_vm2, %v4221_v55  ;;  %v4219_v16 = vpack.c.bf16 %v3455_v29, %v3455_v29  ;;  %v5983_v48 = vadd.f32 %v4454_v52, %v2539_v32  ;;  %v3555_v55 = vmul.f32 %v5959_v59, %v5959_v59  ;;  %v3556_v46 = vmul.f32 %v3455_v29, %v3455_v29 }
 0x22e   : > { %v3343_v28 = vpop.f32.mrf.mxu0  ;;  %v3490_v52 = vsel %vm1555_vm12, %v3455_v29, 0.0 }
 0x22f   : > { %3789 = vst.msk [vmem:[%s4696_s28 + $0x10] sm:$0xf] %vm891_vm2, %v4219_v16  ;;  %v3456_v36 = vadd.f32 %v3343_v28, %v2531_v41  ;;  %v4222_v62 = vpack.c.bf16 %v5983_v48, %v5983_v48  ;;  %v3589_v28 = vsel %vm1555_vm12, %v3555_v55, 0.0 }
 0x230   : > { %v4423_v58 = vpop.f32.mrf.mxu1 }
 0x231   : > { %v4220_v4 = vpack.c.bf16 %v3456_v36, %v3456_v36  ;;  %3792 = vst.msk [vmem:[%s4696_s28 + $0x1c] sm:$0xf] %vm891_vm2, %v4222_v62  ;;  %v2552_v5 = vadd.f32 %v4423_v58, %v5925_v35  ;;  %v3585_v35 = vsel %vm1555_vm12, %v3553_v49, 0.0  ;;  %v3557_v41 = vmul.f32 %v3456_v36, %v3456_v36 }
 0x232   : > { %v2543_v51 = vpop.f32.mrf.mxu1  ;;  %v3591_v62 = vsel %vm1555_vm12, %v3556_v46, 0.0  ;;  %v3492_v58 = vsel %vm1555_vm12, %v3456_v36, 0.0  ;;  %v3558_v36 = vmul.f32 %v5977_v19, %v5977_v19 }
 0x233   : > { %3790 = vst.msk [vmem:[%s4696_s28 + $0x14] sm:$0xf] %vm891_vm2, %v4220_v4  ;;  %v2544_v50 = vadd.f32 %v2543_v51, %v5929_v61  ;;  %v3491_v51 = vadd.f32 %v3490_v52, %v5975_v31 }
 0x234   : > { %v4424_v43 = vpop.f32.mrf.mxu1  ;;  %v3595_v30 = vsel %vm1555_vm12, %v3558_v36, 0.0 }
 0x235   : > { %v2555_v13 = vadd.f32 %v4424_v43, %v5935_v34  ;;  %v3584_v34 = vsel %vm1555_vm12, %v3552_v24, 0.0 }
 0x236   : > { %v2546_v21 = vpop.f32.mrf.mxu1  ;;  %v3586_v14 = vadd.f32 %v3585_v35, %v3584_v34  ;;  %v3559_v34 = vmul.f32 %v5983_v48, %v5983_v48 }
 0x237   : > { %v2547_v9 = vadd.f32 %v2546_v21, %v5939_v6 }
 0x238   : > { %v4457_v18 = vpop.f32.mrf.mxu0  ;;  %v3588_v32 = vadd.f32 %v3587_v37, %v3586_v14 }
 0x239   : > { %v5995_v23 = vadd.f32 %v4457_v18, %v2552_v5  ;;  %v3593_v5 = vsel %vm1555_vm12, %v3557_v41, 0.0 }
 0x23a   : > { %v3356_v10 = vpop.f32.mrf.mxu0  ;;  %v3590_v43 = vadd.f32 %v3589_v28, %v3588_v32  ;;  %v3597_v32 = vsel %vm1555_vm12, %v3559_v34, 0.0 }
 0x23b   : > { %v4225_v20 = vpack.c.bf16 %v5995_v23, %v5995_v23  ;;  %v5999_v12 = vadd.f32 %v3356_v10, %v2544_v50  ;;  %v3493_v50 = vadd.f32 %v3492_v58, %v3491_v51 }
 0x23c   : > { %v4458_v25 = vpop.f32.mrf.mxu0  ;;  %v3592_v49 = vadd.f32 %v3591_v62, %v3590_v43 }
 0x23d   : > { %3795 = vst.msk [vmem:[%s4696_s28 + $0x28] sm:$0xf] %vm891_vm2, %v4225_v20  ;;  %v4223_v61 = vpack.c.bf16 %v5999_v12, %v5999_v12  ;;  %v6008_v56 = vadd.f32 %v4458_v25, %v2555_v13 }
 0x23e   : > { %v3359_v53 = vpop.f32.mrf.mxu0  ;;  %v3594_v24 = vadd.f32 %v3593_v5, %v3592_v49  ;;  %v3502_v5 = vsel %vm1555_vm12, %v5995_v23, 0.0 }
 0x23f   : > { %3793 = vst.msk [vmem:[%s4696_s28 + $0x20] sm:$0xf] %vm891_vm2, %v4223_v61  ;;  %v3460_v0 = vadd.f32 %v3359_v53, %v2547_v9  ;;  %v4226_v6 = vpack.c.bf16 %v6008_v56, %v6008_v56  ;;  %v3563_v36 = vmul.f32 %v6008_v56, %v6008_v56 }
 0x240   : > { %v4427_v47 = vpop.f32.mrf.mxu1 }
 0x241   : > { %v4224_v26 = vpack.c.bf16 %v3460_v0, %v3460_v0  ;;  %3796 = vst.msk [vmem:[%s4696_s28 + $0x2c] sm:$0xf] %vm891_vm2, %v4226_v6  ;;  %v2568_v4 = vadd.f32 %v4427_v47, %v5943_v63  ;;  %v3496_v47 = vsel %vm1555_vm12, %v5983_v48, 0.0  ;;  %v3500_v41 = vsel %vm1555_vm12, %v3460_v0, 0.0 }
 0x242   : > { %v2559_v57 = vpop.f32.mrf.mxu1 }
 0x243   : > { %3794 = vst.msk [vmem:[%s4696_s28 + $0x24] sm:$0xf] %vm891_vm2, %v4224_v26  ;;  %v2560_v18 = vadd.f32 %v2559_v57, %v5947_v2  ;;  %v3494_v2 = vsel %vm1555_vm12, %v5977_v19, 0.0  ;;  %v3596_v19 = vadd.f32 %v3595_v30, %v3594_v24  ;;  %v3498_v26 = vsel %vm1555_vm12, %v5999_v12, 0.0 }
 0x244   : > { %v4428_v16 = vpop.f32.mrf.mxu1  ;;  %v3495_v9 = vadd.f32 %v3494_v2, %v3493_v50  ;;  %v3561_v57 = vmul.f32 %v3460_v0, %v3460_v0 }
 0x245   : > { %v2571_v20 = vadd.f32 %v4428_v16, %v5949_v60  ;;  %v3560_v60 = vmul.f32 %v5999_v12, %v5999_v12  ;;  %v3598_v28 = vadd.f32 %v3597_v32, %v3596_v19  ;;  %v3562_v12 = vmul.f32 %v5995_v23, %v5995_v23 }
 0x246   : > { %v2562_v21 = vpop.f32.mrf.mxu1  ;;  %v3497_v55 = vadd.f32 %v3496_v47, %v3495_v9  ;;  %v3601_v48 = vsel %vm1555_vm12, %v3561_v57, 0.0 }
 0x247   : > { %v2563_v25 = vadd.f32 %v2562_v21, %v5951_v44  ;;  %v3599_v52 = vsel %vm1555_vm12, %v3560_v60, 0.0  ;;  %v3603_v49 = vsel %vm1555_vm12, %v3562_v12, 0.0  ;;  %v3605_v60 = vsel %vm1555_vm12, %v3563_v36, 0.0 }
 0x248   : > { %v4461_v59 = vpop.f32.mrf.mxu0  ;;  %v3499_v16 = vadd.f32 %v3498_v26, %v3497_v55  ;;  %v3600_v62 = vadd.f32 %v3599_v52, %v3598_v28 }
 0x249   : > { %v6032_v29 = vadd.f32 %v4461_v59, %v2568_v4 }
 0x24a   : > { %v3372_v10 = vpop.f32.mrf.mxu0  ;;  %v3501_v58 = vadd.f32 %v3500_v41, %v3499_v16  ;;  %v3602_v43 = vadd.f32 %v3601_v48, %v3600_v62 }
 0x24b   : > { %v4229_v63 = vpack.c.bf16 %v6032_v29, %v6032_v29  ;;  %v3463_v31 = vadd.f32 %v3372_v10, %v2560_v18  ;;  %v3510_v32 = vsel %vm1555_vm12, %v6032_v29, 0.0 }
 0x24c   : > { %v4462_v13 = vpop.f32.mrf.mxu0  ;;  %v3503_v50 = vadd.f32 %v3502_v5, %v3501_v58  ;;  %v3604_v23 = vadd.f32 %v3603_v49, %v3602_v43 }
 0x24d   : > { %3799 = vst.msk [vmem:[%s4696_s28 + $0x38] sm:$0xf] %vm891_vm2, %v4229_v63  ;;  %v4227_v35 = vpack.c.bf16 %v3463_v31, %v3463_v31  ;;  %v6044_v61 = vadd.f32 %v4462_v13, %v2571_v20  ;;  %v3564_v63 = vmul.f32 %v3463_v31, %v3463_v31  ;;  %v3506_v2 = vsel %vm1555_vm12, %v3463_v31, 0.0 }
 0x24e   : > { %v3375_v53 = vpop.f32.mrf.mxu0 }
 0x24f   : > { %3797 = vst.msk [vmem:[%s4696_s28 + $0x30] sm:$0xf] %vm891_vm2, %v4227_v35  ;;  %v3464_v44 = vadd.f32 %v3375_v53, %v2563_v25  ;;  %v4230_v14 = vpack.c.bf16 %v6044_v61, %v6044_v61  ;;  %v3567_v52 = vmul.f32 %v6044_v61, %v6044_v61  ;;  %v3512_v62 = vsel %vm1555_vm12, %v6044_v61, 0.0 }
 0x250   : > { %v4431_v6 = vpop.f32.mrf.mxu1 }
 0x251   : > { %v4228_v37 = vpack.c.bf16 %v3464_v44, %v3464_v44  ;;  %3800 = vst.msk [vmem:[%s4696_s28 + $0x3c] sm:$0xf] %vm891_vm2, %v4230_v14  ;;  %v2584_v51 = vadd.f32 %v4431_v6, %v5905_v38  ;;  %v3565_v25 = vmul.f32 %v3464_v44, %v3464_v44  ;;  %v3613_v5 = vsel %vm1555_vm12, %v3567_v52, 0.0 }
 0x252   : > { %v2575_v46 = vpop.f32.mrf.mxu1 }
 0x253   : > { %3798 = vst.msk [vmem:[%s4696_s28 + $0x34] sm:$0xf] %vm891_vm2, %v4228_v37  ;;  %v2576_v0 = vadd.f32 %v2575_v46, %v5907_v7  ;;  %v3504_v7 = vsel %vm1555_vm12, %v6008_v56, 0.0  ;;  %v3607_v56 = vsel %vm1555_vm12, %v3564_v63, 0.0  ;;  %v3609_v47 = vsel %vm1555_vm12, %v3565_v25, 0.0 }
 0x254   : > { %v4432_v4 = vpop.f32.mrf.mxu1  ;;  %v3505_v53 = vadd.f32 %v3504_v7, %v3503_v50 }
 0x255   : > { %v2587_v20 = vadd.f32 %v4432_v4, %v5909_v42  ;;  %v3508_v42 = vsel %vm1555_vm12, %v3464_v44, 0.0  ;;  %v3566_v44 = vmul.f32 %v6032_v29, %v6032_v29 }
 0x256   : > { %v2578_v21 = vpop.f32.mrf.mxu1  ;;  %v3507_v19 = vadd.f32 %v3506_v2, %v3505_v53 }
 0x257   : > { %v2579_v35 = vadd.f32 %v2578_v21, %v5911_v8  ;;  %v3606_v8 = vadd.f32 %v3605_v60, %v3604_v23  ;;  %v3611_v28 = vsel %vm1555_vm12, %v3566_v44, 0.0 }
 0x258   : > { %v4465_v59 = vpop.f32.mrf.mxu0  ;;  %v3509_v37 = vadd.f32 %v3508_v42, %v3507_v19 }
 0x259   : > { %v6073_v18 = vadd.f32 %v4465_v59, %v2584_v51  ;;  %v3608_v57 = vadd.f32 %v3607_v56, %v3606_v8 }
 0x25a   : > { %v3388_v10 = vpop.f32.mrf.mxu0  ;;  %v3511_v41 = vadd.f32 %v3510_v32, %v3509_v37 }
 0x25b   : > { %v4233_v38 = vpack.c.bf16 %v6073_v18, %v6073_v18  ;;  %v3467_v24 = vadd.f32 %v3388_v10, %v2576_v0  ;;  %v3610_v46 = vadd.f32 %v3609_v47, %v3608_v57 }
 0x25c   : > { %v4466_v13 = vpop.f32.mrf.mxu0  ;;  %v3513_v0 = vadd.f32 %v3512_v62, %v3511_v41 }
 0x25d   : > { %3803 = vst.msk [vmem:[%s4696_s28 + $0x48] sm:$0xf] %vm891_vm2, %v4233_v38  ;;  %v4231_v9 = vpack.c.bf16 %v3467_v24, %v3467_v24  ;;  %v6087_v30 = vadd.f32 %v4466_v13, %v2587_v20  ;;  %v3568_v48 = vmul.f32 %v3467_v24, %v3467_v24  ;;  %v3612_v58 = vadd.f32 %v3611_v28, %v3610_v46 }
 0x25e   : > { %v3391_v34 = vpop.f32.mrf.mxu0  ;;  %v3514_v51 = vsel %vm1555_vm12, %v3467_v24, 0.0 }
 0x25f   : > { %3801 = vst.msk [vmem:[%s4696_s28 + $0x40] sm:$0xf] %vm891_vm2, %v4231_v9  ;;  %v3468_v31 = vadd.f32 %v3391_v34, %v2579_v35  ;;  %v4234_v14 = vpack.c.bf16 %v6087_v30, %v6087_v30  ;;  %v3615_v21 = vsel %vm1555_vm12, %v3568_v48, 0.0  ;;  %v3515_v36 = vadd.f32 %v3514_v51, %v3513_v0 }
 0x260   : > { %v4435_v6 = vpop.f32.mrf.mxu1  ;;  %v3614_v63 = vadd.f32 %v3613_v5, %v3612_v58  ;;  %v3570_v35 = vmul.f32 %v6073_v18, %v6073_v18  ;;  %v3571_v19 = vmul.f32 %v6087_v30, %v6087_v30 }
 0x261   : > { %v4232_v26 = vpack.c.bf16 %v3468_v31, %v3468_v31  ;;  %3804 = vst.msk [vmem:[%s4696_s28 + $0x4c] sm:$0xf] %vm891_vm2, %v4234_v14  ;;  %v2600_v12 = vadd.f32 %v4435_v6, %v5913_v17  ;;  %v3569_v43 = vmul.f32 %v3468_v31, %v3468_v31  ;;  %v3516_v17 = vsel %vm1555_vm12, %v3468_v31, 0.0 }
 0x262   : > { %v2591_v55 = vpop.f32.mrf.mxu1  ;;  %v3616_v20 = vadd.f32 %v3615_v21, %v3614_v63  ;;  %v3517_v13 = vadd.f32 %v3516_v17, %v3515_v36  ;;  %v3619_v31 = vsel %vm1555_vm12, %v3570_v35, 0.0  ;;  %v3520_v6 = vsel %vm1555_vm12, %v6087_v30, 0.0 }
 0x263   : > { %3802 = vst.msk [vmem:[%s4696_s28 + $0x44] sm:$0xf] %vm891_vm2, %v4232_v26  ;;  %v2592_v29 = vadd.f32 %v2591_v55, %v5915_v39  ;;  %v3617_v39 = vsel %vm1555_vm12, %v3569_v43, 0.0  ;;  %v3621_v37 = vsel %vm1555_vm12, %v3571_v19, 0.0 }
 0x264   : > { %v4436_v16 = vpop.f32.mrf.mxu1  ;;  %v3618_v9 = vadd.f32 %v3617_v39, %v3616_v20 }
 0x265   : > { %v2603_v38 = vadd.f32 %v4436_v16, %v5917_v15 }
 0x266   : > { %v2594_v49 = vpop.f32.mrf.mxu1  ;;  %v3620_v14 = vadd.f32 %v3619_v31, %v3618_v9 }
 0x267   : > { %v2595_v7 = vadd.f32 %v2594_v49, %v5919_v45  ;;  %v3518_v45 = vsel %vm1555_vm12, %v6073_v18, 0.0 }
 0x268   : > { %v4469_v4 = vpop.f32.mrf.mxu0  ;;  %v3519_v56 = vadd.f32 %v3518_v45, %v3517_v13  ;;  %v3622_v52 = vadd.f32 %v3621_v37, %v3620_v14 }
 0x269   : > { %v3473_v59 = vadd.f32 %v4469_v4, %v2600_v12 }
 0x26a   : > { %v3404_v50 = vpop.f32.mrf.mxu0  ;;  %v3521_v26 = vadd.f32 %v3520_v6, %v3519_v56 }
 0x26b   : > { %v4237_v61 = vpack.c.bf16 %v3473_v59, %v3473_v59  ;;  %v3471_v10 = vadd.f32 %v3404_v50, %v2592_v29  ;;  %v3574_v4 = vmul.f32 %v3473_v59, %v3473_v59  ;;  %v3526_v0 = vsel %vm1555_vm12, %v3473_v59, 0.0 }
 0x26c   : > { %v4470_v24 = vpop.f32.mrf.mxu0 }
 0x26d   : > { %3807 = vst.msk [vmem:[%s4696_s28 + $0x58] sm:$0xf] %vm891_vm2, %v4237_v61  ;;  %v4235_v23 = vpack.c.bf16 %v3471_v10, %v3471_v10  ;;  %v3474_v2 = vadd.f32 %v4470_v24, %v2603_v38  ;;  %v3572_v8 = vmul.f32 %v3471_v10, %v3471_v10  ;;  %v3522_v47 = vsel %vm1555_vm12, %v3471_v10, 0.0 }
 0x26e   : > { %v3407_v25 = vpop.f32.mrf.mxu0  ;;  %v3523_v32 = vadd.f32 %v3522_v47, %v3521_v26  ;;  %v3627_v61 = vsel %vm1555_vm12, %v3574_v4, 0.0 }
 0x26f   : > { %3805 = vst.msk [vmem:[%s4696_s28 + $0x50] sm:$0xf] %vm891_vm2, %v4235_v23  ;;  %v3472_v15 = vadd.f32 %v3407_v25, %v2595_v7  ;;  %v4238_v53 = vpack.c.bf16 %v3474_v2, %v3474_v2  ;;  %v3623_v55 = vsel %vm1555_vm12, %v3572_v8, 0.0  ;;  %v3575_v10 = vmul.f32 %v3474_v2, %v3474_v2 }
 0x270   : > { %v4439_v34 = vpop.f32.mrf.mxu1  ;;  %v3624_v48 = vadd.f32 %v3623_v55, %v3622_v52 }
 0x271   : > { %v4236_v60 = vpack.c.bf16 %v3472_v15, %v3472_v15  ;;  %3808 = vst.msk [vmem:[%s4696_s28 + $0x5c] sm:$0xf] %vm891_vm2, %v4238_v53  ;;  %v3573_v18 = vmul.f32 %v3472_v15, %v3472_v15  ;;  %v3524_v44 = vsel %vm1555_vm12, %v3472_v15, 0.0  ;;  %v2616_v46 = vadd.f32 %v4439_v34, %v5921_v1 }
 0x272   : > { %v2607_v42 = vpop.f32.mrf.mxu1  ;;  %v3525_v12 = vadd.f32 %v3524_v44, %v3523_v32  ;;  %v3629_v13 = vsel %vm1555_vm12, %v3575_v10, 0.0 }
 0x273   : > { %3806 = vst.msk [vmem:[%s4696_s28 + $0x54] sm:$0xf] %vm891_vm2, %v4236_v60  ;;  %v3625_v16 = vsel %vm1555_vm12, %v3573_v18, 0.0  ;;  %v2608_v30 = vadd.f32 %v2607_v42, %v5923_v22 }
 0x274   : > { %v4440_v57 = vpop.f32.mrf.mxu1  ;;  %v3626_v29 = vadd.f32 %v3625_v16, %v3624_v48  ;;  %v3527_v50 = vadd.f32 %v3526_v0, %v3525_v12 }
 0x275   : > { %v2619_v1 = vadd.f32 %v4440_v57, %v5927_v40 }
 0x276   : > { %v2610_v62 = vpop.f32.mrf.mxu1  ;;  %v3628_v63 = vadd.f32 %v3627_v61, %v3626_v29 }
 0x277   : > { %v2611_v49 = vadd.f32 %v2610_v62, %v5931_v33  ;;  %v3528_v33 = vsel %vm1555_vm12, %v3474_v2, 0.0 }
 0x278   : > { %v4473_v41 = vpop.f32.mrf.mxu0  ;;  %v3529_v23 = vadd.f32 %v3528_v33, %v3527_v50  ;;  %v3630_v9 = vadd.f32 %v3629_v13, %v3628_v63 }
 0x279   : > { %v3477_v28 = vadd.f32 %v4473_v41, %v2616_v46 }
 0x27a   : > { %v3420_v58 = vpop.f32.mrf.mxu0 }
 0x27b   : > { %v4241_v51 = vpack.c.bf16 %v3477_v28, %v3477_v28  ;;  %v3475_v43 = vadd.f32 %v3420_v58, %v2608_v30  ;;  %v3578_v60 = vmul.f32 %v3477_v28, %v3477_v28  ;;  %v3534_v19 = vsel %vm1555_vm12, %v3477_v28, 0.0 }
 0x27c   : > { %v4474_v5 = vpop.f32.mrf.mxu0 }
 0x27d   : > { %3811 = vst.msk [vmem:[%s4696_s28 + $0x68] sm:$0xf] %vm891_vm2, %v4241_v51  ;;  %v4239_v22 = vpack.c.bf16 %v3475_v43, %v3475_v43  ;;  %v3478_v21 = vadd.f32 %v4474_v5, %v2619_v1  ;;  %v3576_v36 = vmul.f32 %v3475_v43, %v3475_v43  ;;  %v3530_v24 = vsel %vm1555_vm12, %v3475_v43, 0.0 }
 0x27e   : > { %v3423_v17 = vpop.f32.mrf.mxu0  ;;  %v3531_v15 = vadd.f32 %v3530_v24, %v3529_v23  ;;  %v3635_v26 = vsel %vm1555_vm12, %v3578_v60, 0.0 }
 0x27f   : > { %3809 = vst.msk [vmem:[%s4696_s28 + $0x60] sm:$0xf] %vm891_vm2, %v4239_v22  ;;  %v3476_v40 = vadd.f32 %v3423_v17, %v2611_v49  ;;  %v4242_v38 = vpack.c.bf16 %v3478_v21, %v3478_v21  ;;  %v3631_v25 = vsel %vm1555_vm12, %v3576_v36, 0.0  ;;  %v3579_v57 = vmul.f32 %v3478_v21, %v3478_v21 }
 0x280   : > { %v4443_v59 = vpop.f32.mrf.mxu1  ;;  %v3632_v53 = vadd.f32 %v3631_v25, %v3630_v9  ;;  %v3536_v44 = vsel %vm1555_vm12, %v3478_v21, 0.0 }
 0x281   : > { %v3577_v39 = vmul.f32 %v3476_v40, %v3476_v40  ;;  %v4240_v7 = vpack.c.bf16 %v3476_v40, %v3476_v40  ;;  %3812 = vst.msk [vmem:[%s4696_s28 + $0x6c] sm:$0xf] %vm891_vm2, %v4242_v38  ;;  %v3532_v35 = vsel %vm1555_vm12, %v3476_v40, 0.0  ;;  %v2632_v56 = vadd.f32 %v4443_v59, %v5933_v3 }
 0x282   : > { %v2623_v20 = vpop.f32.mrf.mxu1  ;;  %v3533_v34 = vadd.f32 %v3532_v35, %v3531_v15  ;;  %v3637_v12 = vsel %vm1555_vm12, %v3579_v57, 0.0 }
 0x283   : > { %3810 = vst.msk [vmem:[%s4696_s28 + $0x64] sm:$0xf] %vm891_vm2, %v4240_v7  ;;  %v3633_v2 = vsel %vm1555_vm12, %v3577_v39, 0.0  ;;  %v2624_v8 = vadd.f32 %v2623_v20, %v5937_v11 }
 0x284   : > { %v4444_v45 = vpop.f32.mrf.mxu1  ;;  %v3634_v42 = vadd.f32 %v3633_v2, %v3632_v53  ;;  %v3535_v6 = vadd.f32 %v3534_v19, %v3533_v34 }
 0x285   : > { %v2635_v46 = vadd.f32 %v4444_v45, %v5941_v27 }
 0x286   : > { %v2626_v47 = vpop.f32.mrf.mxu1  ;;  %v3636_v3 = vadd.f32 %v3635_v26, %v3634_v42  ;;  %v3537_v30 = vadd.f32 %v3536_v44, %v3535_v6 }
 0x287   : > { %v2627_v52 = vadd.f32 %v2626_v47, %v5945_v54 }
 0x288   : > { %v4477_v31 = vpop.f32.mrf.mxu0  ;;  %v3638_v54 = vadd.f32 %v3637_v12, %v3636_v3 }
 0x289   : > { %v3481_v14 = vadd.f32 %v4477_v31, %v2632_v56 }
 0x28a   : > { %v3436_v18 = vpop.f32.mrf.mxu0 }
 0x28b   : > { %v4245_v37 = vpack.c.bf16 %v3481_v14, %v3481_v14  ;;  %v3479_v55 = vadd.f32 %v3436_v18, %v2624_v8  ;;  %v3582_v51 = vmul.f32 %v3481_v14, %v3481_v14  ;;  %v3542_v49 = vsel %vm1555_vm12, %v3481_v14, 0.0 }
 0x28c   : > { %v4478_v32 = vpop.f32.mrf.mxu0 }
 0x28d   : > { %3815 = vst.msk [vmem:[%s4696_s28 + $0x78] sm:$0xf] %vm891_vm2, %v4245_v37  ;;  %v3538_v11 = vsel %vm1555_vm12, %v3479_v55, 0.0  ;;  %v3580_v41 = vmul.f32 %v3479_v55, %v3479_v55  ;;  %v4243_v16 = vpack.c.bf16 %v3479_v55, %v3479_v55  ;;  %v3482_v28 = vadd.f32 %v4478_v32, %v2635_v46 }
 0x28e   : > { %v3439_v48 = vpop.f32.mrf.mxu0  ;;  %v3539_v58 = vadd.f32 %v3538_v11, %v3537_v30  ;;  %v3643_v61 = vsel %vm1555_vm12, %v3582_v51, 0.0 }
 0x28f   : > { %v3639_v62 = vsel %vm1555_vm12, %v3580_v41, 0.0  ;;  %3813 = vst.msk [vmem:[%s4696_s28 + $0x70] sm:$0xf] %vm891_vm2, %v4243_v16  ;;  %v3480_v27 = vadd.f32 %v3439_v48, %v2627_v52  ;;  %v4246_v4 = vpack.c.bf16 %v3482_v28, %v3482_v28  ;;  %v3583_v22 = vmul.f32 %v3482_v28, %v3482_v28 }
 0x290   : > { %v3640_v5 = vadd.f32 %v3639_v62, %v3638_v54  ;;  %v3544_v10 = vsel %vm1555_vm12, %v3482_v28, 0.0 }
 0x291   : > { %v3540_v43 = vsel %vm1555_vm12, %v3480_v27, 0.0  ;;  %v3581_v29 = vmul.f32 %v3480_v27, %v3480_v27  ;;  %v4244_v1 = vpack.c.bf16 %v3480_v27, %v3480_v27  ;;  %3816 = vst.msk [vmem:[%s4696_s28 + $0x7c] sm:$0xf] %vm891_vm2, %v4246_v4  ;;  %v3645_v63 = vsel %vm1555_vm12, %v3583_v22, 0.0 }
 0x292   : > { %v3541_v0 = vadd.f32 %v3540_v43, %v3539_v58 }
 0x293   : > { %v3641_v50 = vsel %vm1555_vm12, %v3581_v29, 0.0  ;;  %3814 = vst.msk [vmem:[%s4696_s28 + $0x74] sm:$0xf] %vm891_vm2, %v4244_v1 }
 0x294   : > { %v3543_v21 = vadd.f32 %v3542_v49, %v3541_v0  ;;  %v3642_v17 = vadd.f32 %v3641_v50, %v3640_v5 }
 0x296   : > { %v3545_v36 = vadd.f32 %v3544_v10, %v3543_v21  ;;  %v3644_v40 = vadd.f32 %v3643_v61, %v3642_v17 }
 0x298   : > { %v3546_v38 = vrot.slane %v3545_v36, 4  ;;  %v3646_v59 = vadd.f32 %v3645_v63, %v3644_v40 }
 0x29a   : > { %v3547_v33 = vadd.f32 %v3546_v38, %v3545_v36  ;;  %v3647_v24 = vrot.slane %v3646_v59, 4 }
 0x29c   : > { %v3548_v39 = vrot.slane %v3547_v33, 2  ;;  %v3648_v7 = vadd.f32 %v3647_v24, %v3646_v59 }
 0x29e   : > { %v3549_v23 = vadd.f32 %v3548_v39, %v3547_v33  ;;  %v3649_v20 = vrot.slane %v3648_v7, 2 }
 0x2a0   : > { %v3550_v13 = vrot.slane %v3549_v23, 1  ;;  %v3650_v25 = vadd.f32 %v3649_v20, %v3648_v7 }
 0x2a2   : > { %v3651_v35 = vrot.slane %v3650_v25, 1  ;;  %v3551_v15 = vadd.f32 %v3550_v13, %v3549_v23 }
 0x2a4   : > { %v3652_v9 = vadd.f32 %v3651_v35, %v3650_v25 }
 0x2a6   : > { %v3654_v2 = vsel %vm3653_vm0, %v3551_v15, %v3652_v9 }
 0x2a7   : > { %3656 = vst.msk [vmem:[%s4701_s6] sm:$0x3] %vm3655_vm1, %v3654_v2 }
 0x2a8 PF: > { %s16_s18 = sadd.s32 1, %s4645_s18  }
 0x2a9   : > { %p13_p5 = scmp.ge.s32.totalorder %s16_s18, 4  }
 0x2ab   :  { %15 = sbr.rel (!%p13_p5) target bundleno = 1 (0x1), region = 86 }

</bundles_post_ra>
